<compile_context>
chip_gen: v7x
topology: tpu7x:2x2x1
jax: 0.10.0
libtpu: 0.0.40
codegen_flags: <defaults>
</compile_context>

<pallas_src>
import numpy as np
import jax
import jax.numpy as jnp
from jax.experimental import pallas as pl
from jax.experimental.pallas import tpu as pltpu

EPS = 1e-5          # torch.nn.BatchNorm2d default eps
NEG_SLOPE = 0.01    # torch.nn.LeakyReLU default negative_slope
MXU_DTYPE = jnp.float32   # set to jnp.bfloat16 on v6e/v7x (f32 accumulate kept)

_OFFSETS = tuple((dy, dx) for dy in (-1, 0, 1) for dx in (-1, 0, 1))


def _mx(a):
    return a if MXU_DTYPE == jnp.float32 else a.astype(MXU_DTYPE)


def _round_up(x, m):
    return (x + m - 1) // m * m


# ----------------------------------------------------------------------------
# Host-precomputed constants (passed as kernel inputs, built once per build)
# ----------------------------------------------------------------------------
def _host_masks(shape):
    """(9, M) f32 boundary-validity masks for the 9 conv taps (center = 1)."""
    n_, H, W = shape
    M = n_ * H * W
    col = np.arange(M)
    xx = col % W
    yy = (col // W) % H
    rows = []
    for dy, dx in _OFFSETS:
        ok = np.ones(M, dtype=bool)
        if dy == -1:
            ok &= yy >= 1
        elif dy == 1:
            ok &= yy <= H - 2
        if dx == -1:
            ok &= xx >= 1
        elif dx == 1:
            ok &= xx <= W - 2
        rows.append(ok.astype(np.float32))
    return np.stack(rows, axis=0)


def _host_pool(shape):
    """AvgPool2d(2,2) as an (M_in, M_out) selection matrix."""
    n_, H, W = shape
    Ho, Wo = H // 2, W // 2
    Mi, Mo = n_ * H * W, n_ * Ho * Wo
    P = np.zeros((Mi, Mo), np.float32)
    ri = np.arange(Mi)
    ni, yi, xi = ri // (H * W), (ri // W) % H, ri % W
    cj = ni * (Ho * Wo) + (yi // 2) * Wo + (xi // 2)
    P[ri, cj] = 0.25
    return P


def _host_up(shape):
    """Nearest-neighbour 2x upsample as an (M_low, M_high) selection matrix."""
    n_, H, W = shape
    Ho, Wo = 2 * H, 2 * W
    Mi, Mo = n_ * H * W, n_ * Ho * Wo
    U = np.zeros((Mi, Mo), np.float32)
    cj = np.arange(Mo)
    nj, yj, xj = cj // (Ho * Wo), (cj // Wo) % Ho, cj % Wo
    ri = nj * (H * W) + (yj // 2) * W + (xj // 2)
    U[ri, cj] = 1.0
    return U


# ----------------------------------------------------------------------------
# Parameter packing: many tiny per-layer params -> two consolidated slabs
# ----------------------------------------------------------------------------
class _Packer:
    """Packs (rows, cols) blocks into one slab at 8-aligned row offsets."""

    def __init__(self):
        self._blocks = []
        self._row = 0

    def add(self, block):
        block = np.asarray(jax.device_get(block), dtype=np.float32)
        r0 = self._row
        self._blocks.append((r0, block))
        self._row += _round_up(block.shape[0], 8)
        return r0

    def finalize(self):
        cols = max(b.shape[1] for _, b in self._blocks)
        slab = np.zeros((max(self._row, 8), cols), np.float32)
        for r0, b in self._blocks:
            slab[r0:r0 + b.shape[0], :b.shape[1]] = b
        return jnp.asarray(slab)


# ----------------------------------------------------------------------------
# Parameter init (deterministic, PyTorch-like fan-in uniform)
# ----------------------------------------------------------------------------
def _conv3x3_weight(key, cin, cout):
    """Stacked-K layout (Cout, 9*Cin); column index = tap*Cin + cin."""
    bound = 1.0 / float(np.sqrt(cin * 9))
    w = jax.random.uniform(key, (3, 3, cin, cout), jnp.float32, -bound, bound)
    return jnp.transpose(w.reshape(9, cin, cout), (2, 0, 1)).reshape(cout, 9 * cin)


def _conv1x1_weight(key, cin, cout):
    bound = 1.0 / float(np.sqrt(cin))
    w = jax.random.uniform(key, (cin, cout), jnp.float32, -bound, bound)
    return w.T                                       # (cout, cin)


def _bn_params(key, c):
    kg, kb = jax.random.split(key)
    gamma = 1.0 + 0.1 * jax.random.normal(kg, (c,), jnp.float32)
    beta = 0.1 * jax.random.normal(kb, (c,), jnp.float32)
    return gamma, beta


# ----------------------------------------------------------------------------
# In-kernel helpers (operate on traced values; everything stays in VMEM/vregs)
# ----------------------------------------------------------------------------
def _conv3x3_stacked(x, shape, ctx, wh):
    """3x3 conv (padding=1) as ONE stacked-K matmul.

    x: (Cin, M); weight slice: (Cout, 9*Cin). Boundary masks zero exactly the
    taps that pltpu.roll wraps across image/row boundaries.
    """
    r0, cout, kdim = wh
    n_, H, W = shape
    M = n_ * H * W
    mref = ctx["masks"][shape]                       # (9, M) host constant
    pieces = []
    for o, (dy, dx) in enumerate(_OFFSETS):
        s = dy * W + dx
        xs = x if s == 0 else pltpu.roll(x, (-s) % M, axis=1)
        if (dy, dx) != (0, 0):
            xs = xs * mref[o:o + 1, :]
        pieces.append(xs)
    slab = jnp.concatenate(pieces, axis=0)           # (9*Cin, M) stacked-K operand
    w = ctx["w"][r0:r0 + cout, 0:kdim]               # (Cout, 9*Cin) static slice
    return jnp.dot(_mx(w), _mx(slab), preferred_element_type=jnp.float32)


def _bn_lrelu(y, ctx, bh):
    """Training-mode BN (biased variance) + LeakyReLU as a per-channel affine."""
    r0, c = bh
    gb = ctx["bn"][r0:r0 + c, 0:2]                   # (C, 2) = [gamma, beta]
    gamma, beta = gb[:, 0:1], gb[:, 1:2]
    mean = jnp.mean(y, axis=1, keepdims=True)        # lane (XLU) reduction
    d = y - mean
    var = jnp.mean(d * d, axis=1, keepdims=True)     # centered two-pass variance
    scale = gamma * jax.lax.rsqrt(var + EPS)         # EUP rsqrt, narrow (C,1)
    z = d * scale + beta
    return jnp.maximum(z, NEG_SLOPE * z)             # LeakyReLU


# ----------------------------------------------------------------------------
# Module builders mirroring the PyTorch definitions.  Each builder registers
# its parameters in the packers and returns
#   apply(x_value, (n, H, W), ctx) -> (y_value, (n, H', W'))
# which runs *inside* the single fused Pallas kernel.
# ----------------------------------------------------------------------------
def make_conv_block(key, cin, cout, wstore, bnstore):   # Conv3x3 + BN + LeakyReLU
    k1, k2 = jax.random.split(key)
    # No conv bias: training-mode BN mean-subtraction cancels it exactly.
    wh = (wstore.add(_conv3x3_weight(k1, cin, cout)), cout, 9 * cin)
    bh = (bnstore.add(jnp.stack(_bn_params(k2, cout), axis=1)), cout)

    def apply(x, shape, ctx):
        y = _conv3x3_stacked(x, shape, ctx, wh)
        return _bn_lrelu(y, ctx, bh), shape
    return apply


def make_down(key, cin, cout, wstore, bnstore):     # AvgPool2 + Conv1x1 + BN + LReLU
    k1, k2 = jax.random.split(key)
    wh = (wstore.add(_conv1x1_weight(k1, cin, cout)), cout, cin)
    bh = (bnstore.add(jnp.stack(_bn_params(k2, cout), axis=1)), cout)

    def apply(x, shape, ctx):
        n_, H, W = shape
        r0, co, ci = wh
        P = ctx["pool"][shape][...]                  # (M, M/4) selection matrix
        xp = jnp.dot(_mx(x), _mx(P), preferred_element_type=jnp.float32)
        w = ctx["w"][r0:r0 + co, 0:ci]
        y = jnp.dot(_mx(w), _mx(xp), preferred_element_type=jnp.float32)
        return _bn_lrelu(y, ctx, bh), (n_, H // 2, W // 2)
    return apply


def make_up(key, cin, cout, wstore, bnstore):       # Upsample2 + Conv1x1 + BN + LReLU
    k1, k2 = jax.random.split(key)
    wh = (wstore.add(_conv1x1_weight(k1, cin, cout)), cout, cin)
    bh = (bnstore.add(jnp.stack(_bn_params(k2, cout), axis=1)), cout)

    def apply(x, shape, ctx):
        n_, H, W = shape
        r0, co, ci = wh
        # Conv1x1 + BN + LeakyReLU at LOW resolution (equivalent: pointwise
        # ops and batch stats are invariant under uniform 4x nearest
        # replication), then upsample via selection matmul.
        w = ctx["w"][r0:r0 + co, 0:ci]
        y = jnp.dot(_mx(w), _mx(x), preferred_element_type=jnp.float32)
        y = _bn_lrelu(y, ctx, bh)
        U = ctx["up"][shape][...]                    # (M, 4M) selection matrix
        y = jnp.dot(_mx(y), _mx(U), preferred_element_type=jnp.float32)
        return y, (n_, 2 * H, 2 * W)
    return apply


def make_plain_conv3x3(key, cin, cout, wstore, bnstore):   # final conv (bias, no BN)
    k1, k2 = jax.random.split(key)
    wh = (wstore.add(_conv3x3_weight(k1, cin, cout)), cout, 9 * cin)
    bound = 1.0 / float(np.sqrt(cin * 9))
    bias = jax.random.uniform(k2, (cout,), jnp.float32, -bound, bound)
    bh = (bnstore.add(jnp.stack([bias, jnp.zeros_like(bias)], axis=1)), cout)

    def apply(x, shape, ctx):
        y = _conv3x3_stacked(x, shape, ctx, wh)
        r0, c = bh
        return y + ctx["bn"][r0:r0 + c, 0:1], shape
    return apply


def make_seq(fns):
    def apply(x, shape, ctx):
        for f in fns:
            x, shape = f(x, shape, ctx)
        return x, shape
    return apply


def make_res(fns):                                   # ResSequential
    inner = make_seq(fns)

    def apply(x, shape, ctx):
        y, s2 = inner(x, shape, ctx)
        return x + y, s2
    return apply


def make_cat(fns):                                   # CatSequential (channels = axis 0)
    inner = make_seq(fns)

    def apply(x, shape, ctx):
        y, s2 = inner(x, shape, ctx)
        return jnp.concatenate([y, x], axis=0), s2
    return apply


def build_unet(key, in_channels, out_channels, layers, wstore, bnstore):
    layers = list(layers)
    keys = iter(jax.random.split(key, 64))
    nk = lambda: next(keys)
    num_convs = 2

    current = layers.pop()
    upper = layers.pop()
    unet = make_cat([
        make_down(nk(), upper, current, wstore, bnstore),
        make_res([make_conv_block(nk(), current, current, wstore, bnstore)
                  for _ in range(num_convs)]),
        make_up(nk(), current, current, wstore, bnstore),
    ])
    for layer in reversed(layers):
        lower, current, upper = current, upper, layer
        unet = make_cat([
            make_down(nk(), upper, current, wstore, bnstore),
            make_res([make_conv_block(nk(), current, current, wstore, bnstore)
                      for _ in range(num_convs)]),
            unet,
            make_conv_block(nk(), current + lower, current, wstore, bnstore),
            make_res([make_conv_block(nk(), current, current, wstore, bnstore)
                      for _ in range(num_convs - 1)]),
            make_up(nk(), current, current, wstore, bnstore),
        ])
    lower, current = current, upper
    return make_seq([
        make_conv_block(nk(), in_channels, current, wstore, bnstore),
        make_res([make_conv_block(nk(), current, current, wstore, bnstore)
                  for _ in range(num_convs - 1)]),
        unet,
        make_conv_block(nk(), current + lower, current, wstore, bnstore),
        make_res([make_conv_block(nk(), current, current, wstore, bnstore)
                  for _ in range(num_convs - 1)]),
        make_plain_conv3x3(nk(), current, out_channels, wstore, bnstore),
    ])


# ----------------------------------------------------------------------------
# Single fused pallas_call wrapping the whole network
# ----------------------------------------------------------------------------
def build_unet_forward(key, in_channels, out_channels, layers, n, H, W):
    wstore, bnstore = _Packer(), _Packer()
    net = build_unet(key, in_channels, out_channels, layers, wstore, bnstore)
    w_slab = wstore.finalize()        # one consolidated weight slab
    bn_slab = bnstore.finalize()      # one consolidated gamma/beta (+bias) slab

    # Host-precomputed constants per resolution.
    n_levels = len(layers)
    shapes = [(n, H >> l, W >> l) for l in range(n_levels)]
    const_arrays, mask_idx, pool_idx, up_idx = [], {}, {}, {}
    for s in shapes:
        mask_idx[s] = len(const_arrays)
        const_arrays.append(jnp.asarray(_host_masks(s)))
    for l in range(n_levels - 1):
        pool_idx[shapes[l]] = len(const_arrays)
        const_arrays.append(jnp.asarray(_host_pool(shapes[l])))
    for l in range(n_levels - 1):
        up_idx[shapes[l + 1]] = len(const_arrays)
        const_arrays.append(jnp.asarray(_host_up(shapes[l + 1])))

    M = n * H * W
    n_consts = len(const_arrays)

    def kernel(*refs):
        x_ref, w_ref, bn_ref = refs[0], refs[1], refs[2]
        const_refs = refs[3:3 + n_consts]
        o_ref = refs[3 + n_consts]
        ctx = {
            "w": w_ref,
            "bn": bn_ref,
            "masks": {s: const_refs[i] for s, i in mask_idx.items()},
            "pool": {s: const_refs[i] for s, i in pool_idx.items()},
            "up": {s: const_refs[i] for s, i in up_idx.items()},
        }
        y, _ = net(x_ref[...], (n, H, W), ctx)
        o_ref[...] = y

    def full_spec(shape):
        return pl.BlockSpec(shape, lambda i: (0,) * len(shape))

    in_specs = ([full_spec((in_channels, M)),
                 full_spec(w_slab.shape),
                 full_spec(bn_slab.shape)]
                + [full_spec(c.shape) for c in const_arrays])

    fused = pl.pallas_call(
        kernel,
        out_shape=jax.ShapeDtypeStruct((out_channels, M), jnp.float32),
        grid=(1,),
        in_specs=in_specs,
        out_specs=full_spec((out_channels, M)),
        compiler_params=pltpu.CompilerParams(
            dimension_semantics=("arbitrary",)),
    )

    def forward(x_nchw):
        # NCHW -> lane-dense (C, N*H*W), flat index over (n, y, x)
        x_cm = jnp.transpose(x_nchw, (1, 0, 2, 3)).reshape(in_channels, M)
        y = fused(x_cm, w_slab, bn_slab, *const_arrays)
        y = y.reshape(out_channels, n, H, W)
        return jnp.transpose(y, (1, 0, 2, 3))        # back to NCHW
    return forward


# ----------------------------------------------------------------------------
if __name__ == "__main__":
    key = jax.random.PRNGKey(0)
    k_in, k_model = jax.random.split(key)

    N, CIN, H, W = 2, 4, 16, 16
    COUT = 4
    LAYERS = (8, 16, 32)   # two downsampling levels: 16x16 -> 8x8 -> 4x4

    x_nchw = jax.random.normal(k_in, (N, CIN, H, W), jnp.float32)

    forward = build_unet_forward(k_model, CIN, COUT, LAYERS, N, H, W)
    y = jax.jit(forward)(x_nchw)
    jax.block_until_ready(y)

    assert y.shape == (N, COUT, H, W), y.shape
    assert bool(jnp.all(jnp.isfinite(y)))
    print("KERNEL_OK")
</pallas_src>

<mosaic_0001>
module attributes {stable_mosaic.version = 11 : i64} {
  func.func @kernel(%arg0: i32, %arg1: memref<4x512xf32, #tpu.memory_space<vmem>>, %arg2: memref<264x432xf32, #tpu.memory_space<vmem>>, %arg3: memref<264x2xf32, #tpu.memory_space<vmem>>, %arg4: memref<9x512xf32, #tpu.memory_space<vmem>>, %arg5: memref<9x128xf32, #tpu.memory_space<vmem>>, %arg6: memref<9x32xf32, #tpu.memory_space<vmem>>, %arg7: memref<512x128xf32, #tpu.memory_space<vmem>>, %arg8: memref<128x32xf32, #tpu.memory_space<vmem>>, %arg9: memref<128x512xf32, #tpu.memory_space<vmem>>, %arg10: memref<32x128xf32, #tpu.memory_space<vmem>>, %arg11: memref<4x512xf32, #tpu.memory_space<vmem>>) attributes {dimension_semantics = [#tpu.dimension_semantics<arbitrary>], iteration_bounds = array<i64: 1>, scalar_prefetch = 0 : i64, scratch_operands = 0 : i64, tpu.core_type = #tpu.core_type<tc>, window_params = [{pipeline_mode = #tpu.pipeline_mode<synchronous>, transform_indices = @transform_0, window_bounds = array<i64: 4, 512>}, {pipeline_mode = #tpu.pipeline_mode<synchronous>, transform_indices = @transform_1, window_bounds = array<i64: 264, 432>}, {pipeline_mode = #tpu.pipeline_mode<synchronous>, transform_indices = @transform_2, window_bounds = array<i64: 264, 2>}, {pipeline_mode = #tpu.pipeline_mode<synchronous>, transform_indices = @transform_3, window_bounds = array<i64: 9, 512>}, {pipeline_mode = #tpu.pipeline_mode<synchronous>, transform_indices = @transform_4, window_bounds = array<i64: 9, 128>}, {pipeline_mode = #tpu.pipeline_mode<synchronous>, transform_indices = @transform_5, window_bounds = array<i64: 9, 32>}, {pipeline_mode = #tpu.pipeline_mode<synchronous>, transform_indices = @transform_6, window_bounds = array<i64: 512, 128>}, {pipeline_mode = #tpu.pipeline_mode<synchronous>, transform_indices = @transform_7, window_bounds = array<i64: 128, 32>}, {pipeline_mode = #tpu.pipeline_mode<synchronous>, transform_indices = @transform_8, window_bounds = array<i64: 128, 512>}, {pipeline_mode = #tpu.pipeline_mode<synchronous>, transform_indices = @transform_9, window_bounds = array<i64: 32, 128>}, {pipeline_mode = #tpu.pipeline_mode<synchronous>, transform_indices = @transform_10, window_bounds = array<i64: 4, 512>}]} {
    %c0 = arith.constant 0 : index
    %c0_0 = arith.constant 0 : index
    %0 = vector.load %arg1[%c0, %c0_0] : memref<4x512xf32, #tpu.memory_space<vmem>>, vector<4x512xf32>
    %c17_i32 = arith.constant 17 : i32
    %1 = tpu.dynamic_rotate %0 by %c17_i32 dim 1 : vector<4x512xf32>, i32 -> vector<4x512xf32>
    %c0_1 = arith.constant 0 : index
    %c0_2 = arith.constant 0 : index
    %2 = vector.load %arg4[%c0_1, %c0_2] : memref<9x512xf32, #tpu.memory_space<vmem>>, vector<1x512xf32>
    %3 = vector.broadcast %2 : vector<1x512xf32> to vector<4x512xf32>
    %4 = arith.mulf %1, %3 : vector<4x512xf32>
    %c16_i32 = arith.constant 16 : i32
    %5 = tpu.dynamic_rotate %0 by %c16_i32 dim 1 : vector<4x512xf32>, i32 -> vector<4x512xf32>
    %c1 = arith.constant 1 : index
    %c0_3 = arith.constant 0 : index
    %6 = vector.load %arg4[%c1, %c0_3] : memref<9x512xf32, #tpu.memory_space<vmem>>, vector<1x512xf32>
    %7 = vector.broadcast %6 : vector<1x512xf32> to vector<4x512xf32>
    %8 = arith.mulf %5, %7 : vector<4x512xf32>
    %c15_i32 = arith.constant 15 : i32
    %9 = tpu.dynamic_rotate %0 by %c15_i32 dim 1 : vector<4x512xf32>, i32 -> vector<4x512xf32>
    %c2 = arith.constant 2 : index
    %c0_4 = arith.constant 0 : index
    %10 = vector.load %arg4[%c2, %c0_4] : memref<9x512xf32, #tpu.memory_space<vmem>>, vector<1x512xf32>
    %11 = vector.broadcast %10 : vector<1x512xf32> to vector<4x512xf32>
    %12 = arith.mulf %9, %11 : vector<4x512xf32>
    %c1_i32 = arith.constant 1 : i32
    %13 = tpu.dynamic_rotate %0 by %c1_i32 dim 1 : vector<4x512xf32>, i32 -> vector<4x512xf32>
    %c3 = arith.constant 3 : index
    %c0_5 = arith.constant 0 : index
    %14 = vector.load %arg4[%c3, %c0_5] : memref<9x512xf32, #tpu.memory_space<vmem>>, vector<1x512xf32>
    %15 = vector.broadcast %14 : vector<1x512xf32> to vector<4x512xf32>
    %16 = arith.mulf %13, %15 : vector<4x512xf32>
    %c511_i32 = arith.constant 511 : i32
    %17 = tpu.dynamic_rotate %0 by %c511_i32 dim 1 : vector<4x512xf32>, i32 -> vector<4x512xf32>
    %c5 = arith.constant 5 : index
    %c0_6 = arith.constant 0 : index
    %18 = vector.load %arg4[%c5, %c0_6] : memref<9x512xf32, #tpu.memory_space<vmem>>, vector<1x512xf32>
    %19 = vector.broadcast %18 : vector<1x512xf32> to vector<4x512xf32>
    %20 = arith.mulf %17, %19 : vector<4x512xf32>
    %c497_i32 = arith.constant 497 : i32
    %21 = tpu.dynamic_rotate %0 by %c497_i32 dim 1 : vector<4x512xf32>, i32 -> vector<4x512xf32>
    %c6 = arith.constant 6 : index
    %c0_7 = arith.constant 0 : index
    %22 = vector.load %arg4[%c6, %c0_7] : memref<9x512xf32, #tpu.memory_space<vmem>>, vector<1x512xf32>
    %23 = vector.broadcast %22 : vector<1x512xf32> to vector<4x512xf32>
    %24 = arith.mulf %21, %23 : vector<4x512xf32>
    %c496_i32 = arith.constant 496 : i32
    %25 = tpu.dynamic_rotate %0 by %c496_i32 dim 1 : vector<4x512xf32>, i32 -> vector<4x512xf32>
    %c7 = arith.constant 7 : index
    %c0_8 = arith.constant 0 : index
    %26 = vector.load %arg4[%c7, %c0_8] : memref<9x512xf32, #tpu.memory_space<vmem>>, vector<1x512xf32>
    %27 = vector.broadcast %26 : vector<1x512xf32> to vector<4x512xf32>
    %28 = arith.mulf %25, %27 : vector<4x512xf32>
    %c495_i32 = arith.constant 495 : i32
    %29 = tpu.dynamic_rotate %0 by %c495_i32 dim 1 : vector<4x512xf32>, i32 -> vector<4x512xf32>
    %c8 = arith.constant 8 : index
    %c0_9 = arith.constant 0 : index
    %30 = vector.load %arg4[%c8, %c0_9] : memref<9x512xf32, #tpu.memory_space<vmem>>, vector<1x512xf32>
    %31 = vector.broadcast %30 : vector<1x512xf32> to vector<4x512xf32>
    %32 = arith.mulf %29, %31 : vector<4x512xf32>
    %33 = tpu.concatenate %4, %8, %12, %16, %0, %20, %24, %28, %32 in 0 : vector<4x512xf32>, vector<4x512xf32>, vector<4x512xf32>, vector<4x512xf32>, vector<4x512xf32>, vector<4x512xf32>, vector<4x512xf32>, vector<4x512xf32>, vector<4x512xf32> -> vector<36x512xf32>
    %c224 = arith.constant 224 : index
    %c0_10 = arith.constant 0 : index
    %34 = vector.load %arg2[%c224, %c0_10] : memref<264x432xf32, #tpu.memory_space<vmem>>, vector<8x36xf32>
    %cst = arith.constant dense<0.000000e+00> : vector<8x512xf32>
    %35 = tpu.matmul %34, %33, %cst {dimension_numbers = #tpu.dot_dimension_numbers<[1], [0], [0], [1], [0, 0, 1, 1], [], []>} : vector<8x36xf32>, vector<36x512xf32>, vector<8x512xf32> -> vector<8x512xf32>
    %c224_11 = arith.constant 224 : index
    %c0_12 = arith.constant 0 : index
    %36 = vector.load %arg3[%c224_11, %c0_12] : memref<264x2xf32, #tpu.memory_space<vmem>>, vector<8x2xf32>
    %37 = vector.extract_strided_slice %36 {offsets = [0, 0], sizes = [8, 1], strides = [1, 1]} : vector<8x2xf32> to vector<8x1xf32>
    %38 = vector.extract_strided_slice %36 {offsets = [0, 1], sizes = [8, 1], strides = [1, 1]} : vector<8x2xf32> to vector<8x1xf32>
    %cst_13 = arith.constant dense<0.000000e+00> : vector<8xf32>
    %39 = vector.multi_reduction <add>, %35, %cst_13 [1] : vector<8x512xf32> to vector<8xf32>
    %40 = vector.shape_cast %39 : vector<8xf32> to vector<8x1xf32>
    %cst_14 = arith.constant 5.120000e+02 : f32
    %41 = vector.broadcast %cst_14 : f32 to vector<8x1xf32>
    %42 = arith.divf %40, %41 : vector<8x1xf32>
    %43 = vector.broadcast %42 : vector<8x1xf32> to vector<8x512xf32>
    %44 = arith.subf %35, %43 : vector<8x512xf32>
    %45 = arith.mulf %44, %44 : vector<8x512xf32>
    %cst_15 = arith.constant dense<0.000000e+00> : vector<8xf32>
    %46 = vector.multi_reduction <add>, %45, %cst_15 [1] : vector<8x512xf32> to vector<8xf32>
    %47 = vector.shape_cast %46 : vector<8xf32> to vector<8x1xf32>
    %cst_16 = arith.constant 5.120000e+02 : f32
    %48 = vector.broadcast %cst_16 : f32 to vector<8x1xf32>
    %49 = arith.divf %47, %48 : vector<8x1xf32>
    %cst_17 = arith.constant 9.99999974E-6 : f32
    %50 = vector.broadcast %cst_17 : f32 to vector<8x1xf32>
    %51 = arith.addf %49, %50 : vector<8x1xf32>
    %52 = math.rsqrt %51 : vector<8x1xf32>
    %53 = arith.mulf %37, %52 : vector<8x1xf32>
    %54 = vector.broadcast %53 : vector<8x1xf32> to vector<8x512xf32>
    %55 = arith.mulf %44, %54 : vector<8x512xf32>
    %56 = vector.broadcast %38 : vector<8x1xf32> to vector<8x512xf32>
    %57 = arith.addf %55, %56 : vector<8x512xf32>
    %cst_18 = arith.constant 0.00999999977 : f32
    %58 = vector.broadcast %cst_18 : f32 to vector<8x512xf32>
    %59 = arith.mulf %58, %57 : vector<8x512xf32>
    %60 = arith.maximumf %57, %59 : vector<8x512xf32>
    %c17_i32_19 = arith.constant 17 : i32
    %61 = tpu.dynamic_rotate %60 by %c17_i32_19 dim 1 : vector<8x512xf32>, i32 -> vector<8x512xf32>
    %c0_20 = arith.constant 0 : index
    %c0_21 = arith.constant 0 : index
    %62 = vector.load %arg4[%c0_20, %c0_21] : memref<9x512xf32, #tpu.memory_space<vmem>>, vector<1x512xf32>
    %63 = vector.broadcast %62 : vector<1x512xf32> to vector<8x512xf32>
    %64 = arith.mulf %61, %63 : vector<8x512xf32>
    %c16_i32_22 = arith.constant 16 : i32
    %65 = tpu.dynamic_rotate %60 by %c16_i32_22 dim 1 : vector<8x512xf32>, i32 -> vector<8x512xf32>
    %c1_23 = arith.constant 1 : index
    %c0_24 = arith.constant 0 : index
    %66 = vector.load %arg4[%c1_23, %c0_24] : memref<9x512xf32, #tpu.memory_space<vmem>>, vector<1x512xf32>
    %67 = vector.broadcast %66 : vector<1x512xf32> to vector<8x512xf32>
    %68 = arith.mulf %65, %67 : vector<8x512xf32>
    %c15_i32_25 = arith.constant 15 : i32
    %69 = tpu.dynamic_rotate %60 by %c15_i32_25 dim 1 : vector<8x512xf32>, i32 -> vector<8x512xf32>
    %c2_26 = arith.constant 2 : index
    %c0_27 = arith.constant 0 : index
    %70 = vector.load %arg4[%c2_26, %c0_27] : memref<9x512xf32, #tpu.memory_space<vmem>>, vector<1x512xf32>
    %71 = vector.broadcast %70 : vector<1x512xf32> to vector<8x512xf32>
    %72 = arith.mulf %69, %71 : vector<8x512xf32>
    %c1_i32_28 = arith.constant 1 : i32
    %73 = tpu.dynamic_rotate %60 by %c1_i32_28 dim 1 : vector<8x512xf32>, i32 -> vector<8x512xf32>
    %c3_29 = arith.constant 3 : index
    %c0_30 = arith.constant 0 : index
    %74 = vector.load %arg4[%c3_29, %c0_30] : memref<9x512xf32, #tpu.memory_space<vmem>>, vector<1x512xf32>
    %75 = vector.broadcast %74 : vector<1x512xf32> to vector<8x512xf32>
    %76 = arith.mulf %73, %75 : vector<8x512xf32>
    %c511_i32_31 = arith.constant 511 : i32
    %77 = tpu.dynamic_rotate %60 by %c511_i32_31 dim 1 : vector<8x512xf32>, i32 -> vector<8x512xf32>
    %c5_32 = arith.constant 5 : index
    %c0_33 = arith.constant 0 : index
    %78 = vector.load %arg4[%c5_32, %c0_33] : memref<9x512xf32, #tpu.memory_space<vmem>>, vector<1x512xf32>
    %79 = vector.broadcast %78 : vector<1x512xf32> to vector<8x512xf32>
    %80 = arith.mulf %77, %79 : vector<8x512xf32>
    %c497_i32_34 = arith.constant 497 : i32
    %81 = tpu.dynamic_rotate %60 by %c497_i32_34 dim 1 : vector<8x512xf32>, i32 -> vector<8x512xf32>
    %c6_35 = arith.constant 6 : index
    %c0_36 = arith.constant 0 : index
    %82 = vector.load %arg4[%c6_35, %c0_36] : memref<9x512xf32, #tpu.memory_space<vmem>>, vector<1x512xf32>
    %83 = vector.broadcast %82 : vector<1x512xf32> to vector<8x512xf32>
    %84 = arith.mulf %81, %83 : vector<8x512xf32>
    %c496_i32_37 = arith.constant 496 : i32
    %85 = tpu.dynamic_rotate %60 by %c496_i32_37 dim 1 : vector<8x512xf32>, i32 -> vector<8x512xf32>
    %c7_38 = arith.constant 7 : index
    %c0_39 = arith.constant 0 : index
    %86 = vector.load %arg4[%c7_38, %c0_39] : memref<9x512xf32, #tpu.memory_space<vmem>>, vector<1x512xf32>
    %87 = vector.broadcast %86 : vector<1x512xf32> to vector<8x512xf32>
    %88 = arith.mulf %85, %87 : vector<8x512xf32>
    %c495_i32_40 = arith.constant 495 : i32
    %89 = tpu.dynamic_rotate %60 by %c495_i32_40 dim 1 : vector<8x512xf32>, i32 -> vector<8x512xf32>
    %c8_41 = arith.constant 8 : index
    %c0_42 = arith.constant 0 : index
    %90 = vector.load %arg4[%c8_41, %c0_42] : memref<9x512xf32, #tpu.memory_space<vmem>>, vector<1x512xf32>
    %91 = vector.broadcast %90 : vector<1x512xf32> to vector<8x512xf32>
    %92 = arith.mulf %89, %91 : vector<8x512xf32>
    %93 = tpu.concatenate %64, %68, %72, %76, %60, %80, %84, %88, %92 in 0 : vector<8x512xf32>, vector<8x512xf32>, vector<8x512xf32>, vector<8x512xf32>, vector<8x512xf32>, vector<8x512xf32>, vector<8x512xf32>, vector<8x512xf32>, vector<8x512xf32> -> vector<72x512xf32>
    %c232 = arith.constant 232 : index
    %c0_43 = arith.constant 0 : index
    %94 = vector.load %arg2[%c232, %c0_43] : memref<264x432xf32, #tpu.memory_space<vmem>>, vector<8x72xf32>
    %cst_44 = arith.constant dense<0.000000e+00> : vector<8x512xf32>
    %95 = tpu.matmul %94, %93, %cst_44 {dimension_numbers = #tpu.dot_dimension_numbers<[1], [0], [0], [1], [0, 0, 1, 1], [], []>} : vector<8x72xf32>, vector<72x512xf32>, vector<8x512xf32> -> vector<8x512xf32>
    %c232_45 = arith.constant 232 : index
    %c0_46 = arith.constant 0 : index
    %96 = vector.load %arg3[%c232_45, %c0_46] : memref<264x2xf32, #tpu.memory_space<vmem>>, vector<8x2xf32>
    %97 = vector.extract_strided_slice %96 {offsets = [0, 0], sizes = [8, 1], strides = [1, 1]} : vector<8x2xf32> to vector<8x1xf32>
    %98 = vector.extract_strided_slice %96 {offsets = [0, 1], sizes = [8, 1], strides = [1, 1]} : vector<8x2xf32> to vector<8x1xf32>
    %cst_47 = arith.constant dense<0.000000e+00> : vector<8xf32>
    %99 = vector.multi_reduction <add>, %95, %cst_47 [1] : vector<8x512xf32> to vector<8xf32>
    %100 = vector.shape_cast %99 : vector<8xf32> to vector<8x1xf32>
    %cst_48 = arith.constant 5.120000e+02 : f32
    %101 = vector.broadcast %cst_48 : f32 to vector<8x1xf32>
    %102 = arith.divf %100, %101 : vector<8x1xf32>
    %103 = vector.broadcast %102 : vector<8x1xf32> to vector<8x512xf32>
    %104 = arith.subf %95, %103 : vector<8x512xf32>
    %105 = arith.mulf %104, %104 : vector<8x512xf32>
    %cst_49 = arith.constant dense<0.000000e+00> : vector<8xf32>
    %106 = vector.multi_reduction <add>, %105, %cst_49 [1] : vector<8x512xf32> to vector<8xf32>
    %107 = vector.shape_cast %106 : vector<8xf32> to vector<8x1xf32>
    %cst_50 = arith.constant 5.120000e+02 : f32
    %108 = vector.broadcast %cst_50 : f32 to vector<8x1xf32>
    %109 = arith.divf %107, %108 : vector<8x1xf32>
    %cst_51 = arith.constant 9.99999974E-6 : f32
    %110 = vector.broadcast %cst_51 : f32 to vector<8x1xf32>
    %111 = arith.addf %109, %110 : vector<8x1xf32>
    %112 = math.rsqrt %111 : vector<8x1xf32>
    %113 = arith.mulf %97, %112 : vector<8x1xf32>
    %114 = vector.broadcast %113 : vector<8x1xf32> to vector<8x512xf32>
    %115 = arith.mulf %104, %114 : vector<8x512xf32>
    %116 = vector.broadcast %98 : vector<8x1xf32> to vector<8x512xf32>
    %117 = arith.addf %115, %116 : vector<8x512xf32>
    %cst_52 = arith.constant 0.00999999977 : f32
    %118 = vector.broadcast %cst_52 : f32 to vector<8x512xf32>
    %119 = arith.mulf %118, %117 : vector<8x512xf32>
    %120 = arith.maximumf %117, %119 : vector<8x512xf32>
    %121 = arith.addf %60, %120 : vector<8x512xf32>
    %c0_53 = arith.constant 0 : index
    %c0_54 = arith.constant 0 : index
    %122 = vector.load %arg7[%c0_53, %c0_54] : memref<512x128xf32, #tpu.memory_space<vmem>>, vector<512x128xf32>
    %cst_55 = arith.constant dense<0.000000e+00> : vector<8x128xf32>
    %123 = tpu.matmul %121, %122, %cst_55 {dimension_numbers = #tpu.dot_dimension_numbers<[1], [0], [0], [1], [0, 0, 1, 1], [], []>} : vector<8x512xf32>, vector<512x128xf32>, vector<8x128xf32> -> vector<8x128xf32>
    %c128 = arith.constant 128 : index
    %c0_56 = arith.constant 0 : index
    %124 = vector.load %arg2[%c128, %c0_56] : memref<264x432xf32, #tpu.memory_space<vmem>>, vector<16x8xf32>
    %cst_57 = arith.constant dense<0.000000e+00> : vector<16x128xf32>
    %125 = tpu.matmul %124, %123, %cst_57 {dimension_numbers = #tpu.dot_dimension_numbers<[1], [0], [0], [1], [0, 0, 1, 1], [], []>} : vector<16x8xf32>, vector<8x128xf32>, vector<16x128xf32> -> vector<16x128xf32>
    %c128_58 = arith.constant 128 : index
    %c0_59 = arith.constant 0 : index
    %126 = vector.load %arg3[%c128_58, %c0_59] : memref<264x2xf32, #tpu.memory_space<vmem>>, vector<16x2xf32>
    %127 = vector.extract_strided_slice %126 {offsets = [0, 0], sizes = [16, 1], strides = [1, 1]} : vector<16x2xf32> to vector<16x1xf32>
    %128 = vector.extract_strided_slice %126 {offsets = [0, 1], sizes = [16, 1], strides = [1, 1]} : vector<16x2xf32> to vector<16x1xf32>
    %cst_60 = arith.constant dense<0.000000e+00> : vector<16xf32>
    %129 = vector.multi_reduction <add>, %125, %cst_60 [1] : vector<16x128xf32> to vector<16xf32>
    %130 = vector.shape_cast %129 : vector<16xf32> to vector<16x1xf32>
    %cst_61 = arith.constant 1.280000e+02 : f32
    %131 = vector.broadcast %cst_61 : f32 to vector<16x1xf32>
    %132 = arith.divf %130, %131 : vector<16x1xf32>
    %133 = vector.broadcast %132 : vector<16x1xf32> to vector<16x128xf32>
    %134 = arith.subf %125, %133 : vector<16x128xf32>
    %135 = arith.mulf %134, %134 : vector<16x128xf32>
    %cst_62 = arith.constant dense<0.000000e+00> : vector<16xf32>
    %136 = vector.multi_reduction <add>, %135, %cst_62 [1] : vector<16x128xf32> to vector<16xf32>
    %137 = vector.shape_cast %136 : vector<16xf32> to vector<16x1xf32>
    %cst_63 = arith.constant 1.280000e+02 : f32
    %138 = vector.broadcast %cst_63 : f32 to vector<16x1xf32>
    %139 = arith.divf %137, %138 : vector<16x1xf32>
    %cst_64 = arith.constant 9.99999974E-6 : f32
    %140 = vector.broadcast %cst_64 : f32 to vector<16x1xf32>
    %141 = arith.addf %139, %140 : vector<16x1xf32>
    %142 = math.rsqrt %141 : vector<16x1xf32>
    %143 = arith.mulf %127, %142 : vector<16x1xf32>
    %144 = vector.broadcast %143 : vector<16x1xf32> to vector<16x128xf32>
    %145 = arith.mulf %134, %144 : vector<16x128xf32>
    %146 = vector.broadcast %128 : vector<16x1xf32> to vector<16x128xf32>
    %147 = arith.addf %145, %146 : vector<16x128xf32>
    %cst_65 = arith.constant 0.00999999977 : f32
    %148 = vector.broadcast %cst_65 : f32 to vector<16x128xf32>
    %149 = arith.mulf %148, %147 : vector<16x128xf32>
    %150 = arith.maximumf %147, %149 : vector<16x128xf32>
    %c9_i32 = arith.constant 9 : i32
    %151 = tpu.dynamic_rotate %150 by %c9_i32 dim 1 : vector<16x128xf32>, i32 -> vector<16x128xf32>
    %c0_66 = arith.constant 0 : index
    %c0_67 = arith.constant 0 : index
    %152 = vector.load %arg5[%c0_66, %c0_67] : memref<9x128xf32, #tpu.memory_space<vmem>>, vector<1x128xf32>
    %153 = vector.broadcast %152 : vector<1x128xf32> to vector<16x128xf32>
    %154 = arith.mulf %151, %153 : vector<16x128xf32>
    %c8_i32 = arith.constant 8 : i32
    %155 = tpu.dynamic_rotate %150 by %c8_i32 dim 1 : vector<16x128xf32>, i32 -> vector<16x128xf32>
    %c1_68 = arith.constant 1 : index
    %c0_69 = arith.constant 0 : index
    %156 = vector.load %arg5[%c1_68, %c0_69] : memref<9x128xf32, #tpu.memory_space<vmem>>, vector<1x128xf32>
    %157 = vector.broadcast %156 : vector<1x128xf32> to vector<16x128xf32>
    %158 = arith.mulf %155, %157 : vector<16x128xf32>
    %c7_i32 = arith.constant 7 : i32
    %159 = tpu.dynamic_rotate %150 by %c7_i32 dim 1 : vector<16x128xf32>, i32 -> vector<16x128xf32>
    %c2_70 = arith.constant 2 : index
    %c0_71 = arith.constant 0 : index
    %160 = vector.load %arg5[%c2_70, %c0_71] : memref<9x128xf32, #tpu.memory_space<vmem>>, vector<1x128xf32>
    %161 = vector.broadcast %160 : vector<1x128xf32> to vector<16x128xf32>
    %162 = arith.mulf %159, %161 : vector<16x128xf32>
    %c1_i32_72 = arith.constant 1 : i32
    %163 = tpu.dynamic_rotate %150 by %c1_i32_72 dim 1 : vector<16x128xf32>, i32 -> vector<16x128xf32>
    %c3_73 = arith.constant 3 : index
    %c0_74 = arith.constant 0 : index
    %164 = vector.load %arg5[%c3_73, %c0_74] : memref<9x128xf32, #tpu.memory_space<vmem>>, vector<1x128xf32>
    %165 = vector.broadcast %164 : vector<1x128xf32> to vector<16x128xf32>
    %166 = arith.mulf %163, %165 : vector<16x128xf32>
    %c127_i32 = arith.constant 127 : i32
    %167 = tpu.dynamic_rotate %150 by %c127_i32 dim 1 : vector<16x128xf32>, i32 -> vector<16x128xf32>
    %c5_75 = arith.constant 5 : index
    %c0_76 = arith.constant 0 : index
    %168 = vector.load %arg5[%c5_75, %c0_76] : memref<9x128xf32, #tpu.memory_space<vmem>>, vector<1x128xf32>
    %169 = vector.broadcast %168 : vector<1x128xf32> to vector<16x128xf32>
    %170 = arith.mulf %167, %169 : vector<16x128xf32>
    %c121_i32 = arith.constant 121 : i32
    %171 = tpu.dynamic_rotate %150 by %c121_i32 dim 1 : vector<16x128xf32>, i32 -> vector<16x128xf32>
    %c6_77 = arith.constant 6 : index
    %c0_78 = arith.constant 0 : index
    %172 = vector.load %arg5[%c6_77, %c0_78] : memref<9x128xf32, #tpu.memory_space<vmem>>, vector<1x128xf32>
    %173 = vector.broadcast %172 : vector<1x128xf32> to vector<16x128xf32>
    %174 = arith.mulf %171, %173 : vector<16x128xf32>
    %c120_i32 = arith.constant 120 : i32
    %175 = tpu.dynamic_rotate %150 by %c120_i32 dim 1 : vector<16x128xf32>, i32 -> vector<16x128xf32>
    %c7_79 = arith.constant 7 : index
    %c0_80 = arith.constant 0 : index
    %176 = vector.load %arg5[%c7_79, %c0_80] : memref<9x128xf32, #tpu.memory_space<vmem>>, vector<1x128xf32>
    %177 = vector.broadcast %176 : vector<1x128xf32> to vector<16x128xf32>
    %178 = arith.mulf %175, %177 : vector<16x128xf32>
    %c119_i32 = arith.constant 119 : i32
    %179 = tpu.dynamic_rotate %150 by %c119_i32 dim 1 : vector<16x128xf32>, i32 -> vector<16x128xf32>
    %c8_81 = arith.constant 8 : index
    %c0_82 = arith.constant 0 : index
    %180 = vector.load %arg5[%c8_81, %c0_82] : memref<9x128xf32, #tpu.memory_space<vmem>>, vector<1x128xf32>
    %181 = vector.broadcast %180 : vector<1x128xf32> to vector<16x128xf32>
    %182 = arith.mulf %179, %181 : vector<16x128xf32>
    %183 = tpu.concatenate %154, %158, %162, %166, %150, %170, %174, %178, %182 in 0 : vector<16x128xf32>, vector<16x128xf32>, vector<16x128xf32>, vector<16x128xf32>, vector<16x128xf32>, vector<16x128xf32>, vector<16x128xf32>, vector<16x128xf32>, vector<16x128xf32> -> vector<144x128xf32>
    %c144 = arith.constant 144 : index
    %c0_83 = arith.constant 0 : index
    %184 = vector.load %arg2[%c144, %c0_83] : memref<264x432xf32, #tpu.memory_space<vmem>>, vector<16x144xf32>
    %cst_84 = arith.constant dense<0.000000e+00> : vector<16x128xf32>
    %185 = tpu.matmul %184, %183, %cst_84 {dimension_numbers = #tpu.dot_dimension_numbers<[1], [0], [0], [1], [0, 0, 1, 1], [], []>} : vector<16x144xf32>, vector<144x128xf32>, vector<16x128xf32> -> vector<16x128xf32>
    %c144_85 = arith.constant 144 : index
    %c0_86 = arith.constant 0 : index
    %186 = vector.load %arg3[%c144_85, %c0_86] : memref<264x2xf32, #tpu.memory_space<vmem>>, vector<16x2xf32>
    %187 = vector.extract_strided_slice %186 {offsets = [0, 0], sizes = [16, 1], strides = [1, 1]} : vector<16x2xf32> to vector<16x1xf32>
    %188 = vector.extract_strided_slice %186 {offsets = [0, 1], sizes = [16, 1], strides = [1, 1]} : vector<16x2xf32> to vector<16x1xf32>
    %cst_87 = arith.constant dense<0.000000e+00> : vector<16xf32>
    %189 = vector.multi_reduction <add>, %185, %cst_87 [1] : vector<16x128xf32> to vector<16xf32>
    %190 = vector.shape_cast %189 : vector<16xf32> to vector<16x1xf32>
    %cst_88 = arith.constant 1.280000e+02 : f32
    %191 = vector.broadcast %cst_88 : f32 to vector<16x1xf32>
    %192 = arith.divf %190, %191 : vector<16x1xf32>
    %193 = vector.broadcast %192 : vector<16x1xf32> to vector<16x128xf32>
    %194 = arith.subf %185, %193 : vector<16x128xf32>
    %195 = arith.mulf %194, %194 : vector<16x128xf32>
    %cst_89 = arith.constant dense<0.000000e+00> : vector<16xf32>
    %196 = vector.multi_reduction <add>, %195, %cst_89 [1] : vector<16x128xf32> to vector<16xf32>
    %197 = vector.shape_cast %196 : vector<16xf32> to vector<16x1xf32>
    %cst_90 = arith.constant 1.280000e+02 : f32
    %198 = vector.broadcast %cst_90 : f32 to vector<16x1xf32>
    %199 = arith.divf %197, %198 : vector<16x1xf32>
    %cst_91 = arith.constant 9.99999974E-6 : f32
    %200 = vector.broadcast %cst_91 : f32 to vector<16x1xf32>
    %201 = arith.addf %199, %200 : vector<16x1xf32>
    %202 = math.rsqrt %201 : vector<16x1xf32>
    %203 = arith.mulf %187, %202 : vector<16x1xf32>
    %204 = vector.broadcast %203 : vector<16x1xf32> to vector<16x128xf32>
    %205 = arith.mulf %194, %204 : vector<16x128xf32>
    %206 = vector.broadcast %188 : vector<16x1xf32> to vector<16x128xf32>
    %207 = arith.addf %205, %206 : vector<16x128xf32>
    %cst_92 = arith.constant 0.00999999977 : f32
    %208 = vector.broadcast %cst_92 : f32 to vector<16x128xf32>
    %209 = arith.mulf %208, %207 : vector<16x128xf32>
    %210 = arith.maximumf %207, %209 : vector<16x128xf32>
    %c9_i32_93 = arith.constant 9 : i32
    %211 = tpu.dynamic_rotate %210 by %c9_i32_93 dim 1 : vector<16x128xf32>, i32 -> vector<16x128xf32>
    %c0_94 = arith.constant 0 : index
    %c0_95 = arith.constant 0 : index
    %212 = vector.load %arg5[%c0_94, %c0_95] : memref<9x128xf32, #tpu.memory_space<vmem>>, vector<1x128xf32>
    %213 = vector.broadcast %212 : vector<1x128xf32> to vector<16x128xf32>
    %214 = arith.mulf %211, %213 : vector<16x128xf32>
    %c8_i32_96 = arith.constant 8 : i32
    %215 = tpu.dynamic_rotate %210 by %c8_i32_96 dim 1 : vector<16x128xf32>, i32 -> vector<16x128xf32>
    %c1_97 = arith.constant 1 : index
    %c0_98 = arith.constant 0 : index
    %216 = vector.load %arg5[%c1_97, %c0_98] : memref<9x128xf32, #tpu.memory_space<vmem>>, vector<1x128xf32>
    %217 = vector.broadcast %216 : vector<1x128xf32> to vector<16x128xf32>
    %218 = arith.mulf %215, %217 : vector<16x128xf32>
    %c7_i32_99 = arith.constant 7 : i32
    %219 = tpu.dynamic_rotate %210 by %c7_i32_99 dim 1 : vector<16x128xf32>, i32 -> vector<16x128xf32>
    %c2_100 = arith.constant 2 : index
    %c0_101 = arith.constant 0 : index
    %220 = vector.load %arg5[%c2_100, %c0_101] : memref<9x128xf32, #tpu.memory_space<vmem>>, vector<1x128xf32>
    %221 = vector.broadcast %220 : vector<1x128xf32> to vector<16x128xf32>
    %222 = arith.mulf %219, %221 : vector<16x128xf32>
    %c1_i32_102 = arith.constant 1 : i32
    %223 = tpu.dynamic_rotate %210 by %c1_i32_102 dim 1 : vector<16x128xf32>, i32 -> vector<16x128xf32>
    %c3_103 = arith.constant 3 : index
    %c0_104 = arith.constant 0 : index
    %224 = vector.load %arg5[%c3_103, %c0_104] : memref<9x128xf32, #tpu.memory_space<vmem>>, vector<1x128xf32>
    %225 = vector.broadcast %224 : vector<1x128xf32> to vector<16x128xf32>
    %226 = arith.mulf %223, %225 : vector<16x128xf32>
    %c127_i32_105 = arith.constant 127 : i32
    %227 = tpu.dynamic_rotate %210 by %c127_i32_105 dim 1 : vector<16x128xf32>, i32 -> vector<16x128xf32>
    %c5_106 = arith.constant 5 : index
    %c0_107 = arith.constant 0 : index
    %228 = vector.load %arg5[%c5_106, %c0_107] : memref<9x128xf32, #tpu.memory_space<vmem>>, vector<1x128xf32>
    %229 = vector.broadcast %228 : vector<1x128xf32> to vector<16x128xf32>
    %230 = arith.mulf %227, %229 : vector<16x128xf32>
    %c121_i32_108 = arith.constant 121 : i32
    %231 = tpu.dynamic_rotate %210 by %c121_i32_108 dim 1 : vector<16x128xf32>, i32 -> vector<16x128xf32>
    %c6_109 = arith.constant 6 : index
    %c0_110 = arith.constant 0 : index
    %232 = vector.load %arg5[%c6_109, %c0_110] : memref<9x128xf32, #tpu.memory_space<vmem>>, vector<1x128xf32>
    %233 = vector.broadcast %232 : vector<1x128xf32> to vector<16x128xf32>
    %234 = arith.mulf %231, %233 : vector<16x128xf32>
    %c120_i32_111 = arith.constant 120 : i32
    %235 = tpu.dynamic_rotate %210 by %c120_i32_111 dim 1 : vector<16x128xf32>, i32 -> vector<16x128xf32>
    %c7_112 = arith.constant 7 : index
    %c0_113 = arith.constant 0 : index
    %236 = vector.load %arg5[%c7_112, %c0_113] : memref<9x128xf32, #tpu.memory_space<vmem>>, vector<1x128xf32>
    %237 = vector.broadcast %236 : vector<1x128xf32> to vector<16x128xf32>
    %238 = arith.mulf %235, %237 : vector<16x128xf32>
    %c119_i32_114 = arith.constant 119 : i32
    %239 = tpu.dynamic_rotate %210 by %c119_i32_114 dim 1 : vector<16x128xf32>, i32 -> vector<16x128xf32>
    %c8_115 = arith.constant 8 : index
    %c0_116 = arith.constant 0 : index
    %240 = vector.load %arg5[%c8_115, %c0_116] : memref<9x128xf32, #tpu.memory_space<vmem>>, vector<1x128xf32>
    %241 = vector.broadcast %240 : vector<1x128xf32> to vector<16x128xf32>
    %242 = arith.mulf %239, %241 : vector<16x128xf32>
    %243 = tpu.concatenate %214, %218, %222, %226, %210, %230, %234, %238, %242 in 0 : vector<16x128xf32>, vector<16x128xf32>, vector<16x128xf32>, vector<16x128xf32>, vector<16x128xf32>, vector<16x128xf32>, vector<16x128xf32>, vector<16x128xf32>, vector<16x128xf32> -> vector<144x128xf32>
    %c160 = arith.constant 160 : index
    %c0_117 = arith.constant 0 : index
    %244 = vector.load %arg2[%c160, %c0_117] : memref<264x432xf32, #tpu.memory_space<vmem>>, vector<16x144xf32>
    %cst_118 = arith.constant dense<0.000000e+00> : vector<16x128xf32>
    %245 = tpu.matmul %244, %243, %cst_118 {dimension_numbers = #tpu.dot_dimension_numbers<[1], [0], [0], [1], [0, 0, 1, 1], [], []>} : vector<16x144xf32>, vector<144x128xf32>, vector<16x128xf32> -> vector<16x128xf32>
    %c160_119 = arith.constant 160 : index
    %c0_120 = arith.constant 0 : index
    %246 = vector.load %arg3[%c160_119, %c0_120] : memref<264x2xf32, #tpu.memory_space<vmem>>, vector<16x2xf32>
    %247 = vector.extract_strided_slice %246 {offsets = [0, 0], sizes = [16, 1], strides = [1, 1]} : vector<16x2xf32> to vector<16x1xf32>
    %248 = vector.extract_strided_slice %246 {offsets = [0, 1], sizes = [16, 1], strides = [1, 1]} : vector<16x2xf32> to vector<16x1xf32>
    %cst_121 = arith.constant dense<0.000000e+00> : vector<16xf32>
    %249 = vector.multi_reduction <add>, %245, %cst_121 [1] : vector<16x128xf32> to vector<16xf32>
    %250 = vector.shape_cast %249 : vector<16xf32> to vector<16x1xf32>
    %cst_122 = arith.constant 1.280000e+02 : f32
    %251 = vector.broadcast %cst_122 : f32 to vector<16x1xf32>
    %252 = arith.divf %250, %251 : vector<16x1xf32>
    %253 = vector.broadcast %252 : vector<16x1xf32> to vector<16x128xf32>
    %254 = arith.subf %245, %253 : vector<16x128xf32>
    %255 = arith.mulf %254, %254 : vector<16x128xf32>
    %cst_123 = arith.constant dense<0.000000e+00> : vector<16xf32>
    %256 = vector.multi_reduction <add>, %255, %cst_123 [1] : vector<16x128xf32> to vector<16xf32>
    %257 = vector.shape_cast %256 : vector<16xf32> to vector<16x1xf32>
    %cst_124 = arith.constant 1.280000e+02 : f32
    %258 = vector.broadcast %cst_124 : f32 to vector<16x1xf32>
    %259 = arith.divf %257, %258 : vector<16x1xf32>
    %cst_125 = arith.constant 9.99999974E-6 : f32
    %260 = vector.broadcast %cst_125 : f32 to vector<16x1xf32>
    %261 = arith.addf %259, %260 : vector<16x1xf32>
    %262 = math.rsqrt %261 : vector<16x1xf32>
    %263 = arith.mulf %247, %262 : vector<16x1xf32>
    %264 = vector.broadcast %263 : vector<16x1xf32> to vector<16x128xf32>
    %265 = arith.mulf %254, %264 : vector<16x128xf32>
    %266 = vector.broadcast %248 : vector<16x1xf32> to vector<16x128xf32>
    %267 = arith.addf %265, %266 : vector<16x128xf32>
    %cst_126 = arith.constant 0.00999999977 : f32
    %268 = vector.broadcast %cst_126 : f32 to vector<16x128xf32>
    %269 = arith.mulf %268, %267 : vector<16x128xf32>
    %270 = arith.maximumf %267, %269 : vector<16x128xf32>
    %271 = arith.addf %150, %270 : vector<16x128xf32>
    %c0_127 = arith.constant 0 : index
    %c0_128 = arith.constant 0 : index
    %272 = vector.load %arg8[%c0_127, %c0_128] : memref<128x32xf32, #tpu.memory_space<vmem>>, vector<128x32xf32>
    %cst_129 = arith.constant dense<0.000000e+00> : vector<16x32xf32>
    %273 = tpu.matmul %271, %272, %cst_129 {dimension_numbers = #tpu.dot_dimension_numbers<[1], [0], [0], [1], [0, 0, 1, 1], [], []>} : vector<16x128xf32>, vector<128x32xf32>, vector<16x32xf32> -> vector<16x32xf32>
    %c0_130 = arith.constant 0 : index
    %c0_131 = arith.constant 0 : index
    %274 = vector.load %arg2[%c0_130, %c0_131] : memref<264x432xf32, #tpu.memory_space<vmem>>, vector<32x16xf32>
    %cst_132 = arith.constant dense<0.000000e+00> : vector<32x32xf32>
    %275 = tpu.matmul %274, %273, %cst_132 {dimension_numbers = #tpu.dot_dimension_numbers<[1], [0], [0], [1], [0, 0, 1, 1], [], []>} : vector<32x16xf32>, vector<16x32xf32>, vector<32x32xf32> -> vector<32x32xf32>
    %c0_133 = arith.constant 0 : index
    %c0_134 = arith.constant 0 : index
    %276 = vector.load %arg3[%c0_133, %c0_134] : memref<264x2xf32, #tpu.memory_space<vmem>>, vector<32x2xf32>
    %277 = vector.extract_strided_slice %276 {offsets = [0, 0], sizes = [32, 1], strides = [1, 1]} : vector<32x2xf32> to vector<32x1xf32>
    %278 = vector.extract_strided_slice %276 {offsets = [0, 1], sizes = [32, 1], strides = [1, 1]} : vector<32x2xf32> to vector<32x1xf32>
    %cst_135 = arith.constant dense<0.000000e+00> : vector<32xf32>
    %279 = vector.multi_reduction <add>, %275, %cst_135 [1] : vector<32x32xf32> to vector<32xf32>
    %280 = vector.shape_cast %279 : vector<32xf32> to vector<32x1xf32>
    %cst_136 = arith.constant 3.200000e+01 : f32
    %281 = vector.broadcast %cst_136 : f32 to vector<32x1xf32>
    %282 = arith.divf %280, %281 : vector<32x1xf32>
    %283 = vector.broadcast %282 : vector<32x1xf32> to vector<32x32xf32>
    %284 = arith.subf %275, %283 : vector<32x32xf32>
    %285 = arith.mulf %284, %284 : vector<32x32xf32>
    %cst_137 = arith.constant dense<0.000000e+00> : vector<32xf32>
    %286 = vector.multi_reduction <add>, %285, %cst_137 [1] : vector<32x32xf32> to vector<32xf32>
    %287 = vector.shape_cast %286 : vector<32xf32> to vector<32x1xf32>
    %cst_138 = arith.constant 3.200000e+01 : f32
    %288 = vector.broadcast %cst_138 : f32 to vector<32x1xf32>
    %289 = arith.divf %287, %288 : vector<32x1xf32>
    %cst_139 = arith.constant 9.99999974E-6 : f32
    %290 = vector.broadcast %cst_139 : f32 to vector<32x1xf32>
    %291 = arith.addf %289, %290 : vector<32x1xf32>
    %292 = math.rsqrt %291 : vector<32x1xf32>
    %293 = arith.mulf %277, %292 : vector<32x1xf32>
    %294 = vector.broadcast %293 : vector<32x1xf32> to vector<32x32xf32>
    %295 = arith.mulf %284, %294 : vector<32x32xf32>
    %296 = vector.broadcast %278 : vector<32x1xf32> to vector<32x32xf32>
    %297 = arith.addf %295, %296 : vector<32x32xf32>
    %cst_140 = arith.constant 0.00999999977 : f32
    %298 = vector.broadcast %cst_140 : f32 to vector<32x32xf32>
    %299 = arith.mulf %298, %297 : vector<32x32xf32>
    %300 = arith.maximumf %297, %299 : vector<32x32xf32>
    %c5_i32 = arith.constant 5 : i32
    %301 = tpu.dynamic_rotate %300 by %c5_i32 dim 1 : vector<32x32xf32>, i32 -> vector<32x32xf32>
    %c0_141 = arith.constant 0 : index
    %c0_142 = arith.constant 0 : index
    %302 = vector.load %arg6[%c0_141, %c0_142] : memref<9x32xf32, #tpu.memory_space<vmem>>, vector<1x32xf32>
    %303 = vector.broadcast %302 : vector<1x32xf32> to vector<32x32xf32>
    %304 = arith.mulf %301, %303 : vector<32x32xf32>
    %c4_i32 = arith.constant 4 : i32
    %305 = tpu.dynamic_rotate %300 by %c4_i32 dim 1 : vector<32x32xf32>, i32 -> vector<32x32xf32>
    %c1_143 = arith.constant 1 : index
    %c0_144 = arith.constant 0 : index
    %306 = vector.load %arg6[%c1_143, %c0_144] : memref<9x32xf32, #tpu.memory_space<vmem>>, vector<1x32xf32>
    %307 = vector.broadcast %306 : vector<1x32xf32> to vector<32x32xf32>
    %308 = arith.mulf %305, %307 : vector<32x32xf32>
    %c3_i32 = arith.constant 3 : i32
    %309 = tpu.dynamic_rotate %300 by %c3_i32 dim 1 : vector<32x32xf32>, i32 -> vector<32x32xf32>
    %c2_145 = arith.constant 2 : index
    %c0_146 = arith.constant 0 : index
    %310 = vector.load %arg6[%c2_145, %c0_146] : memref<9x32xf32, #tpu.memory_space<vmem>>, vector<1x32xf32>
    %311 = vector.broadcast %310 : vector<1x32xf32> to vector<32x32xf32>
    %312 = arith.mulf %309, %311 : vector<32x32xf32>
    %c1_i32_147 = arith.constant 1 : i32
    %313 = tpu.dynamic_rotate %300 by %c1_i32_147 dim 1 : vector<32x32xf32>, i32 -> vector<32x32xf32>
    %c3_148 = arith.constant 3 : index
    %c0_149 = arith.constant 0 : index
    %314 = vector.load %arg6[%c3_148, %c0_149] : memref<9x32xf32, #tpu.memory_space<vmem>>, vector<1x32xf32>
    %315 = vector.broadcast %314 : vector<1x32xf32> to vector<32x32xf32>
    %316 = arith.mulf %313, %315 : vector<32x32xf32>
    %c31_i32 = arith.constant 31 : i32
    %317 = tpu.dynamic_rotate %300 by %c31_i32 dim 1 : vector<32x32xf32>, i32 -> vector<32x32xf32>
    %c5_150 = arith.constant 5 : index
    %c0_151 = arith.constant 0 : index
    %318 = vector.load %arg6[%c5_150, %c0_151] : memref<9x32xf32, #tpu.memory_space<vmem>>, vector<1x32xf32>
    %319 = vector.broadcast %318 : vector<1x32xf32> to vector<32x32xf32>
    %320 = arith.mulf %317, %319 : vector<32x32xf32>
    %c29_i32 = arith.constant 29 : i32
    %321 = tpu.dynamic_rotate %300 by %c29_i32 dim 1 : vector<32x32xf32>, i32 -> vector<32x32xf32>
    %c6_152 = arith.constant 6 : index
    %c0_153 = arith.constant 0 : index
    %322 = vector.load %arg6[%c6_152, %c0_153] : memref<9x32xf32, #tpu.memory_space<vmem>>, vector<1x32xf32>
    %323 = vector.broadcast %322 : vector<1x32xf32> to vector<32x32xf32>
    %324 = arith.mulf %321, %323 : vector<32x32xf32>
    %c28_i32 = arith.constant 28 : i32
    %325 = tpu.dynamic_rotate %300 by %c28_i32 dim 1 : vector<32x32xf32>, i32 -> vector<32x32xf32>
    %c7_154 = arith.constant 7 : index
    %c0_155 = arith.constant 0 : index
    %326 = vector.load %arg6[%c7_154, %c0_155] : memref<9x32xf32, #tpu.memory_space<vmem>>, vector<1x32xf32>
    %327 = vector.broadcast %326 : vector<1x32xf32> to vector<32x32xf32>
    %328 = arith.mulf %325, %327 : vector<32x32xf32>
    %c27_i32 = arith.constant 27 : i32
    %329 = tpu.dynamic_rotate %300 by %c27_i32 dim 1 : vector<32x32xf32>, i32 -> vector<32x32xf32>
    %c8_156 = arith.constant 8 : index
    %c0_157 = arith.constant 0 : index
    %330 = vector.load %arg6[%c8_156, %c0_157] : memref<9x32xf32, #tpu.memory_space<vmem>>, vector<1x32xf32>
    %331 = vector.broadcast %330 : vector<1x32xf32> to vector<32x32xf32>
    %332 = arith.mulf %329, %331 : vector<32x32xf32>
    %333 = tpu.concatenate %304, %308, %312, %316, %300, %320, %324, %328, %332 in 0 : vector<32x32xf32>, vector<32x32xf32>, vector<32x32xf32>, vector<32x32xf32>, vector<32x32xf32>, vector<32x32xf32>, vector<32x32xf32>, vector<32x32xf32>, vector<32x32xf32> -> vector<288x32xf32>
    %c32 = arith.constant 32 : index
    %c0_158 = arith.constant 0 : index
    %334 = vector.load %arg2[%c32, %c0_158] : memref<264x432xf32, #tpu.memory_space<vmem>>, vector<32x288xf32>
    %cst_159 = arith.constant dense<0.000000e+00> : vector<32x32xf32>
    %335 = tpu.matmul %334, %333, %cst_159 {dimension_numbers = #tpu.dot_dimension_numbers<[1], [0], [0], [1], [0, 0, 1, 1], [], []>} : vector<32x288xf32>, vector<288x32xf32>, vector<32x32xf32> -> vector<32x32xf32>
    %c32_160 = arith.constant 32 : index
    %c0_161 = arith.constant 0 : index
    %336 = vector.load %arg3[%c32_160, %c0_161] : memref<264x2xf32, #tpu.memory_space<vmem>>, vector<32x2xf32>
    %337 = vector.extract_strided_slice %336 {offsets = [0, 0], sizes = [32, 1], strides = [1, 1]} : vector<32x2xf32> to vector<32x1xf32>
    %338 = vector.extract_strided_slice %336 {offsets = [0, 1], sizes = [32, 1], strides = [1, 1]} : vector<32x2xf32> to vector<32x1xf32>
    %cst_162 = arith.constant dense<0.000000e+00> : vector<32xf32>
    %339 = vector.multi_reduction <add>, %335, %cst_162 [1] : vector<32x32xf32> to vector<32xf32>
    %340 = vector.shape_cast %339 : vector<32xf32> to vector<32x1xf32>
    %cst_163 = arith.constant 3.200000e+01 : f32
    %341 = vector.broadcast %cst_163 : f32 to vector<32x1xf32>
    %342 = arith.divf %340, %341 : vector<32x1xf32>
    %343 = vector.broadcast %342 : vector<32x1xf32> to vector<32x32xf32>
    %344 = arith.subf %335, %343 : vector<32x32xf32>
    %345 = arith.mulf %344, %344 : vector<32x32xf32>
    %cst_164 = arith.constant dense<0.000000e+00> : vector<32xf32>
    %346 = vector.multi_reduction <add>, %345, %cst_164 [1] : vector<32x32xf32> to vector<32xf32>
    %347 = vector.shape_cast %346 : vector<32xf32> to vector<32x1xf32>
    %cst_165 = arith.constant 3.200000e+01 : f32
    %348 = vector.broadcast %cst_165 : f32 to vector<32x1xf32>
    %349 = arith.divf %347, %348 : vector<32x1xf32>
    %cst_166 = arith.constant 9.99999974E-6 : f32
    %350 = vector.broadcast %cst_166 : f32 to vector<32x1xf32>
    %351 = arith.addf %349, %350 : vector<32x1xf32>
    %352 = math.rsqrt %351 : vector<32x1xf32>
    %353 = arith.mulf %337, %352 : vector<32x1xf32>
    %354 = vector.broadcast %353 : vector<32x1xf32> to vector<32x32xf32>
    %355 = arith.mulf %344, %354 : vector<32x32xf32>
    %356 = vector.broadcast %338 : vector<32x1xf32> to vector<32x32xf32>
    %357 = arith.addf %355, %356 : vector<32x32xf32>
    %cst_167 = arith.constant 0.00999999977 : f32
    %358 = vector.broadcast %cst_167 : f32 to vector<32x32xf32>
    %359 = arith.mulf %358, %357 : vector<32x32xf32>
    %360 = arith.maximumf %357, %359 : vector<32x32xf32>
    %c5_i32_168 = arith.constant 5 : i32
    %361 = tpu.dynamic_rotate %360 by %c5_i32_168 dim 1 : vector<32x32xf32>, i32 -> vector<32x32xf32>
    %c0_169 = arith.constant 0 : index
    %c0_170 = arith.constant 0 : index
    %362 = vector.load %arg6[%c0_169, %c0_170] : memref<9x32xf32, #tpu.memory_space<vmem>>, vector<1x32xf32>
    %363 = vector.broadcast %362 : vector<1x32xf32> to vector<32x32xf32>
    %364 = arith.mulf %361, %363 : vector<32x32xf32>
    %c4_i32_171 = arith.constant 4 : i32
    %365 = tpu.dynamic_rotate %360 by %c4_i32_171 dim 1 : vector<32x32xf32>, i32 -> vector<32x32xf32>
    %c1_172 = arith.constant 1 : index
    %c0_173 = arith.constant 0 : index
    %366 = vector.load %arg6[%c1_172, %c0_173] : memref<9x32xf32, #tpu.memory_space<vmem>>, vector<1x32xf32>
    %367 = vector.broadcast %366 : vector<1x32xf32> to vector<32x32xf32>
    %368 = arith.mulf %365, %367 : vector<32x32xf32>
    %c3_i32_174 = arith.constant 3 : i32
    %369 = tpu.dynamic_rotate %360 by %c3_i32_174 dim 1 : vector<32x32xf32>, i32 -> vector<32x32xf32>
    %c2_175 = arith.constant 2 : index
    %c0_176 = arith.constant 0 : index
    %370 = vector.load %arg6[%c2_175, %c0_176] : memref<9x32xf32, #tpu.memory_space<vmem>>, vector<1x32xf32>
    %371 = vector.broadcast %370 : vector<1x32xf32> to vector<32x32xf32>
    %372 = arith.mulf %369, %371 : vector<32x32xf32>
    %c1_i32_177 = arith.constant 1 : i32
    %373 = tpu.dynamic_rotate %360 by %c1_i32_177 dim 1 : vector<32x32xf32>, i32 -> vector<32x32xf32>
    %c3_178 = arith.constant 3 : index
    %c0_179 = arith.constant 0 : index
    %374 = vector.load %arg6[%c3_178, %c0_179] : memref<9x32xf32, #tpu.memory_space<vmem>>, vector<1x32xf32>
    %375 = vector.broadcast %374 : vector<1x32xf32> to vector<32x32xf32>
    %376 = arith.mulf %373, %375 : vector<32x32xf32>
    %c31_i32_180 = arith.constant 31 : i32
    %377 = tpu.dynamic_rotate %360 by %c31_i32_180 dim 1 : vector<32x32xf32>, i32 -> vector<32x32xf32>
    %c5_181 = arith.constant 5 : index
    %c0_182 = arith.constant 0 : index
    %378 = vector.load %arg6[%c5_181, %c0_182] : memref<9x32xf32, #tpu.memory_space<vmem>>, vector<1x32xf32>
    %379 = vector.broadcast %378 : vector<1x32xf32> to vector<32x32xf32>
    %380 = arith.mulf %377, %379 : vector<32x32xf32>
    %c29_i32_183 = arith.constant 29 : i32
    %381 = tpu.dynamic_rotate %360 by %c29_i32_183 dim 1 : vector<32x32xf32>, i32 -> vector<32x32xf32>
    %c6_184 = arith.constant 6 : index
    %c0_185 = arith.constant 0 : index
    %382 = vector.load %arg6[%c6_184, %c0_185] : memref<9x32xf32, #tpu.memory_space<vmem>>, vector<1x32xf32>
    %383 = vector.broadcast %382 : vector<1x32xf32> to vector<32x32xf32>
    %384 = arith.mulf %381, %383 : vector<32x32xf32>
    %c28_i32_186 = arith.constant 28 : i32
    %385 = tpu.dynamic_rotate %360 by %c28_i32_186 dim 1 : vector<32x32xf32>, i32 -> vector<32x32xf32>
    %c7_187 = arith.constant 7 : index
    %c0_188 = arith.constant 0 : index
    %386 = vector.load %arg6[%c7_187, %c0_188] : memref<9x32xf32, #tpu.memory_space<vmem>>, vector<1x32xf32>
    %387 = vector.broadcast %386 : vector<1x32xf32> to vector<32x32xf32>
    %388 = arith.mulf %385, %387 : vector<32x32xf32>
    %c27_i32_189 = arith.constant 27 : i32
    %389 = tpu.dynamic_rotate %360 by %c27_i32_189 dim 1 : vector<32x32xf32>, i32 -> vector<32x32xf32>
    %c8_190 = arith.constant 8 : index
    %c0_191 = arith.constant 0 : index
    %390 = vector.load %arg6[%c8_190, %c0_191] : memref<9x32xf32, #tpu.memory_space<vmem>>, vector<1x32xf32>
    %391 = vector.broadcast %390 : vector<1x32xf32> to vector<32x32xf32>
    %392 = arith.mulf %389, %391 : vector<32x32xf32>
    %393 = tpu.concatenate %364, %368, %372, %376, %360, %380, %384, %388, %392 in 0 : vector<32x32xf32>, vector<32x32xf32>, vector<32x32xf32>, vector<32x32xf32>, vector<32x32xf32>, vector<32x32xf32>, vector<32x32xf32>, vector<32x32xf32>, vector<32x32xf32> -> vector<288x32xf32>
    %c64 = arith.constant 64 : index
    %c0_192 = arith.constant 0 : index
    %394 = vector.load %arg2[%c64, %c0_192] : memref<264x432xf32, #tpu.memory_space<vmem>>, vector<32x288xf32>
    %cst_193 = arith.constant dense<0.000000e+00> : vector<32x32xf32>
    %395 = tpu.matmul %394, %393, %cst_193 {dimension_numbers = #tpu.dot_dimension_numbers<[1], [0], [0], [1], [0, 0, 1, 1], [], []>} : vector<32x288xf32>, vector<288x32xf32>, vector<32x32xf32> -> vector<32x32xf32>
    %c64_194 = arith.constant 64 : index
    %c0_195 = arith.constant 0 : index
    %396 = vector.load %arg3[%c64_194, %c0_195] : memref<264x2xf32, #tpu.memory_space<vmem>>, vector<32x2xf32>
    %397 = vector.extract_strided_slice %396 {offsets = [0, 0], sizes = [32, 1], strides = [1, 1]} : vector<32x2xf32> to vector<32x1xf32>
    %398 = vector.extract_strided_slice %396 {offsets = [0, 1], sizes = [32, 1], strides = [1, 1]} : vector<32x2xf32> to vector<32x1xf32>
    %cst_196 = arith.constant dense<0.000000e+00> : vector<32xf32>
    %399 = vector.multi_reduction <add>, %395, %cst_196 [1] : vector<32x32xf32> to vector<32xf32>
    %400 = vector.shape_cast %399 : vector<32xf32> to vector<32x1xf32>
    %cst_197 = arith.constant 3.200000e+01 : f32
    %401 = vector.broadcast %cst_197 : f32 to vector<32x1xf32>
    %402 = arith.divf %400, %401 : vector<32x1xf32>
    %403 = vector.broadcast %402 : vector<32x1xf32> to vector<32x32xf32>
    %404 = arith.subf %395, %403 : vector<32x32xf32>
    %405 = arith.mulf %404, %404 : vector<32x32xf32>
    %cst_198 = arith.constant dense<0.000000e+00> : vector<32xf32>
    %406 = vector.multi_reduction <add>, %405, %cst_198 [1] : vector<32x32xf32> to vector<32xf32>
    %407 = vector.shape_cast %406 : vector<32xf32> to vector<32x1xf32>
    %cst_199 = arith.constant 3.200000e+01 : f32
    %408 = vector.broadcast %cst_199 : f32 to vector<32x1xf32>
    %409 = arith.divf %407, %408 : vector<32x1xf32>
    %cst_200 = arith.constant 9.99999974E-6 : f32
    %410 = vector.broadcast %cst_200 : f32 to vector<32x1xf32>
    %411 = arith.addf %409, %410 : vector<32x1xf32>
    %412 = math.rsqrt %411 : vector<32x1xf32>
    %413 = arith.mulf %397, %412 : vector<32x1xf32>
    %414 = vector.broadcast %413 : vector<32x1xf32> to vector<32x32xf32>
    %415 = arith.mulf %404, %414 : vector<32x32xf32>
    %416 = vector.broadcast %398 : vector<32x1xf32> to vector<32x32xf32>
    %417 = arith.addf %415, %416 : vector<32x32xf32>
    %cst_201 = arith.constant 0.00999999977 : f32
    %418 = vector.broadcast %cst_201 : f32 to vector<32x32xf32>
    %419 = arith.mulf %418, %417 : vector<32x32xf32>
    %420 = arith.maximumf %417, %419 : vector<32x32xf32>
    %421 = arith.addf %300, %420 : vector<32x32xf32>
    %c96 = arith.constant 96 : index
    %c0_202 = arith.constant 0 : index
    %422 = vector.load %arg2[%c96, %c0_202] : memref<264x432xf32, #tpu.memory_space<vmem>>, vector<32x32xf32>
    %cst_203 = arith.constant dense<0.000000e+00> : vector<32x32xf32>
    %423 = tpu.matmul %422, %421, %cst_203 {dimension_numbers = #tpu.dot_dimension_numbers<[1], [0], [0], [1], [0, 0, 1, 1], [], []>} : vector<32x32xf32>, vector<32x32xf32>, vector<32x32xf32> -> vector<32x32xf32>
    %c96_204 = arith.constant 96 : index
    %c0_205 = arith.constant 0 : index
    %424 = vector.load %arg3[%c96_204, %c0_205] : memref<264x2xf32, #tpu.memory_space<vmem>>, vector<32x2xf32>
    %425 = vector.extract_strided_slice %424 {offsets = [0, 0], sizes = [32, 1], strides = [1, 1]} : vector<32x2xf32> to vector<32x1xf32>
    %426 = vector.extract_strided_slice %424 {offsets = [0, 1], sizes = [32, 1], strides = [1, 1]} : vector<32x2xf32> to vector<32x1xf32>
    %cst_206 = arith.constant dense<0.000000e+00> : vector<32xf32>
    %427 = vector.multi_reduction <add>, %423, %cst_206 [1] : vector<32x32xf32> to vector<32xf32>
    %428 = vector.shape_cast %427 : vector<32xf32> to vector<32x1xf32>
    %cst_207 = arith.constant 3.200000e+01 : f32
    %429 = vector.broadcast %cst_207 : f32 to vector<32x1xf32>
    %430 = arith.divf %428, %429 : vector<32x1xf32>
    %431 = vector.broadcast %430 : vector<32x1xf32> to vector<32x32xf32>
    %432 = arith.subf %423, %431 : vector<32x32xf32>
    %433 = arith.mulf %432, %432 : vector<32x32xf32>
    %cst_208 = arith.constant dense<0.000000e+00> : vector<32xf32>
    %434 = vector.multi_reduction <add>, %433, %cst_208 [1] : vector<32x32xf32> to vector<32xf32>
    %435 = vector.shape_cast %434 : vector<32xf32> to vector<32x1xf32>
    %cst_209 = arith.constant 3.200000e+01 : f32
    %436 = vector.broadcast %cst_209 : f32 to vector<32x1xf32>
    %437 = arith.divf %435, %436 : vector<32x1xf32>
    %cst_210 = arith.constant 9.99999974E-6 : f32
    %438 = vector.broadcast %cst_210 : f32 to vector<32x1xf32>
    %439 = arith.addf %437, %438 : vector<32x1xf32>
    %440 = math.rsqrt %439 : vector<32x1xf32>
    %441 = arith.mulf %425, %440 : vector<32x1xf32>
    %442 = vector.broadcast %441 : vector<32x1xf32> to vector<32x32xf32>
    %443 = arith.mulf %432, %442 : vector<32x32xf32>
    %444 = vector.broadcast %426 : vector<32x1xf32> to vector<32x32xf32>
    %445 = arith.addf %443, %444 : vector<32x32xf32>
    %cst_211 = arith.constant 0.00999999977 : f32
    %446 = vector.broadcast %cst_211 : f32 to vector<32x32xf32>
    %447 = arith.mulf %446, %445 : vector<32x32xf32>
    %448 = arith.maximumf %445, %447 : vector<32x32xf32>
    %c0_212 = arith.constant 0 : index
    %c0_213 = arith.constant 0 : index
    %449 = vector.load %arg10[%c0_212, %c0_213] : memref<32x128xf32, #tpu.memory_space<vmem>>, vector<32x128xf32>
    %cst_214 = arith.constant dense<0.000000e+00> : vector<32x128xf32>
    %450 = tpu.matmul %448, %449, %cst_214 {dimension_numbers = #tpu.dot_dimension_numbers<[1], [0], [0], [1], [0, 0, 1, 1], [], []>} : vector<32x32xf32>, vector<32x128xf32>, vector<32x128xf32> -> vector<32x128xf32>
    %451 = tpu.concatenate %450, %271 in 0 : vector<32x128xf32>, vector<16x128xf32> -> vector<48x128xf32>
    %c9_i32_215 = arith.constant 9 : i32
    %452 = tpu.dynamic_rotate %451 by %c9_i32_215 dim 1 : vector<48x128xf32>, i32 -> vector<48x128xf32>
    %c0_216 = arith.constant 0 : index
    %c0_217 = arith.constant 0 : index
    %453 = vector.load %arg5[%c0_216, %c0_217] : memref<9x128xf32, #tpu.memory_space<vmem>>, vector<1x128xf32>
    %454 = vector.broadcast %453 : vector<1x128xf32> to vector<48x128xf32>
    %455 = arith.mulf %452, %454 : vector<48x128xf32>
    %c8_i32_218 = arith.constant 8 : i32
    %456 = tpu.dynamic_rotate %451 by %c8_i32_218 dim 1 : vector<48x128xf32>, i32 -> vector<48x128xf32>
    %c1_219 = arith.constant 1 : index
    %c0_220 = arith.constant 0 : index
    %457 = vector.load %arg5[%c1_219, %c0_220] : memref<9x128xf32, #tpu.memory_space<vmem>>, vector<1x128xf32>
    %458 = vector.broadcast %457 : vector<1x128xf32> to vector<48x128xf32>
    %459 = arith.mulf %456, %458 : vector<48x128xf32>
    %c7_i32_221 = arith.constant 7 : i32
    %460 = tpu.dynamic_rotate %451 by %c7_i32_221 dim 1 : vector<48x128xf32>, i32 -> vector<48x128xf32>
    %c2_222 = arith.constant 2 : index
    %c0_223 = arith.constant 0 : index
    %461 = vector.load %arg5[%c2_222, %c0_223] : memref<9x128xf32, #tpu.memory_space<vmem>>, vector<1x128xf32>
    %462 = vector.broadcast %461 : vector<1x128xf32> to vector<48x128xf32>
    %463 = arith.mulf %460, %462 : vector<48x128xf32>
    %c1_i32_224 = arith.constant 1 : i32
    %464 = tpu.dynamic_rotate %451 by %c1_i32_224 dim 1 : vector<48x128xf32>, i32 -> vector<48x128xf32>
    %c3_225 = arith.constant 3 : index
    %c0_226 = arith.constant 0 : index
    %465 = vector.load %arg5[%c3_225, %c0_226] : memref<9x128xf32, #tpu.memory_space<vmem>>, vector<1x128xf32>
    %466 = vector.broadcast %465 : vector<1x128xf32> to vector<48x128xf32>
    %467 = arith.mulf %464, %466 : vector<48x128xf32>
    %c127_i32_227 = arith.constant 127 : i32
    %468 = tpu.dynamic_rotate %451 by %c127_i32_227 dim 1 : vector<48x128xf32>, i32 -> vector<48x128xf32>
    %c5_228 = arith.constant 5 : index
    %c0_229 = arith.constant 0 : index
    %469 = vector.load %arg5[%c5_228, %c0_229] : memref<9x128xf32, #tpu.memory_space<vmem>>, vector<1x128xf32>
    %470 = vector.broadcast %469 : vector<1x128xf32> to vector<48x128xf32>
    %471 = arith.mulf %468, %470 : vector<48x128xf32>
    %c121_i32_230 = arith.constant 121 : i32
    %472 = tpu.dynamic_rotate %451 by %c121_i32_230 dim 1 : vector<48x128xf32>, i32 -> vector<48x128xf32>
    %c6_231 = arith.constant 6 : index
    %c0_232 = arith.constant 0 : index
    %473 = vector.load %arg5[%c6_231, %c0_232] : memref<9x128xf32, #tpu.memory_space<vmem>>, vector<1x128xf32>
    %474 = vector.broadcast %473 : vector<1x128xf32> to vector<48x128xf32>
    %475 = arith.mulf %472, %474 : vector<48x128xf32>
    %c120_i32_233 = arith.constant 120 : i32
    %476 = tpu.dynamic_rotate %451 by %c120_i32_233 dim 1 : vector<48x128xf32>, i32 -> vector<48x128xf32>
    %c7_234 = arith.constant 7 : index
    %c0_235 = arith.constant 0 : index
    %477 = vector.load %arg5[%c7_234, %c0_235] : memref<9x128xf32, #tpu.memory_space<vmem>>, vector<1x128xf32>
    %478 = vector.broadcast %477 : vector<1x128xf32> to vector<48x128xf32>
    %479 = arith.mulf %476, %478 : vector<48x128xf32>
    %c119_i32_236 = arith.constant 119 : i32
    %480 = tpu.dynamic_rotate %451 by %c119_i32_236 dim 1 : vector<48x128xf32>, i32 -> vector<48x128xf32>
    %c8_237 = arith.constant 8 : index
    %c0_238 = arith.constant 0 : index
    %481 = vector.load %arg5[%c8_237, %c0_238] : memref<9x128xf32, #tpu.memory_space<vmem>>, vector<1x128xf32>
    %482 = vector.broadcast %481 : vector<1x128xf32> to vector<48x128xf32>
    %483 = arith.mulf %480, %482 : vector<48x128xf32>
    %484 = tpu.concatenate %455, %459, %463, %467, %451, %471, %475, %479, %483 in 0 : vector<48x128xf32>, vector<48x128xf32>, vector<48x128xf32>, vector<48x128xf32>, vector<48x128xf32>, vector<48x128xf32>, vector<48x128xf32>, vector<48x128xf32>, vector<48x128xf32> -> vector<432x128xf32>
    %c176 = arith.constant 176 : index
    %c0_239 = arith.constant 0 : index
    %485 = vector.load %arg2[%c176, %c0_239] : memref<264x432xf32, #tpu.memory_space<vmem>>, vector<16x432xf32>
    %cst_240 = arith.constant dense<0.000000e+00> : vector<16x128xf32>
    %486 = tpu.matmul %485, %484, %cst_240 {dimension_numbers = #tpu.dot_dimension_numbers<[1], [0], [0], [1], [0, 0, 1, 1], [], []>} : vector<16x432xf32>, vector<432x128xf32>, vector<16x128xf32> -> vector<16x128xf32>
    %c176_241 = arith.constant 176 : index
    %c0_242 = arith.constant 0 : index
    %487 = vector.load %arg3[%c176_241, %c0_242] : memref<264x2xf32, #tpu.memory_space<vmem>>, vector<16x2xf32>
    %488 = vector.extract_strided_slice %487 {offsets = [0, 0], sizes = [16, 1], strides = [1, 1]} : vector<16x2xf32> to vector<16x1xf32>
    %489 = vector.extract_strided_slice %487 {offsets = [0, 1], sizes = [16, 1], strides = [1, 1]} : vector<16x2xf32> to vector<16x1xf32>
    %cst_243 = arith.constant dense<0.000000e+00> : vector<16xf32>
    %490 = vector.multi_reduction <add>, %486, %cst_243 [1] : vector<16x128xf32> to vector<16xf32>
    %491 = vector.shape_cast %490 : vector<16xf32> to vector<16x1xf32>
    %cst_244 = arith.constant 1.280000e+02 : f32
    %492 = vector.broadcast %cst_244 : f32 to vector<16x1xf32>
    %493 = arith.divf %491, %492 : vector<16x1xf32>
    %494 = vector.broadcast %493 : vector<16x1xf32> to vector<16x128xf32>
    %495 = arith.subf %486, %494 : vector<16x128xf32>
    %496 = arith.mulf %495, %495 : vector<16x128xf32>
    %cst_245 = arith.constant dense<0.000000e+00> : vector<16xf32>
    %497 = vector.multi_reduction <add>, %496, %cst_245 [1] : vector<16x128xf32> to vector<16xf32>
    %498 = vector.shape_cast %497 : vector<16xf32> to vector<16x1xf32>
    %cst_246 = arith.constant 1.280000e+02 : f32
    %499 = vector.broadcast %cst_246 : f32 to vector<16x1xf32>
    %500 = arith.divf %498, %499 : vector<16x1xf32>
    %cst_247 = arith.constant 9.99999974E-6 : f32
    %501 = vector.broadcast %cst_247 : f32 to vector<16x1xf32>
    %502 = arith.addf %500, %501 : vector<16x1xf32>
    %503 = math.rsqrt %502 : vector<16x1xf32>
    %504 = arith.mulf %488, %503 : vector<16x1xf32>
    %505 = vector.broadcast %504 : vector<16x1xf32> to vector<16x128xf32>
    %506 = arith.mulf %495, %505 : vector<16x128xf32>
    %507 = vector.broadcast %489 : vector<16x1xf32> to vector<16x128xf32>
    %508 = arith.addf %506, %507 : vector<16x128xf32>
    %cst_248 = arith.constant 0.00999999977 : f32
    %509 = vector.broadcast %cst_248 : f32 to vector<16x128xf32>
    %510 = arith.mulf %509, %508 : vector<16x128xf32>
    %511 = arith.maximumf %508, %510 : vector<16x128xf32>
    %c9_i32_249 = arith.constant 9 : i32
    %512 = tpu.dynamic_rotate %511 by %c9_i32_249 dim 1 : vector<16x128xf32>, i32 -> vector<16x128xf32>
    %c0_250 = arith.constant 0 : index
    %c0_251 = arith.constant 0 : index
    %513 = vector.load %arg5[%c0_250, %c0_251] : memref<9x128xf32, #tpu.memory_space<vmem>>, vector<1x128xf32>
    %514 = vector.broadcast %513 : vector<1x128xf32> to vector<16x128xf32>
    %515 = arith.mulf %512, %514 : vector<16x128xf32>
    %c8_i32_252 = arith.constant 8 : i32
    %516 = tpu.dynamic_rotate %511 by %c8_i32_252 dim 1 : vector<16x128xf32>, i32 -> vector<16x128xf32>
    %c1_253 = arith.constant 1 : index
    %c0_254 = arith.constant 0 : index
    %517 = vector.load %arg5[%c1_253, %c0_254] : memref<9x128xf32, #tpu.memory_space<vmem>>, vector<1x128xf32>
    %518 = vector.broadcast %517 : vector<1x128xf32> to vector<16x128xf32>
    %519 = arith.mulf %516, %518 : vector<16x128xf32>
    %c7_i32_255 = arith.constant 7 : i32
    %520 = tpu.dynamic_rotate %511 by %c7_i32_255 dim 1 : vector<16x128xf32>, i32 -> vector<16x128xf32>
    %c2_256 = arith.constant 2 : index
    %c0_257 = arith.constant 0 : index
    %521 = vector.load %arg5[%c2_256, %c0_257] : memref<9x128xf32, #tpu.memory_space<vmem>>, vector<1x128xf32>
    %522 = vector.broadcast %521 : vector<1x128xf32> to vector<16x128xf32>
    %523 = arith.mulf %520, %522 : vector<16x128xf32>
    %c1_i32_258 = arith.constant 1 : i32
    %524 = tpu.dynamic_rotate %511 by %c1_i32_258 dim 1 : vector<16x128xf32>, i32 -> vector<16x128xf32>
    %c3_259 = arith.constant 3 : index
    %c0_260 = arith.constant 0 : index
    %525 = vector.load %arg5[%c3_259, %c0_260] : memref<9x128xf32, #tpu.memory_space<vmem>>, vector<1x128xf32>
    %526 = vector.broadcast %525 : vector<1x128xf32> to vector<16x128xf32>
    %527 = arith.mulf %524, %526 : vector<16x128xf32>
    %c127_i32_261 = arith.constant 127 : i32
    %528 = tpu.dynamic_rotate %511 by %c127_i32_261 dim 1 : vector<16x128xf32>, i32 -> vector<16x128xf32>
    %c5_262 = arith.constant 5 : index
    %c0_263 = arith.constant 0 : index
    %529 = vector.load %arg5[%c5_262, %c0_263] : memref<9x128xf32, #tpu.memory_space<vmem>>, vector<1x128xf32>
    %530 = vector.broadcast %529 : vector<1x128xf32> to vector<16x128xf32>
    %531 = arith.mulf %528, %530 : vector<16x128xf32>
    %c121_i32_264 = arith.constant 121 : i32
    %532 = tpu.dynamic_rotate %511 by %c121_i32_264 dim 1 : vector<16x128xf32>, i32 -> vector<16x128xf32>
    %c6_265 = arith.constant 6 : index
    %c0_266 = arith.constant 0 : index
    %533 = vector.load %arg5[%c6_265, %c0_266] : memref<9x128xf32, #tpu.memory_space<vmem>>, vector<1x128xf32>
    %534 = vector.broadcast %533 : vector<1x128xf32> to vector<16x128xf32>
    %535 = arith.mulf %532, %534 : vector<16x128xf32>
    %c120_i32_267 = arith.constant 120 : i32
    %536 = tpu.dynamic_rotate %511 by %c120_i32_267 dim 1 : vector<16x128xf32>, i32 -> vector<16x128xf32>
    %c7_268 = arith.constant 7 : index
    %c0_269 = arith.constant 0 : index
    %537 = vector.load %arg5[%c7_268, %c0_269] : memref<9x128xf32, #tpu.memory_space<vmem>>, vector<1x128xf32>
    %538 = vector.broadcast %537 : vector<1x128xf32> to vector<16x128xf32>
    %539 = arith.mulf %536, %538 : vector<16x128xf32>
    %c119_i32_270 = arith.constant 119 : i32
    %540 = tpu.dynamic_rotate %511 by %c119_i32_270 dim 1 : vector<16x128xf32>, i32 -> vector<16x128xf32>
    %c8_271 = arith.constant 8 : index
    %c0_272 = arith.constant 0 : index
    %541 = vector.load %arg5[%c8_271, %c0_272] : memref<9x128xf32, #tpu.memory_space<vmem>>, vector<1x128xf32>
    %542 = vector.broadcast %541 : vector<1x128xf32> to vector<16x128xf32>
    %543 = arith.mulf %540, %542 : vector<16x128xf32>
    %544 = tpu.concatenate %515, %519, %523, %527, %511, %531, %535, %539, %543 in 0 : vector<16x128xf32>, vector<16x128xf32>, vector<16x128xf32>, vector<16x128xf32>, vector<16x128xf32>, vector<16x128xf32>, vector<16x128xf32>, vector<16x128xf32>, vector<16x128xf32> -> vector<144x128xf32>
    %c192 = arith.constant 192 : index
    %c0_273 = arith.constant 0 : index
    %545 = vector.load %arg2[%c192, %c0_273] : memref<264x432xf32, #tpu.memory_space<vmem>>, vector<16x144xf32>
    %cst_274 = arith.constant dense<0.000000e+00> : vector<16x128xf32>
    %546 = tpu.matmul %545, %544, %cst_274 {dimension_numbers = #tpu.dot_dimension_numbers<[1], [0], [0], [1], [0, 0, 1, 1], [], []>} : vector<16x144xf32>, vector<144x128xf32>, vector<16x128xf32> -> vector<16x128xf32>
    %c192_275 = arith.constant 192 : index
    %c0_276 = arith.constant 0 : index
    %547 = vector.load %arg3[%c192_275, %c0_276] : memref<264x2xf32, #tpu.memory_space<vmem>>, vector<16x2xf32>
    %548 = vector.extract_strided_slice %547 {offsets = [0, 0], sizes = [16, 1], strides = [1, 1]} : vector<16x2xf32> to vector<16x1xf32>
    %549 = vector.extract_strided_slice %547 {offsets = [0, 1], sizes = [16, 1], strides = [1, 1]} : vector<16x2xf32> to vector<16x1xf32>
    %cst_277 = arith.constant dense<0.000000e+00> : vector<16xf32>
    %550 = vector.multi_reduction <add>, %546, %cst_277 [1] : vector<16x128xf32> to vector<16xf32>
    %551 = vector.shape_cast %550 : vector<16xf32> to vector<16x1xf32>
    %cst_278 = arith.constant 1.280000e+02 : f32
    %552 = vector.broadcast %cst_278 : f32 to vector<16x1xf32>
    %553 = arith.divf %551, %552 : vector<16x1xf32>
    %554 = vector.broadcast %553 : vector<16x1xf32> to vector<16x128xf32>
    %555 = arith.subf %546, %554 : vector<16x128xf32>
    %556 = arith.mulf %555, %555 : vector<16x128xf32>
    %cst_279 = arith.constant dense<0.000000e+00> : vector<16xf32>
    %557 = vector.multi_reduction <add>, %556, %cst_279 [1] : vector<16x128xf32> to vector<16xf32>
    %558 = vector.shape_cast %557 : vector<16xf32> to vector<16x1xf32>
    %cst_280 = arith.constant 1.280000e+02 : f32
    %559 = vector.broadcast %cst_280 : f32 to vector<16x1xf32>
    %560 = arith.divf %558, %559 : vector<16x1xf32>
    %cst_281 = arith.constant 9.99999974E-6 : f32
    %561 = vector.broadcast %cst_281 : f32 to vector<16x1xf32>
    %562 = arith.addf %560, %561 : vector<16x1xf32>
    %563 = math.rsqrt %562 : vector<16x1xf32>
    %564 = arith.mulf %548, %563 : vector<16x1xf32>
    %565 = vector.broadcast %564 : vector<16x1xf32> to vector<16x128xf32>
    %566 = arith.mulf %555, %565 : vector<16x128xf32>
    %567 = vector.broadcast %549 : vector<16x1xf32> to vector<16x128xf32>
    %568 = arith.addf %566, %567 : vector<16x128xf32>
    %cst_282 = arith.constant 0.00999999977 : f32
    %569 = vector.broadcast %cst_282 : f32 to vector<16x128xf32>
    %570 = arith.mulf %569, %568 : vector<16x128xf32>
    %571 = arith.maximumf %568, %570 : vector<16x128xf32>
    %572 = arith.addf %511, %571 : vector<16x128xf32>
    %c208 = arith.constant 208 : index
    %c0_283 = arith.constant 0 : index
    %573 = vector.load %arg2[%c208, %c0_283] : memref<264x432xf32, #tpu.memory_space<vmem>>, vector<16x16xf32>
    %cst_284 = arith.constant dense<0.000000e+00> : vector<16x128xf32>
    %574 = tpu.matmul %573, %572, %cst_284 {dimension_numbers = #tpu.dot_dimension_numbers<[1], [0], [0], [1], [0, 0, 1, 1], [], []>} : vector<16x16xf32>, vector<16x128xf32>, vector<16x128xf32> -> vector<16x128xf32>
    %c208_285 = arith.constant 208 : index
    %c0_286 = arith.constant 0 : index
    %575 = vector.load %arg3[%c208_285, %c0_286] : memref<264x2xf32, #tpu.memory_space<vmem>>, vector<16x2xf32>
    %576 = vector.extract_strided_slice %575 {offsets = [0, 0], sizes = [16, 1], strides = [1, 1]} : vector<16x2xf32> to vector<16x1xf32>
    %577 = vector.extract_strided_slice %575 {offsets = [0, 1], sizes = [16, 1], strides = [1, 1]} : vector<16x2xf32> to vector<16x1xf32>
    %cst_287 = arith.constant dense<0.000000e+00> : vector<16xf32>
    %578 = vector.multi_reduction <add>, %574, %cst_287 [1] : vector<16x128xf32> to vector<16xf32>
    %579 = vector.shape_cast %578 : vector<16xf32> to vector<16x1xf32>
    %cst_288 = arith.constant 1.280000e+02 : f32
    %580 = vector.broadcast %cst_288 : f32 to vector<16x1xf32>
    %581 = arith.divf %579, %580 : vector<16x1xf32>
    %582 = vector.broadcast %581 : vector<16x1xf32> to vector<16x128xf32>
    %583 = arith.subf %574, %582 : vector<16x128xf32>
    %584 = arith.mulf %583, %583 : vector<16x128xf32>
    %cst_289 = arith.constant dense<0.000000e+00> : vector<16xf32>
    %585 = vector.multi_reduction <add>, %584, %cst_289 [1] : vector<16x128xf32> to vector<16xf32>
    %586 = vector.shape_cast %585 : vector<16xf32> to vector<16x1xf32>
    %cst_290 = arith.constant 1.280000e+02 : f32
    %587 = vector.broadcast %cst_290 : f32 to vector<16x1xf32>
    %588 = arith.divf %586, %587 : vector<16x1xf32>
    %cst_291 = arith.constant 9.99999974E-6 : f32
    %589 = vector.broadcast %cst_291 : f32 to vector<16x1xf32>
    %590 = arith.addf %588, %589 : vector<16x1xf32>
    %591 = math.rsqrt %590 : vector<16x1xf32>
    %592 = arith.mulf %576, %591 : vector<16x1xf32>
    %593 = vector.broadcast %592 : vector<16x1xf32> to vector<16x128xf32>
    %594 = arith.mulf %583, %593 : vector<16x128xf32>
    %595 = vector.broadcast %577 : vector<16x1xf32> to vector<16x128xf32>
    %596 = arith.addf %594, %595 : vector<16x128xf32>
    %cst_292 = arith.constant 0.00999999977 : f32
    %597 = vector.broadcast %cst_292 : f32 to vector<16x128xf32>
    %598 = arith.mulf %597, %596 : vector<16x128xf32>
    %599 = arith.maximumf %596, %598 : vector<16x128xf32>
    %c0_293 = arith.constant 0 : index
    %c0_294 = arith.constant 0 : index
    %600 = vector.load %arg9[%c0_293, %c0_294] : memref<128x512xf32, #tpu.memory_space<vmem>>, vector<128x512xf32>
    %cst_295 = arith.constant dense<0.000000e+00> : vector<16x512xf32>
    %601 = tpu.matmul %599, %600, %cst_295 {dimension_numbers = #tpu.dot_dimension_numbers<[1], [0], [0], [1], [0, 0, 1, 1], [], []>} : vector<16x128xf32>, vector<128x512xf32>, vector<16x512xf32> -> vector<16x512xf32>
    %602 = tpu.concatenate %601, %121 in 0 : vector<16x512xf32>, vector<8x512xf32> -> vector<24x512xf32>
    %c17_i32_296 = arith.constant 17 : i32
    %603 = tpu.dynamic_rotate %602 by %c17_i32_296 dim 1 : vector<24x512xf32>, i32 -> vector<24x512xf32>
    %c0_297 = arith.constant 0 : index
    %c0_298 = arith.constant 0 : index
    %604 = vector.load %arg4[%c0_297, %c0_298] : memref<9x512xf32, #tpu.memory_space<vmem>>, vector<1x512xf32>
    %605 = vector.broadcast %604 : vector<1x512xf32> to vector<24x512xf32>
    %606 = arith.mulf %603, %605 : vector<24x512xf32>
    %c16_i32_299 = arith.constant 16 : i32
    %607 = tpu.dynamic_rotate %602 by %c16_i32_299 dim 1 : vector<24x512xf32>, i32 -> vector<24x512xf32>
    %c1_300 = arith.constant 1 : index
    %c0_301 = arith.constant 0 : index
    %608 = vector.load %arg4[%c1_300, %c0_301] : memref<9x512xf32, #tpu.memory_space<vmem>>, vector<1x512xf32>
    %609 = vector.broadcast %608 : vector<1x512xf32> to vector<24x512xf32>
    %610 = arith.mulf %607, %609 : vector<24x512xf32>
    %c15_i32_302 = arith.constant 15 : i32
    %611 = tpu.dynamic_rotate %602 by %c15_i32_302 dim 1 : vector<24x512xf32>, i32 -> vector<24x512xf32>
    %c2_303 = arith.constant 2 : index
    %c0_304 = arith.constant 0 : index
    %612 = vector.load %arg4[%c2_303, %c0_304] : memref<9x512xf32, #tpu.memory_space<vmem>>, vector<1x512xf32>
    %613 = vector.broadcast %612 : vector<1x512xf32> to vector<24x512xf32>
    %614 = arith.mulf %611, %613 : vector<24x512xf32>
    %c1_i32_305 = arith.constant 1 : i32
    %615 = tpu.dynamic_rotate %602 by %c1_i32_305 dim 1 : vector<24x512xf32>, i32 -> vector<24x512xf32>
    %c3_306 = arith.constant 3 : index
    %c0_307 = arith.constant 0 : index
    %616 = vector.load %arg4[%c3_306, %c0_307] : memref<9x512xf32, #tpu.memory_space<vmem>>, vector<1x512xf32>
    %617 = vector.broadcast %616 : vector<1x512xf32> to vector<24x512xf32>
    %618 = arith.mulf %615, %617 : vector<24x512xf32>
    %c511_i32_308 = arith.constant 511 : i32
    %619 = tpu.dynamic_rotate %602 by %c511_i32_308 dim 1 : vector<24x512xf32>, i32 -> vector<24x512xf32>
    %c5_309 = arith.constant 5 : index
    %c0_310 = arith.constant 0 : index
    %620 = vector.load %arg4[%c5_309, %c0_310] : memref<9x512xf32, #tpu.memory_space<vmem>>, vector<1x512xf32>
    %621 = vector.broadcast %620 : vector<1x512xf32> to vector<24x512xf32>
    %622 = arith.mulf %619, %621 : vector<24x512xf32>
    %c497_i32_311 = arith.constant 497 : i32
    %623 = tpu.dynamic_rotate %602 by %c497_i32_311 dim 1 : vector<24x512xf32>, i32 -> vector<24x512xf32>
    %c6_312 = arith.constant 6 : index
    %c0_313 = arith.constant 0 : index
    %624 = vector.load %arg4[%c6_312, %c0_313] : memref<9x512xf32, #tpu.memory_space<vmem>>, vector<1x512xf32>
    %625 = vector.broadcast %624 : vector<1x512xf32> to vector<24x512xf32>
    %626 = arith.mulf %623, %625 : vector<24x512xf32>
    %c496_i32_314 = arith.constant 496 : i32
    %627 = tpu.dynamic_rotate %602 by %c496_i32_314 dim 1 : vector<24x512xf32>, i32 -> vector<24x512xf32>
    %c7_315 = arith.constant 7 : index
    %c0_316 = arith.constant 0 : index
    %628 = vector.load %arg4[%c7_315, %c0_316] : memref<9x512xf32, #tpu.memory_space<vmem>>, vector<1x512xf32>
    %629 = vector.broadcast %628 : vector<1x512xf32> to vector<24x512xf32>
    %630 = arith.mulf %627, %629 : vector<24x512xf32>
    %c495_i32_317 = arith.constant 495 : i32
    %631 = tpu.dynamic_rotate %602 by %c495_i32_317 dim 1 : vector<24x512xf32>, i32 -> vector<24x512xf32>
    %c8_318 = arith.constant 8 : index
    %c0_319 = arith.constant 0 : index
    %632 = vector.load %arg4[%c8_318, %c0_319] : memref<9x512xf32, #tpu.memory_space<vmem>>, vector<1x512xf32>
    %633 = vector.broadcast %632 : vector<1x512xf32> to vector<24x512xf32>
    %634 = arith.mulf %631, %633 : vector<24x512xf32>
    %635 = tpu.concatenate %606, %610, %614, %618, %602, %622, %626, %630, %634 in 0 : vector<24x512xf32>, vector<24x512xf32>, vector<24x512xf32>, vector<24x512xf32>, vector<24x512xf32>, vector<24x512xf32>, vector<24x512xf32>, vector<24x512xf32>, vector<24x512xf32> -> vector<216x512xf32>
    %c240 = arith.constant 240 : index
    %c0_320 = arith.constant 0 : index
    %636 = vector.load %arg2[%c240, %c0_320] : memref<264x432xf32, #tpu.memory_space<vmem>>, vector<8x216xf32>
    %cst_321 = arith.constant dense<0.000000e+00> : vector<8x512xf32>
    %637 = tpu.matmul %636, %635, %cst_321 {dimension_numbers = #tpu.dot_dimension_numbers<[1], [0], [0], [1], [0, 0, 1, 1], [], []>} : vector<8x216xf32>, vector<216x512xf32>, vector<8x512xf32> -> vector<8x512xf32>
    %c240_322 = arith.constant 240 : index
    %c0_323 = arith.constant 0 : index
    %638 = vector.load %arg3[%c240_322, %c0_323] : memref<264x2xf32, #tpu.memory_space<vmem>>, vector<8x2xf32>
    %639 = vector.extract_strided_slice %638 {offsets = [0, 0], sizes = [8, 1], strides = [1, 1]} : vector<8x2xf32> to vector<8x1xf32>
    %640 = vector.extract_strided_slice %638 {offsets = [0, 1], sizes = [8, 1], strides = [1, 1]} : vector<8x2xf32> to vector<8x1xf32>
    %cst_324 = arith.constant dense<0.000000e+00> : vector<8xf32>
    %641 = vector.multi_reduction <add>, %637, %cst_324 [1] : vector<8x512xf32> to vector<8xf32>
    %642 = vector.shape_cast %641 : vector<8xf32> to vector<8x1xf32>
    %cst_325 = arith.constant 5.120000e+02 : f32
    %643 = vector.broadcast %cst_325 : f32 to vector<8x1xf32>
    %644 = arith.divf %642, %643 : vector<8x1xf32>
    %645 = vector.broadcast %644 : vector<8x1xf32> to vector<8x512xf32>
    %646 = arith.subf %637, %645 : vector<8x512xf32>
    %647 = arith.mulf %646, %646 : vector<8x512xf32>
    %cst_326 = arith.constant dense<0.000000e+00> : vector<8xf32>
    %648 = vector.multi_reduction <add>, %647, %cst_326 [1] : vector<8x512xf32> to vector<8xf32>
    %649 = vector.shape_cast %648 : vector<8xf32> to vector<8x1xf32>
    %cst_327 = arith.constant 5.120000e+02 : f32
    %650 = vector.broadcast %cst_327 : f32 to vector<8x1xf32>
    %651 = arith.divf %649, %650 : vector<8x1xf32>
    %cst_328 = arith.constant 9.99999974E-6 : f32
    %652 = vector.broadcast %cst_328 : f32 to vector<8x1xf32>
    %653 = arith.addf %651, %652 : vector<8x1xf32>
    %654 = math.rsqrt %653 : vector<8x1xf32>
    %655 = arith.mulf %639, %654 : vector<8x1xf32>
    %656 = vector.broadcast %655 : vector<8x1xf32> to vector<8x512xf32>
    %657 = arith.mulf %646, %656 : vector<8x512xf32>
    %658 = vector.broadcast %640 : vector<8x1xf32> to vector<8x512xf32>
    %659 = arith.addf %657, %658 : vector<8x512xf32>
    %cst_329 = arith.constant 0.00999999977 : f32
    %660 = vector.broadcast %cst_329 : f32 to vector<8x512xf32>
    %661 = arith.mulf %660, %659 : vector<8x512xf32>
    %662 = arith.maximumf %659, %661 : vector<8x512xf32>
    %c17_i32_330 = arith.constant 17 : i32
    %663 = tpu.dynamic_rotate %662 by %c17_i32_330 dim 1 : vector<8x512xf32>, i32 -> vector<8x512xf32>
    %c0_331 = arith.constant 0 : index
    %c0_332 = arith.constant 0 : index
    %664 = vector.load %arg4[%c0_331, %c0_332] : memref<9x512xf32, #tpu.memory_space<vmem>>, vector<1x512xf32>
    %665 = vector.broadcast %664 : vector<1x512xf32> to vector<8x512xf32>
    %666 = arith.mulf %663, %665 : vector<8x512xf32>
    %c16_i32_333 = arith.constant 16 : i32
    %667 = tpu.dynamic_rotate %662 by %c16_i32_333 dim 1 : vector<8x512xf32>, i32 -> vector<8x512xf32>
    %c1_334 = arith.constant 1 : index
    %c0_335 = arith.constant 0 : index
    %668 = vector.load %arg4[%c1_334, %c0_335] : memref<9x512xf32, #tpu.memory_space<vmem>>, vector<1x512xf32>
    %669 = vector.broadcast %668 : vector<1x512xf32> to vector<8x512xf32>
    %670 = arith.mulf %667, %669 : vector<8x512xf32>
    %c15_i32_336 = arith.constant 15 : i32
    %671 = tpu.dynamic_rotate %662 by %c15_i32_336 dim 1 : vector<8x512xf32>, i32 -> vector<8x512xf32>
    %c2_337 = arith.constant 2 : index
    %c0_338 = arith.constant 0 : index
    %672 = vector.load %arg4[%c2_337, %c0_338] : memref<9x512xf32, #tpu.memory_space<vmem>>, vector<1x512xf32>
    %673 = vector.broadcast %672 : vector<1x512xf32> to vector<8x512xf32>
    %674 = arith.mulf %671, %673 : vector<8x512xf32>
    %c1_i32_339 = arith.constant 1 : i32
    %675 = tpu.dynamic_rotate %662 by %c1_i32_339 dim 1 : vector<8x512xf32>, i32 -> vector<8x512xf32>
    %c3_340 = arith.constant 3 : index
    %c0_341 = arith.constant 0 : index
    %676 = vector.load %arg4[%c3_340, %c0_341] : memref<9x512xf32, #tpu.memory_space<vmem>>, vector<1x512xf32>
    %677 = vector.broadcast %676 : vector<1x512xf32> to vector<8x512xf32>
    %678 = arith.mulf %675, %677 : vector<8x512xf32>
    %c511_i32_342 = arith.constant 511 : i32
    %679 = tpu.dynamic_rotate %662 by %c511_i32_342 dim 1 : vector<8x512xf32>, i32 -> vector<8x512xf32>
    %c5_343 = arith.constant 5 : index
    %c0_344 = arith.constant 0 : index
    %680 = vector.load %arg4[%c5_343, %c0_344] : memref<9x512xf32, #tpu.memory_space<vmem>>, vector<1x512xf32>
    %681 = vector.broadcast %680 : vector<1x512xf32> to vector<8x512xf32>
    %682 = arith.mulf %679, %681 : vector<8x512xf32>
    %c497_i32_345 = arith.constant 497 : i32
    %683 = tpu.dynamic_rotate %662 by %c497_i32_345 dim 1 : vector<8x512xf32>, i32 -> vector<8x512xf32>
    %c6_346 = arith.constant 6 : index
    %c0_347 = arith.constant 0 : index
    %684 = vector.load %arg4[%c6_346, %c0_347] : memref<9x512xf32, #tpu.memory_space<vmem>>, vector<1x512xf32>
    %685 = vector.broadcast %684 : vector<1x512xf32> to vector<8x512xf32>
    %686 = arith.mulf %683, %685 : vector<8x512xf32>
    %c496_i32_348 = arith.constant 496 : i32
    %687 = tpu.dynamic_rotate %662 by %c496_i32_348 dim 1 : vector<8x512xf32>, i32 -> vector<8x512xf32>
    %c7_349 = arith.constant 7 : index
    %c0_350 = arith.constant 0 : index
    %688 = vector.load %arg4[%c7_349, %c0_350] : memref<9x512xf32, #tpu.memory_space<vmem>>, vector<1x512xf32>
    %689 = vector.broadcast %688 : vector<1x512xf32> to vector<8x512xf32>
    %690 = arith.mulf %687, %689 : vector<8x512xf32>
    %c495_i32_351 = arith.constant 495 : i32
    %691 = tpu.dynamic_rotate %662 by %c495_i32_351 dim 1 : vector<8x512xf32>, i32 -> vector<8x512xf32>
    %c8_352 = arith.constant 8 : index
    %c0_353 = arith.constant 0 : index
    %692 = vector.load %arg4[%c8_352, %c0_353] : memref<9x512xf32, #tpu.memory_space<vmem>>, vector<1x512xf32>
    %693 = vector.broadcast %692 : vector<1x512xf32> to vector<8x512xf32>
    %694 = arith.mulf %691, %693 : vector<8x512xf32>
    %695 = tpu.concatenate %666, %670, %674, %678, %662, %682, %686, %690, %694 in 0 : vector<8x512xf32>, vector<8x512xf32>, vector<8x512xf32>, vector<8x512xf32>, vector<8x512xf32>, vector<8x512xf32>, vector<8x512xf32>, vector<8x512xf32>, vector<8x512xf32> -> vector<72x512xf32>
    %c248 = arith.constant 248 : index
    %c0_354 = arith.constant 0 : index
    %696 = vector.load %arg2[%c248, %c0_354] : memref<264x432xf32, #tpu.memory_space<vmem>>, vector<8x72xf32>
    %cst_355 = arith.constant dense<0.000000e+00> : vector<8x512xf32>
    %697 = tpu.matmul %696, %695, %cst_355 {dimension_numbers = #tpu.dot_dimension_numbers<[1], [0], [0], [1], [0, 0, 1, 1], [], []>} : vector<8x72xf32>, vector<72x512xf32>, vector<8x512xf32> -> vector<8x512xf32>
    %c248_356 = arith.constant 248 : index
    %c0_357 = arith.constant 0 : index
    %698 = vector.load %arg3[%c248_356, %c0_357] : memref<264x2xf32, #tpu.memory_space<vmem>>, vector<8x2xf32>
    %699 = vector.extract_strided_slice %698 {offsets = [0, 0], sizes = [8, 1], strides = [1, 1]} : vector<8x2xf32> to vector<8x1xf32>
    %700 = vector.extract_strided_slice %698 {offsets = [0, 1], sizes = [8, 1], strides = [1, 1]} : vector<8x2xf32> to vector<8x1xf32>
    %cst_358 = arith.constant dense<0.000000e+00> : vector<8xf32>
    %701 = vector.multi_reduction <add>, %697, %cst_358 [1] : vector<8x512xf32> to vector<8xf32>
    %702 = vector.shape_cast %701 : vector<8xf32> to vector<8x1xf32>
    %cst_359 = arith.constant 5.120000e+02 : f32
    %703 = vector.broadcast %cst_359 : f32 to vector<8x1xf32>
    %704 = arith.divf %702, %703 : vector<8x1xf32>
    %705 = vector.broadcast %704 : vector<8x1xf32> to vector<8x512xf32>
    %706 = arith.subf %697, %705 : vector<8x512xf32>
    %707 = arith.mulf %706, %706 : vector<8x512xf32>
    %cst_360 = arith.constant dense<0.000000e+00> : vector<8xf32>
    %708 = vector.multi_reduction <add>, %707, %cst_360 [1] : vector<8x512xf32> to vector<8xf32>
    %709 = vector.shape_cast %708 : vector<8xf32> to vector<8x1xf32>
    %cst_361 = arith.constant 5.120000e+02 : f32
    %710 = vector.broadcast %cst_361 : f32 to vector<8x1xf32>
    %711 = arith.divf %709, %710 : vector<8x1xf32>
    %cst_362 = arith.constant 9.99999974E-6 : f32
    %712 = vector.broadcast %cst_362 : f32 to vector<8x1xf32>
    %713 = arith.addf %711, %712 : vector<8x1xf32>
    %714 = math.rsqrt %713 : vector<8x1xf32>
    %715 = arith.mulf %699, %714 : vector<8x1xf32>
    %716 = vector.broadcast %715 : vector<8x1xf32> to vector<8x512xf32>
    %717 = arith.mulf %706, %716 : vector<8x512xf32>
    %718 = vector.broadcast %700 : vector<8x1xf32> to vector<8x512xf32>
    %719 = arith.addf %717, %718 : vector<8x512xf32>
    %cst_363 = arith.constant 0.00999999977 : f32
    %720 = vector.broadcast %cst_363 : f32 to vector<8x512xf32>
    %721 = arith.mulf %720, %719 : vector<8x512xf32>
    %722 = arith.maximumf %719, %721 : vector<8x512xf32>
    %723 = arith.addf %662, %722 : vector<8x512xf32>
    %c17_i32_364 = arith.constant 17 : i32
    %724 = tpu.dynamic_rotate %723 by %c17_i32_364 dim 1 : vector<8x512xf32>, i32 -> vector<8x512xf32>
    %c0_365 = arith.constant 0 : index
    %c0_366 = arith.constant 0 : index
    %725 = vector.load %arg4[%c0_365, %c0_366] : memref<9x512xf32, #tpu.memory_space<vmem>>, vector<1x512xf32>
    %726 = vector.broadcast %725 : vector<1x512xf32> to vector<8x512xf32>
    %727 = arith.mulf %724, %726 : vector<8x512xf32>
    %c16_i32_367 = arith.constant 16 : i32
    %728 = tpu.dynamic_rotate %723 by %c16_i32_367 dim 1 : vector<8x512xf32>, i32 -> vector<8x512xf32>
    %c1_368 = arith.constant 1 : index
    %c0_369 = arith.constant 0 : index
    %729 = vector.load %arg4[%c1_368, %c0_369] : memref<9x512xf32, #tpu.memory_space<vmem>>, vector<1x512xf32>
    %730 = vector.broadcast %729 : vector<1x512xf32> to vector<8x512xf32>
    %731 = arith.mulf %728, %730 : vector<8x512xf32>
    %c15_i32_370 = arith.constant 15 : i32
    %732 = tpu.dynamic_rotate %723 by %c15_i32_370 dim 1 : vector<8x512xf32>, i32 -> vector<8x512xf32>
    %c2_371 = arith.constant 2 : index
    %c0_372 = arith.constant 0 : index
    %733 = vector.load %arg4[%c2_371, %c0_372] : memref<9x512xf32, #tpu.memory_space<vmem>>, vector<1x512xf32>
    %734 = vector.broadcast %733 : vector<1x512xf32> to vector<8x512xf32>
    %735 = arith.mulf %732, %734 : vector<8x512xf32>
    %c1_i32_373 = arith.constant 1 : i32
    %736 = tpu.dynamic_rotate %723 by %c1_i32_373 dim 1 : vector<8x512xf32>, i32 -> vector<8x512xf32>
    %c3_374 = arith.constant 3 : index
    %c0_375 = arith.constant 0 : index
    %737 = vector.load %arg4[%c3_374, %c0_375] : memref<9x512xf32, #tpu.memory_space<vmem>>, vector<1x512xf32>
    %738 = vector.broadcast %737 : vector<1x512xf32> to vector<8x512xf32>
    %739 = arith.mulf %736, %738 : vector<8x512xf32>
    %c511_i32_376 = arith.constant 511 : i32
    %740 = tpu.dynamic_rotate %723 by %c511_i32_376 dim 1 : vector<8x512xf32>, i32 -> vector<8x512xf32>
    %c5_377 = arith.constant 5 : index
    %c0_378 = arith.constant 0 : index
    %741 = vector.load %arg4[%c5_377, %c0_378] : memref<9x512xf32, #tpu.memory_space<vmem>>, vector<1x512xf32>
    %742 = vector.broadcast %741 : vector<1x512xf32> to vector<8x512xf32>
    %743 = arith.mulf %740, %742 : vector<8x512xf32>
    %c497_i32_379 = arith.constant 497 : i32
    %744 = tpu.dynamic_rotate %723 by %c497_i32_379 dim 1 : vector<8x512xf32>, i32 -> vector<8x512xf32>
    %c6_380 = arith.constant 6 : index
    %c0_381 = arith.constant 0 : index
    %745 = vector.load %arg4[%c6_380, %c0_381] : memref<9x512xf32, #tpu.memory_space<vmem>>, vector<1x512xf32>
    %746 = vector.broadcast %745 : vector<1x512xf32> to vector<8x512xf32>
    %747 = arith.mulf %744, %746 : vector<8x512xf32>
    %c496_i32_382 = arith.constant 496 : i32
    %748 = tpu.dynamic_rotate %723 by %c496_i32_382 dim 1 : vector<8x512xf32>, i32 -> vector<8x512xf32>
    %c7_383 = arith.constant 7 : index
    %c0_384 = arith.constant 0 : index
    %749 = vector.load %arg4[%c7_383, %c0_384] : memref<9x512xf32, #tpu.memory_space<vmem>>, vector<1x512xf32>
    %750 = vector.broadcast %749 : vector<1x512xf32> to vector<8x512xf32>
    %751 = arith.mulf %748, %750 : vector<8x512xf32>
    %c495_i32_385 = arith.constant 495 : i32
    %752 = tpu.dynamic_rotate %723 by %c495_i32_385 dim 1 : vector<8x512xf32>, i32 -> vector<8x512xf32>
    %c8_386 = arith.constant 8 : index
    %c0_387 = arith.constant 0 : index
    %753 = vector.load %arg4[%c8_386, %c0_387] : memref<9x512xf32, #tpu.memory_space<vmem>>, vector<1x512xf32>
    %754 = vector.broadcast %753 : vector<1x512xf32> to vector<8x512xf32>
    %755 = arith.mulf %752, %754 : vector<8x512xf32>
    %756 = tpu.concatenate %727, %731, %735, %739, %723, %743, %747, %751, %755 in 0 : vector<8x512xf32>, vector<8x512xf32>, vector<8x512xf32>, vector<8x512xf32>, vector<8x512xf32>, vector<8x512xf32>, vector<8x512xf32>, vector<8x512xf32>, vector<8x512xf32> -> vector<72x512xf32>
    %c256 = arith.constant 256 : index
    %c0_388 = arith.constant 0 : index
    %757 = vector.load %arg2[%c256, %c0_388] : memref<264x432xf32, #tpu.memory_space<vmem>>, vector<4x72xf32>
    %cst_389 = arith.constant dense<0.000000e+00> : vector<4x512xf32>
    %758 = tpu.matmul %757, %756, %cst_389 {dimension_numbers = #tpu.dot_dimension_numbers<[1], [0], [0], [1], [0, 0, 1, 1], [], []>} : vector<4x72xf32>, vector<72x512xf32>, vector<4x512xf32> -> vector<4x512xf32>
    %c256_390 = arith.constant 256 : index
    %c0_391 = arith.constant 0 : index
    %759 = vector.load %arg3[%c256_390, %c0_391] : memref<264x2xf32, #tpu.memory_space<vmem>>, vector<4x1xf32>
    %760 = vector.broadcast %759 : vector<4x1xf32> to vector<4x512xf32>
    %761 = arith.addf %758, %760 : vector<4x512xf32>
    %c0_392 = arith.constant 0 : index
    %c0_393 = arith.constant 0 : index
    %762 = vector.load %arg11[%c0_392, %c0_393] : memref<4x512xf32, #tpu.memory_space<vmem>>, vector<4x512xf32>
    tpu.vector_store %arg11[%c0_392, %c0_393], %761 {strides = array<i32>} : memref<4x512xf32, #tpu.memory_space<vmem>>, vector<4x512xf32>,
    return
  }
  func.func @transform_0(%arg0: i32) -> (i32, i32) {
    %c0_i32 = arith.constant 0 : i32
    %c0_i32_0 = arith.constant 0 : i32
    %c0_i32_1 = arith.constant 0 : i32
    return %c0_i32, %c0_i32_0 : i32, i32
  }
  func.func @transform_1(%arg0: i32) -> (i32, i32) {
    %c0_i32 = arith.constant 0 : i32
    %c0_i32_0 = arith.constant 0 : i32
    %c0_i32_1 = arith.constant 0 : i32
    return %c0_i32, %c0_i32_0 : i32, i32
  }
  func.func @transform_2(%arg0: i32) -> (i32, i32) {
    %c0_i32 = arith.constant 0 : i32
    %c0_i32_0 = arith.constant 0 : i32
    %c0_i32_1 = arith.constant 0 : i32
    return %c0_i32, %c0_i32_0 : i32, i32
  }
  func.func @transform_3(%arg0: i32) -> (i32, i32) {
    %c0_i32 = arith.constant 0 : i32
    %c0_i32_0 = arith.constant 0 : i32
    %c0_i32_1 = arith.constant 0 : i32
    return %c0_i32, %c0_i32_0 : i32, i32
  }
  func.func @transform_4(%arg0: i32) -> (i32, i32) {
    %c0_i32 = arith.constant 0 : i32
    %c0_i32_0 = arith.constant 0 : i32
    %c0_i32_1 = arith.constant 0 : i32
    return %c0_i32, %c0_i32_0 : i32, i32
  }
  func.func @transform_5(%arg0: i32) -> (i32, i32) {
    %c0_i32 = arith.constant 0 : i32
    %c0_i32_0 = arith.constant 0 : i32
    %c0_i32_1 = arith.constant 0 : i32
    return %c0_i32, %c0_i32_0 : i32, i32
  }
  func.func @transform_6(%arg0: i32) -> (i32, i32) {
    %c0_i32 = arith.constant 0 : i32
    %c0_i32_0 = arith.constant 0 : i32
    %c0_i32_1 = arith.constant 0 : i32
    return %c0_i32, %c0_i32_0 : i32, i32
  }
  func.func @transform_7(%arg0: i32) -> (i32, i32) {
    %c0_i32 = arith.constant 0 : i32
    %c0_i32_0 = arith.constant 0 : i32
    %c0_i32_1 = arith.constant 0 : i32
    return %c0_i32, %c0_i32_0 : i32, i32
  }
  func.func @transform_8(%arg0: i32) -> (i32, i32) {
    %c0_i32 = arith.constant 0 : i32
    %c0_i32_0 = arith.constant 0 : i32
    %c0_i32_1 = arith.constant 0 : i32
    return %c0_i32, %c0_i32_0 : i32, i32
  }
  func.func @transform_9(%arg0: i32) -> (i32, i32) {
    %c0_i32 = arith.constant 0 : i32
    %c0_i32_0 = arith.constant 0 : i32
    %c0_i32_1 = arith.constant 0 : i32
    return %c0_i32, %c0_i32_0 : i32, i32
  }
  func.func @transform_10(%arg0: i32) -> (i32, i32) {
    %c0_i32 = arith.constant 0 : i32
    %c0_i32_0 = arith.constant 0 : i32
    %c0_i32_1 = arith.constant 0 : i32
    return %c0_i32, %c0_i32_0 : i32, i32
  }
}

</mosaic_0001>

<bundles_post_ra>
// kernel: forward.1
= control target key start
LH: loop header
LB: loop body
LE: loop exit
PB: predicated region body
PF: predicated region fallthrough
CT: control target
= control target key end

     0   :  { %15 = vsyncpa [#allocation3], 0  ;;  %s10473_s0 = inlined_call_operand.vmem [shape: f32[4,512], index: 0, kind: input, shape index: {}]   ;;  %s10474_s1 = inlined_call_operand.hbm [shape: f32[264,432], index: 1, kind: input, shape index: {}]   ;;  %s10475_s2 = inlined_call_operand.vmem [shape: f32[264,2], index: 2, kind: input, shape index: {}]   ;;  %s10476_s3 = inlined_call_operand.hbm [shape: f32[9,512], index: 3, kind: input, shape index: {}]   ;;  %s10477_s4 = inlined_call_operand.hbm [shape: f32[9,128], index: 4, kind: input, shape index: {}]   ;;  %s10478_s5 = inlined_call_operand.hbm [shape: f32[9,32], index: 5, kind: input, shape index: {}]   ;;  %s10479_s6 = inlined_call_operand.hbm [shape: f32[512,128], index: 6, kind: input, shape index: {}]   ;;  %s10480_s7 = inlined_call_operand.vmem [shape: f32[128,32], index: 7, kind: input, shape index: {}]   ;;  %s10481_s8 = inlined_call_operand.hbm [shape: f32[128,512], index: 8, kind: input, shape index: {}]   ;;  %s10482_s9 = inlined_call_operand.vmem [shape: f32[32,128], index: 9, kind: input, shape index: {}]   ;;  %s10483_s10 = inlined_call_operand.vmem [shape: f32[4,512], index: 10, kind: output, shape index: {}]  }
   0x1   :  { %16 = vsyncpa [#allocation5], 0 }
   0x2   :  { %17 = vsyncpa [#allocation8], 0 }
   0x3   :  { %18 = vsyncpa [#allocation11], 0  ;;  %s7439_s13 = smov [#allocation4]   ;;  %s7299_s17 = scalar_lea.hbm %s10476_s3, 1024 }
   0x4   :  { %s40_s14 = sshll.u32 %s7439_s13, 4  ;;  %p7300_p0 = scmp.ne.s32.totalorder %s10476_s3, %s7299_s17  ;;  %s41_s14 = int_to_ptr.vmem [resolvable:$true] %s40_s14 }
   0x5   :  { %p7303_p1 = scmp.lt.u32.totalorder %s7299_s17, %s10476_s3 }
   0x7   :  { %p7305_p2 = pnand %p7303_p1, %p7300_p0 }
   0x9   :  { %7308 = shalt.err (!%p7305_p2)
}
   0xa   :  { %s7309_s22 = scalar_lea.vmem %s41_s14, 1024  ;;  %p7314_p4 = scmp.lt.s32.totalorder %s41_s14, %s41_s14 }
   0xb   :  { %p7310_p3 = scmp.ne.s32.totalorder %s41_s14, %s7309_s22  ;;  %p7315_p5 = scmp.lt.s32.totalorder %s7309_s22, %s7309_s22 }
   0xd   :  { %p7316_p6 = por %p7315_p5, %p7314_p4 }
   0xf   :  { %p7317_p7 = pnand %p7316_p6, %p7310_p3 }
  0x11   :  { %7320 = shalt.err (!%p7317_p7)
}
  0x12   :  { %s7440_s23 = smov 512   ;;  %s7441_s24 = smov 32  }
  0x13   :  { %46 = dma.hbm_to_vmem [thread:$0]  %s10476_s3, 1024, %s41_s14, [#allocation5], %s7440_s23, %s7440_s23, %s7441_s24  }
  0x14   :  { %s7442_s27 = smov [#allocation7]   ;;  %s7443_s29 = smov [#allocation2]  }
  0x15   :  { %s64_s28 = sshll.u32 %s7442_s27, 4  ;;  %s26_s30 = sshll.u32 %s7443_s29, 4  ;;  %s65_s28 = int_to_ptr.vmem [resolvable:$true] %s64_s28  ;;  %s27_s30 = int_to_ptr.vmem [resolvable:$true] %s26_s30 }
  0x16   :  { %s7321_s13 = scalar_lea.hbm %s10478_s5, 256 }
  0x17   :  { %p7322_p8 = scmp.ne.s32.totalorder %s10478_s5, %s7321_s13  ;;  %p7325_p9 = scmp.lt.u32.totalorder %s7321_s13, %s10478_s5 }
  0x19   :  { %p7327_p10 = pnand %p7325_p9, %p7322_p8 }
  0x1b   :  { %7330 = shalt.err (!%p7327_p10)
}
  0x1c   :  { %s7331_s3 = scalar_lea.vmem %s65_s28, 256  ;;  %p7336_p12 = scmp.lt.s32.totalorder %s65_s28, %s65_s28 }
  0x1d   :  { %p7332_p11 = scmp.ne.s32.totalorder %s65_s28, %s7331_s3  ;;  %p7337_p13 = scmp.lt.s32.totalorder %s7331_s3, %s7331_s3 }
  0x1f   :  { %p7338_p0 = por %p7337_p13, %p7336_p12 }
  0x21   :  { %p7339_p1 = pnand %p7338_p0, %p7332_p11 }
  0x23   :  { %7342 = shalt.err (!%p7339_p1)
}
  0x24   :  { %s7444_s14 = smov 128   ;;  %s7445_s19 = smov 8  }
  0x25   :  { %70 = dma.hbm_to_vmem [thread:$0]  %s10478_s5, 256, %s65_s28, [#allocation8], %s7444_s14, %s7444_s14, %s7445_s19  }
  0x26   :  { %s7343_s26 = scalar_lea.hbm %s10474_s1, 16896 }
  0x27   :  { %p7344_p2 = scmp.ne.s32.totalorder %s10474_s1, %s7343_s26  ;;  %p7347_p3 = scmp.lt.u32.totalorder %s7343_s26, %s10474_s1 }
  0x29   :  { %p7349_p4 = pnand %p7347_p3, %p7344_p2 }
  0x2b   :  { %7352 = shalt.err (!%p7349_p4)
}
  0x2c   :  { %s7353_s13 = scalar_lea.vmem %s27_s30, 16896  ;;  %p7358_p6 = scmp.lt.s32.totalorder %s27_s30, %s27_s30 }
  0x2d   :  { %p7354_p5 = scmp.ne.s32.totalorder %s27_s30, %s7353_s13  ;;  %p7359_p7 = scmp.lt.s32.totalorder %s7353_s13, %s7353_s13 }
  0x2f   :  { %p7360_p8 = por %p7359_p7, %p7358_p6 }
  0x31   :  { %p7361_p9 = pnand %p7360_p8, %p7354_p5 }
  0x33   :  { %7364 = shalt.err (!%p7361_p9)
}
  0x34   :  { %32 = dma.hbm_to_vmem [thread:$0]  %s10474_s1, 16896, %s27_s30, [#allocation3], %s7440_s23, %s7440_s23, %s7441_s24  }
  0x35   :  { %s7446_s15 = smov [#allocation6]   ;;  %s7447_s17 = smov [#allocation9]  }
  0x36   :  { %s52_s16 = sshll.u32 %s7446_s15, 4  ;;  %s76_s18 = sshll.u32 %s7447_s17, 4  ;;  %s53_s16 = int_to_ptr.vmem [resolvable:$true] %s52_s16  ;;  %s77_s18 = int_to_ptr.vmem [resolvable:$true] %s76_s18 }
  0x37   :  { %s7365_s21 = scalar_lea.hbm %s10477_s4, 256 }
  0x38   :  { %p7366_p10 = scmp.ne.s32.totalorder %s10477_s4, %s7365_s21  ;;  %p7369_p11 = scmp.lt.u32.totalorder %s7365_s21, %s10477_s4 }
  0x3a   :  { %p7371_p12 = pnand %p7369_p11, %p7366_p10 }
  0x3c   :  { %7374 = shalt.err (!%p7371_p12)
}
  0x3d   :  { %s7375_s1 = scalar_lea.vmem %s53_s16, 256  ;;  %p7380_p0 = scmp.lt.s32.totalorder %s53_s16, %s53_s16 }
  0x3e   :  { %p7376_p13 = scmp.ne.s32.totalorder %s53_s16, %s7375_s1  ;;  %p7381_p1 = scmp.lt.s32.totalorder %s7375_s1, %s7375_s1 }
  0x40   :  { %p7382_p2 = por %p7381_p1, %p7380_p0 }
  0x42   :  { %p7383_p3 = pnand %p7382_p2, %p7376_p13 }
  0x44   :  { %7386 = shalt.err (!%p7383_p3)
}
  0x45   :  { %58 = dma.hbm_to_vmem [thread:$0]  %s10477_s4, 256, %s53_s16, [#allocation5], %s7444_s14, %s7444_s14, %s7445_s19  }
  0x46   :  { %s7387_s13 = scalar_lea.hbm %s10479_s6, 8192 }
  0x47   :  { %p7388_p4 = scmp.ne.s32.totalorder %s10479_s6, %s7387_s13  ;;  %p7391_p5 = scmp.lt.u32.totalorder %s7387_s13, %s10479_s6 }
  0x49   :  { %p7393_p6 = pnand %p7391_p5, %p7388_p4 }
  0x4b   :  { %7396 = shalt.err (!%p7393_p6)
}
  0x4c   :  { %s7397_s3 = scalar_lea.vmem %s77_s18, 8192  ;;  %p7402_p8 = scmp.lt.s32.totalorder %s77_s18, %s77_s18 }
  0x4d   :  { %p7398_p7 = scmp.ne.s32.totalorder %s77_s18, %s7397_s3  ;;  %p7403_p9 = scmp.lt.s32.totalorder %s7397_s3, %s7397_s3 }
  0x4f   :  { %p7404_p10 = por %p7403_p9, %p7402_p8 }
  0x51   :  { %p7405_p11 = pnand %p7404_p10, %p7398_p7 }
  0x53   :  { %7408 = shalt.err (!%p7405_p11)
}
  0x54   :  { %82 = dma.hbm_to_vmem [thread:$0]  %s10479_s6, 8192, %s77_s18, [#allocation8], %s7444_s14, %s7444_s14, %s7445_s19  }
  0x55   :  { %s7448_s20 = smov [#allocation10]   ;;  %s7409_s26 = scalar_lea.hbm %s10481_s8, 8192 }
  0x56   :  { %s90_s21 = sshll.u32 %s7448_s20, 4  ;;  %p7410_p12 = scmp.ne.s32.totalorder %s10481_s8, %s7409_s26  ;;  %s91_s21 = int_to_ptr.vmem [resolvable:$true] %s90_s21 }
  0x57   :  { %p7413_p13 = scmp.lt.u32.totalorder %s7409_s26, %s10481_s8 }
  0x59   :  { %p7415_p0 = pnand %p7413_p13, %p7410_p12 }
  0x5b   :  { %7418 = shalt.err (!%p7415_p0)
}
  0x5c   :  { %s7419_s11 = scalar_lea.vmem %s91_s21, 8192  ;;  %p7424_p2 = scmp.lt.s32.totalorder %s91_s21, %s91_s21 }
  0x5d   :  { %p7420_p1 = scmp.ne.s32.totalorder %s91_s21, %s7419_s11  ;;  %p7425_p3 = scmp.lt.s32.totalorder %s7419_s11, %s7419_s11 }
  0x5f   :  { %p7426_p4 = por %p7425_p3, %p7424_p2 }
  0x61   :  { %p7427_p5 = pnand %p7426_p4, %p7420_p1 }
  0x63   :  { %7430 = shalt.err (!%p7427_p5)
}
  0x64   :  { %96 = dma.hbm_to_vmem [thread:$0]  %s10481_s8, 8192, %s91_s21, [#allocation11], %s7440_s23, %s7440_s23, %s7441_s24  }
  0x65   :  { %7431 = dma.done.wait [#allocation3], 16896  }
  0x66   :  { %7432 = vsyncadd [#allocation3], 4294950400 }
  0x67   :  { %7433 = dma.done.wait [#allocation5], 1280  }
  0x68   :  { %7434 = vsyncadd [#allocation5], 4294966016 }
  0x69   :  { %7435 = dma.done.wait [#allocation8], 8448  }
  0x6a   :  { %7436 = vsyncadd [#allocation8], 4294958848 }
  0x6b   :  { %7437 = dma.done.wait [#allocation11], 8192  }
  0x6c   :  { %7438 = vsyncadd [#allocation11], 4294959104  ;;  %v7628_v0 = vld [vmem:[%s10473_s0] sm:$0xff]  ;;  %s7449_s13 = smov 1   ;;  %s7450_s5 = smov 16   ;;  %v7641_v2 = vld [vmem:[%s10473_s0 + $0x8] sm:$0xff]  ;;  %v133_v5 = vlaneseq }
  0x6d   :  { %246 = vrot.lane.b32.xlu1 %v7628_v0, %s7449_s13  ;;  %166 = vrot.lane.b32.xlu0 %v7628_v0, %s7450_s5  ;;  %v7636_v1 = vcombine.high %v7628_v0, %v7628_v0  ;;  %v7649_v3 = vcombine.high %v7641_v2, %v7641_v2  ;;  %s7451_s28 = smov 17   ;;  %s7452_s0 = smov 15   ;;  %v10484_v4 = vmov 0.0   ;;  %v260_v13 = vld [vmem:[#allocation4 + $0x3] ss:$8 sm:$0xf] }
  0x6e   :  { %s7453_s15 = smov 127   ;;  %s7454_s17 = smov 112   ;;  %592 = vmatprep.mubr.f32.mxu0 %v10484_v4  ;;  %663 = vmatprep.mubr.f32.mxu1 %v10484_v4  ;;  %v143_v8 = vshrl.u32 %v133_v5, 7  ;;  %v7709_v9 = vand.u32 127, %v133_v5  ;;  %vm494_vm4 = vcmask 1043456   ;;  %vm512_vm9 = vcmask 293888  }
  0x6f   :  { %s7455_s3 = smov 113   ;;  %s7457_s4 = smov 111   ;;  %v180_v14 = vld [vmem:[#allocation4 + $0x1] ss:$8 sm:$0xf]  ;;  %vm850_vm10 = vcmask 588800  }
  0x70   :  { %v7713_v12 = vsub.s32 1, %v143_v8  ;;  %vm174_vm0 = vcmp.lt.s32.totalorder %v7709_v9, 16  ;;  %vm254_vm1 = vcmp.lt.s32.totalorder %v7709_v9, 1  ;;  %v7717_v17 = vld [vmem:[#allocation4] ss:$8 sm:$0xf] }
  0x71   :  { %248 = vrot.lane.b32.xlu1 %v7636_v1, %s7449_s13  ;;  %168 = vrot.lane.b32.xlu0 %v7636_v1, %s7450_s5  ;;  %vm135_vm2 = vcmp.lt.s32.totalorder %v7709_v9, 17  ;;  %v7731_v22 = vld [vmem:[#allocation4 + $0x2] ss:$8 sm:$0xf]  ;;  %v7739_v26 = vsub.s32 0, %v143_v8  ;;  %vm214_vm3 = vcmp.lt.s32.totalorder %v7709_v9, 15 }
  0x72   :  { %v7721_v18 = vrot.slane %v260_v13, %v7713_v12  ;;  %v7724_v19 = vrot.slane %v180_v14, %v7713_v12  ;;  %v7737_v24 = vrot.slane %v7717_v17, %v7713_v12  ;;  %v7749_v30 = vrot.slane %v7731_v22, %v7713_v12  ;;  %s7461_s30 = smov 9   ;;  %s7462_s29 = smov 7  }
  0x73   :  { %v7755_v34 = vrot.slane %v260_v13, %v7739_v26  ;;  %v7761_v38 = vrot.slane %v180_v14, %v7739_v26  ;;  %v7770_v43 = vrot.slane %v7717_v17, %v7739_v26  ;;  %v7780_v51 = vrot.slane %v7731_v22, %v7739_v26  ;;  %s7463_s11 = smov 121   ;;  %s7464_s6 = smov 120  }
  0x74   :  { %10587 = vst [vmem:[#allocation16_spill] sm:$0xff] %v7737_v24  ;;  %v7782_v52 = vsub.s32 2, %v143_v8  ;;  %v7784_v53 = vsub.s32 3, %v143_v8  ;;  %vm294_vm5 = vcmp.lt.s32.totalorder %v7709_v9, 127  ;;  %vm374_vm6 = vcmp.lt.s32.totalorder %v7709_v9, 112  ;;  %s7465_s14 = smov 119  }
  0x75   :  { %252 = vrot.lane.b32.xlu1 %v7649_v3, %s7449_s13  ;;  %172 = vrot.lane.b32.xlu0 %v7649_v3, %s7450_s5  ;;  %10588 = vst [vmem:[#allocation17_spill] sm:$0xff] %v7755_v34  ;;  %vm334_vm7 = vcmp.lt.s32.totalorder %v7709_v9, 113  ;;  %vm414_vm8 = vcmp.lt.s32.totalorder %v7709_v9, 111  ;;  %vm1256_vm11 = vcmask 64512   ;;  %vm1483_vm12 = vcmask 130048   ;;  %s7466_s1 = smov 28  }
  0x76   :  { %v7791_v61 = vrot.slane %v180_v14, %v7782_v52  ;;  %v7794_v62 = vrot.slane %v180_v14, %v7784_v53  ;;  %v7797_v63 = vrot.slane %v260_v13, %v7782_v52  ;;  %vm2000_vm13 = vcmask 261120   ;;  %s7467_s18 = smov 3   ;;  %s7468_s12 = smov 4  }
  0x77   :  { %vm2110_vm14 = vcmask 1047808   ;;  %s7469_s8 = smov 29   ;;  %s7470_s23 = smov 5   ;;  %vm3793_vm15 = vcmask 392192  }
  0x78   :  { %10589 = vst [vmem:[#allocation18_spill] sm:$0xff] %v7797_v63  ;;  %s7472_s16 = smov 27   ;;  %s7473_s20 = smov 26  }
  0x79   :  { %127 = vrot.lane.b32.xlu1 %v7636_v1, %s7451_s28  ;;  %125 = vrot.lane.b32.xlu0 %v7628_v0, %s7451_s28  ;;  %s7474_s21 = smov 24   ;;  %s7475_s22 = smov 126  }
  0x7a   :  { %s7476_s25 = smov 23   ;;  %s7477_s26 = smov 124  }
  0x7b   :  { %s7478_s27 = smov 22  }
  0x7d   :  { %208 = vrot.lane.b32.xlu1 %v7636_v1, %s7452_s0  ;;  %206 = vrot.lane.b32.xlu0 %v7628_v0, %s7452_s0 }
  0x81   :  { %170 = vrot.lane.b32.xlu1 %v7641_v2, %s7450_s5  ;;  %131 = vrot.lane.b32.xlu0 %v7649_v3, %s7451_s28 }
  0x85   :  { %250 = vrot.lane.b32.xlu1 %v7641_v2, %s7449_s13  ;;  %212 = vrot.lane.b32.xlu0 %v7649_v3, %s7452_s0 }
  0x89   :  { %290 = vrot.lane.b32.xlu1 %v7641_v2, %s7453_s15  ;;  %288 = vrot.lane.b32.xlu0 %v7636_v1, %s7453_s15 }
  0x8d   :  { %370 = vrot.lane.b32.xlu1 %v7641_v2, %s7454_s17  ;;  %368 = vrot.lane.b32.xlu0 %v7636_v1, %s7454_s17 }
  0x91   :  { %210 = vrot.lane.b32.xlu1 %v7641_v2, %s7452_s0  ;;  %129 = vrot.lane.b32.xlu0 %v7641_v2, %s7451_s28 }
  0x95   :  { %366 = vrot.lane.b32.xlu1 %v7628_v0, %s7454_s17  ;;  %286 = vrot.lane.b32.xlu0 %v7628_v0, %s7453_s15 }
  0x99   :  { %330 = vrot.lane.b32.xlu1 %v7641_v2, %s7455_s3  ;;  %328 = vrot.lane.b32.xlu0 %v7636_v1, %s7455_s3 }
  0x9d   :  { %326 = vrot.lane.b32.xlu1 %v7628_v0, %s7455_s3  ;;  %292 = vrot.lane.b32.xlu0 %v7649_v3, %s7453_s15 }
  0xa1   :  { %332 = vrot.lane.b32.xlu1 %v7649_v3, %s7455_s3  ;;  %372 = vrot.lane.b32.xlu0 %v7649_v3, %s7454_s17 }
  0xa5   :  { %410 = vrot.lane.b32.xlu1 %v7641_v2, %s7457_s4  ;;  %408 = vrot.lane.b32.xlu0 %v7636_v1, %s7457_s4 }
  0xa9   :  { %412 = vrot.lane.b32.xlu1 %v7649_v3, %s7457_s4  ;;  %406 = vrot.lane.b32.xlu0 %v7628_v0, %s7457_s4 }
  0xdf   :  { %v247_v6 = vpop.permute.xlu1 %246  ;;  %v167_v7 = vpop.permute.xlu0 %166 }
  0xe3   :  { %v7711_v10 = vpop.permute.xlu1 %248  ;;  %v169_v11 = vpop.permute.xlu0 %168 }
  0xe4   :  { %v257_v20 = vsel %vm254_vm1, %v247_v6, %v7711_v10  ;;  %v177_v21 = vsel %vm174_vm0, %v167_v7, %v169_v11 }
  0xe5   :  { %v283_v28 = vmul.f32 %v7721_v18, %v257_v20  ;;  %v203_v29 = vmul.f32 %v7724_v19, %v177_v21 }
  0xe7   :  { %v253_v15 = vpop.permute.xlu1 %252  ;;  %v173_v16 = vpop.permute.xlu0 %172  ;;  %v463_v36 = vrot.slane %v283_v28, 4  ;;  %v451_v37 = vrot.slane %v203_v29, 4 }
  0xe8   :  { %v258_v40 = vsel %vm254_vm1, %v253_v15, %v247_v6  ;;  %v178_v41 = vsel %vm174_vm0, %v173_v16, %v167_v7  ;;  %v7802_v6 = vrot.slane %v260_v13, %v7784_v53 }
  0xe9   :  { %v282_v49 = vmul.f32 %v7755_v34, %v258_v40  ;;  %v202_v50 = vmul.f32 %v7761_v38, %v178_v41 }
  0xea   :  { %10590 = vst [vmem:[#allocation19_spill] sm:$0xff] %v7802_v6 }
  0xeb   :  { %v7733_v23 = vpop.permute.xlu1 %127  ;;  %v126_v25 = vpop.permute.xlu0 %125  ;;  %v462_v58 = vrot.slane %v282_v49, 4  ;;  %v450_v59 = vrot.slane %v202_v50, 4 }
  0xec   :  { %v138_v27 = vsel %vm135_vm2, %v126_v25, %v7733_v23 }
  0xed   :  { %v163_v31 = vmul.f32 %v7737_v24, %v138_v27 }
  0xef   :  { %v7752_v32 = vpop.permute.xlu1 %208  ;;  %v207_v33 = vpop.permute.xlu0 %206  ;;  %v496_v45 = vsel %vm494_vm4, %v163_v31, %v451_v37  ;;  %v7834_v37 = vrot.slane %v7717_v17, %v7782_v52 }
  0xf0   :  { %v217_v35 = vsel %vm214_vm3, %v207_v33, %v7752_v32 }
  0xf1   :  { %v243_v39 = vmul.f32 %v7749_v30, %v217_v35 }
  0xf3   :  { %v171_v42 = vpop.permute.xlu1 %170  ;;  %v132_v44 = vpop.permute.xlu0 %131  ;;  %v500_v46 = vsel %vm494_vm4, %v243_v39, %v463_v36  ;;  %v7830_v36 = vrot.slane %v7731_v22, %v7784_v53  ;;  %v7838_v39 = vrot.slane %v7717_v17, %v7784_v53 }
  0xf4   :  { %v139_v47 = vsel %vm135_vm2, %v132_v44, %v126_v25  ;;  %v6184_v48 = vpack.c.bf16 %v500_v46, %v496_v45  ;;  %v176_v5 = vsel %vm174_vm0, %v169_v11, %v171_v42  ;;  %v175_v14 = vsel %vm174_vm0, %v171_v42, %v173_v16  ;;  %v7821_v16 = vld [vmem:[#allocation4 + $0x7] ss:$8 sm:$0xf] }
  0xf5   :  { %v162_v54 = vmul.f32 %v7770_v43, %v139_v47  ;;  %v204_v13 = vmul.f32 %v7791_v61, %v176_v5  ;;  %v205_v28 = vmul.f32 %v7794_v62, %v175_v14  ;;  %10592 = vst [vmem:[#allocation21_spill] sm:$0xff] %v7830_v36  ;;  %v7846_v42 = vrot.slane %v7821_v16, %v7713_v12  ;;  %v340_v5 = vld [vmem:[#allocation4 + $0x6] ss:$8 sm:$0xf] }
  0xf6   :  { %6185 = vmatprep.subr.bf16.mxu0 %v6184_v48 }
  0xf7   :  { %v251_v55 = vpop.permute.xlu1 %250  ;;  %v213_v56 = vpop.permute.xlu0 %212  ;;  %v495_v20 = vsel %vm494_vm4, %v162_v54, %v450_v59  ;;  %v452_v40 = vrot.slane %v204_v13, 4  ;;  %10594 = vst [vmem:[#allocation23_spill] sm:$0xff] %v7846_v42 }
  0xf8   :  { %v218_v57 = vsel %vm214_vm3, %v213_v56, %v207_v33  ;;  %v255_v25 = vsel %vm254_vm1, %v251_v55, %v253_v15  ;;  %v256_v11 = vsel %vm254_vm1, %v7711_v10, %v251_v55  ;;  %v300_v33 = vld [vmem:[#allocation4 + $0x5] ss:$8 sm:$0xf]  ;;  %v7826_v10 = vrot.slane %v7731_v22, %v7782_v52 }
  0xf9   :  { %v242_v60 = vmul.f32 %v7780_v51, %v218_v57  ;;  %v284_v29 = vmul.f32 %v7797_v63, %v256_v11  ;;  %v285_v31 = vmul.f32 %v7802_v6, %v255_v25  ;;  %v7842_v41 = vrot.slane %v300_v33, %v7713_v12 }
  0xfa   :  { %10591 = vst [vmem:[#allocation20_spill] sm:$0xff] %v7826_v10  ;;  %v453_v22 = vrot.slane %v205_v28, 4 }
  0xfb   :  { %v7804_v7 = vpop.permute.xlu1 %290  ;;  %v289_v8 = vpop.permute.xlu0 %288  ;;  %v499_v21 = vsel %vm494_vm4, %v242_v60, %v462_v58  ;;  %10593 = vst [vmem:[#allocation22_spill] sm:$0xff] %v7842_v41  ;;  %v464_v45 = vrot.slane %v284_v29, 4  ;;  %v465_v46 = vrot.slane %v285_v31, 4  ;;  %v7882_v31 = vrot.slane %v300_v33, %v7739_v26 }
  0xfc   :  { %v6186_v27 = vpack.c.bf16 %v499_v21, %v495_v20  ;;  %v296_v47 = vsel %vm294_vm5, %v289_v8, %v7804_v7 }
  0xfd   :  { %10596 = vst [vmem:[#allocation25_spill] sm:$0xff] %v7882_v31 }
  0xfe   :  { %6187 = vmatpush1.bf16.msra.mxu0 %v6186_v27 }
  0xff   :  { %v7819_v35 = vpop.permute.xlu1 %370  ;;  %v369_v15 = vpop.permute.xlu0 %368 }
 0x103   :  { %v211_v48 = vpop.permute.xlu1 %210  ;;  %v130_v17 = vpop.permute.xlu0 %129 }
 0x104   :  { %v215_v49 = vsel %vm214_vm3, %v211_v48, %v213_v56  ;;  %v216_v50 = vsel %vm214_vm3, %v7752_v32, %v211_v48  ;;  %v136_v54 = vsel %vm135_vm2, %v130_v17, %v132_v44  ;;  %v137_v55 = vsel %vm135_vm2, %v7733_v23, %v130_v17 }
 0x105   :  { %v244_v57 = vmul.f32 %v7826_v10, %v216_v50  ;;  %v245_v58 = vmul.f32 %v7830_v36, %v215_v49  ;;  %v164_v59 = vmul.f32 %v7834_v37, %v137_v55  ;;  %v165_v60 = vmul.f32 %v7838_v39, %v136_v54 }
 0x106   :  { %v323_v56 = vmul.f32 %v7842_v41, %v296_v47  ;;  %v376_v32 = vsel %vm374_vm6, %v369_v15, %v7819_v35  ;;  %v7871_v44 = vrot.slane %v7821_v16, %v7739_v26  ;;  %v7893_v17 = vrot.slane %v340_v5, %v7739_v26 }
 0x107   :  { %v367_v23 = vpop.permute.xlu1 %366  ;;  %v287_v20 = vpop.permute.xlu0 %286  ;;  %v498_v21 = vsel %vm494_vm4, %v165_v60, %v453_v22  ;;  %v502_v14 = vsel %vm494_vm4, %v245_v58, %v465_v46  ;;  %v497_v25 = vsel %vm494_vm4, %v164_v59, %v452_v40  ;;  %v501_v11 = vsel %vm494_vm4, %v244_v57, %v464_v45 }
 0x108   :  { %10595 = vst [vmem:[#allocation24_spill] sm:$0xff] %v7871_v44  ;;  %v377_v27 = vsel %vm374_vm6, %v367_v23, %v369_v15  ;;  %v6192_v13 = vpack.c.bf16 %v502_v14, %v498_v21  ;;  %v6194_v28 = vpack.c.bf16 %v501_v11, %v497_v25  ;;  %v403_v29 = vmul.f32 %v7846_v42, %v376_v32 }
 0x109   :  { %v7885_v22 = vrot.slane %v340_v5, %v7713_v12  ;;  %v297_v40 = vsel %vm294_vm5, %v287_v20, %v289_v8  ;;  %v475_v45 = vrot.slane %v323_v56, 4  ;;  %v402_v46 = vmul.f32 %v7871_v44, %v377_v27  ;;  %10598 = vst [vmem:[#allocation27_spill] sm:$0xff] %v7893_v17  ;;  %v420_v27 = vld [vmem:[#allocation4 + $0x20] ss:$8 sm:$0xf] }
 0x10a   :  { %6193 = vmatprep.subr.bf16.mxu1 %v6192_v13  ;;  %v7896_v49 = vrot.slane %v300_v33, %v7782_v52  ;;  %v487_v50 = vrot.slane %v403_v29, 4  ;;  %v322_v54 = vmul.f32 %v7882_v31, %v297_v40  ;;  %v7901_v55 = vrot.slane %v300_v33, %v7784_v53 }
 0x10b   :  { %10597 = vst [vmem:[#allocation26_spill] sm:$0xff] %v7885_v22  ;;  %v331_v15 = vpop.permute.xlu1 %330  ;;  %6195 = vmatpush1.bf16.msra.mxu1 %v6194_v28  ;;  %v329_v47 = vpop.permute.xlu0 %328  ;;  %v7905_v57 = vrot.slane %v7821_v16, %v7782_v52  ;;  %v486_v58 = vrot.slane %v402_v46, 4  ;;  %v504_v56 = vsel %vm494_vm4, %v7636_v1, %v475_v45  ;;  %v7912_v21 = vrot.slane %v7821_v16, %v7784_v53 }
 0x10c   :  { %v336_v48 = vsel %vm334_vm7, %v329_v47, %v331_v15  ;;  %10599 = vst [vmem:[#allocation28_spill] sm:$0xff] %v7896_v49  ;;  %10600 = vst [vmem:[#allocation29_spill] sm:$0xff] %v7901_v55  ;;  %v474_v13 = vrot.slane %v322_v54, 4  ;;  %v7926_v29 = vrot.slane %v340_v5, %v7782_v52 }
 0x10d   :  { %v363_v8 = vmul.f32 %v7885_v22, %v336_v48  ;;  %10601 = vst [vmem:[#allocation30_spill] sm:$0xff] %v7905_v57  ;;  %10602 = vst [vmem:[#allocation31_spill] sm:$0xff] %v7912_v21 }
 0x10e   :  { %10603 = vst [vmem:[#allocation32_spill] sm:$0xff] %v7926_v29 }
 0x10f   :  { %v327_v59 = vpop.permute.xlu1 %326  ;;  %v293_v60 = vpop.permute.xlu0 %292  ;;  %v508_v32 = vsel %vm494_vm4, %v363_v8, %v487_v50 }
 0x110   :  { %v337_v33 = vsel %vm334_vm7, %v327_v59, %v329_v47  ;;  %v295_v14 = vsel %vm294_vm5, %v7804_v7, %v293_v60  ;;  %v298_v25 = vsel %vm294_vm5, %v293_v60, %v287_v20  ;;  %v6188_v11 = vpack.c.bf16 %v508_v32, %v504_v56 }
 0x111   :  { %v362_v1 = vmul.f32 %v7893_v17, %v337_v33  ;;  %v324_v28 = vmul.f32 %v7896_v49, %v295_v14  ;;  %v325_v16 = vmul.f32 %v7901_v55, %v298_v25  ;;  %v7929_v7 = vrot.slane %v340_v5, %v7784_v53 }
 0x112   :  { %6189 = vmatprep.subr.bf16.mxu0 %v6188_v11  ;;  %v7933_v47 = vrot.slane %v420_v27, %v7713_v12  ;;  %v503_v12 = vsel %vm494_vm4, %v7628_v0, %v474_v13  ;;  %v7953_v25 = vrot.slane %v420_v27, %v7739_v26  ;;  %v7956_v11 = vrot.slane %v420_v27, %v7784_v53 }
 0x113   :  { %v477_v40 = vrot.slane %v325_v16, 4  ;;  %10604 = vst [vmem:[#allocation33_spill] sm:$0xff] %v7929_v7  ;;  %v333_v20 = vpop.permute.xlu1 %332  ;;  %v373_v45 = vpop.permute.xlu0 %372  ;;  %v507_v46 = vsel %vm494_vm4, %v362_v1, %v486_v58  ;;  %v476_v8 = vrot.slane %v324_v28, 4  ;;  %v7966_v26 = vrot.slane %v420_v27, %v7782_v52  ;;  %v511_v52 = vld [vmem:[#allocation2 + $0x380] sm:$0xff] }
 0x114   :  { %10605 = vst [vmem:[#allocation34_spill] sm:$0xff] %v7933_v47  ;;  %v335_v48 = vsel %vm334_vm7, %v331_v15, %v333_v20  ;;  %v338_v50 = vsel %vm334_vm7, %v333_v20, %v327_v59  ;;  %v375_v54 = vsel %vm374_vm6, %v7819_v35, %v373_v45  ;;  %v378_v5 = vsel %vm374_vm6, %v373_v45, %v367_v23 }
 0x115   :  { %v404_v60 = vmul.f32 %v7905_v57, %v375_v54  ;;  %v405_v58 = vmul.f32 %v7912_v21, %v378_v5  ;;  %v6190_v56 = vpack.c.bf16 %v507_v46, %v503_v12  ;;  %v364_v15 = vmul.f32 %v7926_v29, %v335_v48  ;;  %10606 = vst [vmem:[#allocation35_spill] sm:$0xff] %v7953_v25 }
 0x116   :  { %v365_v59 = vmul.f32 %v7929_v7, %v338_v50  ;;  %10607 = vst [vmem:[#allocation36_spill] sm:$0xff] %v7956_v11  ;;  %v506_v0 = vsel %vm494_vm4, %v7649_v3, %v477_v40  ;;  %v505_v28 = vsel %vm494_vm4, %v7641_v2, %v476_v8  ;;  %10608 = vst [vmem:[#allocation37_spill] sm:$0xff] %v7966_v26 }
 0x117   :  { %v488_v32 = vrot.slane %v404_v60, 4  ;;  %v489_v33 = vrot.slane %v405_v58, 4  ;;  %v411_v14 = vpop.permute.xlu1 %410  ;;  %v409_v35 = vpop.permute.xlu0 %408  ;;  %6191 = vmatpush1.bf16.msra.mxu0 %v6190_v56 }
 0x118   :  { %v416_v23 = vsel %vm414_vm8, %v409_v35, %v411_v14 }
 0x119   :  { %v443_v13 = vmul.f32 %v7933_v47, %v416_v23  ;;  %v510_v1 = vsel %vm494_vm4, %v365_v59, %v489_v33  ;;  %v509_v16 = vsel %vm494_vm4, %v364_v15, %v488_v32 }
 0x11a   :  { %v6196_v20 = vpack.c.bf16 %v510_v1, %v506_v0  ;;  %v6198_v45 = vpack.c.bf16 %v509_v16, %v505_v28 }
 0x11b   :  { %v413_v46 = vpop.permute.xlu1 %412  ;;  %5750 = vmatprep.subr.msk.mxu0 %vm494_vm4, %v443_v13  ;;  %v407_v53 = vpop.permute.xlu0 %406 }
 0x11c   :  { %v415_v3 = vsel %vm414_vm8, %v411_v14, %v413_v46  ;;  %v417_v40 = vsel %vm414_vm8, %v407_v53, %v409_v35  ;;  %v418_v2 = vsel %vm414_vm8, %v413_v46, %v407_v53  ;;  %6197 = vmatprep.subr.bf16.mxu1 %v6196_v20  ;;  %v670_v46 = vld [vmem:[%s10475_s2 + $0xe0] sm:$0xff]  ;;  %v10486_v53 = vmov 1  }
 0x11d   :  { %v442_v48 = vmul.f32 %v7953_v25, %v417_v40  ;;  %v445_v50 = vmul.f32 %v7956_v11, %v418_v2  ;;  %6199 = vmatpush1.bf16.msra.mxu1 %v6198_v45  ;;  %v444_v27 = vmul.f32 %v7966_v26, %v415_v3  ;;  %v10488_v45 = vmov 0   ;;  %6852 = vset.pattern.permute.xlu1 %v10486_v53  ;;  %v1085_v53 = vld [vmem:[#allocation9 + $0x118] sm:$0xff] }
 0x11e   :  { %6851 = vset.pattern.permute.xlu0 %v10488_v45 }
 0x11f   :  { %5751 = vmatpush1.msk.msra.mxu0 %vm494_vm4, %v442_v48  ;;  %5753 = vmatprep.subr.msk.mxu1 %vm494_vm4, %v445_v50 }
 0x120   :  { %5752 = vmatmul.mubr.msk.f32.vlgmr.msra.gmra.mrb[0].mxu0 %vm512_vm9, %v511_v52 }
 0x121   :  { %5754 = vmatpush1.msk.msra.mxu1 %vm494_vm4, %v444_v27  ;;  %918 = vmatprep.mubr.f32.mxu0 %v10484_v4  ;;  %vm4928_vm4 = vcmask 719872  }
 0x122   :  { %5755 = vmatmul.mubr.msk.f32.vlgmr.msra.gmra.mrb[0].mxu1 %vm512_vm9, %v511_v52 }
 0x123   :  { %989 = vmatprep.mubr.f32.mxu1 %v10484_v4  ;;  %v1053_v4 = vld [vmem:[#allocation9 + $0x18] sm:$0xff] }
 0x1f3   :  { %v594_v54 = vpop.f32.mrb[0].mxu0 }
 0x1f4   :  { %v596_v5 = vpop.f32.mrb[1].mxu0 }
 0x1f5   :  { %v671_v8 = vadd.f32 %v596_v5, %v594_v54  ;;  %v665_v60 = vpop.f32.mrb[0].mxu1 }
 0x1f6   :  { %v667_v58 = vpop.f32.mrb[1].mxu1 }
 0x1f7   :  { %v672_v12 = vadd.f32 %v671_v8, %v665_v60 }
 0x1f9   :  { %v673_v56 = vadd.f32 %v672_v12, %v667_v58 }
 0x1fb   :  { %674 = vadd.xlane.f32.xlu0 %v673_v56 }
 0x288   :  { %v675_v15 = vpop.xlane.xlu0 %674 }
 0x289   :  { %v677_v59 = vmul.f32 0.001953125, %v675_v15 }
 0x28b   :  { %v678_v32 = vsub.f32 %v594_v54, %v677_v59  ;;  %v679_v33 = vsub.f32 %v596_v5, %v677_v59  ;;  %v680_v14 = vsub.f32 %v665_v60, %v677_v59  ;;  %v681_v35 = vsub.f32 %v667_v58, %v677_v59 }
 0x28d   :  { %v682_v23 = vmul.f32 %v678_v32, %v678_v32  ;;  %v683_v0 = vmul.f32 %v679_v33, %v679_v33  ;;  %v684_v13 = vmul.f32 %v680_v14, %v680_v14  ;;  %v685_v28 = vmul.f32 %v681_v35, %v681_v35 }
 0x28f   :  { %v686_v1 = vadd.f32 %v683_v0, %v682_v23 }
 0x291   :  { %v687_v16 = vadd.f32 %v686_v1, %v684_v13 }
 0x293   :  { %v688_v20 = vadd.f32 %v687_v16, %v685_v28 }
 0x295   :  { %689 = vadd.xlane.f32.xlu1 %v688_v20 }
 0x2a6   :  { %706 = vperm.xlu1 %6852, %v670_v46  }
 0x322   :  { %v690_v3 = vpop.xlane.xlu1 %689 }
 0x323   :  { %v691_v40 = vmul.f32 0.001953125, %v690_v3 }
 0x325   :  { %v692_v2 = vadd.f32 1e-05, %v691_v40 }
 0x326   :  { %v707_v27 = vpop.permute.xlu1 %706 }
 0x327   :  { %7227 = vrsqrt.f32 %v692_v2 }
 0x331   :  { %v7228_v48 = vpop.eup %7227 }
 0x332   :  { %v694_v50 = vmul.f32 %v7228_v48, %v670_v46 }
 0x334   :  { %697 = vperm.xlu0 %6851, %v694_v50  }
 0x3b3   :  { %v698_v52 = vpop.permute.xlu0 %697 }
 0x3b4   :  { %v700_v54 = vmul.f32 %v698_v52, %v678_v32  ;;  %v701_v5 = vmul.f32 %v698_v52, %v679_v33  ;;  %v702_v8 = vmul.f32 %v698_v52, %v680_v14  ;;  %v703_v59 = vmul.f32 %v698_v52, %v681_v35 }
 0x3b6   :  { %v709_v60 = vadd.f32 %v707_v27, %v700_v54  ;;  %v710_v58 = vadd.f32 %v707_v27, %v701_v5  ;;  %v711_v12 = vadd.f32 %v707_v27, %v702_v8  ;;  %v712_v32 = vadd.f32 %v707_v27, %v703_v59 }
 0x3b8   :  { %v713_v56 = vmul.f32 0.01, %v709_v60  ;;  %v715_v15 = vmul.f32 0.01, %v711_v12  ;;  %v714_v23 = vmul.f32 0.01, %v710_v58 }
 0x3b9   :  { %v716_v14 = vmul.f32 0.01, %v712_v32 }
 0x3ba   :  { %v7988_v0 = vmax.f32 %v709_v60, %v713_v56  ;;  %v7990_v13 = vmax.f32 %v711_v12, %v715_v15  ;;  %v7996_v33 = vmax.f32 %v710_v58, %v714_v23 }
 0x3bb   :  { %v8006_v35 = vmax.f32 %v712_v32, %v716_v14 }
 0x3bc   :  { %725 = vrot.lane.b32.xlu0 %v7990_v13, %s7451_s28  ;;  %721 = vrot.lane.b32.xlu1 %v7988_v0, %s7451_s28 }
 0x3c0   :  { %753 = vrot.lane.b32.xlu0 %v7988_v0, %s7452_s0  ;;  %723 = vrot.lane.b32.xlu1 %v7996_v33, %s7451_s28 }
 0x3c4   :  { %769 = vrot.lane.b32.xlu0 %v7988_v0, %s7449_s13  ;;  %737 = vrot.lane.b32.xlu1 %v7988_v0, %s7450_s5 }
 0x3c8   :  { %759 = vrot.lane.b32.xlu0 %v8006_v35, %s7452_s0  ;;  %739 = vrot.lane.b32.xlu1 %v7996_v33, %s7450_s5 }
 0x3cc   :  { %757 = vrot.lane.b32.xlu0 %v7990_v13, %s7452_s0  ;;  %727 = vrot.lane.b32.xlu1 %v8006_v35, %s7451_s28 }
 0x3d0   :  { %787 = vrot.lane.b32.xlu0 %v7996_v33, %s7453_s15  ;;  %743 = vrot.lane.b32.xlu1 %v8006_v35, %s7450_s5 }
 0x3d4   :  { %785 = vrot.lane.b32.xlu0 %v7988_v0, %s7453_s15  ;;  %741 = vrot.lane.b32.xlu1 %v7990_v13, %s7450_s5 }
 0x3d8   :  { %803 = vrot.lane.b32.xlu0 %v7996_v33, %s7455_s3  ;;  %755 = vrot.lane.b32.xlu1 %v7996_v33, %s7452_s0 }
 0x3dc   :  { %819 = vrot.lane.b32.xlu0 %v7996_v33, %s7454_s17  ;;  %771 = vrot.lane.b32.xlu1 %v7996_v33, %s7449_s13 }
 0x3e0   :  { %801 = vrot.lane.b32.xlu0 %v7988_v0, %s7455_s3  ;;  %775 = vrot.lane.b32.xlu1 %v8006_v35, %s7449_s13 }
 0x3e4   :  { %807 = vrot.lane.b32.xlu0 %v8006_v35, %s7455_s3  ;;  %773 = vrot.lane.b32.xlu1 %v7990_v13, %s7449_s13 }
 0x3e8   :  { %835 = vrot.lane.b32.xlu0 %v7996_v33, %s7457_s4  ;;  %789 = vrot.lane.b32.xlu1 %v7990_v13, %s7453_s15 }
 0x3ec   :  { %833 = vrot.lane.b32.xlu0 %v7988_v0, %s7457_s4  ;;  %791 = vrot.lane.b32.xlu1 %v8006_v35, %s7453_s15 }
 0x3f0   :  { %805 = vrot.lane.b32.xlu1 %v7990_v13, %s7455_s3 }
 0x3f4   :  { %821 = vrot.lane.b32.xlu1 %v7990_v13, %s7454_s17 }
 0x3f8   :  { %817 = vrot.lane.b32.xlu1 %v7988_v0, %s7454_s17 }
 0x3fc   :  { %823 = vrot.lane.b32.xlu1 %v8006_v35, %s7454_s17 }
 0x400   :  { %837 = vrot.lane.b32.xlu1 %v7990_v13, %s7457_s4 }
 0x404   :  { %839 = vrot.lane.b32.xlu1 %v8006_v35, %s7457_s4 }
 0x42e   :  { %v726_v1 = vpop.permute.xlu0 %725  ;;  %v722_v28 = vpop.permute.xlu1 %721 }
 0x432   :  { %v754_v16 = vpop.permute.xlu0 %753  ;;  %v724_v20 = vpop.permute.xlu1 %723 }
 0x433   :  { %v731_v40 = vsel %vm135_vm2, %v722_v28, %v724_v20  ;;  %v730_v59 = vsel %vm135_vm2, %v724_v20, %v726_v1 }
 0x434   :  { %v734_v52 = vmul.f32 %v731_v40, %v7737_v24 }
 0x436   :  { %v770_v46 = vpop.permute.xlu0 %769  ;;  %v738_v3 = vpop.permute.xlu1 %737 }
 0x43a   :  { %v760_v2 = vpop.permute.xlu0 %759  ;;  %v740_v48 = vpop.permute.xlu1 %739 }
 0x43b   :  { %v747_v50 = vsel %vm174_vm0, %v738_v3, %v740_v48 }
 0x43c   :  { %v750_v27 = vmul.f32 %v747_v50, %v7724_v19 }
 0x43e   :  { %v728_v54 = vpop.permute.xlu1 %727  ;;  %v6200_v5 = vpack.c.bf16 %v750_v27, %v734_v52  ;;  %v758_v8 = vpop.permute.xlu0 %757 }
 0x43f   :  { %v732_v60 = vsel %vm135_vm2, %v728_v54, %v722_v28  ;;  %v729_v23 = vsel %vm135_vm2, %v726_v1, %v728_v54 }
 0x440   :  { %6201 = vmatprep.subr.bf16.mxu0 %v6200_v5  ;;  %v733_v56 = vmul.f32 %v732_v60, %v7770_v43  ;;  %v736_v52 = vmul.f32 %v729_v23, %v7838_v39 }
 0x442   :  { %v744_v58 = vpop.permute.xlu1 %743  ;;  %v788_v32 = vpop.permute.xlu0 %787 }
 0x443   :  { %v748_v12 = vsel %vm174_vm0, %v744_v58, %v738_v3  ;;  %v735_v3 = vmul.f32 %v730_v59, %v7834_v37  ;;  %v764_v59 = vsel %vm214_vm3, %v760_v2, %v754_v16 }
 0x444   :  { %v749_v15 = vmul.f32 %v748_v12, %v7761_v38 }
 0x446   :  { %v6202_v14 = vpack.c.bf16 %v749_v15, %v733_v56  ;;  %v742_v40 = vpop.permute.xlu1 %741  ;;  %v786_v60 = vpop.permute.xlu0 %785 }
 0x447   :  { %v745_v28 = vsel %vm174_vm0, %v742_v40, %v744_v58  ;;  %v746_v50 = vsel %vm174_vm0, %v740_v48, %v742_v40 }
 0x448   :  { %v751_v27 = vmul.f32 %v746_v50, %v7791_v61  ;;  %v752_v20 = vmul.f32 %v745_v28, %v7794_v62  ;;  %6203 = vmatpush1.bf16.msra.mxu0 %v6202_v14  ;;  %v765_v50 = vmul.f32 %v764_v59, %v7780_v51 }
 0x44a   :  { %v6218_v5 = vpack.c.bf16 %v751_v27, %v735_v3  ;;  %v756_v1 = vpop.permute.xlu1 %755  ;;  %v6216_v54 = vpack.c.bf16 %v752_v20, %v736_v52  ;;  %v804_v23 = vpop.permute.xlu0 %803  ;;  %v761_v3 = vsel %vm214_vm3, %v758_v8, %v760_v2  ;;  %v795_v2 = vsel %vm294_vm5, %v786_v60, %v788_v32 }
 0x44b   :  { %v763_v58 = vsel %vm214_vm3, %v754_v16, %v756_v1  ;;  %v762_v27 = vsel %vm214_vm3, %v756_v1, %v758_v8  ;;  %v768_v16 = vmul.f32 %v761_v3, %v7830_v36 }
 0x44c   :  { %6217 = vmatprep.subr.bf16.mxu1 %v6216_v54  ;;  %v766_v56 = vmul.f32 %v763_v58, %v7749_v30 }
 0x44d   :  { %6219 = vmatpush1.bf16.msra.mxu1 %v6218_v5 }
 0x44e   :  { %v772_v12 = vpop.permute.xlu1 %771  ;;  %v820_v54 = vpop.permute.xlu0 %819 }
 0x44f   :  { %v779_v48 = vsel %vm254_vm1, %v770_v46, %v772_v12 }
 0x450   :  { %v782_v15 = vmul.f32 %v779_v48, %v7721_v18  ;;  %v767_v48 = vmul.f32 %v762_v27, %v7826_v10 }
 0x452   :  { %v776_v14 = vpop.permute.xlu1 %775  ;;  %v6204_v40 = vpack.c.bf16 %v782_v15, %v766_v56 }
 0x453   :  { %v780_v28 = vsel %vm254_vm1, %v776_v14, %v770_v46 }
 0x454   :  { %v781_v52 = vmul.f32 %v780_v28, %v7755_v34  ;;  %6205 = vmatprep.subr.bf16.mxu0 %v6204_v40  ;;  %v797_v40 = vmul.f32 %v795_v2, %v7882_v31  ;;  %v802_v28 = vpop.permute.xlu0 %801 }
 0x456   :  { %v6206_v20 = vpack.c.bf16 %v781_v52, %v765_v50  ;;  %v774_v5 = vpop.permute.xlu1 %773  ;;  %v6210_v52 = vpack.c.bf16 %v797_v40, %v7988_v0 }
 0x457   :  { %v777_v58 = vsel %vm254_vm1, %v774_v5, %v776_v14  ;;  %v778_v46 = vsel %vm254_vm1, %v772_v12, %v774_v5 }
 0x458   :  { %v783_v56 = vmul.f32 %v778_v46, %v7797_v63  ;;  %v784_v8 = vmul.f32 %v777_v58, %v7802_v6  ;;  %6207 = vmatpush1.bf16.msra.mxu0 %v6206_v20  ;;  %v808_v2 = vpop.permute.xlu0 %807  ;;  %v9042_v63 = vld [vmem:[#allocation6 + $0x6] ss:$0 sm:$0xff] }
 0x45a   :  { %v6222_v1 = vpack.c.bf16 %v783_v56, %v767_v48  ;;  %v790_v15 = vpop.permute.xlu1 %789  ;;  %v6220_v59 = vpack.c.bf16 %v784_v8, %v768_v16 }
 0x45b   :  { %v794_v14 = vsel %vm294_vm5, %v788_v32, %v790_v15 }
 0x45c   :  { %v798_v12 = vmul.f32 %v794_v14, %v7842_v41  ;;  %6221 = vmatprep.subr.bf16.mxu1 %v6220_v59  ;;  %v836_v59 = vpop.permute.xlu0 %835 }
 0x45d   :  { %6223 = vmatpush1.bf16.msra.mxu1 %v6222_v1 }
 0x45e   :  { %v792_v50 = vpop.permute.xlu1 %791  ;;  %v6208_v3 = vpack.c.bf16 %v798_v12, %v7996_v33 }
 0x45f   :  { %v793_v27 = vsel %vm294_vm5, %v790_v15, %v792_v50  ;;  %v796_v20 = vsel %vm294_vm5, %v792_v50, %v786_v60  ;;  %v811_v15 = vsel %vm334_vm7, %v802_v28, %v804_v23 }
 0x460   :  { %v799_v5 = vmul.f32 %v793_v27, %v7896_v49  ;;  %v800_v32 = vmul.f32 %v796_v20, %v7901_v55  ;;  %6209 = vmatprep.subr.bf16.mxu0 %v6208_v3  ;;  %v813_v50 = vmul.f32 %v811_v15, %v7893_v17 }
 0x461   :  { %6211 = vmatpush1.bf16.msra.mxu0 %v6210_v52  ;;  %v812_v52 = vsel %vm334_vm7, %v808_v2, %v802_v28 }
 0x462   :  { %v6226_v16 = vpack.c.bf16 %v799_v5, %v7990_v13  ;;  %v806_v58 = vpop.permute.xlu1 %805  ;;  %v6224_v46 = vpack.c.bf16 %v800_v32, %v8006_v35 }
 0x463   :  { %v810_v48 = vsel %vm334_vm7, %v804_v23, %v806_v58  ;;  %v809_v27 = vsel %vm334_vm7, %v806_v58, %v808_v2  ;;  %v834_v23 = vpop.permute.xlu0 %833 }
 0x464   :  { %6225 = vmatprep.subr.bf16.mxu1 %v6224_v46  ;;  %v814_v8 = vmul.f32 %v810_v48, %v7885_v22  ;;  %v815_v46 = vmul.f32 %v809_v27, %v7926_v29  ;;  %v843_v58 = vsel %vm414_vm8, %v834_v23, %v836_v59 }
 0x465   :  { %6227 = vmatpush1.bf16.msra.mxu1 %v6226_v16  ;;  %v816_v16 = vmul.f32 %v812_v52, %v7929_v7  ;;  %v845_v15 = vmul.f32 %v843_v58, %v7953_v25 }
 0x466   :  { %v822_v56 = vpop.permute.xlu1 %821 }
 0x467   :  { %v826_v60 = vsel %vm374_vm6, %v820_v54, %v822_v56 }
 0x468   :  { %v830_v1 = vmul.f32 %v826_v60, %v7846_v42 }
 0x46a   :  { %v818_v40 = vpop.permute.xlu1 %817  ;;  %v6212_v14 = vpack.c.bf16 %v830_v1, %v814_v8 }
 0x46b   :  { %v827_v12 = vsel %vm374_vm6, %v818_v40, %v820_v54 }
 0x46c   :  { %v829_v3 = vmul.f32 %v827_v12, %v7871_v44  ;;  %6213 = vmatprep.subr.bf16.mxu0 %v6212_v14 }
 0x46e   :  { %v6214_v20 = vpack.c.bf16 %v829_v3, %v813_v50  ;;  %v824_v5 = vpop.permute.xlu1 %823 }
 0x46f   :  { %v825_v32 = vsel %vm374_vm6, %v822_v56, %v824_v5  ;;  %v828_v54 = vsel %vm374_vm6, %v824_v5, %v818_v40  ;;  %v849_v40 = vld [vmem:[#allocation2 + $0x3a0] sm:$0xff] }
 0x470   :  { %v831_v48 = vmul.f32 %v825_v32, %v7905_v57  ;;  %v832_v28 = vmul.f32 %v828_v54, %v7912_v21  ;;  %6215 = vmatpush1.bf16.msra.mxu0 %v6214_v20 }
 0x472   :  { %v6230_v2 = vpack.c.bf16 %v831_v48, %v815_v46  ;;  %v838_v60 = vpop.permute.xlu1 %837  ;;  %v6228_v8 = vpack.c.bf16 %v832_v28, %v816_v16 }
 0x473   :  { %v842_v56 = vsel %vm414_vm8, %v836_v59, %v838_v60 }
 0x474   :  { %6229 = vmatprep.subr.bf16.mxu1 %v6228_v8  ;;  %v846_v1 = vmul.f32 %v842_v56, %v7933_v47 }
 0x475   :  { %6231 = vmatpush1.bf16.msra.mxu1 %v6230_v2 }
 0x476   :  { %870 = vmatprep.subr.mxu0 %v846_v1  ;;  %v840_v14 = vpop.permute.xlu1 %839 }
 0x477   :  { %v841_v12 = vsel %vm414_vm8, %v838_v60, %v840_v14  ;;  %v844_v50 = vsel %vm414_vm8, %v840_v14, %v834_v23  ;;  %871 = vmatpush1.msra.mxu0 %v845_v15 }
 0x478   :  { %v847_v3 = vmul.f32 %v841_v12, %v7966_v26  ;;  %5756 = vmatmul.mubr.msk.f32.vlgmr.msra.gmra.mrb[2].mxu0 %vm850_vm10, %v849_v40  ;;  %v848_v59 = vmul.f32 %v844_v50, %v7956_v11  ;;  %v8181_v12 = vld [vmem:[%s10475_s2 + $0xe8] sm:$0xff]  ;;  %v1066_v50 = vld [vmem:[#allocation9 + $0x80] sm:$0xff] }
 0x479   :  { %v1106_v26 = vld [vmem:[#allocation9 + $0x1c0] sm:$0xff]  ;;  %v1107_v11 = vld [vmem:[#allocation9 + $0x1c8] sm:$0xff] }
 0x47a   :  { %941 = vmatprep.subr.mxu1 %v848_v59  ;;  %v1098_v59 = vld [vmem:[#allocation9 + $0x180] sm:$0xff] }
 0x47b   :  { %942 = vmatpush1.msra.mxu1 %v847_v3  ;;  %v1067_v3 = vld [vmem:[#allocation9 + $0x88] sm:$0xff] }
 0x47c   :  { %5757 = vmatmul.mubr.msk.f32.vlgmr.msra.gmra.mrb[2].mxu1 %vm850_vm10, %v849_v40 }
 0x54b   :  { %v920_v52 = vpop.f32.mrb[2].mxu0 }
 0x54c   :  { %v922_v27 = vpop.f32.mrb[3].mxu0 }
 0x54d   :  { %v997_v20 = vadd.f32 %v922_v27, %v920_v52 }
 0x54f   :  { %v991_v5 = vpop.f32.mrb[2].mxu1 }
 0x550   :  { %v998_v32 = vadd.f32 %v997_v20, %v991_v5  ;;  %v993_v54 = vpop.f32.mrb[3].mxu1  ;;  %v1050_v20 = vld [vmem:[#allocation9] sm:$0xff] }
 0x552   :  { %v999_v16 = vadd.f32 %v998_v32, %v993_v54 }
 0x554   :  { %1000 = vadd.xlane.f32.xlu0 %v999_v16  ;;  %v1082_v16 = vld [vmem:[#allocation9 + $0x100] sm:$0xff] }
 0x5e1   :  { %v1001_v23 = vpop.xlane.xlu0 %1000 }
 0x5e2   :  { %v1002_v46 = vmul.f32 0.001953125, %v1001_v23  ;;  %v1083_v23 = vld [vmem:[#allocation9 + $0x108] sm:$0xff] }
 0x5e4   :  { %v8162_v48 = vsub.f32 %v920_v52, %v1002_v46  ;;  %v8164_v28 = vsub.f32 %v922_v27, %v1002_v46  ;;  %v8166_v58 = vsub.f32 %v991_v5, %v1002_v46  ;;  %v8168_v2 = vsub.f32 %v993_v54, %v1002_v46  ;;  %v1099_v27 = vld [vmem:[#allocation9 + $0x188] sm:$0xff]  ;;  %v1068_v46 = vld [vmem:[#allocation9 + $0x90] sm:$0xff] }
 0x5e5   :  { %v6232_v52 = vpack.c.bf16 %v1067_v3, %v1066_v50  ;;  %v1051_v5 = vld [vmem:[#allocation9 + $0x8] sm:$0xff]  ;;  %v6264_v32 = vpack.c.bf16 %v1099_v27, %v1098_v59  ;;  %v1084_v50 = vld [vmem:[#allocation9 + $0x110] sm:$0xff]  ;;  %v1070_v59 = vld [vmem:[#allocation9 + $0xa0] sm:$0xff] }
 0x5e6   :  { %v1007_v60 = vmul.f32 %v8162_v48, %v8162_v48  ;;  %v1008_v8 = vmul.f32 %v8164_v28, %v8164_v28  ;;  %v1009_v56 = vmul.f32 %v8166_v58, %v8166_v58  ;;  %v1010_v15 = vmul.f32 %v8168_v2, %v8168_v2  ;;  %v1071_v27 = vld [vmem:[#allocation9 + $0xa8] sm:$0xff] }
 0x5e7   :  { %v6234_v54 = vpack.c.bf16 %v1051_v5, %v1050_v20  ;;  %6233 = vmatprep.subr.bf16.mxu0 %v6232_v52  ;;  %6265 = vmatprep.subr.bf16.mxu1 %v6264_v32  ;;  %v6270_v20 = vpack.c.bf16 %v1085_v53, %v1084_v50  ;;  %v6240_v52 = vpack.c.bf16 %v1071_v27, %v1070_v59  ;;  %v1102_v5 = vld [vmem:[#allocation9 + $0x1a0] sm:$0xff]  ;;  %v1055_v32 = vld [vmem:[#allocation9 + $0x28] sm:$0xff]  ;;  %v1057_v53 = vld [vmem:[#allocation9 + $0x38] sm:$0xff] }
 0x5e8   :  { %v1011_v1 = vadd.f32 %v1008_v8, %v1007_v60  ;;  %v6266_v60 = vpack.c.bf16 %v1083_v23, %v1082_v16  ;;  %v1069_v8 = vld [vmem:[#allocation9 + $0x98] sm:$0xff]  ;;  %v1103_v16 = vld [vmem:[#allocation9 + $0x1a8] sm:$0xff]  ;;  %v1054_v23 = vld [vmem:[#allocation9 + $0x20] sm:$0xff] }
 0x5e9   :  { %6235 = vmatpush3.bf16.msra.mxu0 %v6234_v54  ;;  %v6272_v45 = vpack.c.bf16 %v1103_v16, %v1102_v5  ;;  %v1086_v54 = vld [vmem:[#allocation9 + $0x120] sm:$0xff]  ;;  %v1088_v59 = vld [vmem:[#allocation9 + $0x130] sm:$0xff]  ;;  %v1089_v27 = vld [vmem:[#allocation9 + $0x138] sm:$0xff] }
 0x5ea   :  { %v1012_v40 = vadd.f32 %v1011_v1, %v1009_v56  ;;  %v1100_v56 = vld [vmem:[#allocation9 + $0x190] sm:$0xff]  ;;  %v1101_v1 = vld [vmem:[#allocation9 + $0x198] sm:$0xff]  ;;  %6267 = vmatpush3.bf16.msra.mxu1 %v6266_v60  ;;  %v1074_v5 = vld [vmem:[#allocation9 + $0xc0] sm:$0xff] }
 0x5eb   :  { %v1104_v60 = vld [vmem:[#allocation9 + $0x1b0] sm:$0xff]  ;;  %v1075_v16 = vld [vmem:[#allocation9 + $0xc8] sm:$0xff] }
 0x5ec   :  { %v1013_v14 = vadd.f32 %v1012_v40, %v1010_v15  ;;  %v6236_v15 = vpack.c.bf16 %v1069_v8, %v1068_v46  ;;  %v6268_v40 = vpack.c.bf16 %v1101_v1, %v1100_v56  ;;  %v1087_v46 = vld [vmem:[#allocation9 + $0x128] sm:$0xff]  ;;  %v6242_v8 = vpack.c.bf16 %v1055_v32, %v1054_v23  ;;  %v1072_v56 = vld [vmem:[#allocation9 + $0xb0] sm:$0xff]  ;;  %v1073_v1 = vld [vmem:[#allocation9 + $0xb8] sm:$0xff] }
 0x5ed   :  { %v6278_v23 = vpack.c.bf16 %v1089_v27, %v1088_v59  ;;  %v1059_v32 = vld [vmem:[#allocation9 + $0x48] sm:$0xff]  ;;  %v1060_v59 = vld [vmem:[#allocation9 + $0x50] sm:$0xff]  ;;  %v1061_v27 = vld [vmem:[#allocation9 + $0x58] sm:$0xff] }
 0x5ee   :  { %1014 = vadd.xlane.f32.xlu1 %v1013_v14  ;;  %v1052_v14 = vld [vmem:[#allocation9 + $0x10] sm:$0xff]  ;;  %6237 = vmatprep.subr.bf16.mxu0 %v6236_v15  ;;  %v1105_v15 = vld [vmem:[#allocation9 + $0x1b8] sm:$0xff] }
 0x5ef   :  { %v6238_v3 = vpack.c.bf16 %v1053_v4, %v1052_v14  ;;  %6269 = vmatprep.subr.bf16.mxu1 %v6268_v40  ;;  %v6274_v4 = vpack.c.bf16 %v1087_v46, %v1086_v54  ;;  %v6244_v14 = vpack.c.bf16 %v1073_v1, %v1072_v56  ;;  %v1056_v40 = vld [vmem:[#allocation9 + $0x30] sm:$0xff]  ;;  %v6276_v50 = vpack.c.bf16 %v1105_v15, %v1104_v60  ;;  %v1090_v54 = vld [vmem:[#allocation9 + $0x140] sm:$0xff]  ;;  %v1091_v56 = vld [vmem:[#allocation9 + $0x148] sm:$0xff] }
 0x5f0   :  { %6271 = vmatpush3.bf16.msra.mxu1 %v6270_v20  ;;  %v6248_v20 = vpack.c.bf16 %v1075_v16, %v1074_v5  ;;  %v6280_v46 = vpack.c.bf16 %v1107_v11, %v1106_v26  ;;  %v1077_v1 = vld [vmem:[#allocation9 + $0xd8] sm:$0xff]  ;;  %v1108_v60 = vld [vmem:[#allocation9 + $0x1d0] sm:$0xff]  ;;  %v6254_v16 = vpack.c.bf16 %v1061_v27, %v1060_v59 }
 0x5f1   :  { %6239 = vmatpush3.bf16.msra.mxu0 %v6238_v3  ;;  %6273 = vmatprep.subr.bf16.mxu1 %v6272_v45  ;;  %v6246_v3 = vpack.c.bf16 %v1057_v53, %v1056_v40  ;;  %v1076_v45 = vld [vmem:[#allocation9 + $0xd0] sm:$0xff]  ;;  %v1109_v15 = vld [vmem:[#allocation9 + $0x1d8] sm:$0xff] }
 0x5f2   :  { %6241 = vmatprep.subr.bf16.mxu0 %v6240_v52  ;;  %v1058_v52 = vld [vmem:[#allocation9 + $0x40] sm:$0xff]  ;;  %v6252_v40 = vpack.c.bf16 %v1077_v1, %v1076_v45  ;;  %v1092_v5 = vld [vmem:[#allocation9 + $0x150] sm:$0xff] }
 0x5f3   :  { %v6250_v25 = vpack.c.bf16 %v1059_v32, %v1058_v52  ;;  %v1110_v52 = vld [vmem:[#allocation9 + $0x1e0] sm:$0xff]  ;;  %v1096_v27 = vld [vmem:[#allocation9 + $0x170] sm:$0xff] }
 0x5f4   :  { %6275 = vmatpush3.bf16.msra.mxu1 %v6274_v4  ;;  %v6284_v4 = vpack.c.bf16 %v1109_v15, %v1108_v60  ;;  %v1094_v60 = vld [vmem:[#allocation9 + $0x160] sm:$0xff] }
 0x5f5   :  { %6243 = vmatpush3.bf16.msra.mxu0 %v6242_v8  ;;  %6277 = vmatprep.subr.bf16.mxu1 %v6276_v50  ;;  %v6282_v8 = vpack.c.bf16 %v1091_v56, %v1090_v54  ;;  %v1111_v54 = vld [vmem:[#allocation9 + $0x1e8] sm:$0xff] }
 0x5f6   :  { %6245 = vmatprep.subr.bf16.mxu0 %v6244_v14  ;;  %v1063_v56 = vld [vmem:[#allocation9 + $0x68] sm:$0xff]  ;;  %v6288_v45 = vpack.c.bf16 %v1111_v54, %v1110_v52 }
 0x5f8   :  { %6279 = vmatpush3.bf16.msra.mxu1 %v6278_v23 }
 0x5f9   :  { %6247 = vmatpush3.bf16.msra.mxu0 %v6246_v3  ;;  %6281 = vmatprep.subr.bf16.mxu1 %v6280_v46  ;;  %v1093_v3 = vld [vmem:[#allocation9 + $0x158] sm:$0xff]  ;;  %v1062_v46 = vld [vmem:[#allocation9 + $0x60] sm:$0xff] }
 0x5fa   :  { %6249 = vmatprep.subr.bf16.mxu0 %v6248_v20  ;;  %v6286_v23 = vpack.c.bf16 %v1093_v3, %v1092_v5  ;;  %v1078_v20 = vld [vmem:[#allocation9 + $0xe0] sm:$0xff]  ;;  %v6258_v1 = vpack.c.bf16 %v1063_v56, %v1062_v46  ;;  %v1097_v5 = vld [vmem:[#allocation9 + $0x178] sm:$0xff] }
 0x5fc   :  { %6283 = vmatpush3.bf16.msra.mxu1 %v6282_v8  ;;  %v1080_v8 = vld [vmem:[#allocation9 + $0xf0] sm:$0xff] }
 0x5fd   :  { %6251 = vmatpush3.bf16.msra.mxu0 %v6250_v25  ;;  %6285 = vmatprep.subr.bf16.mxu1 %v6284_v4  ;;  %v1079_v25 = vld [vmem:[#allocation9 + $0xe8] sm:$0xff]  ;;  %v1112_v4 = vld [vmem:[#allocation9 + $0x1f0] sm:$0xff] }
 0x5fe   :  { %6253 = vmatprep.subr.bf16.mxu0 %v6252_v40  ;;  %v6256_v32 = vpack.c.bf16 %v1079_v25, %v1078_v20  ;;  %v1081_v40 = vld [vmem:[#allocation9 + $0xf8] sm:$0xff] }
 0x5ff   :  { %1031 = vperm.xlu1 %6852, %v8181_v12  }
 0x600   :  { %6287 = vmatpush3.bf16.msra.mxu1 %v6286_v23 }
 0x601   :  { %6255 = vmatpush3.bf16.msra.mxu0 %v6254_v16  ;;  %6289 = vmatprep.subr.bf16.mxu1 %v6288_v45  ;;  %v6294_v16 = vpack.c.bf16 %v1097_v5, %v1096_v27 }
 0x602   :  { %6257 = vmatprep.subr.bf16.mxu0 %v6256_v32 }
 0x605   :  { %6259 = vmatpush3.bf16.msra.mxu0 %v6258_v1 }
 0x67b   :  { %v1015_v14 = vpop.xlane.xlu1 %1014 }
 0x67c   :  { %v1016_v53 = vmul.f32 0.001953125, %v1015_v14  ;;  %v6260_v14 = vpack.c.bf16 %v1081_v40, %v1080_v8 }
 0x67e   :  { %v1017_v11 = vadd.f32 1e-05, %v1016_v53  ;;  %v1113_v53 = vld [vmem:[#allocation9 + $0x1f8] sm:$0xff]  ;;  %6261 = vmatprep.subr.bf16.mxu0 %v6260_v14 }
 0x67f   :  { %v1032_v32 = vpop.permute.xlu1 %1031 }
 0x680   :  { %7229 = vrsqrt.f32 %v1017_v11  ;;  %v1064_v11 = vld [vmem:[#allocation9 + $0x70] sm:$0xff] }
 0x68a   :  { %v7230_v26 = vpop.eup %7229 }
 0x68b   :  { %v1019_v50 = vmul.f32 %v7230_v26, %v8181_v12  ;;  %v1095_v12 = vld [vmem:[#allocation9 + $0x168] sm:$0xff]  ;;  %v1065_v26 = vld [vmem:[#allocation9 + $0x78] sm:$0xff] }
 0x68c   :  { %v6290_v15 = vpack.c.bf16 %v1095_v12, %v1094_v60  ;;  %v6262_v59 = vpack.c.bf16 %v1065_v26, %v1064_v11 }
 0x68d   :  { %1022 = vperm.xlu0 %6851, %v1019_v50   ;;  %v6292_v50 = vpack.c.bf16 %v1113_v53, %v1112_v4  ;;  %v1254_v53 = vld [vmem:[#allocation2 + $0x200] sm:$0xff] }
 0x68e   :  { %6291 = vmatpush3.bf16.msra.mxu1 %v6290_v15  ;;  %6263 = vmatpush3.bf16.msra.mxu0 %v6262_v59 }
 0x68f   :  { %6293 = vmatprep.subr.bf16.mxu1 %v6292_v50 }
 0x692   :  { %6295 = vmatpush3.bf16.msra.mxu1 %v6294_v16  ;;  %v1338_v16 = vld [vmem:[%s10475_s2 + $0x80] sm:$0xff] }
 0x70c   :  { %v1023_v3 = vpop.permute.xlu0 %1022 }
 0x70d   :  { %v1025_v23 = vmul.f32 %v1023_v3, %v8162_v48  ;;  %v1026_v20 = vmul.f32 %v1023_v3, %v8164_v28  ;;  %v1027_v25 = vmul.f32 %v1023_v3, %v8166_v58  ;;  %v1028_v52 = vmul.f32 %v1023_v3, %v8168_v2 }
 0x70e   :  { %v10613_v3 = vmov 0  }
 0x70f   :  { %v1034_v54 = vadd.f32 %v1032_v32, %v1025_v23  ;;  %v1035_v46 = vadd.f32 %v1032_v32, %v1026_v20  ;;  %v1036_v56 = vadd.f32 %v1032_v32, %v1027_v25  ;;  %v1037_v45 = vadd.f32 %v1032_v32, %v1028_v52 }
 0x711   :  { %v1038_v1 = vmul.f32 0.01, %v1034_v54  ;;  %v1039_v60 = vmul.f32 0.01, %v1035_v46  ;;  %v1040_v12 = vmul.f32 0.01, %v1036_v56 }
 0x712   :  { %v1041_v15 = vmul.f32 0.01, %v1037_v45 }
 0x713   :  { %v1042_v8 = vmax.f32 %v1034_v54, %v1038_v1  ;;  %v1043_v40 = vmax.f32 %v1035_v46, %v1039_v60  ;;  %v1044_v4 = vmax.f32 %v1036_v56, %v1040_v12 }
 0x714   :  { %v1045_v14 = vmax.f32 %v1037_v45, %v1041_v15 }
 0x715   :  { %v8190_v48 = vadd.f32 %v1042_v8, %v7988_v0  ;;  %v8193_v28 = vadd.f32 %v1043_v40, %v7996_v33  ;;  %v8196_v58 = vadd.f32 %v1044_v4, %v7990_v13 }
 0x716   :  { %v8199_v2 = vadd.f32 %v1045_v14, %v8006_v35  ;;  %v1255_v35 = vld [vmem:[#allocation2 + $0x220] sm:$0xff]  ;;  %v1339_v14 = vld [vmem:[%s10475_s2 + $0x88] sm:$0xff] }
 0x717   :  { %10609 = vst [vmem:[#allocation38_spill] sm:$0xff] %v8190_v48  ;;  %10610 = vst [vmem:[#allocation39_spill] sm:$0xff] %v8193_v28  ;;  %1178 = vmatprep.mubr.f32.mxu0 %v8193_v28 }
 0x718   :  { %10611 = vst [vmem:[#allocation40_spill] sm:$0xff] %v8196_v58  ;;  %10612 = vst [vmem:[#allocation41_spill] sm:$0xff] %v8199_v2  ;;  %1248 = vmatprep.mubr.f32.mxu1 %v8199_v2  ;;  %1179 = vmatmul.mubr.f32.vlgmr.msra.gmra.mrb[4].mxu0 %v8190_v48 }
 0x719   :  { %1249 = vmatmul.mubr.f32.vlgmr.msra.gmra.mrb[4].mxu1 %v8196_v58  ;;  %6073 = vmatprep.mubr.msk.f32.mxu0 %vm1256_vm11, %v1254_v53 }
 0x7eb   :  { %v5844_v0 = vpop.f32.mrb[4].mxu0 }
 0x7ec   :  { %v5879_v33 = vpop.f32.mrb[4].mxu1  ;;  %v5845_v11 = vpop.f32.mrb[5].mxu0 }
 0x7ed   :  { %v5846_v26 = vadd.f32 %v5845_v11, %v5844_v0  ;;  %v5880_v13 = vpop.f32.mrb[5].mxu1 }
 0x7ee   :  { %v5881_v50 = vadd.f32 %v5880_v13, %v5879_v33  ;;  %v10614_v33 = vmov 1  }
 0x7f0   :  { %v1251_v59 = vadd.f32 %v5881_v50, %v5846_v26 }
 0x7f2   :  { %6071 = vmatprep.subr.mxu0 %v1251_v59 }
 0x7f3   :  { %6072 = vmatpush3.msra.mxu0 %v1251_v59  ;;  %v10496_v59 = vmov 0.0|0.0  }
 0x7f4   :  { %6074 = vmatmul.mubr.msk.f32.vlgmr.msra.gmra.mrb[6].mxu0 %vm1256_vm11, %v1255_v35  ;;  %6296 = vmatprep.subr.bf16.mxu1 %v10496_v59 }
 0x7f5   :  { %6323 = vmatprep.subr.bf16.mxu0 %v10496_v59 }
 0x8c7   :  { %v6075_v27 = vpop.f32.mrb[6].mxu0 }
 0x8c8   :  { %1342 = vadd.xlane.f32.xlu1 %v6075_v27  ;;  %v1329_v5 = vpop.f32.mrb[7].mxu0 }
 0x8c9   :  { %1340 = vadd.xlane.f32.xlu0 %v1329_v5 }
 0x8d9   :  { %1377 = vperm.xlu1 %6852, %v1338_v16  }
 0x8dd   :  { %6853 = vset.pattern.permute.xlu1 %v10613_v3 }
 0x955   :  { %v1343_v23 = vpop.xlane.xlu1 %1342 }
 0x956   :  { %v1341_v20 = vpop.xlane.xlu0 %1340  ;;  %v1346_v25 = vmul.f32 0.0078125, %v1343_v23 }
 0x957   :  { %v1345_v52 = vmul.f32 0.0078125, %v1341_v20 }
 0x958   :  { %v1348_v46 = vsub.f32 %v6075_v27, %v1346_v25 }
 0x959   :  { %v1347_v32 = vsub.f32 %v1329_v5, %v1345_v52  ;;  %v1378_v11 = vpop.permute.xlu1 %1377 }
 0x95a   :  { %v1350_v56 = vmul.f32 %v1348_v46, %v1348_v46 }
 0x95b   :  { %v1349_v54 = vmul.f32 %v1347_v32, %v1347_v32 }
 0x95d   :  { %1351 = vadd.xlane.f32.xlu0 %v1349_v54 }
 0x961   :  { %1353 = vadd.xlane.f32.xlu0 %v1350_v56 }
 0x9ea   :  { %v1352_v45 = vpop.xlane.xlu0 %1351 }
 0x9eb   :  { %v1355_v1 = vmul.f32 0.0078125, %v1352_v45 }
 0x9ed   :  { %v1357_v60 = vadd.f32 1e-05, %v1355_v1 }
 0x9ee   :  { %v1354_v12 = vpop.xlane.xlu0 %1353 }
 0x9ef   :  { %7231 = vrsqrt.f32 %v1357_v60  ;;  %v1356_v15 = vmul.f32 0.0078125, %v1354_v12  ;;  %v8257_v12 = vld [vmem:[#allocation6 + $0x1] ss:$0 sm:$0xff] }
 0x9f1   :  { %v1358_v8 = vadd.f32 1e-05, %v1356_v15 }
 0x9f3   :  { %7233 = vrsqrt.f32 %v1358_v8 }
 0x9f9   :  { %v7232_v40 = vpop.eup %7231 }
 0x9fa   :  { %v1361_v4 = vmul.f32 %v7232_v40, %v1338_v16 }
 0x9fc   :  { %1365 = vperm.xlu1 %6853, %v1361_v4  }
 0x9fd   :  { %v7234_v53 = vpop.eup %7233 }
 0x9fe   :  { %v1362_v0 = vmul.f32 %v7234_v53, %v1339_v14  ;;  %v8261_v53 = vld [vmem:[#allocation6 + $0x2] ss:$0 sm:$0xff] }
 0xa00   :  { %1370 = vperm.xlu0 %6851, %v1362_v0   ;;  %6854 = vset.pattern.permute.xlu1 %v10614_v33 }
 0xa01   :  { %1382 = vperm.xlu1 %6854, %v1339_v14  }
 0xa05   :  { %6855 = vset.pattern.permute.xlu1 %v10613_v3 }
 0xa7b   :  { %v1366_v26 = vpop.permute.xlu1 %1365 }
 0xa7c   :  { %v1373_v13 = vmul.f32 %v1366_v26, %v1347_v32  ;;  %v1480_v32 = vld [vmem:[#allocation2 + $0x248] sm:$0xff] }
 0xa7d   :  { %5768 = vmatprep.mubr.msk.f32.mxu1 %vm1483_vm12, %v1480_v32 }
 0xa7e   :  { %v1385_v50 = vadd.f32 %v1378_v11, %v1373_v13 }
 0xa7f   :  { %v1371_v35 = vpop.permute.xlu0 %1370 }
 0xa80   :  { %v1387_v27 = vmul.f32 0.01, %v1385_v50  ;;  %v1374_v5 = vmul.f32 %v1371_v35, %v1348_v46  ;;  %v1383_v16 = vpop.permute.xlu1 %1382  ;;  %v8253_v46 = vld [vmem:[#allocation6] ss:$0 sm:$0xff]  ;;  %v8266_v35 = vld [vmem:[#allocation6 + $0x3] ss:$0 sm:$0xff] }
 0xa82   :  { %v8216_v23 = vmax.f32 %v1385_v50, %v1387_v27  ;;  %v1386_v20 = vadd.f32 %v1383_v16, %v1374_v5 }
 0xa84   :  { %v1388_v25 = vmul.f32 0.01, %v1386_v20  ;;  %1391 = vrot.lane.b32.xlu0 %v8216_v23, %s7461_s30 }
 0xa86   :  { %v8220_v52 = vmax.f32 %v1386_v20, %v1388_v25 }
 0xa88   :  { %1402 = vrot.lane.b32.xlu0 %v8216_v23, %s7445_s19  ;;  %1393 = vrot.lane.b32.xlu1 %v8220_v52, %s7461_s30 }
 0xa8c   :  { %1413 = vrot.lane.b32.xlu0 %v8216_v23, %s7462_s29  ;;  %1404 = vrot.lane.b32.xlu1 %v8220_v52, %s7445_s19 }
 0xa90   :  { %1424 = vrot.lane.b32.xlu0 %v8216_v23, %s7449_s13  ;;  %1415 = vrot.lane.b32.xlu1 %v8220_v52, %s7462_s29 }
 0xa94   :  { %1435 = vrot.lane.b32.xlu0 %v8216_v23, %s7453_s15  ;;  %1426 = vrot.lane.b32.xlu1 %v8220_v52, %s7449_s13 }
 0xa98   :  { %1446 = vrot.lane.b32.xlu0 %v8216_v23, %s7463_s11  ;;  %1437 = vrot.lane.b32.xlu1 %v8220_v52, %s7453_s15 }
 0xa9c   :  { %1457 = vrot.lane.b32.xlu0 %v8216_v23, %s7464_s6  ;;  %1448 = vrot.lane.b32.xlu1 %v8220_v52, %s7463_s11 }
 0xaa0   :  { %1468 = vrot.lane.b32.xlu0 %v8216_v23, %s7465_s14  ;;  %1459 = vrot.lane.b32.xlu1 %v8220_v52, %s7464_s6 }
 0xaa4   :  { %1470 = vrot.lane.b32.xlu1 %v8220_v52, %s7465_s14 }
 0xaf6   :  { %v1392_v54 = vpop.permute.xlu0 %1391 }
 0xaf7   :  { %v1400_v1 = vmul.f32 %v8253_v46, %v1392_v54 }
 0xafa   :  { %v1394_v56 = vpop.permute.xlu1 %1393  ;;  %v1403_v45 = vpop.permute.xlu0 %1402 }
 0xafb   :  { %v1401_v60 = vmul.f32 %v8253_v46, %v1394_v56  ;;  %v1411_v4 = vmul.f32 %v8257_v12, %v1403_v45  ;;  %v8272_v56 = vld [vmem:[#allocation6 + $0x5] ss:$0 sm:$0xff] }
 0xafd   :  { %v6297_v15 = vpack.c.bf16 %v1401_v60, %v1400_v1  ;;  %v6309_v60 = vpack.c.bf16 %v8220_v52, %v8216_v23 }
 0xafe   :  { %v1405_v8 = vpop.permute.xlu1 %1404  ;;  %v1414_v40 = vpop.permute.xlu0 %1413 }
 0xaff   :  { %v1412_v14 = vmul.f32 %v8257_v12, %v1405_v8  ;;  %6298 = vmatpush1.bf16.msra.mxu1 %v6297_v15  ;;  %v1422_v13 = vmul.f32 %v8261_v53, %v1414_v40  ;;  %v8279_v40 = vld [vmem:[#allocation6 + $0x6] ss:$0 sm:$0xff] }
 0xb00   :  { %6299 = vmatprep.subr.bf16.mxu1 %v10496_v59 }
 0xb01   :  { %v6300_v0 = vpack.c.bf16 %v1412_v14, %v1411_v4 }
 0xb02   :  { %v1416_v11 = vpop.permute.xlu1 %1415  ;;  %v1425_v26 = vpop.permute.xlu0 %1424 }
 0xb03   :  { %v1423_v50 = vmul.f32 %v8261_v53, %v1416_v11  ;;  %6301 = vmatpush1.bf16.msra.mxu1 %v6300_v0  ;;  %v1433_v20 = vmul.f32 %v8266_v35, %v1425_v26 }
 0xb04   :  { %6302 = vmatprep.subr.bf16.mxu1 %v10496_v59 }
 0xb05   :  { %v6303_v27 = vpack.c.bf16 %v1423_v50, %v1422_v13  ;;  %v8284_v13 = vld [vmem:[#allocation6 + $0x7] ss:$0 sm:$0xff] }
 0xb06   :  { %v1427_v5 = vpop.permute.xlu1 %1426  ;;  %v1436_v16 = vpop.permute.xlu0 %1435 }
 0xb07   :  { %v1434_v25 = vmul.f32 %v8266_v35, %v1427_v5  ;;  %6304 = vmatpush1.bf16.msra.mxu1 %v6303_v27  ;;  %v1444_v8 = vmul.f32 %v8272_v56, %v1436_v16 }
 0xb08   :  { %6305 = vmatprep.subr.bf16.mxu1 %v10496_v59 }
 0xb09   :  { %v6306_v32 = vpack.c.bf16 %v1434_v25, %v1433_v20  ;;  %v8289_v20 = vld [vmem:[#allocation6 + $0x8] ss:$0 sm:$0xff] }
 0xb0a   :  { %v1438_v54 = vpop.permute.xlu1 %1437  ;;  %v1447_v45 = vpop.permute.xlu0 %1446 }
 0xb0b   :  { %6307 = vmatpush1.bf16.msra.mxu1 %v6306_v32  ;;  %v1445_v1 = vmul.f32 %v8272_v56, %v1438_v54  ;;  %v1455_v26 = vmul.f32 %v8279_v40, %v1447_v45 }
 0xb0c   :  { %6308 = vmatprep.subr.bf16.mxu1 %v10496_v59 }
 0xb0d   :  { %v6312_v4 = vpack.c.bf16 %v1445_v1, %v1444_v8  ;;  %v1481_v8 = vld [vmem:[#allocation2 + $0x260] sm:$0xff] }
 0xb0e   :  { %v1449_v15 = vpop.permute.xlu1 %1448  ;;  %v1458_v0 = vpop.permute.xlu0 %1457 }
 0xb0f   :  { %6310 = vmatpush1.bf16.msra.mxu1 %v6309_v60  ;;  %v1456_v14 = vmul.f32 %v8279_v40, %v1449_v15  ;;  %v1466_v16 = vmul.f32 %v8284_v13, %v1458_v0  ;;  %v1479_v60 = vld [vmem:[#allocation2 + $0x240] sm:$0xff]  ;;  %v1482_v15 = vld [vmem:[#allocation2 + $0x268] sm:$0xff] }
 0xb10   :  { %6311 = vmatprep.subr.bf16.mxu1 %v10496_v59 }
 0xb11   :  { %v6315_v50 = vpack.c.bf16 %v1456_v14, %v1455_v26 }
 0xb12   :  { %v1460_v11 = vpop.permute.xlu1 %1459  ;;  %v1469_v25 = vpop.permute.xlu0 %1468 }
 0xb13   :  { %6313 = vmatpush1.bf16.msra.mxu1 %v6312_v4  ;;  %v1467_v27 = vmul.f32 %v8284_v13, %v1460_v11  ;;  %v1477_v45 = vmul.f32 %v8289_v20, %v1469_v25 }
 0xb14   :  { %6314 = vmatprep.subr.bf16.mxu1 %v10496_v59 }
 0xb15   :  { %v6318_v32 = vpack.c.bf16 %v1467_v27, %v1466_v16 }
 0xb16   :  { %v1471_v5 = vpop.permute.xlu1 %1470 }
 0xb17   :  { %6316 = vmatpush1.bf16.msra.mxu1 %v6315_v50  ;;  %v1478_v54 = vmul.f32 %v8289_v20, %v1471_v5 }
 0xb18   :  { %6317 = vmatprep.subr.bf16.mxu1 %v10496_v59 }
 0xb19   :  { %v6321_v1 = vpack.c.bf16 %v1478_v54, %v1477_v45 }
 0xb1b   :  { %6319 = vmatpush1.bf16.msra.mxu1 %v6318_v32 }
 0xb1c   :  { %6320 = vmatprep.subr.bf16.mxu1 %v10496_v59 }
 0xb1f   :  { %6322 = vmatpush1.bf16.msra.mxu1 %v6321_v1 }
 0xb22   :  { %1555 = vmatmul.mubr.f32.vlgmr.msra.gmra.mrb[6].mxu1 %v1479_v60 }
 0xb23   :  { %5769 = vmatprep.mubr.msk.f32.mxu1 %vm1483_vm12, %v1482_v15 }
 0xb26   :  { %1560 = vmatmul.mubr.f32.gmra.mrb[8].mxu1 %v1481_v8 }
 0xbf5   :  { %v1556_v4 = vpop.f32.mrb[6].mxu1 }
 0xbf6   :  { %1567 = vadd.xlane.f32.xlu0 %v1556_v4  ;;  %v1558_v14 = vpop.f32.mrb[7].mxu1 }
 0xbf9   :  { %v1561_v0 = vpop.f32.mrb[8].mxu1 }
 0xbfa   :  { %1569 = vadd.xlane.f32.xlu1 %v1561_v0  ;;  %v1563_v11 = vpop.f32.mrb[9].mxu1 }
 0xbfb   :  { %v1565_v11 = vld [vmem:[%s10475_s2 + $0x90] sm:$0xff] }
 0xc83   :  { %v1568_v26 = vpop.xlane.xlu0 %1567 }
 0xc84   :  { %v1571_v50 = vmul.f32 0.0078125, %v1568_v26 }
 0xc86   :  { %v1573_v27 = vsub.f32 %v1556_v4, %v1571_v50 }
 0xc87   :  { %v1570_v5 = vpop.xlane.xlu1 %1569 }
 0xc88   :  { %v1572_v16 = vmul.f32 0.0078125, %v1570_v5  ;;  %v1575_v25 = vmul.f32 %v1573_v27, %v1573_v27 }
 0xc8a   :  { %1577 = vadd.xlane.f32.xlu0 %v1575_v25  ;;  %v1574_v32 = vsub.f32 %v1561_v0, %v1572_v16  ;;  %v1566_v0 = vld [vmem:[%s10475_s2 + $0x98] sm:$0xff] }
 0xc8c   :  { %v1576_v54 = vmul.f32 %v1574_v32, %v1574_v32 }
 0xc8e   :  { %1579 = vadd.xlane.f32.xlu0 %v1576_v54 }
 0xd17   :  { %v1578_v45 = vpop.xlane.xlu0 %1577 }
 0xd18   :  { %v1581_v1 = vmul.f32 0.0078125, %v1578_v45 }
 0xd1a   :  { %v1583_v60 = vadd.f32 1e-05, %v1581_v1 }
 0xd1b   :  { %v1580_v15 = vpop.xlane.xlu0 %1579 }
 0xd1c   :  { %7235 = vrsqrt.f32 %v1583_v60  ;;  %v1582_v8 = vmul.f32 0.0078125, %v1580_v15 }
 0xd1e   :  { %v1584_v14 = vadd.f32 1e-05, %v1582_v8 }
 0xd20   :  { %7237 = vrsqrt.f32 %v1584_v14 }
 0xd26   :  { %v7236_v4 = vpop.eup %7235 }
 0xd27   :  { %v1587_v26 = vmul.f32 %v7236_v4, %v1565_v11 }
 0xd29   :  { %1591 = vperm.xlu1 %6855, %v1587_v26  }
 0xd2a   :  { %v7238_v50 = vpop.eup %7237 }
 0xd2b   :  { %v1588_v5 = vmul.f32 %v7238_v50, %v1566_v0 }
 0xd2d   :  { %6856 = vset.pattern.permute.xlu1 %v10614_v33  ;;  %1596 = vperm.xlu0 %6851, %v1588_v5  }
 0xd2e   :  { %1603 = vperm.xlu1 %6856, %v1565_v11  }
 0xd32   :  { %1608 = vperm.xlu1 %6856, %v1566_v0  }
 0xd36   :  { %6857 = vset.pattern.permute.xlu1 %v10613_v3 }
 0xda8   :  { %v1592_v16 = vpop.permute.xlu1 %1591 }
 0xda9   :  { %v1599_v25 = vmul.f32 %v1592_v16, %v1573_v27  ;;  %v1666_v27 = vld [vmem:[#allocation2 + $0x288] sm:$0xff] }
 0xdaa   :  { %5770 = vmatprep.mubr.msk.f32.mxu0 %vm1483_vm12, %v1666_v27 }
 0xdac   :  { %v1597_v54 = vpop.permute.xlu0 %1596 }
 0xdad   :  { %v1604_v45 = vpop.permute.xlu1 %1603  ;;  %v1600_v60 = vmul.f32 %v1597_v54, %v1574_v32 }
 0xdae   :  { %v1611_v1 = vadd.f32 %v1604_v45, %v1599_v25 }
 0xdb0   :  { %v1613_v15 = vmul.f32 0.01, %v1611_v1 }
 0xdb1   :  { %v1609_v8 = vpop.permute.xlu1 %1608 }
 0xdb2   :  { %v1615_v14 = vmax.f32 %v1611_v1, %v1613_v15  ;;  %v1612_v4 = vadd.f32 %v1609_v8, %v1600_v60 }
 0xdb4   :  { %v1614_v26 = vmul.f32 0.01, %v1612_v4  ;;  %1617 = vrot.lane.b32.xlu0 %v1615_v14, %s7461_s30 }
 0xdb6   :  { %v1616_v50 = vmax.f32 %v1612_v4, %v1614_v26 }
 0xdb8   :  { %1623 = vrot.lane.b32.xlu0 %v1615_v14, %s7445_s19  ;;  %1619 = vrot.lane.b32.xlu1 %v1616_v50, %s7461_s30  ;;  %v6336_v11 = vpack.c.bf16 %v1616_v50, %v1615_v14 }
 0xdbc   :  { %1629 = vrot.lane.b32.xlu0 %v1615_v14, %s7462_s29  ;;  %1625 = vrot.lane.b32.xlu1 %v1616_v50, %s7445_s19 }
 0xdc0   :  { %1635 = vrot.lane.b32.xlu0 %v1615_v14, %s7449_s13  ;;  %1631 = vrot.lane.b32.xlu1 %v1616_v50, %s7462_s29 }
 0xdc4   :  { %1641 = vrot.lane.b32.xlu0 %v1615_v14, %s7453_s15  ;;  %1637 = vrot.lane.b32.xlu1 %v1616_v50, %s7449_s13 }
 0xdc8   :  { %1647 = vrot.lane.b32.xlu0 %v1615_v14, %s7463_s11  ;;  %1643 = vrot.lane.b32.xlu1 %v1616_v50, %s7453_s15 }
 0xdcc   :  { %1653 = vrot.lane.b32.xlu0 %v1615_v14, %s7464_s6  ;;  %1649 = vrot.lane.b32.xlu1 %v1616_v50, %s7463_s11 }
 0xdd0   :  { %1659 = vrot.lane.b32.xlu0 %v1615_v14, %s7465_s14  ;;  %1655 = vrot.lane.b32.xlu1 %v1616_v50, %s7464_s6 }
 0xdd4   :  { %1661 = vrot.lane.b32.xlu1 %v1616_v50, %s7465_s14 }
 0xe26   :  { %v1618_v32 = vpop.permute.xlu0 %1617 }
 0xe27   :  { %v1621_v16 = vmul.f32 %v8253_v46, %v1618_v32 }
 0xe2a   :  { %v1624_v0 = vpop.permute.xlu0 %1623  ;;  %v1620_v5 = vpop.permute.xlu1 %1619 }
 0xe2b   :  { %v1622_v25 = vmul.f32 %v8253_v46, %v1620_v5  ;;  %v1627_v60 = vmul.f32 %v8257_v12, %v1624_v0 }
 0xe2d   :  { %v6324_v54 = vpack.c.bf16 %v1622_v25, %v1621_v16 }
 0xe2e   :  { %v1630_v45 = vpop.permute.xlu0 %1629  ;;  %v1626_v1 = vpop.permute.xlu1 %1625 }
 0xe2f   :  { %v1628_v15 = vmul.f32 %v8257_v12, %v1626_v1  ;;  %6325 = vmatpush1.bf16.msra.mxu0 %v6324_v54  ;;  %v1633_v26 = vmul.f32 %v8261_v53, %v1630_v45 }
 0xe30   :  { %6326 = vmatprep.subr.bf16.mxu0 %v10496_v59 }
 0xe31   :  { %v6327_v8 = vpack.c.bf16 %v1628_v15, %v1627_v60 }
 0xe32   :  { %v1636_v14 = vpop.permute.xlu0 %1635  ;;  %v1632_v4 = vpop.permute.xlu1 %1631 }
 0xe33   :  { %v1634_v50 = vmul.f32 %v8261_v53, %v1632_v4  ;;  %6328 = vmatpush1.bf16.msra.mxu0 %v6327_v8  ;;  %v1639_v0 = vmul.f32 %v8266_v35, %v1636_v14 }
 0xe34   :  { %6329 = vmatprep.subr.bf16.mxu0 %v10496_v59 }
 0xe35   :  { %v6330_v46 = vpack.c.bf16 %v1634_v50, %v1633_v26 }
 0xe36   :  { %v1642_v27 = vpop.permute.xlu0 %1641  ;;  %v1638_v32 = vpop.permute.xlu1 %1637 }
 0xe37   :  { %v1640_v12 = vmul.f32 %v8266_v35, %v1638_v32  ;;  %6331 = vmatpush1.bf16.msra.mxu0 %v6330_v46  ;;  %v1645_v45 = vmul.f32 %v8272_v56, %v1642_v27  ;;  %v1665_v32 = vld [vmem:[#allocation2 + $0x280] sm:$0xff] }
 0xe38   :  { %6332 = vmatprep.subr.bf16.mxu0 %v10496_v59 }
 0xe39   :  { %v6333_v5 = vpack.c.bf16 %v1640_v12, %v1639_v0  ;;  %v1668_v0 = vld [vmem:[#allocation2 + $0x2a8] sm:$0xff] }
 0xe3a   :  { %v1644_v16 = vpop.permute.xlu1 %1643  ;;  %v1648_v25 = vpop.permute.xlu0 %1647 }
 0xe3b   :  { %6334 = vmatpush1.bf16.msra.mxu0 %v6333_v5  ;;  %v1646_v53 = vmul.f32 %v8272_v56, %v1644_v16  ;;  %v1651_v8 = vmul.f32 %v8279_v40, %v1648_v25 }
 0xe3c   :  { %6335 = vmatprep.subr.bf16.mxu0 %v10496_v59 }
 0xe3d   :  { %v6339_v1 = vpack.c.bf16 %v1646_v53, %v1645_v45 }
 0xe3e   :  { %v1650_v54 = vpop.permute.xlu1 %1649  ;;  %v1654_v60 = vpop.permute.xlu0 %1653 }
 0xe3f   :  { %6337 = vmatpush1.bf16.msra.mxu0 %v6336_v11  ;;  %v1652_v35 = vmul.f32 %v8279_v40, %v1650_v54  ;;  %v1657_v50 = vmul.f32 %v8284_v13, %v1654_v60 }
 0xe40   :  { %6338 = vmatprep.subr.bf16.mxu0 %v10496_v59 }
 0xe41   :  { %v6342_v14 = vpack.c.bf16 %v1652_v35, %v1651_v8  ;;  %v1804_v8 = vld [vmem:[%s10480_s7] sm:$0xff] }
 0xe42   :  { %v1656_v15 = vpop.permute.xlu1 %1655  ;;  %v1660_v56 = vpop.permute.xlu0 %1659 }
 0xe43   :  { %6340 = vmatpush1.bf16.msra.mxu0 %v6339_v1  ;;  %v1658_v4 = vmul.f32 %v8284_v13, %v1656_v15  ;;  %v1663_v27 = vmul.f32 %v8289_v20, %v1660_v56  ;;  %v1667_v13 = vld [vmem:[#allocation2 + $0x2a0] sm:$0xff] }
 0xe44   :  { %6341 = vmatprep.subr.bf16.mxu0 %v10496_v59 }
 0xe45   :  { %v6345_v11 = vpack.c.bf16 %v1658_v4, %v1657_v50  ;;  %v1806_v4 = vld [vmem:[%s10480_s7 + $0x10] sm:$0xff]  ;;  %v1807_v50 = vld [vmem:[%s10480_s7 + $0x18] sm:$0xff] }
 0xe46   :  { %v1662_v26 = vpop.permute.xlu1 %1661  ;;  %v6354_v56 = vpack.c.bf16 %v1807_v50, %v1806_v4  ;;  %v1814_v50 = vld [vmem:[%s10480_s7 + $0x50] sm:$0xff] }
 0xe47   :  { %6343 = vmatpush1.bf16.msra.mxu0 %v6342_v14  ;;  %v1664_v46 = vmul.f32 %v8289_v20, %v1662_v26  ;;  %v1805_v14 = vld [vmem:[%s10480_s7 + $0x8] sm:$0xff] }
 0xe48   :  { %6344 = vmatprep.subr.bf16.mxu0 %v10496_v59  ;;  %v6350_v26 = vpack.c.bf16 %v1805_v14, %v1804_v8  ;;  %v1813_v8 = vld [vmem:[%s10480_s7 + $0x48] sm:$0xff] }
 0xe49   :  { %v6348_v40 = vpack.c.bf16 %v1664_v46, %v1663_v27  ;;  %v1809_v46 = vld [vmem:[%s10480_s7 + $0x28] sm:$0xff] }
 0xe4a   :  { %6351 = vmatprep.subr.bf16.mxu1 %v6350_v26 }
 0xe4b   :  { %6346 = vmatpush1.bf16.msra.mxu0 %v6345_v11  ;;  %v1808_v11 = vld [vmem:[%s10480_s7 + $0x20] sm:$0xff]  ;;  %6353 = vmatpush3.bf16.msra.mxu1 %v6350_v26 }
 0xe4c   :  { %6347 = vmatprep.subr.bf16.mxu0 %v10496_v59  ;;  %6355 = vmatprep.subr.bf16.mxu1 %v6354_v56  ;;  %v6358_v27 = vpack.c.bf16 %v1809_v46, %v1808_v11  ;;  %v1816_v46 = vld [vmem:[%s10480_s7 + $0x60] sm:$0xff] }
 0xe4f   :  { %6349 = vmatpush1.bf16.msra.mxu0 %v6348_v40  ;;  %v1810_v40 = vld [vmem:[%s10480_s7 + $0x30] sm:$0xff]  ;;  %6357 = vmatpush3.bf16.msra.mxu1 %v6354_v56  ;;  %v1815_v56 = vld [vmem:[%s10480_s7 + $0x58] sm:$0xff] }
 0xe50   :  { %6359 = vmatprep.subr.bf16.mxu1 %v6358_v27  ;;  %v6370_v11 = vpack.c.bf16 %v1815_v56, %v1814_v50 }
 0xe52   :  { %1740 = vmatmul.mubr.f32.vlgmr.msra.gmra.mrb[8].mxu0 %v1665_v32  ;;  %v1811_v32 = vld [vmem:[%s10480_s7 + $0x38] sm:$0xff] }
 0xe53   :  { %5771 = vmatprep.mubr.msk.f32.mxu0 %vm1483_vm12, %v1668_v0  ;;  %v6362_v0 = vpack.c.bf16 %v1811_v32, %v1810_v40  ;;  %6361 = vmatpush3.bf16.msra.mxu1 %v6358_v27  ;;  %v1817_v27 = vld [vmem:[%s10480_s7 + $0x68] sm:$0xff]  ;;  %v1818_v32 = vld [vmem:[%s10480_s7 + $0x70] sm:$0xff] }
 0xe54   :  { %v6374_v40 = vpack.c.bf16 %v1817_v27, %v1816_v46  ;;  %v1898_v46 = vld [vmem:[#allocation2 + $0x60] sm:$0xff] }
 0xe55   :  { %6363 = vmatprep.subr.bf16.mxu1 %v6362_v0 }
 0xe56   :  { %1745 = vmatmul.mubr.f32.gmra.mrb[10].mxu0 %v1667_v13 }
 0xe57   :  { %6365 = vmatpush3.bf16.msra.mxu1 %v6362_v0  ;;  %v1819_v0 = vld [vmem:[%s10480_s7 + $0x78] sm:$0xff] }
 0xf25   :  { %v1741_v12 = vpop.f32.mrb[8].mxu0 }
 0xf26   :  { %1752 = vadd.xlane.f32.xlu0 %v1741_v12  ;;  %v1743_v5 = vpop.f32.mrb[9].mxu0 }
 0xf29   :  { %v1746_v16 = vpop.f32.mrb[10].mxu0 }
 0xf2a   :  { %1754 = vadd.xlane.f32.xlu1 %v1746_v16  ;;  %v1748_v25 = vpop.f32.mrb[11].mxu0 }
 0xfb3   :  { %v1753_v53 = vpop.xlane.xlu0 %1752 }
 0xfb4   :  { %v1756_v20 = vmul.f32 0.0078125, %v1753_v53 }
 0xfb6   :  { %v8346_v54 = vsub.f32 %v1741_v12, %v1756_v20  ;;  %v1750_v20 = vld [vmem:[%s10475_s2 + $0xa0] sm:$0xff] }
 0xfb7   :  { %v1755_v45 = vpop.xlane.xlu1 %1754 }
 0xfb8   :  { %v1757_v1 = vmul.f32 0.0078125, %v1755_v45  ;;  %v1760_v35 = vmul.f32 %v8346_v54, %v8346_v54 }
 0xfba   :  { %v8350_v60 = vsub.f32 %v1746_v16, %v1757_v1  ;;  %1762 = vadd.xlane.f32.xlu0 %v1760_v35  ;;  %v1751_v35 = vld [vmem:[%s10475_s2 + $0xa8] sm:$0xff] }
 0xfbc   :  { %v1761_v15 = vmul.f32 %v8350_v60, %v8350_v60 }
 0xfbe   :  { %1764 = vadd.xlane.f32.xlu0 %v1761_v15  ;;  %v1812_v15 = vld [vmem:[%s10480_s7 + $0x40] sm:$0xff]  ;;  %s7471_s7 = smov 31  }
 0xfbf   :  { %v6366_v14 = vpack.c.bf16 %v1813_v8, %v1812_v15 }
 0xfc1   :  { %6367 = vmatprep.subr.bf16.mxu1 %v6366_v14 }
 0xfc2   :  { %6369 = vmatpush3.bf16.msra.mxu1 %v6366_v14 }
 0xfc3   :  { %6371 = vmatprep.subr.bf16.mxu1 %v6370_v11 }
 0xfc6   :  { %6373 = vmatpush3.bf16.msra.mxu1 %v6370_v11  ;;  %v1896_v11 = vld [vmem:[#allocation2 + $0x20] sm:$0xff] }
 0xfc7   :  { %6375 = vmatprep.subr.bf16.mxu1 %v6374_v40 }
 0xfca   :  { %6377 = vmatpush3.bf16.msra.mxu1 %v6374_v40 }
0x1047   :  { %v1763_v13 = vpop.xlane.xlu0 %1762 }
0x1048   :  { %v1766_v12 = vmul.f32 0.0078125, %v1763_v13  ;;  %v6378_v13 = vpack.c.bf16 %v1819_v0, %v1818_v32 }
0x104a   :  { %v1768_v5 = vadd.f32 1e-05, %v1766_v12  ;;  %6379 = vmatprep.subr.bf16.mxu1 %v6378_v13 }
0x104b   :  { %v1765_v16 = vpop.xlane.xlu0 %1764  ;;  %6381 = vmatpush3.bf16.msra.mxu1 %v6378_v13 }
0x104c   :  { %7239 = vrsqrt.f32 %v1768_v5  ;;  %v1767_v25 = vmul.f32 0.0078125, %v1765_v16 }
0x104e   :  { %v1769_v53 = vadd.f32 1e-05, %v1767_v25 }
0x1050   :  { %7241 = vrsqrt.f32 %v1769_v53 }
0x1056   :  { %v7240_v45 = vpop.eup %7239 }
0x1057   :  { %v1772_v1 = vmul.f32 %v7240_v45, %v1750_v20 }
0x1059   :  { %1776 = vperm.xlu1 %6857, %v1772_v1  }
0x105a   :  { %v7242_v4 = vpop.eup %7241 }
0x105b   :  { %v1773_v26 = vmul.f32 %v7242_v4, %v1751_v35 }
0x105d   :  { %6858 = vset.pattern.permute.xlu1 %v10614_v33  ;;  %1781 = vperm.xlu0 %6851, %v1773_v26  }
0x105e   :  { %1788 = vperm.xlu1 %6858, %v1750_v20  }
0x1062   :  { %1793 = vperm.xlu1 %6858, %v1751_v35  }
0x10d8   :  { %v1777_v12 = vpop.permute.xlu1 %1776 }
0x10d9   :  { %v1784_v5 = vmul.f32 %v1777_v12, %v8346_v54  ;;  %v1895_v54 = vld [vmem:[#allocation2] sm:$0xff] }
0x10da   :  { %6115 = vmatprep.mubr.msk.f32.mxu0 %vm1483_vm12, %v1895_v54 }
0x10dc   :  { %v1782_v16 = vpop.permute.xlu0 %1781 }
0x10dd   :  { %v1789_v25 = vpop.permute.xlu1 %1788  ;;  %v1785_v20 = vmul.f32 %v1782_v16, %v8350_v60 }
0x10de   :  { %v1796_v53 = vadd.f32 %v1789_v25, %v1784_v5 }
0x10e0   :  { %v1798_v45 = vmul.f32 0.01, %v1796_v53 }
0x10e1   :  { %v1794_v1 = vpop.permute.xlu1 %1793 }
0x10e2   :  { %v1800_v35 = vmax.f32 %v1796_v53, %v1798_v45  ;;  %v1797_v15 = vadd.f32 %v1794_v1, %v1785_v20 }
0x10e4   :  { %v8412_v8 = vadd.f32 %v1800_v35, %v8216_v23  ;;  %v1799_v14 = vmul.f32 0.01, %v1797_v15  ;;  %v1897_v23 = vld [vmem:[#allocation2 + $0x40] sm:$0xff] }
0x10e6   :  { %v1801_v4 = vmax.f32 %v1797_v15, %v1799_v14  ;;  %6108 = vmatprep.mubr.f32.mxu1 %v8412_v8 }
0x10e8   :  { %v8416_v26 = vadd.f32 %v1801_v4, %v8220_v52 }
0x10ea   :  { %6109 = vmatmul.mubr.f32.vlgmr.msra.gmra.mrb[10].mxu1 %v8416_v26 }
0x11bd   :  { %v6110_v60 = vpop.f32.mrb[10].mxu1 }
0x11be   :  { %v1886_v50 = vpop.f32.mrb[11].mxu1 }
0x11bf   :  { %v6382_v56 = vpack.c.bf16 %v6110_v60, %v1886_v50 }
0x11c1   :  { %6383 = vmatprep.subr.bf16.mxu0 %v6382_v56 }
0x11c2   :  { %6385 = vmatpush3.bf16.msra.mxu0 %v6382_v56 }
0x11c5   :  { %6116 = vmatmul.mubr.msk.f32.vlgmr.msra.gmra.mrb[12].mxu0 %vm1483_vm12, %v1896_v11 }
0x11c6   :  { %6118 = vmatprep.mubr.msk.f32.mxu0 %vm1483_vm12, %v1897_v23 }
0x11c9   :  { %6119 = vmatmul.mubr.msk.f32.gmra.mrb[14].mxu0 %vm1483_vm12, %v1898_v46 }
0x1298   :  { %v6117_v52 = vpop.f32.mrb[12].mxu0 }
0x1299   :  { %v1977_v27 = vpop.f32.mrb[13].mxu0  ;;  %v2004_v40 = vsel %vm2000_vm13, %v6117_v52, 0.0 }
0x129a   :  { %2005 = vadd.xlane.f32.xlu1 %v2004_v40  ;;  %v2001_v32 = vsel %vm2000_vm13, %v1977_v27, 0.0 }
0x129b   :  { %2002 = vadd.xlane.f32.xlu0 %v2001_v32  ;;  %v1996_v32 = vld [vmem:[%s10475_s2] sm:$0xff] }
0x129c   :  { %v6120_v0 = vpop.f32.mrb[14].mxu0 }
0x129d   :  { %v1987_v13 = vpop.f32.mrb[15].mxu0  ;;  %v2010_v5 = vsel %vm2000_vm13, %v6120_v0, 0.0 }
0x129e   :  { %v2007_v12 = vsel %vm2000_vm13, %v1987_v13, 0.0 }
0x129f   :  { %2008 = vadd.xlane.f32.xlu0 %v2007_v12 }
0x12a3   :  { %2011 = vadd.xlane.f32.xlu0 %v2010_v5 }
0x1327   :  { %v2006_v16 = vpop.xlane.xlu1 %2005 }
0x1328   :  { %v2015_v25 = vmul.f32 0.03125, %v2006_v16  ;;  %v2003_v53 = vpop.xlane.xlu0 %2002 }
0x1329   :  { %v2014_v20 = vmul.f32 0.03125, %v2003_v53 }
0x132a   :  { %v8427_v45 = vsub.f32 %v6117_v52, %v2015_v25 }
0x132b   :  { %v8429_v1 = vsub.f32 %v1977_v27, %v2014_v20 }
0x132c   :  { %v2009_v35 = vpop.xlane.xlu0 %2008  ;;  %v2023_v15 = vmul.f32 %v8427_v45, %v8427_v45 }
0x132d   :  { %v2016_v14 = vmul.f32 0.03125, %v2009_v35  ;;  %v2022_v4 = vmul.f32 %v8429_v1, %v8429_v1 }
0x132e   :  { %v2029_v54 = vsel %vm2000_vm13, %v2023_v15, 0.0 }
0x132f   :  { %v8436_v60 = vsub.f32 %v1987_v13, %v2016_v14  ;;  %2030 = vadd.xlane.f32.xlu0 %v2029_v54  ;;  %v2026_v50 = vsel %vm2000_vm13, %v2022_v4, 0.0  ;;  %v1997_v13 = vld [vmem:[%s10475_s2 + $0x8] sm:$0xff] }
0x1330   :  { %2027 = vadd.xlane.f32.xlu1 %v2026_v50  ;;  %v2012_v56 = vpop.xlane.xlu0 %2011 }
0x1331   :  { %v2017_v11 = vmul.f32 0.03125, %v2012_v56  ;;  %v2024_v23 = vmul.f32 %v8436_v60, %v8436_v60 }
0x1333   :  { %v8441_v46 = vsub.f32 %v6120_v0, %v2017_v11  ;;  %v2032_v52 = vsel %vm2000_vm13, %v2024_v23, 0.0 }
0x1334   :  { %2033 = vadd.xlane.f32.xlu1 %v2032_v52  ;;  %v1998_v52 = vld [vmem:[%s10475_s2 + $0x10] sm:$0xff] }
0x1335   :  { %v2025_v27 = vmul.f32 %v8441_v46, %v8441_v46 }
0x1337   :  { %v2035_v40 = vsel %vm2000_vm13, %v2025_v27, 0.0 }
0x1338   :  { %2036 = vadd.xlane.f32.xlu0 %v2035_v40 }
0x1345   :  { %2080 = vperm.xlu1 %6858, %v1996_v32  }
0x1349   :  { %2085 = vperm.xlu1 %6858, %v1997_v13  }
0x134d   :  { %6859 = vset.pattern.permute.xlu1 %v10613_v3 }
0x13bc   :  { %v2031_v0 = vpop.xlane.xlu0 %2030 }
0x13bd   :  { %v2039_v12 = vmul.f32 0.03125, %v2031_v0  ;;  %v2028_v5 = vpop.xlane.xlu1 %2027  ;;  %v1999_v0 = vld [vmem:[%s10475_s2 + $0x18] sm:$0xff] }
0x13be   :  { %v2038_v16 = vmul.f32 0.03125, %v2028_v5 }
0x13bf   :  { %v2043_v25 = vadd.f32 1e-05, %v2039_v12 }
0x13c0   :  { %v2042_v53 = vadd.f32 1e-05, %v2038_v16 }
0x13c1   :  { %7243 = vrsqrt.f32 %v2043_v25  ;;  %v2034_v20 = vpop.xlane.xlu1 %2033 }
0x13c2   :  { %7245 = vrsqrt.f32 %v2042_v53  ;;  %v2040_v35 = vmul.f32 0.03125, %v2034_v20 }
0x13c4   :  { %v2044_v15 = vadd.f32 1e-05, %v2040_v35 }
0x13c5   :  { %v2037_v14 = vpop.xlane.xlu0 %2036 }
0x13c6   :  { %7247 = vrsqrt.f32 %v2044_v15  ;;  %v2041_v4 = vmul.f32 0.03125, %v2037_v14 }
0x13c8   :  { %v2045_v54 = vadd.f32 1e-05, %v2041_v4 }
0x13ca   :  { %7249 = vrsqrt.f32 %v2045_v54 }
0x13cb   :  { %v7244_v50 = vpop.eup %7243 }
0x13cc   :  { %v7246_v56 = vpop.eup %7245  ;;  %v2051_v11 = vmul.f32 %v7244_v50, %v1997_v13 }
0x13cd   :  { %v2050_v23 = vmul.f32 %v7246_v56, %v1996_v32  ;;  %v2081_v32 = vpop.permute.xlu1 %2080 }
0x13ce   :  { %2061 = vperm.xlu0 %6851, %v2051_v11  }
0x13cf   :  { %2056 = vperm.xlu1 %6859, %v2050_v23  }
0x13d0   :  { %v7248_v27 = vpop.eup %7247 }
0x13d1   :  { %v2052_v40 = vmul.f32 %v7248_v27, %v1998_v52  ;;  %v2086_v13 = vpop.permute.xlu1 %2085 }
0x13d3   :  { %2066 = vperm.xlu0 %6851, %v2052_v40  }
0x13d4   :  { %v7250_v12 = vpop.eup %7249 }
0x13d5   :  { %v2053_v5 = vmul.f32 %v7250_v12, %v1999_v0 }
0x13d7   :  { %6860 = vset.pattern.permute.xlu0 %v10614_v33  ;;  %2071 = vperm.xlu1 %6859, %v2053_v5  }
0x13d8   :  { %2090 = vperm.xlu0 %6860, %v1998_v52  }
0x13db   :  { %6861 = vset.pattern.permute.xlu1 %v10614_v33 }
0x13dc   :  { %2095 = vperm.xlu1 %6861, %v1999_v0   ;;  %7032 = vset.pattern.permute.xlu0 %v10613_v3 }
0x13e0   :  { %7033 = vset.pattern.permute.xlu1 %v10613_v3 }
0x144d   :  { %v2062_v16 = vpop.permute.xlu0 %2061 }
0x144e   :  { %v2075_v25 = vmul.f32 %v2062_v16, %v8427_v45  ;;  %v2057_v53 = vpop.permute.xlu1 %2056 }
0x144f   :  { %v2074_v20 = vmul.f32 %v2057_v53, %v8429_v1 }
0x1450   :  { %v2099_v35 = vadd.f32 %v2086_v13, %v2075_v25  ;;  %v5777_v13 = vld [vmem:[#allocation7 + $0x1] ss:$0 sm:$0xff] }
0x1451   :  { %v2098_v15 = vadd.f32 %v2081_v32, %v2074_v20 }
0x1452   :  { %v2103_v14 = vmul.f32 0.01, %v2099_v35  ;;  %v2067_v4 = vpop.permute.xlu0 %2066 }
0x1453   :  { %v2102_v54 = vmul.f32 0.01, %v2098_v15  ;;  %v2076_v11 = vmul.f32 %v2067_v4, %v8436_v60  ;;  %v5780_v60 = vld [vmem:[#allocation7 + $0x5] ss:$0 sm:$0xff] }
0x1454   :  { %v8466_v50 = vmax.f32 %v2099_v35, %v2103_v14 }
0x1455   :  { %v8468_v56 = vmax.f32 %v2098_v15, %v2102_v54  ;;  %v5781_v15 = vld [vmem:[#allocation7 + $0x6] ss:$0 sm:$0xff]  ;;  %v5782_v54 = vld [vmem:[#allocation7 + $0x7] ss:$0 sm:$0xff] }
0x1456   :  { %v2072_v23 = vpop.permute.xlu1 %2071  ;;  %2114 = vrot.lane.b32.xlu0 %v8466_v50, %s7441_s24 }
0x1457   :  { %2111 = vrot.lane.b32.xlu1 %v8468_v56, %s7441_s24  ;;  %v2091_v45 = vpop.permute.xlu0 %2090  ;;  %v2077_v52 = vmul.f32 %v2072_v23, %v8441_v46  ;;  %v5783_v23 = vld [vmem:[#allocation7 + $0x8] ss:$0 sm:$0xff] }
0x1458   :  { %v2100_v1 = vadd.f32 %v2091_v45, %v2076_v11  ;;  %v5778_v11 = vld [vmem:[#allocation7 + $0x2] ss:$0 sm:$0xff]  ;;  %v5779_v45 = vld [vmem:[#allocation7 + $0x3] ss:$0 sm:$0xff] }
0x145a   :  { %v2104_v27 = vmul.f32 0.01, %v2100_v1 }
0x145b   :  { %v2096_v40 = vpop.permute.xlu1 %2095 }
0x145c   :  { %v8476_v0 = vmax.f32 %v2100_v1, %v2104_v27  ;;  %v2101_v12 = vadd.f32 %v2096_v40, %v2077_v52  ;;  %v5776_v1 = vld [vmem:[#allocation7] ss:$0 sm:$0xff]  ;;  %v6862_v52 = vpack.i.bf16 %v8466_v50, %v8468_v56 }
0x145e   :  { %v2105_v5 = vmul.f32 0.01, %v2101_v12  ;;  %2117 = vrot.lane.b32.xlu1 %v8476_v0, %s7441_s24 }
0x1460   :  { %v8480_v32 = vmax.f32 %v2101_v12, %v2105_v5 }
0x1462   :  { %2120 = vrot.lane.b32.xlu0 %v8480_v32, %s7441_s24  ;;  %2193 = vrot.lane.b32.xlu1 %v5780_v60, %s7449_s13  ;;  %v6867_v27 = vpack.i.bf16 %v8480_v32, %v8476_v0 }
0x1466   :  { %2154 = vrot.lane.b32.xlu0 %v5777_v13, %s7466_s1  ;;  %s7479_s1 = smov 101  }
0x14c8   :  { %v2115_v46 = vpop.permute.xlu0 %2114 }
0x14c9   :  { %v2112_v16 = vpop.permute.xlu1 %2111  ;;  %v2116_v25 = vsel %vm2110_vm14, %v2115_v46, %v8466_v50 }
0x14ca   :  { %2125 = vrot.lane.b32.xlu0 %v2116_v25, %s7441_s24  ;;  %v2113_v53 = vsel %vm2110_vm14, %v2112_v16, %v8468_v56 }
0x14cb   :  { %2123 = vrot.lane.b32.xlu1 %v2113_v53, %s7441_s24 }
0x14d0   :  { %v2118_v20 = vpop.permute.xlu1 %2117 }
0x14d1   :  { %v2119_v35 = vsel %vm2110_vm14, %v2118_v20, %v8476_v0 }
0x14d2   :  { %2127 = vrot.lane.b32.xlu1 %v2119_v35, %s7441_s24 }
0x14d4   :  { %v2121_v14 = vpop.permute.xlu0 %2120  ;;  %v8506_v12 = vpop.permute.xlu1 %2193 }
0x14d5   :  { %v2122_v4 = vsel %vm2110_vm14, %v2121_v14, %v8480_v32 }
0x14d6   :  { %2206 = vrot.lane.b32.xlu1 %v5781_v15, %s7467_s18  ;;  %2129 = vrot.lane.b32.xlu0 %v2122_v4, %s7441_s24 }
0x14d8   :  { %v8504_v40 = vpop.permute.xlu0 %2154 }
0x14da   :  { %2219 = vrot.lane.b32.xlu1 %v5782_v54, %s7468_s12  ;;  %2167 = vrot.lane.b32.xlu0 %v5778_v11, %s7469_s8 }
0x14de   :  { %2232 = vrot.lane.b32.xlu1 %v5783_v23, %s7470_s23  ;;  %2180 = vrot.lane.b32.xlu0 %v5779_v45, %s7471_s7 }
0x14e2   :  { %6863 = vrot.lane.b32.xlu1 %v6862_v52, %s7472_s16  ;;  %2141 = vrot.lane.b32.xlu0 %v5776_v1, %s7472_s16 }
0x14e6   :  { %6868 = vrot.lane.b32.xlu0 %v6867_v27, %s7472_s16 }
0x153c   :  { %v2126_v5 = vpop.permute.xlu0 %2125 }
0x153d   :  { %v8510_v60 = vsel %vm2110_vm14, %v2126_v5, %v8466_v50  ;;  %v2124_v13 = vpop.permute.xlu1 %2123 }
0x153e   :  { %v8514_v46 = vsel %vm2110_vm14, %v2124_v13, %v8468_v56  ;;  %v2197_v16 = vmul.f32 %v8506_v12, %v8510_v60  ;;  %v2158_v25 = vmul.f32 %v8504_v40, %v8510_v60 }
0x153f   :  { %v2196_v53 = vmul.f32 %v8506_v12, %v8514_v46  ;;  %v2157_v20 = vmul.f32 %v8504_v40, %v8514_v46 }
0x1541   :  { %v6872_v35 = vpack.i.bf16 %v2197_v16, %v2196_v53  ;;  %v6877_v15 = vpack.i.bf16 %v2158_v25, %v2157_v20 }
0x1543   :  { %6873 = vrot.lane.b32.xlu1 %v6872_v35, %s7473_s20  ;;  %6878 = vrot.lane.b32.xlu0 %v6877_v15, %s7453_s15 }
0x1544   :  { %v2128_v14 = vpop.permute.xlu1 %2127 }
0x1545   :  { %v8528_v4 = vsel %vm2110_vm14, %v2128_v14, %v8476_v0 }
0x1546   :  { %v2198_v45 = vmul.f32 %v8506_v12, %v8528_v4  ;;  %v2159_v52 = vmul.f32 %v8504_v40, %v8528_v4 }
0x1548   :  { %v2130_v54 = vpop.permute.xlu0 %2129  ;;  %v8530_v11 = vpop.permute.xlu1 %2206 }
0x1549   :  { %v8534_v23 = vsel %vm2110_vm14, %v2130_v54, %v8480_v32  ;;  %v2209_v25 = vmul.f32 %v8530_v11, %v8514_v46  ;;  %v2210_v53 = vmul.f32 %v8530_v11, %v8510_v60  ;;  %v2211_v14 = vmul.f32 %v8530_v11, %v8528_v4 }
0x154a   :  { %v2199_v1 = vmul.f32 %v8506_v12, %v8534_v23  ;;  %v2160_v27 = vmul.f32 %v8504_v40, %v8534_v23  ;;  %v2212_v54 = vmul.f32 %v8530_v11, %v8534_v23 }
0x154c   :  { %v8544_v5 = vpop.permute.xlu0 %2167  ;;  %v6882_v13 = vpack.i.bf16 %v2199_v1, %v2198_v45  ;;  %v6892_v16 = vpack.i.bf16 %v2160_v27, %v2159_v52  ;;  %v8560_v45 = vpop.permute.xlu1 %2219  ;;  %v6887_v1 = vpack.i.bf16 %v2210_v53, %v2209_v25 }
0x154d   :  { %v2170_v20 = vmul.f32 %v8544_v5, %v8514_v46  ;;  %v2171_v35 = vmul.f32 %v8544_v5, %v8510_v60  ;;  %v2172_v52 = vmul.f32 %v8544_v5, %v8528_v4  ;;  %v2173_v27 = vmul.f32 %v8544_v5, %v8534_v23 }
0x154e   :  { %6883 = vrot.lane.b32.xlu1 %v6882_v13, %s7473_s20  ;;  %6893 = vrot.lane.b32.xlu0 %v6892_v16, %s7453_s15  ;;  %v6902_v13 = vpack.i.bf16 %v2212_v54, %v2211_v14  ;;  %v2222_v16 = vmul.f32 %v8560_v45, %v8514_v46  ;;  %v2223_v25 = vmul.f32 %v8560_v45, %v8510_v60 }
0x154f   :  { %v6897_v15 = vpack.i.bf16 %v2171_v35, %v2170_v20  ;;  %v6912_v20 = vpack.i.bf16 %v2173_v27, %v2172_v52  ;;  %v2225_v14 = vmul.f32 %v8560_v45, %v8534_v23 }
0x1550   :  { %v8566_v59 = vpop.permute.xlu0 %2180  ;;  %v8578_v47 = vpop.permute.xlu1 %2232  ;;  %v6907_v54 = vpack.i.bf16 %v2223_v25, %v2222_v16 }
0x1551   :  { %v2183_v53 = vmul.f32 %v8566_v59, %v8514_v46  ;;  %v2184_v35 = vmul.f32 %v8566_v59, %v8510_v60  ;;  %v2185_v52 = vmul.f32 %v8566_v59, %v8528_v4  ;;  %v2186_v27 = vmul.f32 %v8566_v59, %v8534_v23 }
0x1552   :  { %6888 = vrot.lane.b32.xlu1 %v6887_v1, %s7474_s21  ;;  %6898 = vrot.lane.b32.xlu0 %v6897_v15, %s7475_s22  ;;  %v2224_v15 = vmul.f32 %v8560_v45, %v8528_v4  ;;  %v2236_v16 = vmul.f32 %v8578_v47, %v8510_v60  ;;  %v2237_v44 = vmul.f32 %v8578_v47, %v8528_v4 }
0x1553   :  { %v6917_v1 = vpack.i.bf16 %v2184_v35, %v2183_v53  ;;  %v6927_v35 = vpack.i.bf16 %v2186_v27, %v2185_v52 }
0x1554   :  { %v6864_v25 = vpop.permute.xlu1 %6863  ;;  %v6922_v53 = vpack.i.bf16 %v2225_v14, %v2224_v15 }
0x1556   :  { %6903 = vrot.lane.b32.xlu1 %v6902_v13, %s7474_s21  ;;  %6913 = vrot.lane.b32.xlu0 %v6912_v20, %s7475_s22  ;;  %v8592_v13 = vpop.permute.xlu0 %2141  ;;  %v2235_v20 = vmul.f32 %v8578_v47, %v8514_v46 }
0x1557   :  { %v2144_v21 = vmul.f32 %v8592_v13, %v8514_v46  ;;  %v2145_v57 = vmul.f32 %v8592_v13, %v8510_v60  ;;  %v2146_v14 = vmul.f32 %v8592_v13, %v8528_v4  ;;  %v2147_v52 = vmul.f32 %v8592_v13, %v8534_v23 }
0x1559   :  { %v6947_v27 = vpack.i.bf16 %v2145_v57, %v2144_v21 }
0x155a   :  { %6908 = vrot.lane.b32.xlu1 %v6907_v54, %s7476_s25  ;;  %6918 = vrot.lane.b32.xlu0 %v6917_v1, %s7477_s26  ;;  %v2238_v54 = vmul.f32 %v8578_v47, %v8534_v23  ;;  %v6932_v1 = vpack.i.bf16 %v2236_v16, %v2235_v20  ;;  %v6869_v15 = vpop.permute.xlu0 %6868 }
0x155c   :  { %v6937_v42 = vpack.i.bf16 %v2238_v54, %v2237_v44  ;;  %v6957_v44 = vpack.i.bf16 %v2147_v52, %v2146_v14 }
0x155e   :  { %6923 = vrot.lane.b32.xlu1 %v6922_v53, %s7476_s25  ;;  %6928 = vrot.lane.b32.xlu0 %v6927_v35, %s7477_s26  ;;  %v2336_v53 = vld [vmem:[#allocation2 + $0x88] sm:$0xff] }
0x155f   :  { %2535 = vmatprep.mubr.f32.mxu0 %v2336_v53 }
0x1562   :  { %6933 = vrot.lane.b32.xlu1 %v6932_v1, %s7478_s27  ;;  %6938 = vrot.lane.b32.xlu0 %v6937_v42, %s7478_s27 }
0x1566   :  { %6943 = vrot.lane.b32.xlu1 %v6864_v25, %s7479_s1  ;;  %6948 = vrot.lane.b32.xlu0 %v6947_v27, %s7479_s1 }
0x156a   :  { %6958 = vrot.lane.b32.xlu0 %v6957_v44, %s7479_s1  ;;  %6953 = vrot.lane.b32.xlu1 %v6869_v15, %s7479_s1 }
0x15b5   :  { %v6874_v60 = vpop.permute.xlu1 %6873  ;;  %v6879_v46 = vpop.permute.xlu0 %6878 }
0x15b6   :  { %6968 = vrot.lane.b32.xlu0 %v6879_v46, %s7479_s1  ;;  %6963 = vrot.lane.b32.xlu1 %v6874_v60, %s7479_s1 }
0x15c0   :  { %v6884_v42 = vpop.permute.xlu1 %6883  ;;  %v6894_v4 = vpop.permute.xlu0 %6893 }
0x15c1   :  { %6983 = vrot.lane.b32.xlu0 %v6894_v4, %s7479_s1  ;;  %6973 = vrot.lane.b32.xlu1 %v6884_v42, %s7479_s1 }
0x15c4   :  { %v6889_v23 = vpop.permute.xlu1 %6888  ;;  %v6899_v57 = vpop.permute.xlu0 %6898 }
0x15c5   :  { %6988 = vrot.lane.b32.xlu0 %v6899_v57, %s7479_s1  ;;  %6978 = vrot.lane.b32.xlu1 %v6889_v23, %s7479_s1 }
0x15c8   :  { %v6904_v21 = vpop.permute.xlu1 %6903  ;;  %v6914_v20 = vpop.permute.xlu0 %6913 }
0x15c9   :  { %7003 = vrot.lane.b32.xlu0 %v6914_v20, %s7479_s1  ;;  %6993 = vrot.lane.b32.xlu1 %v6904_v21, %s7479_s1 }
0x15cc   :  { %v6909_v16 = vpop.permute.xlu1 %6908  ;;  %v6919_v25 = vpop.permute.xlu0 %6918 }
0x15cd   :  { %7008 = vrot.lane.b32.xlu0 %v6919_v25, %s7479_s1  ;;  %6998 = vrot.lane.b32.xlu1 %v6909_v16, %s7479_s1 }
0x15d0   :  { %v6924_v35 = vpop.permute.xlu1 %6923  ;;  %v6929_v54 = vpop.permute.xlu0 %6928 }
0x15d1   :  { %7018 = vrot.lane.b32.xlu0 %v6929_v54, %s7479_s1  ;;  %7013 = vrot.lane.b32.xlu1 %v6924_v35, %s7479_s1 }
0x15d4   :  { %v6934_v1 = vpop.permute.xlu1 %6933  ;;  %v6939_v15 = vpop.permute.xlu0 %6938 }
0x15d5   :  { %7028 = vrot.lane.b32.xlu0 %v6939_v15, %s7479_s1  ;;  %7023 = vrot.lane.b32.xlu1 %v6934_v1, %s7479_s1 }
0x15d8   :  { %v6944_v14 = vpop.permute.xlu1 %6943  ;;  %v6949_v52 = vpop.permute.xlu0 %6948 }
0x15d9   :  { %v6946_v27 = vunpack.i.h.bf16 %v6944_v14  ;;  %v6945_v44 = vunpack.i.l.bf16 %v6944_v14  ;;  %v6951_v60 = vunpack.i.h.bf16 %v6949_v52  ;;  %v6950_v46 = vunpack.i.l.bf16 %v6949_v52 }
0x15db   :  { %v6388_v42 = vpack.c.bf16 %v6951_v60, %v6950_v46  ;;  %v6386_v4 = vpack.c.bf16 %v6946_v27, %v6945_v44 }
0x15dc   :  { %v6959_v23 = vpop.permute.xlu0 %6958  ;;  %v6954_v57 = vpop.permute.xlu1 %6953 }
0x15dd   :  { %v6961_v21 = vunpack.i.h.bf16 %v6959_v23  ;;  %v6960_v20 = vunpack.i.l.bf16 %v6959_v23  ;;  %v6956_v16 = vunpack.i.h.bf16 %v6954_v57  ;;  %v6955_v25 = vunpack.i.l.bf16 %v6954_v57  ;;  %6387 = vmatprep.subr.bf16.mxu0 %v6386_v4 }
0x15de   :  { %6389 = vmatpush3.bf16.msra.mxu0 %v6388_v42 }
0x15df   :  { %v6392_v53 = vpack.c.bf16 %v6961_v21, %v6960_v20  ;;  %v6390_v35 = vpack.c.bf16 %v6956_v16, %v6955_v25 }
0x15e1   :  { %6391 = vmatprep.subr.bf16.mxu0 %v6390_v35 }
0x15e2   :  { %6393 = vmatpush3.bf16.msra.mxu0 %v6392_v53 }
0x1628   :  { %v6969_v54 = vpop.permute.xlu0 %6968  ;;  %v6964_v14 = vpop.permute.xlu1 %6963 }
0x1629   :  { %v6971_v52 = vunpack.i.h.bf16 %v6969_v54  ;;  %v6970_v15 = vunpack.i.l.bf16 %v6969_v54  ;;  %v6966_v7 = vunpack.i.h.bf16 %v6964_v14  ;;  %v6965_v1 = vunpack.i.l.bf16 %v6964_v14 }
0x162b   :  { %v6396_v60 = vpack.c.bf16 %v6971_v52, %v6970_v15  ;;  %v6394_v27 = vpack.c.bf16 %v6966_v7, %v6965_v1 }
0x162d   :  { %6395 = vmatprep.subr.bf16.mxu0 %v6394_v27 }
0x162e   :  { %6397 = vmatpush3.bf16.msra.mxu0 %v6396_v60 }
0x1633   :  { %v6984_v44 = vpop.permute.xlu0 %6983  ;;  %v6974_v46 = vpop.permute.xlu1 %6973 }
0x1634   :  { %v6986_v23 = vunpack.i.h.bf16 %v6984_v44  ;;  %v6985_v57 = vunpack.i.l.bf16 %v6984_v44  ;;  %v6976_v4 = vunpack.i.h.bf16 %v6974_v46  ;;  %v6975_v42 = vunpack.i.l.bf16 %v6974_v46 }
0x1636   :  { %v6400_v21 = vpack.c.bf16 %v6986_v23, %v6985_v57  ;;  %v6398_v20 = vpack.c.bf16 %v6976_v4, %v6975_v42 }
0x1637   :  { %v6989_v16 = vpop.permute.xlu0 %6988  ;;  %v6979_v25 = vpop.permute.xlu1 %6978 }
0x1638   :  { %v6991_v53 = vunpack.i.h.bf16 %v6989_v16  ;;  %v6990_v35 = vunpack.i.l.bf16 %v6989_v16  ;;  %v6981_v29 = vunpack.i.h.bf16 %v6979_v25  ;;  %v6980_v54 = vunpack.i.l.bf16 %v6979_v25  ;;  %6399 = vmatprep.subr.bf16.mxu0 %v6398_v20 }
0x1639   :  { %6401 = vmatpush3.bf16.msra.mxu0 %v6400_v21 }
0x163a   :  { %v6404_v14 = vpack.c.bf16 %v6991_v53, %v6990_v35  ;;  %v6402_v7 = vpack.c.bf16 %v6981_v29, %v6980_v54 }
0x163b   :  { %v7004_v52 = vpop.permute.xlu0 %7003  ;;  %v6994_v15 = vpop.permute.xlu1 %6993 }
0x163c   :  { %v7006_v1 = vunpack.i.h.bf16 %v7004_v52  ;;  %v7005_v60 = vunpack.i.l.bf16 %v7004_v52  ;;  %v6996_v27 = vunpack.i.h.bf16 %v6994_v15  ;;  %v6995_v44 = vunpack.i.l.bf16 %v6994_v15  ;;  %6403 = vmatprep.subr.bf16.mxu0 %v6402_v7 }
0x163d   :  { %6405 = vmatpush3.bf16.msra.mxu0 %v6404_v14 }
0x163e   :  { %v6408_v46 = vpack.c.bf16 %v7006_v1, %v7005_v60  ;;  %v6406_v23 = vpack.c.bf16 %v6996_v27, %v6995_v44 }
0x163f   :  { %v7009_v57 = vpop.permute.xlu0 %7008  ;;  %v6999_v4 = vpop.permute.xlu1 %6998 }
0x1640   :  { %v7011_v42 = vunpack.i.h.bf16 %v7009_v57  ;;  %v7010_v16 = vunpack.i.l.bf16 %v7009_v57  ;;  %v7001_v17 = vunpack.i.h.bf16 %v6999_v4  ;;  %v7000_v25 = vunpack.i.l.bf16 %v6999_v4  ;;  %6407 = vmatprep.subr.bf16.mxu0 %v6406_v23  ;;  %v2339_v23 = vld [vmem:[#allocation2 + $0xa8] sm:$0xff] }
0x1641   :  { %6409 = vmatpush3.bf16.msra.mxu0 %v6408_v46  ;;  %v2335_v46 = vld [vmem:[#allocation2 + $0x80] sm:$0xff] }
0x1642   :  { %v6412_v21 = vpack.c.bf16 %v7011_v42, %v7010_v16  ;;  %v6410_v29 = vpack.c.bf16 %v7001_v17, %v7000_v25  ;;  %v2338_v16 = vld [vmem:[#allocation2 + $0xa0] sm:$0xff]  ;;  %v2342_v25 = vld [vmem:[#allocation2 + $0xc8] sm:$0xff] }
0x1643   :  { %v7019_v20 = vpop.permute.xlu0 %7018  ;;  %v7014_v53 = vpop.permute.xlu1 %7013 }
0x1644   :  { %v7021_v35 = vunpack.i.h.bf16 %v7019_v20  ;;  %v7020_v54 = vunpack.i.l.bf16 %v7019_v20  ;;  %v7016_v52 = vunpack.i.h.bf16 %v7014_v53  ;;  %v7015_v15 = vunpack.i.l.bf16 %v7014_v53  ;;  %6411 = vmatprep.subr.bf16.mxu0 %v6410_v29  ;;  %v2345_v29 = vld [vmem:[#allocation2 + $0xe8] sm:$0xff]  ;;  %v2344_v20 = vld [vmem:[#allocation2 + $0xe0] sm:$0xff]  ;;  %v2337_v53 = vld [vmem:[#allocation2 + $0x90] sm:$0xff] }
0x1645   :  { %6413 = vmatpush3.bf16.msra.mxu0 %v6412_v21  ;;  %v2341_v21 = vld [vmem:[#allocation2 + $0xc0] sm:$0xff] }
0x1646   :  { %v6416_v14 = vpack.c.bf16 %v7021_v35, %v7020_v54  ;;  %v6414_v7 = vpack.c.bf16 %v7016_v52, %v7015_v15  ;;  %v2340_v35 = vld [vmem:[#allocation2 + $0xb0] sm:$0xff] }
0x1647   :  { %v7029_v1 = vpop.permute.xlu0 %7028  ;;  %v7024_v60 = vpop.permute.xlu1 %7023  ;;  %v2343_v54 = vld [vmem:[#allocation2 + $0xd0] sm:$0xff] }
0x1648   :  { %v7031_v27 = vunpack.i.h.bf16 %v7029_v1  ;;  %v7030_v44 = vunpack.i.l.bf16 %v7029_v1  ;;  %v7026_v57 = vunpack.i.h.bf16 %v7024_v60  ;;  %v7025_v4 = vunpack.i.l.bf16 %v7024_v60  ;;  %6415 = vmatprep.subr.bf16.mxu0 %v6414_v7  ;;  %v2346_v52 = vld [vmem:[#allocation2 + $0xf0] sm:$0xff] }
0x1649   :  { %6417 = vmatpush3.bf16.msra.mxu0 %v6416_v14 }
0x164a   :  { %v6418_v17 = vpack.c.bf16 %v7026_v57, %v7025_v4  ;;  %v6422_v42 = vpack.c.bf16 %v7031_v27, %v7030_v44 }
0x164c   :  { %2536 = vmatmul.mubr.f32.vlgmr.msra.gmra.mrb[16].mxu0 %v2335_v46  ;;  %6419 = vmatprep.subr.bf16.mxu0 %v6418_v17 }
0x164d   :  { %6421 = vmatpush3.bf16.msra.mxu0 %v6418_v17  ;;  %2540 = vmatprep.mubr.f32.mxu0 %v2339_v23 }
0x164e   :  { %6423 = vmatprep.subr.bf16.mxu0 %v6422_v42 }
0x1650   :  { %2541 = vmatmul.mubr.f32.gmra.mrb[18].mxu0 %v2338_v16 }
0x1651   :  { %6425 = vmatpush3.bf16.msra.mxu0 %v6422_v42  ;;  %2545 = vmatprep.mubr.f32.mxu0 %v2342_v25 }
0x1654   :  { %2546 = vmatmul.mubr.f32.gmra.mrb[20].mxu0 %v2341_v21 }
0x1655   :  { %2550 = vmatprep.mubr.f32.mxu0 %v2345_v29 }
0x1658   :  { %2551 = vmatmul.mubr.f32.gmra.mrb[22].mxu0 %v2344_v20 }
0x1659   :  { %6129 = vmatprep.mubr.msk.f32.mxu0 %vm2000_vm13, %v2337_v53 }
0x165c   :  { %6130 = vmatmul.mubr.msk.f32.vlgmr.msra.gmra.mrb[24].mxu0 %vm2000_vm13, %v2340_v35 }
0x165d   :  { %6132 = vmatprep.mubr.msk.f32.mxu0 %vm2000_vm13, %v2343_v54 }
0x1660   :  { %6133 = vmatmul.mubr.msk.f32.gmra.mrb[26].mxu0 %vm2000_vm13, %v2346_v52 }
0x171f   :  { %v5941_v15 = vpop.f32.mrb[16].mxu0 }
0x1720   :  { %v5942_v14 = vpop.f32.mrb[17].mxu0 }
0x1721   :  { %v5943_v7 = vadd.f32 %v5942_v14, %v5941_v15 }
0x1723   :  { %v5944_v1 = vpop.f32.mrb[18].mxu0 }
0x1724   :  { %v5945_v60 = vpop.f32.mrb[19].mxu0 }
0x1725   :  { %v5946_v27 = vadd.f32 %v5945_v60, %v5944_v1 }
0x1727   :  { %v5947_v44 = vpop.f32.mrb[20].mxu0 }
0x1728   :  { %v5948_v57 = vpop.f32.mrb[21].mxu0 }
0x1729   :  { %v5949_v4 = vadd.f32 %v5948_v57, %v5947_v44 }
0x172b   :  { %v5950_v46 = vpop.f32.mrb[22].mxu0 }
0x172c   :  { %v5951_v17 = vpop.f32.mrb[23].mxu0 }
0x172d   :  { %v5952_v23 = vadd.f32 %v5951_v17, %v5950_v46 }
0x172f   :  { %v6131_v42 = vpop.f32.mrb[24].mxu0 }
0x1730   :  { %v2628_v16 = vadd.f32 %v6131_v42, %v5946_v27  ;;  %v2622_v25 = vpop.f32.mrb[25].mxu0 }
0x1731   :  { %v2623_v21 = vadd.f32 %v5943_v7, %v2622_v25 }
0x1732   :  { %v2648_v29 = vsel %vm2000_vm13, %v2628_v16, 0.0 }
0x1733   :  { %v6134_v20 = vpop.f32.mrb[26].mxu0  ;;  %2649 = vadd.xlane.f32.xlu0 %v2648_v29  ;;  %v2645_v53 = vsel %vm2000_vm13, %v2623_v21, 0.0 }
0x1734   :  { %v2638_v35 = vadd.f32 %v6134_v20, %v5952_v23  ;;  %v2632_v54 = vpop.f32.mrb[27].mxu0  ;;  %2646 = vadd.xlane.f32.xlu1 %v2645_v53 }
0x1735   :  { %v2633_v52 = vadd.f32 %v5949_v4, %v2632_v54 }
0x1736   :  { %v2654_v15 = vsel %vm2000_vm13, %v2638_v35, 0.0 }
0x1737   :  { %v2651_v14 = vsel %vm2000_vm13, %v2633_v52, 0.0 }
0x1738   :  { %2652 = vadd.xlane.f32.xlu0 %v2651_v14  ;;  %2655 = vadd.xlane.f32.xlu1 %v2654_v15 }
0x17c0   :  { %v2650_v1 = vpop.xlane.xlu0 %2649 }
0x17c1   :  { %v2658_v60 = vmul.f32 0.03125, %v2650_v1  ;;  %v2647_v27 = vpop.xlane.xlu1 %2646 }
0x17c2   :  { %v2657_v7 = vmul.f32 0.03125, %v2647_v27 }
0x17c3   :  { %v8640_v44 = vsub.f32 %v2628_v16, %v2658_v60 }
0x17c4   :  { %v2661_v57 = vsub.f32 %v2623_v21, %v2657_v7 }
0x17c5   :  { %v2653_v46 = vpop.xlane.xlu0 %2652  ;;  %v2656_v17 = vpop.xlane.xlu1 %2655  ;;  %v2666_v23 = vmul.f32 %v8640_v44, %v8640_v44 }
0x17c6   :  { %v2659_v42 = vmul.f32 0.03125, %v2653_v46  ;;  %v2660_v4 = vmul.f32 0.03125, %v2656_v17  ;;  %v2665_v25 = vmul.f32 %v2661_v57, %v2661_v57 }
0x17c7   :  { %v2672_v29 = vsel %vm2000_vm13, %v2666_v23, 0.0  ;;  %v2642_v23 = vld [vmem:[%s10475_s2 + $0x28] sm:$0xff] }
0x17c8   :  { %v8645_v20 = vsub.f32 %v2633_v52, %v2659_v42  ;;  %v8647_v53 = vsub.f32 %v2638_v35, %v2660_v4  ;;  %2673 = vadd.xlane.f32.xlu1 %v2672_v29  ;;  %v2669_v54 = vsel %vm2000_vm13, %v2665_v25, 0.0  ;;  %v2641_v4 = vld [vmem:[%s10475_s2 + $0x20] sm:$0xff] }
0x17c9   :  { %2670 = vadd.xlane.f32.xlu0 %v2669_v54 }
0x17ca   :  { %v2667_v16 = vmul.f32 %v8645_v20, %v8645_v20  ;;  %v2668_v21 = vmul.f32 %v8647_v53, %v8647_v53 }
0x17cc   :  { %v2675_v15 = vsel %vm2000_vm13, %v2667_v16, 0.0  ;;  %v2678_v14 = vsel %vm2000_vm13, %v2668_v21, 0.0 }
0x17cd   :  { %2676 = vadd.xlane.f32.xlu0 %v2675_v15  ;;  %2679 = vadd.xlane.f32.xlu1 %v2678_v14 }
0x1855   :  { %v2674_v52 = vpop.xlane.xlu1 %2673 }
0x1856   :  { %v2682_v1 = vmul.f32 0.03125, %v2674_v52  ;;  %v2671_v35 = vpop.xlane.xlu0 %2670  ;;  %v2643_v52 = vld [vmem:[%s10475_s2 + $0x30] sm:$0xff] }
0x1857   :  { %v2681_v60 = vmul.f32 0.03125, %v2671_v35  ;;  %v2644_v35 = vld [vmem:[%s10475_s2 + $0x38] sm:$0xff] }
0x1858   :  { %v2686_v27 = vadd.f32 1e-05, %v2682_v1 }
0x1859   :  { %v2685_v7 = vadd.f32 1e-05, %v2681_v60 }
0x185a   :  { %7251 = vrsqrt.f32 %v2686_v27  ;;  %v2680_v46 = vpop.xlane.xlu1 %2679  ;;  %v2677_v42 = vpop.xlane.xlu0 %2676 }
0x185b   :  { %7253 = vrsqrt.f32 %v2685_v7  ;;  %v2684_v17 = vmul.f32 0.03125, %v2680_v46  ;;  %v2683_v16 = vmul.f32 0.03125, %v2677_v42 }
0x185d   :  { %v2688_v21 = vadd.f32 1e-05, %v2684_v17  ;;  %v2687_v14 = vadd.f32 1e-05, %v2683_v16 }
0x185f   :  { %7255 = vrsqrt.f32 %v2688_v21 }
0x1860   :  { %7257 = vrsqrt.f32 %v2687_v14 }
0x1864   :  { %v7252_v25 = vpop.eup %7251 }
0x1865   :  { %v7254_v29 = vpop.eup %7253  ;;  %v2694_v54 = vmul.f32 %v7252_v25, %v2642_v23 }
0x1866   :  { %v2693_v15 = vmul.f32 %v7254_v29, %v2641_v4 }
0x1867   :  { %2704 = vperm.xlu1 %7033, %v2694_v54  }
0x1868   :  { %2699 = vperm.xlu0 %7032, %v2693_v15  }
0x1869   :  { %v7256_v1 = vpop.eup %7255 }
0x186a   :  { %v2696_v60 = vmul.f32 %v7256_v1, %v2644_v35  ;;  %v7258_v27 = vpop.eup %7257 }
0x186b   :  { %7034 = vset.pattern.permute.xlu1 %v10614_v33  ;;  %v2695_v7 = vmul.f32 %v7258_v27, %v2643_v52 }
0x186c   :  { %2723 = vperm.xlu1 %7034, %v2641_v4  }
0x1870   :  { %2728 = vperm.xlu1 %7034, %v2642_v23  }
0x1874   :  { %2733 = vperm.xlu1 %7034, %v2643_v52  }
0x1878   :  { %7035 = vset.pattern.permute.xlu1 %v10613_v3 }
0x1879   :  { %2714 = vperm.xlu1 %7035, %v2696_v60  }
0x187d   :  { %2709 = vperm.xlu1 %7035, %v2695_v7  }
0x1881   :  { %7036 = vset.pattern.permute.xlu1 %v10614_v33 }
0x1882   :  { %2738 = vperm.xlu1 %7036, %v2644_v35  }
0x18e6   :  { %v2705_v46 = vpop.permute.xlu1 %2704 }
0x18e7   :  { %v2700_v17 = vpop.permute.xlu0 %2699  ;;  %v2718_v25 = vmul.f32 %v2705_v46, %v8640_v44 }
0x18e8   :  { %v2717_v23 = vmul.f32 %v2700_v17, %v2661_v57 }
0x18eb   :  { %v2724_v42 = vpop.permute.xlu1 %2723 }
0x18ec   :  { %v2741_v4 = vadd.f32 %v2724_v42, %v2717_v23 }
0x18ee   :  { %v2745_v29 = vmul.f32 0.01, %v2741_v4 }
0x18ef   :  { %v2729_v54 = vpop.permute.xlu1 %2728 }
0x18f0   :  { %v2749_v16 = vmax.f32 %v2741_v4, %v2745_v29  ;;  %v2742_v21 = vadd.f32 %v2729_v54, %v2718_v25 }
0x18f2   :  { %v2746_v15 = vmul.f32 0.01, %v2742_v21  ;;  %2753 = vrot.lane.b32.xlu0 %v2749_v16, %s7441_s24 }
0x18f3   :  { %v2734_v14 = vpop.permute.xlu1 %2733 }
0x18f4   :  { %v2750_v52 = vmax.f32 %v2742_v21, %v2746_v15 }
0x18f6   :  { %2756 = vrot.lane.b32.xlu1 %v2750_v52, %s7441_s24 }
0x18f8   :  { %v2715_v1 = vpop.permute.xlu1 %2714 }
0x18f9   :  { %v2720_v27 = vmul.f32 %v2715_v1, %v8647_v53 }
0x18fc   :  { %v2710_v35 = vpop.permute.xlu1 %2709 }
0x18fd   :  { %v2719_v60 = vmul.f32 %v2710_v35, %v8645_v20 }
0x18ff   :  { %v2743_v57 = vadd.f32 %v2734_v14, %v2719_v60  ;;  %v7037_v14 = vpack.i.bf16 %v2750_v52, %v2749_v16 }
0x1901   :  { %v2747_v7 = vmul.f32 0.01, %v2743_v57  ;;  %v2739_v44 = vpop.permute.xlu1 %2738 }
0x1902   :  { %v2744_v46 = vadd.f32 %v2739_v44, %v2720_v27 }
0x1903   :  { %v2751_v17 = vmax.f32 %v2743_v57, %v2747_v7 }
0x1904   :  { %v2748_v23 = vmul.f32 0.01, %v2744_v46 }
0x1905   :  { %2759 = vrot.lane.b32.xlu0 %v2751_v17, %s7441_s24 }
0x1906   :  { %v2752_v42 = vmax.f32 %v2744_v46, %v2748_v23 }
0x1908   :  { %2762 = vrot.lane.b32.xlu1 %v2752_v42, %s7441_s24  ;;  %v7042_v1 = vpack.i.bf16 %v2752_v42, %v2751_v17 }
0x1964   :  { %v2754_v4 = vpop.permute.xlu0 %2753 }
0x1965   :  { %v2755_v25 = vsel %vm2110_vm14, %v2754_v4, %v2749_v16 }
0x1966   :  { %2765 = vrot.lane.b32.xlu0 %v2755_v25, %s7441_s24 }
0x1968   :  { %v2757_v29 = vpop.permute.xlu1 %2756 }
0x1969   :  { %v2758_v20 = vsel %vm2110_vm14, %v2757_v29, %v2750_v52 }
0x196a   :  { %2767 = vrot.lane.b32.xlu1 %v2758_v20, %s7441_s24 }
0x1977   :  { %v2760_v53 = vpop.permute.xlu0 %2759 }
0x1978   :  { %v2761_v54 = vsel %vm2110_vm14, %v2760_v53, %v2751_v17 }
0x1979   :  { %2769 = vrot.lane.b32.xlu0 %v2761_v54, %s7441_s24 }
0x197a   :  { %v2763_v21 = vpop.permute.xlu1 %2762 }
0x197b   :  { %v2764_v15 = vsel %vm2110_vm14, %v2763_v21, %v2752_v42 }
0x197c   :  { %2771 = vrot.lane.b32.xlu1 %v2764_v15, %s7441_s24 }
0x197d   :  { %7038 = vrot.lane.b32.xlu0 %v7037_v14, %s7472_s16 }
0x1980   :  { %7043 = vrot.lane.b32.xlu1 %v7042_v1, %s7472_s16 }
0x19d8   :  { %v2766_v35 = vpop.permute.xlu0 %2765 }
0x19d9   :  { %v8689_v60 = vsel %vm2110_vm14, %v2766_v35, %v2749_v16 }
0x19da   :  { %v2793_v7 = vmul.f32 %v8689_v60, %v8506_v12  ;;  %v2781_v46 = vmul.f32 %v8689_v60, %v8504_v40 }
0x19dc   :  { %v2768_v57 = vpop.permute.xlu1 %2767 }
0x19dd   :  { %v2774_v27 = vsel %vm2110_vm14, %v2768_v57, %v2750_v52 }
0x19de   :  { %v2794_v44 = vmul.f32 %v2774_v27, %v8506_v12  ;;  %v2782_v23 = vmul.f32 %v2774_v27, %v8504_v40  ;;  %v2798_v35 = vmul.f32 %v2774_v27, %v8530_v11  ;;  %v2786_v57 = vmul.f32 %v2774_v27, %v8544_v5 }
0x19e0   :  { %v7047_v4 = vpack.i.bf16 %v2794_v44, %v2793_v7  ;;  %v7052_v25 = vpack.i.bf16 %v2782_v23, %v2781_v46 }
0x19e2   :  { %7048 = vrot.lane.b32.xlu0 %v7047_v4, %s7473_s20  ;;  %7053 = vrot.lane.b32.xlu1 %v7052_v25, %s7453_s15 }
0x19eb   :  { %v2770_v16 = vpop.permute.xlu0 %2769 }
0x19ec   :  { %v2775_v29 = vsel %vm2110_vm14, %v2770_v16, %v2751_v17  ;;  %v2797_v17 = vmul.f32 %v8689_v60, %v8530_v11  ;;  %v2802_v16 = vmul.f32 %v2774_v27, %v8560_v45 }
0x19ed   :  { %v2795_v53 = vmul.f32 %v2775_v29, %v8506_v12  ;;  %v2783_v21 = vmul.f32 %v2775_v29, %v8504_v40  ;;  %v2799_v46 = vmul.f32 %v2775_v29, %v8530_v11  ;;  %v2787_v23 = vmul.f32 %v2775_v29, %v8544_v5 }
0x19ee   :  { %v2772_v52 = vpop.permute.xlu1 %2771 }
0x19ef   :  { %v2776_v20 = vsel %vm2110_vm14, %v2772_v52, %v2752_v42  ;;  %v7062_v42 = vpack.i.bf16 %v2798_v35, %v2797_v17  ;;  %v2790_v52 = vmul.f32 %v2774_v27, %v8566_v59  ;;  %v2806_v17 = vmul.f32 %v2774_v27, %v8578_v47 }
0x19f0   :  { %v2796_v54 = vmul.f32 %v2776_v20, %v8506_v12  ;;  %v2784_v15 = vmul.f32 %v2776_v20, %v8504_v40  ;;  %v2785_v12 = vmul.f32 %v8689_v60, %v8544_v5  ;;  %v2800_v40 = vmul.f32 %v2776_v20, %v8530_v11 }
0x19f1   :  { %v2788_v44 = vmul.f32 %v2776_v20, %v8544_v5  ;;  %v2804_v5 = vmul.f32 %v2776_v20, %v8560_v45 }
0x19f2   :  { %v7057_v14 = vpack.i.bf16 %v2796_v54, %v2795_v53  ;;  %v7067_v1 = vpack.i.bf16 %v2784_v15, %v2783_v21  ;;  %v7072_v7 = vpack.i.bf16 %v2786_v57, %v2785_v12  ;;  %v7077_v4 = vpack.i.bf16 %v2800_v40, %v2799_v46  ;;  %v7044_v46 = vpop.permute.xlu1 %7043 }
0x19f3   :  { %v7087_v25 = vpack.i.bf16 %v2788_v44, %v2787_v23  ;;  %v2801_v53 = vmul.f32 %v8689_v60, %v8560_v45  ;;  %v2789_v54 = vmul.f32 %v8689_v60, %v8566_v59  ;;  %v2792_v15 = vmul.f32 %v2776_v20, %v8566_v59 }
0x19f4   :  { %7058 = vrot.lane.b32.xlu0 %v7057_v14, %s7473_s20  ;;  %7068 = vrot.lane.b32.xlu1 %v7067_v1, %s7453_s15  ;;  %v2803_v14 = vmul.f32 %v2775_v29, %v8560_v45  ;;  %v2791_v1 = vmul.f32 %v2775_v29, %v8566_v59  ;;  %v2808_v12 = vmul.f32 %v2776_v20, %v8578_v47 }
0x19f5   :  { %v7082_v21 = vpack.i.bf16 %v2802_v16, %v2801_v53  ;;  %v7092_v11 = vpack.i.bf16 %v2790_v52, %v2789_v54  ;;  %v2807_v40 = vmul.f32 %v2775_v29, %v8578_v47  ;;  %v2778_v45 = vmul.f32 %v2774_v27, %v8592_v13 }
0x19f6   :  { %v7097_v35 = vpack.i.bf16 %v2804_v5, %v2803_v14  ;;  %v7102_v57 = vpack.i.bf16 %v2792_v15, %v2791_v1  ;;  %v2777_v23 = vmul.f32 %v8689_v60, %v8592_v13  ;;  %v2906_v5 = vld [vmem:[#allocation2 + $0x108] sm:$0xff] }
0x19f7   :  { %v7112_v59 = vpack.i.bf16 %v2808_v12, %v2807_v40  ;;  %3105 = vmatprep.mubr.f32.mxu1 %v2906_v5 }
0x19f8   :  { %7063 = vrot.lane.b32.xlu0 %v7062_v42, %s7474_s21  ;;  %7073 = vrot.lane.b32.xlu1 %v7072_v7, %s7475_s22  ;;  %v7039_v42 = vpop.permute.xlu0 %7038  ;;  %v2805_v7 = vmul.f32 %v8689_v60, %v8578_v47  ;;  %v2779_v47 = vmul.f32 %v2775_v29, %v8592_v13 }
0x19fa   :  { %v7107_v44 = vpack.i.bf16 %v2806_v17, %v2805_v7 }
0x19fc   :  { %7078 = vrot.lane.b32.xlu0 %v7077_v4, %s7474_s21  ;;  %7088 = vrot.lane.b32.xlu1 %v7087_v25, %s7475_s22  ;;  %v7122_v4 = vpack.i.bf16 %v2778_v45, %v2777_v23  ;;  %v2780_v25 = vmul.f32 %v2776_v20, %v8592_v13 }
0x19fe   :  { %v7132_v27 = vpack.i.bf16 %v2780_v25, %v2779_v47 }
0x1a00   :  { %7083 = vrot.lane.b32.xlu0 %v7082_v21, %s7476_s25  ;;  %7093 = vrot.lane.b32.xlu1 %v7092_v11, %s7477_s26 }
0x1a04   :  { %7098 = vrot.lane.b32.xlu0 %v7097_v35, %s7476_s25  ;;  %7103 = vrot.lane.b32.xlu1 %v7102_v57, %s7477_s26  ;;  %v2907_v57 = vld [vmem:[#allocation2 + $0x110] sm:$0xff] }
0x1a05   :  { %6143 = vmatprep.mubr.msk.f32.mxu0 %vm2000_vm13, %v2907_v57 }
0x1a08   :  { %7108 = vrot.lane.b32.xlu0 %v7107_v44, %s7478_s27  ;;  %7113 = vrot.lane.b32.xlu1 %v7112_v59, %s7478_s27 }
0x1a0c   :  { %7118 = vrot.lane.b32.xlu0 %v7039_v42, %s7479_s1  ;;  %7123 = vrot.lane.b32.xlu1 %v7122_v4, %s7479_s1 }
0x1a10   :  { %7133 = vrot.lane.b32.xlu1 %v7132_v27, %s7479_s1  ;;  %7128 = vrot.lane.b32.xlu0 %v7044_v46, %s7479_s1 }
0x1a54   :  { %v7049_v16 = vpop.permute.xlu0 %7048  ;;  %v7054_v60 = vpop.permute.xlu1 %7053 }
0x1a55   :  { %7143 = vrot.lane.b32.xlu1 %v7054_v60, %s7479_s1  ;;  %7138 = vrot.lane.b32.xlu0 %v7049_v16, %s7479_s1 }
0x1a66   :  { %v7059_v52 = vpop.permute.xlu0 %7058  ;;  %v7069_v53 = vpop.permute.xlu1 %7068 }
0x1a67   :  { %7158 = vrot.lane.b32.xlu1 %v7069_v53, %s7479_s1  ;;  %7148 = vrot.lane.b32.xlu0 %v7059_v52, %s7479_s1 }
0x1a6a   :  { %v7064_v20 = vpop.permute.xlu0 %7063  ;;  %v7074_v54 = vpop.permute.xlu1 %7073 }
0x1a6b   :  { %7163 = vrot.lane.b32.xlu1 %v7074_v54, %s7479_s1  ;;  %7153 = vrot.lane.b32.xlu0 %v7064_v20, %s7479_s1 }
0x1a6e   :  { %v7079_v13 = vpop.permute.xlu0 %7078  ;;  %v7089_v29 = vpop.permute.xlu1 %7088 }
0x1a6f   :  { %7178 = vrot.lane.b32.xlu1 %v7089_v29, %s7479_s1  ;;  %7168 = vrot.lane.b32.xlu0 %v7079_v13, %s7479_s1 }
0x1a72   :  { %v7084_v21 = vpop.permute.xlu0 %7083  ;;  %v7094_v11 = vpop.permute.xlu1 %7093 }
0x1a73   :  { %7183 = vrot.lane.b32.xlu1 %v7094_v11, %s7479_s1  ;;  %7173 = vrot.lane.b32.xlu0 %v7084_v21, %s7479_s1 }
0x1a76   :  { %v7099_v15 = vpop.permute.xlu0 %7098  ;;  %v7104_v14 = vpop.permute.xlu1 %7103 }
0x1a77   :  { %7193 = vrot.lane.b32.xlu1 %v7104_v14, %s7479_s1  ;;  %7188 = vrot.lane.b32.xlu0 %v7099_v15, %s7479_s1 }
0x1a7a   :  { %v7109_v1 = vpop.permute.xlu0 %7108  ;;  %v7114_v35 = vpop.permute.xlu1 %7113 }
0x1a7b   :  { %7203 = vrot.lane.b32.xlu1 %v7114_v35, %s7479_s1  ;;  %7198 = vrot.lane.b32.xlu0 %v7109_v1, %s7479_s1 }
0x1a7e   :  { %v7119_v17 = vpop.permute.xlu0 %7118  ;;  %v7124_v12 = vpop.permute.xlu1 %7123 }
0x1a7f   :  { %v7121_v42 = vunpack.i.h.bf16 %v7119_v17  ;;  %v7120_v7 = vunpack.i.l.bf16 %v7119_v17  ;;  %v7126_v40 = vunpack.i.h.bf16 %v7124_v12  ;;  %v7125_v45 = vunpack.i.l.bf16 %v7124_v12 }
0x1a81   :  { %v6428_v44 = vpack.c.bf16 %v7126_v40, %v7125_v45  ;;  %v6426_v59 = vpack.c.bf16 %v7121_v42, %v7120_v7 }
0x1a82   :  { %v7134_v46 = vpop.permute.xlu1 %7133  ;;  %v7129_v23 = vpop.permute.xlu0 %7128 }
0x1a83   :  { %v7136_v4 = vunpack.i.h.bf16 %v7134_v46  ;;  %v7135_v25 = vunpack.i.l.bf16 %v7134_v46  ;;  %v7131_v47 = vunpack.i.h.bf16 %v7129_v23  ;;  %v7130_v27 = vunpack.i.l.bf16 %v7129_v23  ;;  %6427 = vmatprep.subr.bf16.mxu1 %v6426_v59 }
0x1a84   :  { %6429 = vmatpush3.bf16.msra.mxu1 %v6428_v44 }
0x1a85   :  { %v6432_v16 = vpack.c.bf16 %v7136_v4, %v7135_v25  ;;  %v6430_v60 = vpack.c.bf16 %v7131_v47, %v7130_v27 }
0x1a87   :  { %6431 = vmatprep.subr.bf16.mxu1 %v6430_v60 }
0x1a88   :  { %6433 = vmatpush3.bf16.msra.mxu1 %v6432_v16 }
0x1ac7   :  { %v7144_v52 = vpop.permute.xlu1 %7143  ;;  %v7139_v53 = vpop.permute.xlu0 %7138 }
0x1ac8   :  { %v7146_v20 = vunpack.i.h.bf16 %v7144_v52  ;;  %v7145_v54 = vunpack.i.l.bf16 %v7144_v52  ;;  %v7141_v13 = vunpack.i.h.bf16 %v7139_v53  ;;  %v7140_v29 = vunpack.i.l.bf16 %v7139_v53 }
0x1aca   :  { %v6436_v21 = vpack.c.bf16 %v7146_v20, %v7145_v54  ;;  %v6434_v11 = vpack.c.bf16 %v7141_v13, %v7140_v29 }
0x1acc   :  { %6435 = vmatprep.subr.bf16.mxu1 %v6434_v11 }
0x1acd   :  { %6437 = vmatpush3.bf16.msra.mxu1 %v6436_v21 }
0x1ad9   :  { %v7159_v5 = vpop.permute.xlu1 %7158  ;;  %v7149_v15 = vpop.permute.xlu0 %7148 }
0x1ada   :  { %v7161_v14 = vunpack.i.h.bf16 %v7159_v5  ;;  %v7160_v1 = vunpack.i.l.bf16 %v7159_v5  ;;  %v7151_v35 = vunpack.i.h.bf16 %v7149_v15  ;;  %v7150_v57 = vunpack.i.l.bf16 %v7149_v15 }
0x1adc   :  { %v6440_v17 = vpack.c.bf16 %v7161_v14, %v7160_v1  ;;  %v6438_v12 = vpack.c.bf16 %v7151_v35, %v7150_v57 }
0x1add   :  { %v7164_v42 = vpop.permute.xlu1 %7163  ;;  %v7154_v7 = vpop.permute.xlu0 %7153 }
0x1ade   :  { %v7166_v40 = vunpack.i.h.bf16 %v7164_v42  ;;  %v7165_v45 = vunpack.i.l.bf16 %v7164_v42  ;;  %v7156_v44 = vunpack.i.h.bf16 %v7154_v7  ;;  %v7155_v59 = vunpack.i.l.bf16 %v7154_v7  ;;  %6439 = vmatprep.subr.bf16.mxu1 %v6438_v12 }
0x1adf   :  { %6441 = vmatpush3.bf16.msra.mxu1 %v6440_v17 }
0x1ae0   :  { %v6444_v46 = vpack.c.bf16 %v7166_v40, %v7165_v45  ;;  %v6442_v23 = vpack.c.bf16 %v7156_v44, %v7155_v59 }
0x1ae1   :  { %v7179_v4 = vpop.permute.xlu1 %7178  ;;  %v7169_v25 = vpop.permute.xlu0 %7168 }
0x1ae2   :  { %v7181_v47 = vunpack.i.h.bf16 %v7179_v4  ;;  %v7180_v27 = vunpack.i.l.bf16 %v7179_v4  ;;  %v7171_v16 = vunpack.i.h.bf16 %v7169_v25  ;;  %v7170_v60 = vunpack.i.l.bf16 %v7169_v25  ;;  %6443 = vmatprep.subr.bf16.mxu1 %v6442_v23  ;;  %v2905_v4 = vld [vmem:[#allocation2 + $0x100] sm:$0xff] }
0x1ae3   :  { %6445 = vmatpush3.bf16.msra.mxu1 %v6444_v46 }
0x1ae4   :  { %v6448_v52 = vpack.c.bf16 %v7181_v47, %v7180_v27  ;;  %v6446_v53 = vpack.c.bf16 %v7171_v16, %v7170_v60  ;;  %v2909_v47 = vld [vmem:[#allocation2 + $0x128] sm:$0xff]  ;;  %v2908_v16 = vld [vmem:[#allocation2 + $0x120] sm:$0xff] }
0x1ae5   :  { %v7184_v20 = vpop.permute.xlu1 %7183  ;;  %v7174_v54 = vpop.permute.xlu0 %7173  ;;  %v2912_v60 = vld [vmem:[#allocation2 + $0x148] sm:$0xff] }
0x1ae6   :  { %v7186_v13 = vunpack.i.h.bf16 %v7184_v20  ;;  %v7185_v29 = vunpack.i.l.bf16 %v7184_v20  ;;  %v7176_v21 = vunpack.i.h.bf16 %v7174_v54  ;;  %v7175_v11 = vunpack.i.l.bf16 %v7174_v54  ;;  %6447 = vmatprep.subr.bf16.mxu1 %v6446_v53  ;;  %v2910_v53 = vld [vmem:[#allocation2 + $0x130] sm:$0xff]  ;;  %v2915_v20 = vld [vmem:[#allocation2 + $0x168] sm:$0xff] }
0x1ae7   :  { %6449 = vmatpush3.bf16.msra.mxu1 %v6448_v52  ;;  %v2911_v52 = vld [vmem:[#allocation2 + $0x140] sm:$0xff]  ;;  %v2913_v54 = vld [vmem:[#allocation2 + $0x150] sm:$0xff] }
0x1ae8   :  { %v6452_v5 = vpack.c.bf16 %v7186_v13, %v7185_v29  ;;  %v6450_v15 = vpack.c.bf16 %v7176_v21, %v7175_v11  ;;  %v2914_v13 = vld [vmem:[#allocation2 + $0x160] sm:$0xff]  ;;  %v2916_v29 = vld [vmem:[#allocation2 + $0x170] sm:$0xff] }
0x1ae9   :  { %v7194_v14 = vpop.permute.xlu1 %7193  ;;  %v7189_v1 = vpop.permute.xlu0 %7188 }
0x1aea   :  { %v7196_v35 = vunpack.i.h.bf16 %v7194_v14  ;;  %v7195_v57 = vunpack.i.l.bf16 %v7194_v14  ;;  %v7191_v17 = vunpack.i.h.bf16 %v7189_v1  ;;  %v7190_v12 = vunpack.i.l.bf16 %v7189_v1  ;;  %6451 = vmatprep.subr.bf16.mxu1 %v6450_v15 }
0x1aeb   :  { %6453 = vmatpush3.bf16.msra.mxu1 %v6452_v5 }
0x1aec   :  { %v6456_v42 = vpack.c.bf16 %v7196_v35, %v7195_v57  ;;  %v6454_v7 = vpack.c.bf16 %v7191_v17, %v7190_v12 }
0x1aed   :  { %v7204_v40 = vpop.permute.xlu1 %7203  ;;  %v7199_v45 = vpop.permute.xlu0 %7198 }
0x1aee   :  { %v7206_v44 = vunpack.i.h.bf16 %v7204_v40  ;;  %v7205_v59 = vunpack.i.l.bf16 %v7204_v40  ;;  %v7201_v46 = vunpack.i.h.bf16 %v7199_v45  ;;  %v7200_v23 = vunpack.i.l.bf16 %v7199_v45  ;;  %6455 = vmatprep.subr.bf16.mxu1 %v6454_v7 }
0x1aef   :  { %6457 = vmatpush3.bf16.msra.mxu1 %v6456_v42 }
0x1af0   :  { %v6458_v25 = vpack.c.bf16 %v7201_v46, %v7200_v23  ;;  %v6462_v27 = vpack.c.bf16 %v7206_v44, %v7205_v59 }
0x1af2   :  { %3106 = vmatmul.mubr.f32.vlgmr.msra.gmra.mrb[12].mxu1 %v2905_v4  ;;  %6459 = vmatprep.subr.bf16.mxu0 %v6458_v25 }
0x1af3   :  { %6461 = vmatpush3.bf16.msra.mxu0 %v6458_v25  ;;  %3110 = vmatprep.mubr.f32.mxu1 %v2909_v47 }
0x1af4   :  { %6463 = vmatprep.subr.bf16.mxu0 %v6462_v27 }
0x1af6   :  { %3111 = vmatmul.mubr.f32.gmra.mrb[14].mxu1 %v2908_v16 }
0x1af7   :  { %6465 = vmatpush3.bf16.msra.mxu0 %v6462_v27  ;;  %3115 = vmatprep.mubr.f32.mxu1 %v2912_v60 }
0x1afa   :  { %3116 = vmatmul.mubr.f32.gmra.mrb[16].mxu1 %v2911_v52  ;;  %6144 = vmatmul.mubr.msk.f32.vlgmr.msra.gmra.mrb[28].mxu0 %vm2000_vm13, %v2910_v53 }
0x1afb   :  { %3120 = vmatprep.mubr.f32.mxu1 %v2915_v20  ;;  %6146 = vmatprep.mubr.msk.f32.mxu0 %vm2000_vm13, %v2913_v54 }
0x1afe   :  { %3121 = vmatmul.mubr.f32.gmra.mrb[18].mxu1 %v2914_v13  ;;  %6147 = vmatmul.mubr.msk.f32.gmra.mrb[30].mxu0 %vm2000_vm13, %v2916_v29 }
0x1bc5   :  { %v5993_v21 = vpop.f32.mrb[12].mxu1 }
0x1bc6   :  { %v5994_v11 = vpop.f32.mrb[13].mxu1 }
0x1bc7   :  { %v5995_v5 = vadd.f32 %v5994_v11, %v5993_v21 }
0x1bc9   :  { %v5996_v15 = vpop.f32.mrb[14].mxu1 }
0x1bca   :  { %v5997_v14 = vpop.f32.mrb[15].mxu1 }
0x1bcb   :  { %v5998_v1 = vadd.f32 %v5997_v14, %v5996_v15 }
0x1bcd   :  { %v6145_v35 = vpop.f32.mrb[28].mxu0  ;;  %v5999_v57 = vpop.f32.mrb[16].mxu1 }
0x1bce   :  { %v3198_v17 = vadd.f32 %v6145_v35, %v5998_v1  ;;  %v3192_v12 = vpop.f32.mrb[29].mxu0  ;;  %v6000_v42 = vpop.f32.mrb[17].mxu1 }
0x1bcf   :  { %v3193_v7 = vadd.f32 %v5995_v5, %v3192_v12  ;;  %v6001_v40 = vadd.f32 %v6000_v42, %v5999_v57 }
0x1bd0   :  { %v3218_v45 = vsel %vm2000_vm13, %v3198_v17, 0.0 }
0x1bd1   :  { %v6002_v44 = vpop.f32.mrb[18].mxu1  ;;  %v6148_v59 = vpop.f32.mrb[30].mxu0  ;;  %3219 = vadd.xlane.f32.xlu1 %v3218_v45  ;;  %v3215_v46 = vsel %vm2000_vm13, %v3193_v7, 0.0 }
0x1bd2   :  { %v6003_v23 = vpop.f32.mrb[19].mxu1  ;;  %v3202_v4 = vpop.f32.mrb[31].mxu0  ;;  %3216 = vadd.xlane.f32.xlu0 %v3215_v46 }
0x1bd3   :  { %v6004_v25 = vadd.f32 %v6003_v23, %v6002_v44  ;;  %v3203_v47 = vadd.f32 %v6001_v40, %v3202_v4  ;;  %v3211_v44 = vld [vmem:[%s10475_s2 + $0x40] sm:$0xff] }
0x1bd5   :  { %v3208_v27 = vadd.f32 %v6148_v59, %v6004_v25  ;;  %v3221_v16 = vsel %vm2000_vm13, %v3203_v47, 0.0  ;;  %v3212_v59 = vld [vmem:[%s10475_s2 + $0x48] sm:$0xff] }
0x1bd6   :  { %3222 = vadd.xlane.f32.xlu0 %v3221_v16 }
0x1bd7   :  { %v3224_v60 = vsel %vm2000_vm13, %v3208_v27, 0.0 }
0x1bda   :  { %3225 = vadd.xlane.f32.xlu0 %v3224_v60 }
0x1c5e   :  { %v3220_v52 = vpop.xlane.xlu1 %3219 }
0x1c5f   :  { %v3228_v53 = vmul.f32 0.03125, %v3220_v52  ;;  %v3217_v20 = vpop.xlane.xlu0 %3216 }
0x1c60   :  { %v3227_v54 = vmul.f32 0.03125, %v3217_v20 }
0x1c61   :  { %v8774_v13 = vsub.f32 %v3198_v17, %v3228_v53 }
0x1c62   :  { %v8776_v29 = vsub.f32 %v3193_v7, %v3227_v54 }
0x1c63   :  { %v3223_v21 = vpop.xlane.xlu0 %3222  ;;  %v3236_v11 = vmul.f32 %v8774_v13, %v8774_v13 }
0x1c64   :  { %v3229_v5 = vmul.f32 0.03125, %v3223_v21  ;;  %v3235_v15 = vmul.f32 %v8776_v29, %v8776_v29 }
0x1c65   :  { %v3242_v14 = vsel %vm2000_vm13, %v3236_v11, 0.0 }
0x1c66   :  { %v8783_v1 = vsub.f32 %v3203_v47, %v3229_v5  ;;  %3243 = vadd.xlane.f32.xlu0 %v3242_v14  ;;  %v3239_v35 = vsel %vm2000_vm13, %v3235_v15, 0.0  ;;  %v3213_v14 = vld [vmem:[%s10475_s2 + $0x50] sm:$0xff] }
0x1c67   :  { %3240 = vadd.xlane.f32.xlu1 %v3239_v35  ;;  %v3226_v57 = vpop.xlane.xlu0 %3225 }
0x1c68   :  { %v3230_v17 = vmul.f32 0.03125, %v3226_v57  ;;  %v3237_v12 = vmul.f32 %v8783_v1, %v8783_v1 }
0x1c6a   :  { %v8788_v42 = vsub.f32 %v3208_v27, %v3230_v17  ;;  %v3245_v7 = vsel %vm2000_vm13, %v3237_v12, 0.0  ;;  %v3214_v17 = vld [vmem:[%s10475_s2 + $0x58] sm:$0xff] }
0x1c6b   :  { %3246 = vadd.xlane.f32.xlu1 %v3245_v7 }
0x1c6c   :  { %v3238_v40 = vmul.f32 %v8788_v42, %v8788_v42 }
0x1c6e   :  { %v3248_v45 = vsel %vm2000_vm13, %v3238_v40, 0.0  ;;  %v3327_v40 = vld [vmem:[#allocation2 + $0x180] sm:$0xff] }
0x1c6f   :  { %3249 = vadd.xlane.f32.xlu0 %v3248_v45  ;;  %6157 = vmatprep.mubr.msk.f32.mxu0 %vm2000_vm13, %v3327_v40 }
0x1c7c   :  { %3293 = vperm.xlu1 %7036, %v3211_v44  }
0x1c80   :  { %3298 = vperm.xlu1 %7036, %v3212_v59  }
0x1c84   :  { %7207 = vset.pattern.permute.xlu1 %v10613_v3 }
0x1cf3   :  { %v3244_v46 = vpop.xlane.xlu0 %3243 }
0x1cf4   :  { %v3252_v23 = vmul.f32 0.03125, %v3244_v46  ;;  %v3241_v4 = vpop.xlane.xlu1 %3240 }
0x1cf5   :  { %v3251_v25 = vmul.f32 0.03125, %v3241_v4 }
0x1cf6   :  { %v3256_v47 = vadd.f32 1e-05, %v3252_v23 }
0x1cf7   :  { %v3255_v27 = vadd.f32 1e-05, %v3251_v25 }
0x1cf8   :  { %7259 = vrsqrt.f32 %v3256_v47  ;;  %v3247_v16 = vpop.xlane.xlu1 %3246 }
0x1cf9   :  { %7261 = vrsqrt.f32 %v3255_v27  ;;  %v3253_v60 = vmul.f32 0.03125, %v3247_v16 }
0x1cfb   :  { %v3257_v52 = vadd.f32 1e-05, %v3253_v60 }
0x1cfc   :  { %v3250_v53 = vpop.xlane.xlu0 %3249  ;;  %v3294_v45 = vpop.permute.xlu1 %3293 }
0x1cfd   :  { %7263 = vrsqrt.f32 %v3257_v52  ;;  %v3254_v20 = vmul.f32 0.03125, %v3250_v53 }
0x1cff   :  { %v3258_v54 = vadd.f32 1e-05, %v3254_v20 }
0x1d01   :  { %7265 = vrsqrt.f32 %v3258_v54 }
0x1d02   :  { %v7260_v21 = vpop.eup %7259 }
0x1d03   :  { %v7262_v11 = vpop.eup %7261  ;;  %v3264_v5 = vmul.f32 %v7260_v21, %v3212_v59 }
0x1d04   :  { %v3263_v15 = vmul.f32 %v7262_v11, %v3211_v44  ;;  %v3299_v44 = vpop.permute.xlu1 %3298 }
0x1d05   :  { %3274 = vperm.xlu0 %7032, %v3264_v5  }
0x1d06   :  { %3269 = vperm.xlu1 %7207, %v3263_v15  }
0x1d07   :  { %v7264_v35 = vpop.eup %7263 }
0x1d08   :  { %v3265_v57 = vmul.f32 %v7264_v35, %v3213_v14 }
0x1d0a   :  { %3279 = vperm.xlu0 %7032, %v3265_v57  }
0x1d0b   :  { %v7266_v12 = vpop.eup %7265 }
0x1d0c   :  { %v3266_v7 = vmul.f32 %v7266_v12, %v3214_v17 }
0x1d0e   :  { %7208 = vset.pattern.permute.xlu0 %v10614_v33  ;;  %3284 = vperm.xlu1 %7207, %v3266_v7  }
0x1d0f   :  { %3303 = vperm.xlu0 %7208, %v3213_v14  }
0x1d12   :  { %7209 = vset.pattern.permute.xlu1 %v10614_v33 }
0x1d13   :  { %3308 = vperm.xlu1 %7209, %v3214_v17   ;;  %7210 = vset.pattern.permute.xlu0 %v10613_v3 }
0x1d17   :  { %7211 = vset.pattern.permute.xlu1 %v10613_v3 }
0x1d84   :  { %v3275_v59 = vpop.permute.xlu0 %3274 }
0x1d85   :  { %v3288_v46 = vmul.f32 %v3275_v59, %v8774_v13  ;;  %v3270_v23 = vpop.permute.xlu1 %3269 }
0x1d86   :  { %v3287_v4 = vmul.f32 %v3270_v23, %v8776_v29 }
0x1d87   :  { %v3312_v25 = vadd.f32 %v3299_v44, %v3288_v46 }
0x1d88   :  { %v3311_v47 = vadd.f32 %v3294_v45, %v3287_v4  ;;  %v3329_v45 = vld [vmem:[#allocation2 + $0x1c0] sm:$0xff] }
0x1d89   :  { %v3316_v27 = vmul.f32 0.01, %v3312_v25  ;;  %v3280_v16 = vpop.permute.xlu0 %3279 }
0x1d8a   :  { %v3315_v60 = vmul.f32 0.01, %v3311_v47  ;;  %v3289_v20 = vmul.f32 %v3280_v16, %v8783_v1 }
0x1d8b   :  { %v3320_v52 = vmax.f32 %v3312_v25, %v3316_v27 }
0x1d8c   :  { %v3319_v53 = vmax.f32 %v3311_v47, %v3315_v60 }
0x1d8d   :  { %v3285_v54 = vpop.permute.xlu1 %3284  ;;  %v3324_v21 = vadd.f32 %v3320_v52, %v8466_v50 }
0x1d8e   :  { %v3304_v11 = vpop.permute.xlu0 %3303  ;;  %v3323_v5 = vadd.f32 %v3319_v53, %v8468_v56  ;;  %v3290_v14 = vmul.f32 %v3285_v54, %v8788_v42  ;;  %v3328_v56 = vld [vmem:[#allocation2 + $0x1a0] sm:$0xff] }
0x1d8f   :  { %v3313_v15 = vadd.f32 %v3304_v11, %v3289_v20  ;;  %v3330_v42 = vld [vmem:[#allocation2 + $0x1e0] sm:$0xff] }
0x1d90   :  { %v6466_v13 = vpack.c.bf16 %v3324_v21, %v3323_v5 }
0x1d91   :  { %v3317_v29 = vmul.f32 0.01, %v3313_v15 }
0x1d92   :  { %v3309_v35 = vpop.permute.xlu1 %3308  ;;  %6467 = vmatprep.subr.bf16.mxu0 %v6466_v13 }
0x1d93   :  { %v3314_v57 = vadd.f32 %v3309_v35, %v3290_v14  ;;  %6469 = vmatpush3.bf16.msra.mxu0 %v6466_v13  ;;  %v3321_v17 = vmax.f32 %v3313_v15, %v3317_v29 }
0x1d95   :  { %v3318_v12 = vmul.f32 0.01, %v3314_v57  ;;  %v3325_v1 = vadd.f32 %v3321_v17, %v8476_v0 }
0x1d97   :  { %v3322_v7 = vmax.f32 %v3314_v57, %v3318_v12 }
0x1d99   :  { %v3326_v40 = vadd.f32 %v3322_v7, %v8480_v32 }
0x1d9b   :  { %v6470_v50 = vpack.c.bf16 %v3326_v40, %v3325_v1 }
0x1d9d   :  { %6471 = vmatprep.subr.bf16.mxu0 %v6470_v50 }
0x1d9e   :  { %6473 = vmatpush3.bf16.msra.mxu0 %v6470_v50 }
0x1da1   :  { %6158 = vmatmul.mubr.msk.f32.vlgmr.msra.gmra.mrb[32].mxu0 %vm2000_vm13, %v3328_v56 }
0x1da2   :  { %6160 = vmatprep.mubr.msk.f32.mxu0 %vm2000_vm13, %v3329_v45 }
0x1da5   :  { %6161 = vmatmul.mubr.msk.f32.gmra.mrb[34].mxu0 %vm2000_vm13, %v3330_v42 }
0x1e74   :  { %v6159_v44 = vpop.f32.mrb[32].mxu0 }
0x1e75   :  { %v3409_v59 = vpop.f32.mrb[33].mxu0  ;;  %v3435_v46 = vsel %vm2000_vm13, %v6159_v44, 0.0 }
0x1e76   :  { %3436 = vadd.xlane.f32.xlu0 %v3435_v46  ;;  %v3432_v0 = vsel %vm2000_vm13, %v3409_v59, 0.0  ;;  %v3429_v46 = vld [vmem:[%s10475_s2 + $0x68] sm:$0xff] }
0x1e77   :  { %3433 = vadd.xlane.f32.xlu1 %v3432_v0 }
0x1e78   :  { %v6162_v32 = vpop.f32.mrb[34].mxu0 }
0x1e79   :  { %v3419_v23 = vpop.f32.mrb[35].mxu0  ;;  %v3441_v4 = vsel %vm2000_vm13, %v6162_v32, 0.0 }
0x1e7a   :  { %v3438_v25 = vsel %vm2000_vm13, %v3419_v23, 0.0 }
0x1e7b   :  { %3442 = vadd.xlane.f32.xlu1 %v3441_v4  ;;  %3439 = vadd.xlane.f32.xlu0 %v3438_v25 }
0x1f03   :  { %v3437_v47 = vpop.xlane.xlu0 %3436 }
0x1f04   :  { %v3445_v27 = vmul.f32 0.03125, %v3437_v47  ;;  %v3434_v16 = vpop.xlane.xlu1 %3433 }
0x1f05   :  { %v3444_v60 = vmul.f32 0.03125, %v3434_v16 }
0x1f06   :  { %v8827_v52 = vsub.f32 %v6159_v44, %v3445_v27 }
0x1f07   :  { %v8829_v53 = vsub.f32 %v3409_v59, %v3444_v60 }
0x1f08   :  { %v3443_v20 = vpop.xlane.xlu1 %3442  ;;  %v3440_v54 = vpop.xlane.xlu0 %3439  ;;  %v3453_v21 = vmul.f32 %v8827_v52, %v8827_v52 }
0x1f09   :  { %v3447_v11 = vmul.f32 0.03125, %v3443_v20  ;;  %v3446_v5 = vmul.f32 0.03125, %v3440_v54  ;;  %v3452_v15 = vmul.f32 %v8829_v53, %v8829_v53  ;;  %v3540_v20 = vld [vmem:[%s10482_s9] sm:$0xff]  ;;  %v3541_v54 = vld [vmem:[%s10482_s9 + $0x8] sm:$0xff] }
0x1f0a   :  { %v3459_v13 = vsel %vm2000_vm13, %v3453_v21, 0.0  ;;  %v6474_v21 = vpack.c.bf16 %v3541_v54, %v3540_v20 }
0x1f0b   :  { %v8836_v14 = vsub.f32 %v6162_v32, %v3447_v11  ;;  %v8838_v29 = vsub.f32 %v3419_v23, %v3446_v5  ;;  %3460 = vadd.xlane.f32.xlu1 %v3459_v13  ;;  %v3456_v35 = vsel %vm2000_vm13, %v3452_v15, 0.0  ;;  %v3428_v32 = vld [vmem:[%s10475_s2 + $0x60] sm:$0xff]  ;;  %v3430_v11 = vld [vmem:[%s10475_s2 + $0x70] sm:$0xff]  ;;  %v3431_v15 = vld [vmem:[%s10475_s2 + $0x78] sm:$0xff] }
0x1f0c   :  { %3457 = vadd.xlane.f32.xlu0 %v3456_v35  ;;  %6475 = vmatprep.subr.bf16.mxu0 %v6474_v21  ;;  %v3542_v13 = vld [vmem:[%s10482_s9 + $0x10] sm:$0xff]  ;;  %v3543_v35 = vld [vmem:[%s10482_s9 + $0x18] sm:$0xff] }
0x1f0d   :  { %v3455_v57 = vmul.f32 %v8836_v14, %v8836_v14  ;;  %v3454_v17 = vmul.f32 %v8838_v29, %v8838_v29  ;;  %6477 = vmatpush3.bf16.msra.mxu0 %v6474_v21 }
0x1f0f   :  { %v3465_v12 = vsel %vm2000_vm13, %v3455_v57, 0.0  ;;  %v3462_v7 = vsel %vm2000_vm13, %v3454_v17, 0.0  ;;  %v6478_v57 = vpack.c.bf16 %v3543_v35, %v3542_v13 }
0x1f10   :  { %3466 = vadd.xlane.f32.xlu1 %v3465_v12  ;;  %3463 = vadd.xlane.f32.xlu0 %v3462_v7  ;;  %v10615_v7 = vmov 0.0|0.0  }
0x1f11   :  { %6479 = vmatprep.subr.bf16.mxu0 %v6478_v57 }
0x1f12   :  { %6481 = vmatpush3.bf16.msra.mxu0 %v6478_v57 }
0x1f13   :  { %6514 = vmatprep.subr.bf16.mxu0 %v10615_v7 }
0x1f98   :  { %v3461_v1 = vpop.xlane.xlu1 %3460 }
0x1f99   :  { %v3469_v40 = vmul.f32 0.03125, %v3461_v1  ;;  %v3458_v50 = vpop.xlane.xlu0 %3457 }
0x1f9a   :  { %v3468_v56 = vmul.f32 0.03125, %v3458_v50 }
0x1f9b   :  { %v3473_v45 = vadd.f32 1e-05, %v3469_v40 }
0x1f9c   :  { %v3472_v42 = vadd.f32 1e-05, %v3468_v56 }
0x1f9d   :  { %7267 = vrsqrt.f32 %v3473_v45  ;;  %v3467_v44 = vpop.xlane.xlu1 %3466  ;;  %v3464_v0 = vpop.xlane.xlu0 %3463 }
0x1f9e   :  { %7269 = vrsqrt.f32 %v3472_v42  ;;  %v3471_v59 = vmul.f32 0.03125, %v3467_v44  ;;  %v3470_v27 = vmul.f32 0.03125, %v3464_v0 }
0x1fa0   :  { %v3475_v47 = vadd.f32 1e-05, %v3471_v59  ;;  %v3474_v60 = vadd.f32 1e-05, %v3470_v27 }
0x1fa2   :  { %7271 = vrsqrt.f32 %v3475_v47 }
0x1fa3   :  { %7273 = vrsqrt.f32 %v3474_v60 }
0x1fa7   :  { %v7268_v23 = vpop.eup %7267 }
0x1fa8   :  { %v7270_v4 = vpop.eup %7269  ;;  %v3481_v25 = vmul.f32 %v7268_v23, %v3429_v46 }
0x1fa9   :  { %v3480_v16 = vmul.f32 %v7270_v4, %v3428_v32 }
0x1faa   :  { %3491 = vperm.xlu1 %7211, %v3481_v25  }
0x1fab   :  { %3486 = vperm.xlu0 %7210, %v3480_v16  }
0x1fac   :  { %v7272_v5 = vpop.eup %7271 }
0x1fad   :  { %v3483_v17 = vmul.f32 %v7272_v5, %v3431_v15  ;;  %v7274_v12 = vpop.eup %7273 }
0x1fae   :  { %7212 = vset.pattern.permute.xlu1 %v10614_v33  ;;  %v3482_v1 = vmul.f32 %v7274_v12, %v3430_v11 }
0x1faf   :  { %3510 = vperm.xlu1 %7212, %v3428_v32   ;;  %3723 = vrot.lane.b32.xlu0 %v8416_v26, %s7453_s15 }
0x1fb3   :  { %3515 = vperm.xlu1 %7212, %v3429_v46   ;;  %3687 = vrot.lane.b32.xlu0 %v8416_v26, %s7462_s29 }
0x1fb7   :  { %3520 = vperm.xlu1 %7212, %v3430_v11   ;;  %3741 = vrot.lane.b32.xlu0 %v8416_v26, %s7463_s11 }
0x1fbb   :  { %7213 = vset.pattern.permute.xlu1 %v10613_v3  ;;  %3651 = vrot.lane.b32.xlu0 %v8416_v26, %s7461_s30 }
0x1fbc   :  { %3501 = vperm.xlu1 %7213, %v3483_v17  }
0x1fbf   :  { %3705 = vrot.lane.b32.xlu0 %v8416_v26, %s7449_s13 }
0x1fc0   :  { %3496 = vperm.xlu1 %7213, %v3482_v1  }
0x1fc3   :  { %3759 = vrot.lane.b32.xlu0 %v8416_v26, %s7464_s6 }
0x1fc4   :  { %7214 = vset.pattern.permute.xlu1 %v10614_v33 }
0x1fc5   :  { %3525 = vperm.xlu1 %7214, %v3431_v15  }
0x1fc7   :  { %3669 = vrot.lane.b32.xlu0 %v8416_v26, %s7445_s19 }
0x1fc9   :  { %3721 = vrot.lane.b32.xlu1 %v8412_v8, %s7453_s15 }
0x1fca   :  { %7215 = vset.pattern.permute.xlu1 %v10613_v3 }
0x1fcd   :  { %3685 = vrot.lane.b32.xlu1 %v8412_v8, %s7462_s29 }
0x1fd1   :  { %3739 = vrot.lane.b32.xlu1 %v8412_v8, %s7463_s11 }
0x1fd5   :  { %3649 = vrot.lane.b32.xlu1 %v8412_v8, %s7461_s30 }
0x1fd9   :  { %3703 = vrot.lane.b32.xlu1 %v8412_v8, %s7449_s13 }
0x1fdd   :  { %3757 = vrot.lane.b32.xlu1 %v8412_v8, %s7464_s6 }
0x1fe1   :  { %3667 = vrot.lane.b32.xlu1 %v8412_v8, %s7445_s19 }
0x2029   :  { %v3492_v40 = vpop.permute.xlu1 %3491 }
0x202a   :  { %v3487_v50 = vpop.permute.xlu0 %3486  ;;  %v3505_v44 = vmul.f32 %v3492_v40, %v8827_v52 }
0x202b   :  { %v3504_v56 = vmul.f32 %v3487_v50, %v8829_v53 }
0x202e   :  { %v3511_v45 = vpop.permute.xlu1 %3510  ;;  %v8910_v20 = vpop.permute.xlu0 %3723 }
0x202f   :  { %v3528_v42 = vadd.f32 %v3511_v45, %v3504_v56 }
0x2031   :  { %v3532_v59 = vmul.f32 0.01, %v3528_v42 }
0x2032   :  { %v3516_v46 = vpop.permute.xlu1 %3515  ;;  %v3688_v35 = vpop.permute.xlu0 %3687 }
0x2033   :  { %v3536_v0 = vmax.f32 %v3528_v42, %v3532_v59  ;;  %v3529_v32 = vadd.f32 %v3516_v46, %v3505_v44  ;;  %v3786_v44 = vld [vmem:[#allocation2 + $0x2c8] sm:$0xff]  ;;  %v3788_v59 = vld [vmem:[#allocation2 + $0x2d8] sm:$0xff] }
0x2034   :  { %3864 = vmatprep.mubr.f32.mxu1 %v3786_v44 }
0x2035   :  { %v3533_v23 = vmul.f32 0.01, %v3529_v32  ;;  %6171 = vmatprep.mubr.msk.f32.mxu0 %vm2000_vm13, %v3536_v0 }
0x2036   :  { %v3521_v4 = vpop.permute.xlu1 %3520  ;;  %v9001_v46 = vpop.permute.xlu0 %3741 }
0x2037   :  { %v3537_v25 = vmax.f32 %v3529_v32, %v3533_v23 }
0x2039   :  { %6172 = vmatmul.mubr.msk.f32.vlgmr.msra.gmra.mrb[36].mxu0 %vm2000_vm13, %v3537_v25 }
0x203a   :  { %v9003_v32 = vpop.permute.xlu0 %3651 }
0x203b   :  { %v3502_v47 = vpop.permute.xlu1 %3501 }
0x203c   :  { %v3507_v60 = vmul.f32 %v3502_v47, %v8836_v14 }
0x203f   :  { %v3497_v27 = vpop.permute.xlu1 %3496 }
0x2040   :  { %v3506_v16 = vmul.f32 %v3497_v27, %v8838_v29  ;;  %v8916_v29 = vld [vmem:[#allocation6 + $0x2] ss:$0 sm:$0xff] }
0x2041   :  { %v3694_v14 = vmul.f32 %v8916_v29, %v3688_v35 }
0x2042   :  { %v3530_v53 = vadd.f32 %v3521_v4, %v3506_v16  ;;  %v9007_v4 = vpop.permute.xlu0 %3705 }
0x2044   :  { %v3534_v52 = vmul.f32 0.01, %v3530_v53  ;;  %v3526_v54 = vpop.permute.xlu1 %3525 }
0x2045   :  { %v3531_v21 = vadd.f32 %v3526_v54, %v3507_v60 }
0x2046   :  { %v3538_v11 = vmax.f32 %v3530_v53, %v3534_v52  ;;  %v9011_v47 = vpop.permute.xlu0 %3759 }
0x2047   :  { %v3535_v5 = vmul.f32 0.01, %v3531_v21 }
0x2048   :  { %v8912_v15 = vpop.permute.xlu1 %3721  ;;  %6174 = vmatprep.mubr.msk.f32.mxu0 %vm2000_vm13, %v3538_v11 }
0x2049   :  { %v3539_v13 = vmax.f32 %v3531_v21, %v3535_v5  ;;  %v9019_v21 = vld [vmem:[#allocation6] ss:$0 sm:$0xff] }
0x204a   :  { %v9015_v16 = vpop.permute.xlu0 %3669 }
0x204b   :  { %6175 = vmatmul.mubr.msk.f32.gmra.mrb[38].mxu0 %vm2000_vm13, %v3539_v13 }
0x204c   :  { %v3686_v57 = vpop.permute.xlu1 %3685  ;;  %5800 = vmatprep.mubr.msk.f32.mxu0 %vm3793_vm15, %v3788_v59 }
0x204d   :  { %v3693_v17 = vmul.f32 %v8916_v29, %v3686_v57 }
0x204f   :  { %v6482_v12 = vpack.c.bf16 %v3694_v14, %v3693_v17  ;;  %v9023_v14 = vld [vmem:[#allocation6 + $0x3] ss:$0 sm:$0xff] }
0x2050   :  { %v3740_v0 = vpop.permute.xlu1 %3739 }
0x2051   :  { %6483 = vmatprep.subr.bf16.mxu1 %v6482_v12 }
0x2054   :  { %v9005_v23 = vpop.permute.xlu1 %3649 }
0x2058   :  { %v9009_v25 = vpop.permute.xlu1 %3703 }
0x205c   :  { %v9013_v27 = vpop.permute.xlu1 %3757 }
0x2060   :  { %v9017_v53 = vpop.permute.xlu1 %3667 }
0x210c   :  { %v8920_v1 = vpop.f32.mrb[36].mxu0 }
0x210d   :  { %3733 = vrot.lane.b32.xlu0 %v8920_v1, %s7463_s11  ;;  %v8924_v40 = vpop.f32.mrb[37].mxu0 }
0x210e   :  { %3731 = vrot.lane.b32.xlu1 %v8924_v40, %s7463_s11 }
0x2111   :  { %3643 = vrot.lane.b32.xlu0 %v8920_v1, %s7461_s30 }
0x2112   :  { %3641 = vrot.lane.b32.xlu1 %v8924_v40, %s7461_s30 }
0x2115   :  { %3697 = vrot.lane.b32.xlu0 %v8920_v1, %s7449_s13 }
0x2116   :  { %3695 = vrot.lane.b32.xlu1 %v8924_v40, %s7449_s13 }
0x2119   :  { %3751 = vrot.lane.b32.xlu0 %v8920_v1, %s7464_s6 }
0x211a   :  { %3749 = vrot.lane.b32.xlu1 %v8924_v40, %s7464_s6 }
0x211d   :  { %3661 = vrot.lane.b32.xlu0 %v8920_v1, %s7445_s19 }
0x211e   :  { %3659 = vrot.lane.b32.xlu1 %v8924_v40, %s7445_s19  ;;  %v8946_v56 = vpop.f32.mrb[38].mxu0 }
0x211f   :  { %v8948_v45 = vpop.f32.mrb[39].mxu0 }
0x2121   :  { %3769 = vrot.lane.b32.xlu0 %v8920_v1, %s7465_s14 }
0x2122   :  { %3767 = vrot.lane.b32.xlu1 %v8924_v40, %s7465_s14 }
0x2125   :  { %3719 = vrot.lane.b32.xlu0 %v8946_v56, %s7453_s15 }
0x2126   :  { %3717 = vrot.lane.b32.xlu1 %v8948_v45, %s7453_s15 }
0x2129   :  { %3737 = vrot.lane.b32.xlu0 %v8946_v56, %s7463_s11 }
0x212a   :  { %3677 = vrot.lane.b32.xlu1 %v8924_v40, %s7462_s29 }
0x212d   :  { %3647 = vrot.lane.b32.xlu0 %v8946_v56, %s7461_s30 }
0x212e   :  { %3735 = vrot.lane.b32.xlu1 %v8948_v45, %s7463_s11 }
0x2131   :  { %3701 = vrot.lane.b32.xlu0 %v8946_v56, %s7449_s13 }
0x2132   :  { %3645 = vrot.lane.b32.xlu1 %v8948_v45, %s7461_s30 }
0x2135   :  { %3755 = vrot.lane.b32.xlu0 %v8946_v56, %s7464_s6 }
0x2136   :  { %3699 = vrot.lane.b32.xlu1 %v8948_v45, %s7449_s13 }
0x2139   :  { %3665 = vrot.lane.b32.xlu0 %v8946_v56, %s7445_s19 }
0x213a   :  { %3753 = vrot.lane.b32.xlu1 %v8948_v45, %s7464_s6 }
0x213d   :  { %3679 = vrot.lane.b32.xlu0 %v8920_v1, %s7462_s29 }
0x213e   :  { %3663 = vrot.lane.b32.xlu1 %v8948_v45, %s7445_s19 }
0x2141   :  { %3715 = vrot.lane.b32.xlu0 %v8920_v1, %s7453_s15 }
0x2142   :  { %3713 = vrot.lane.b32.xlu1 %v8924_v40, %s7453_s15 }
0x2145   :  { %3773 = vrot.lane.b32.xlu0 %v8946_v56, %s7465_s14 }
0x2146   :  { %3771 = vrot.lane.b32.xlu1 %v8948_v45, %s7465_s14 }
0x2149   :  { %3683 = vrot.lane.b32.xlu0 %v8946_v56, %s7462_s29 }
0x214a   :  { %3681 = vrot.lane.b32.xlu1 %v8948_v45, %s7462_s29 }
0x214d   :  { %3777 = vrot.lane.b32.xlu0 %v8416_v26, %s7465_s14 }
0x214e   :  { %3775 = vrot.lane.b32.xlu1 %v8412_v8, %s7465_s14 }
0x217f   :  { %v3734_v60 = vpop.permute.xlu0 %3733 }
0x2180   :  { %v3732_v52 = vpop.permute.xlu1 %3731 }
0x2183   :  { %v3644_v54 = vpop.permute.xlu0 %3643 }
0x2184   :  { %v3654_v11 = vmul.f32 %v9019_v21, %v3644_v54  ;;  %v3642_v5 = vpop.permute.xlu1 %3641 }
0x2185   :  { %v3653_v13 = vmul.f32 %v9019_v21, %v3642_v5  ;;  %v9031_v5 = vld [vmem:[#allocation6 + $0x5] ss:$0 sm:$0xff] }
0x2187   :  { %v6484_v35 = vpack.c.bf16 %v3654_v11, %v3653_v13  ;;  %v3698_v57 = vpop.permute.xlu0 %3697 }
0x2188   :  { %v3708_v17 = vmul.f32 %v9023_v14, %v3698_v57  ;;  %v3696_v12 = vpop.permute.xlu1 %3695 }
0x2189   :  { %v3707_v44 = vmul.f32 %v9023_v14, %v3696_v12  ;;  %6485 = vmatpush3.bf16.msra.mxu1 %v6484_v35  ;;  %v3729_v35 = vmul.f32 %v9031_v5, %v8912_v15 }
0x218b   :  { %v6486_v59 = vpack.c.bf16 %v3708_v17, %v3707_v44  ;;  %v3752_v42 = vpop.permute.xlu0 %3751 }
0x218c   :  { %v3750_v50 = vpop.permute.xlu1 %3749 }
0x218d   :  { %6487 = vmatprep.subr.bf16.mxu1 %v6486_v59  ;;  %v3730_v59 = vmul.f32 %v9031_v5, %v8910_v20 }
0x218f   :  { %v3662_v22 = vpop.permute.xlu0 %3661  ;;  %v6518_v41 = vpack.c.bf16 %v3730_v59, %v3729_v35 }
0x2190   :  { %v3660_v49 = vpop.permute.xlu1 %3659 }
0x2193   :  { %v9027_v54 = vpop.permute.xlu0 %3769 }
0x2194   :  { %v9029_v31 = vpop.permute.xlu1 %3767 }
0x2197   :  { %v3720_v11 = vpop.permute.xlu0 %3719 }
0x2198   :  { %v3728_v13 = vmul.f32 %v9031_v5, %v3720_v11  ;;  %v3718_v57 = vpop.permute.xlu1 %3717  ;;  %v3744_v11 = vmul.f32 %v9042_v63, %v3734_v60  ;;  %v3747_v60 = vmul.f32 %v9042_v63, %v3740_v0  ;;  %v3658_v0 = vmul.f32 %v9019_v21, %v9003_v32 }
0x2199   :  { %v3727_v55 = vmul.f32 %v9031_v5, %v3718_v57  ;;  %v3743_v57 = vmul.f32 %v9042_v63, %v3732_v52 }
0x219b   :  { %v6515_v17 = vpack.c.bf16 %v3728_v13, %v3727_v55  ;;  %v3738_v12 = vpop.permute.xlu0 %3737  ;;  %v6521_v55 = vpack.c.bf16 %v3744_v11, %v3743_v57  ;;  %v3748_v11 = vmul.f32 %v9042_v63, %v9001_v46 }
0x219c   :  { %v9037_v44 = vpop.permute.xlu1 %3677 }
0x219d   :  { %6516 = vmatpush1.bf16.msra.mxu0 %v6515_v17  ;;  %v3746_v17 = vmul.f32 %v9042_v63, %v3738_v12  ;;  %v6527_v46 = vpack.c.bf16 %v3748_v11, %v3747_v60 }
0x219e   :  { %6517 = vmatprep.subr.bf16.mxu0 %v10615_v7 }
0x219f   :  { %v3648_v34 = vpop.permute.xlu0 %3647 }
0x21a0   :  { %v3736_v6 = vpop.permute.xlu1 %3735  ;;  %v3656_v35 = vmul.f32 %v9019_v21, %v3648_v34  ;;  %v3711_v34 = vmul.f32 %v9023_v14, %v9009_v25 }
0x21a1   :  { %6519 = vmatpush1.bf16.msra.mxu0 %v6518_v41  ;;  %v3745_v15 = vmul.f32 %v9042_v63, %v3736_v6  ;;  %v3657_v6 = vmul.f32 %v9019_v21, %v9005_v23  ;;  %v9066_v23 = vld [vmem:[#allocation6 + $0x7] ss:$0 sm:$0xff] }
0x21a2   :  { %6520 = vmatprep.subr.bf16.mxu0 %v10615_v7  ;;  %v3761_v25 = vmul.f32 %v9066_v23, %v3750_v50 }
0x21a3   :  { %v3702_v13 = vpop.permute.xlu0 %3701  ;;  %v6524_v52 = vpack.c.bf16 %v3746_v17, %v3745_v15  ;;  %v3712_v15 = vmul.f32 %v9023_v14, %v9007_v4 }
0x21a4   :  { %v3646_v20 = vpop.permute.xlu1 %3645  ;;  %v3710_v12 = vmul.f32 %v9023_v14, %v3702_v13 }
0x21a5   :  { %v3655_v59 = vmul.f32 %v9019_v21, %v3646_v20  ;;  %6522 = vmatpush1.bf16.msra.mxu0 %v6521_v55  ;;  %v3762_v20 = vmul.f32 %v9066_v23, %v3752_v42  ;;  %v6494_v4 = vpack.c.bf16 %v3712_v15, %v3711_v34  ;;  %v3765_v34 = vmul.f32 %v9066_v23, %v9013_v27 }
0x21a6   :  { %6523 = vmatprep.subr.bf16.mxu0 %v10615_v7 }
0x21a7   :  { %v6488_v41 = vpack.c.bf16 %v3656_v35, %v3655_v59  ;;  %v3756_v10 = vpop.permute.xlu0 %3755  ;;  %v6492_v35 = vpack.c.bf16 %v3658_v0, %v3657_v6  ;;  %v9070_v59 = vld [vmem:[#allocation6 + $0x1] ss:$0 sm:$0xff]  ;;  %v6530_v60 = vpack.c.bf16 %v3762_v20, %v3761_v25  ;;  %v10616_v0 = vpack.c.bf16 %v8920_v1, %v8924_v40 }
0x21a8   :  { %v3700_v57 = vpop.permute.xlu1 %3699  ;;  %v3671_v32 = vmul.f32 %v9070_v59, %v3660_v49  ;;  %v3766_v20 = vmul.f32 %v9066_v23, %v9011_v47  ;;  %v3676_v25 = vmul.f32 %v9070_v59, %v9015_v16 }
0x21a9   :  { %v3709_v55 = vmul.f32 %v9023_v14, %v3700_v57  ;;  %6489 = vmatpush3.bf16.msra.mxu1 %v6488_v41  ;;  %6525 = vmatpush1.bf16.msra.mxu0 %v6524_v52  ;;  %v3672_v52 = vmul.f32 %v9070_v59, %v3662_v22  ;;  %v3764_v57 = vmul.f32 %v9066_v23, %v3756_v10 }
0x21aa   :  { %6526 = vmatprep.subr.bf16.mxu0 %v10615_v7  ;;  %v3675_v10 = vmul.f32 %v9070_v59, %v9017_v53  ;;  %v6536_v27 = vpack.c.bf16 %v3766_v20, %v3765_v34  ;;  %v10617_v53 = vpack.c.bf16 %v8946_v56, %v8948_v45  ;;  %v3785_v34 = vld [vmem:[#allocation2 + $0x2c0] sm:$0xff] }
0x21ab   :  { %v6490_v13 = vpack.c.bf16 %v3710_v12, %v3709_v55  ;;  %v3666_v17 = vpop.permute.xlu0 %3665  ;;  %v6496_v11 = vpack.c.bf16 %v3672_v52, %v3671_v32 }
0x21ac   :  { %v3754_v41 = vpop.permute.xlu1 %3753  ;;  %v3674_v22 = vmul.f32 %v9070_v59, %v3666_v17  ;;  %v6504_v17 = vpack.c.bf16 %v3676_v25, %v3675_v10  ;;  %v3792_v10 = vld [vmem:[#allocation2 + $0x2f8] sm:$0xff] }
0x21ad   :  { %6491 = vmatprep.subr.bf16.mxu1 %v6490_v13  ;;  %6528 = vmatpush1.bf16.msra.mxu0 %v6527_v46  ;;  %v3763_v42 = vmul.f32 %v9066_v23, %v3754_v41  ;;  %v9092_v13 = vld [vmem:[#allocation6 + $0x8] ss:$0 sm:$0xff] }
0x21ae   :  { %6493 = vmatpush3.bf16.msra.mxu1 %v6492_v35  ;;  %6529 = vmatprep.subr.bf16.mxu0 %v10615_v7  ;;  %v3780_v1 = vmul.f32 %v9092_v13, %v9027_v54  ;;  %v3779_v40 = vmul.f32 %v9092_v13, %v9029_v31  ;;  %v6506_v54 = vpack.c.bf16 %v8416_v26, %v8412_v8 }
0x21af   :  { %6495 = vmatprep.subr.bf16.mxu1 %v6494_v4  ;;  %v3680_v50 = vpop.permute.xlu0 %3679  ;;  %v6533_v12 = vpack.c.bf16 %v3764_v57, %v3763_v42  ;;  %v3689_v31 = vmul.f32 %v8916_v29, %v9037_v44 }
0x21b0   :  { %v3664_v6 = vpop.permute.xlu1 %3663  ;;  %v3690_v16 = vmul.f32 %v8916_v29, %v3680_v50  ;;  %v6539_v56 = vpack.c.bf16 %v3780_v1, %v3779_v40 }
0x21b1   :  { %v3673_v49 = vmul.f32 %v9070_v59, %v3664_v6  ;;  %6531 = vmatpush1.bf16.msra.mxu0 %v6530_v60 }
0x21b2   :  { %6497 = vmatpush3.bf16.msra.mxu1 %v6496_v11  ;;  %6532 = vmatprep.subr.bf16.mxu0 %v10615_v7  ;;  %v6508_v60 = vpack.c.bf16 %v3690_v16, %v3689_v31 }
0x21b3   :  { %v6500_v55 = vpack.c.bf16 %v3674_v22, %v3673_v49  ;;  %6499 = vmatprep.subr.bf16.mxu1 %v10616_v0  ;;  %v3716_v15 = vpop.permute.xlu0 %3715  ;;  %v3787_v0 = vld [vmem:[#allocation2 + $0x2d0] sm:$0xff] }
0x21b4   :  { %v3714_v46 = vpop.permute.xlu1 %3713  ;;  %v3726_v52 = vmul.f32 %v9031_v5, %v3716_v15  ;;  %v3789_v15 = vld [vmem:[#allocation2 + $0x2e0] sm:$0xff] }
0x21b5   :  { %6534 = vmatpush1.bf16.msra.mxu0 %v6533_v12  ;;  %v3725_v32 = vmul.f32 %v9031_v5, %v3714_v46  ;;  %v3791_v46 = vld [vmem:[#allocation2 + $0x2f0] sm:$0xff] }
0x21b6   :  { %6501 = vmatpush3.bf16.msra.mxu1 %v6500_v55  ;;  %6535 = vmatprep.subr.bf16.mxu0 %v10615_v7  ;;  %v3790_v55 = vld [vmem:[#allocation2 + $0x2e8] sm:$0xff] }
0x21b7   :  { %6503 = vmatprep.subr.bf16.mxu1 %v10617_v53  ;;  %v3774_v47 = vpop.permute.xlu0 %3773  ;;  %v6510_v11 = vpack.c.bf16 %v3726_v52, %v3725_v32 }
0x21b8   :  { %v3772_v35 = vpop.permute.xlu1 %3771  ;;  %v3782_v45 = vmul.f32 %v9092_v13, %v3774_v47 }
0x21b9   :  { %6537 = vmatpush1.bf16.msra.mxu0 %v6536_v27  ;;  %v3781_v41 = vmul.f32 %v9092_v13, %v3772_v35 }
0x21ba   :  { %6505 = vmatpush3.bf16.msra.mxu1 %v6504_v17  ;;  %6538 = vmatprep.subr.bf16.mxu0 %v10615_v7 }
0x21bb   :  { %6507 = vmatprep.subr.bf16.mxu1 %v6506_v54  ;;  %v3684_v4 = vpop.permute.xlu0 %3683  ;;  %v6542_v26 = vpack.c.bf16 %v3782_v45, %v3781_v41 }
0x21bc   :  { %v3692_v42 = vmul.f32 %v8916_v29, %v3684_v4  ;;  %v3682_v50 = vpop.permute.xlu1 %3681 }
0x21bd   :  { %v3691_v8 = vmul.f32 %v8916_v29, %v3682_v50  ;;  %6540 = vmatpush1.bf16.msra.mxu0 %v6539_v56 }
0x21be   :  { %6509 = vmatpush3.bf16.msra.mxu1 %v6508_v60  ;;  %6541 = vmatprep.subr.bf16.mxu0 %v10615_v7 }
0x21bf   :  { %v6512_v44 = vpack.c.bf16 %v3692_v42, %v3691_v8  ;;  %6511 = vmatprep.subr.bf16.mxu1 %v6510_v11  ;;  %v3778_v6 = vpop.permute.xlu0 %3777 }
0x21c0   :  { %v3784_v57 = vmul.f32 %v9092_v13, %v3778_v6  ;;  %v3776_v22 = vpop.permute.xlu1 %3775 }
0x21c1   :  { %v3783_v49 = vmul.f32 %v9092_v13, %v3776_v22  ;;  %6543 = vmatpush1.bf16.msra.mxu0 %v6542_v26 }
0x21c2   :  { %6513 = vmatpush3.bf16.msra.mxu1 %v6512_v44  ;;  %6544 = vmatprep.subr.bf16.mxu0 %v10615_v7 }
0x21c3   :  { %v6545_v12 = vpack.c.bf16 %v3784_v57, %v3783_v49  ;;  %6547 = vmatprep.subr.bf16.mxu1 %v10615_v7  ;;  %v3950_v57 = vld [vmem:[%s10475_s2 + $0xb0] sm:$0xff] }
0x21c5   :  { %3865 = vmatmul.mubr.f32.vlgmr.msra.gmra.mrb[20].mxu1 %v3785_v34  ;;  %6546 = vmatpush1.bf16.msra.mxu0 %v6545_v12  ;;  %v3951_v34 = vld [vmem:[%s10475_s2 + $0xb8] sm:$0xff] }
0x21c6   :  { %3869 = vmatprep.mubr.f32.mxu1 %v3790_v55 }
0x21c8   :  { %3940 = vmatmul.mubr.f32.vlgmr.msra.gmra.mrb[40].mxu0 %v3787_v0 }
0x21c9   :  { %3870 = vmatmul.mubr.f32.gmra.mrb[22].mxu1 %v3789_v15  ;;  %5801 = vmatprep.mubr.msk.f32.mxu0 %vm3793_vm15, %v3792_v10 }
0x21cc   :  { %3945 = vmatmul.mubr.f32.gmra.mrb[42].mxu0 %v3791_v46 }
0x2298   :  { %v6061_v20 = vpop.f32.mrb[20].mxu1 }
0x2299   :  { %v6062_v25 = vpop.f32.mrb[21].mxu1 }
0x229a   :  { %v6063_v27 = vadd.f32 %v6062_v25, %v6061_v20 }
0x229b   :  { %v3941_v1 = vpop.f32.mrb[40].mxu0 }
0x229c   :  { %v3942_v40 = vadd.f32 %v6063_v27, %v3941_v1  ;;  %v6064_v53 = vpop.f32.mrb[22].mxu1  ;;  %v3943_v47 = vpop.f32.mrb[41].mxu0 }
0x229d   :  { %v6065_v17 = vpop.f32.mrb[23].mxu1 }
0x229e   :  { %v6066_v16 = vadd.f32 %v6065_v17, %v6064_v53  ;;  %3952 = vadd.xlane.f32.xlu1 %v3942_v40 }
0x229f   :  { %v3946_v35 = vpop.f32.mrb[42].mxu0 }
0x22a0   :  { %v3947_v52 = vadd.f32 %v6066_v16, %v3946_v35  ;;  %v3948_v32 = vpop.f32.mrb[43].mxu0  ;;  %v4051_v16 = vld [vmem:[#allocation2 + $0x308] sm:$0xff] }
0x22a1   :  { %5802 = vmatprep.mubr.msk.f32.mxu1 %vm1483_vm12, %v4051_v16 }
0x22a2   :  { %3954 = vadd.xlane.f32.xlu0 %v3947_v52 }
0x232b   :  { %v3953_v54 = vpop.xlane.xlu1 %3952 }
0x232c   :  { %v3956_v31 = vmul.f32 0.0078125, %v3953_v54 }
0x232e   :  { %v3958_v56 = vsub.f32 %v3942_v40, %v3956_v31 }
0x232f   :  { %v3955_v45 = vpop.xlane.xlu0 %3954 }
0x2330   :  { %v3957_v41 = vmul.f32 0.0078125, %v3955_v45  ;;  %v3960_v4 = vmul.f32 %v3958_v56, %v3958_v56 }
0x2332   :  { %v3959_v60 = vsub.f32 %v3947_v52, %v3957_v41  ;;  %3962 = vadd.xlane.f32.xlu0 %v3960_v4 }
0x2334   :  { %v3961_v42 = vmul.f32 %v3959_v60, %v3959_v60 }
0x2336   :  { %3964 = vadd.xlane.f32.xlu1 %v3961_v42 }
0x23bf   :  { %v3963_v50 = vpop.xlane.xlu0 %3962 }
0x23c0   :  { %v3966_v11 = vmul.f32 0.0078125, %v3963_v50 }
0x23c2   :  { %v3968_v8 = vadd.f32 1e-05, %v3966_v11 }
0x23c3   :  { %v3965_v26 = vpop.xlane.xlu1 %3964 }
0x23c4   :  { %7275 = vrsqrt.f32 %v3968_v8  ;;  %v3967_v44 = vmul.f32 0.0078125, %v3965_v26 }
0x23c6   :  { %v3969_v6 = vadd.f32 1e-05, %v3967_v44 }
0x23c8   :  { %7277 = vrsqrt.f32 %v3969_v6 }
0x23ce   :  { %v7276_v22 = vpop.eup %7275 }
0x23cf   :  { %v3972_v49 = vmul.f32 %v7276_v22, %v3950_v57 }
0x23d1   :  { %3976 = vperm.xlu0 %7210, %v3972_v49  }
0x23d2   :  { %v7278_v12 = vpop.eup %7277 }
0x23d3   :  { %v3973_v55 = vmul.f32 %v7278_v12, %v3951_v34 }
0x23d5   :  { %3981 = vperm.xlu1 %7215, %v3973_v55   ;;  %7217 = vset.pattern.permute.xlu0 %v10614_v33 }
0x23d6   :  { %3993 = vperm.xlu0 %7217, %v3951_v34  }
0x23d9   :  { %7216 = vset.pattern.permute.xlu1 %v10614_v33 }
0x23da   :  { %3988 = vperm.xlu1 %7216, %v3950_v57   ;;  %7219 = vset.pattern.permute.xlu0 %v10613_v3 }
0x23de   :  { %7218 = vset.pattern.permute.xlu1 %v10613_v3 }
0x2450   :  { %v3977_v0 = vpop.permute.xlu0 %3976 }
0x2451   :  { %v3984_v20 = vmul.f32 %v3977_v0, %v3958_v56 }
0x2454   :  { %v3982_v15 = vpop.permute.xlu1 %3981 }
0x2455   :  { %v3985_v10 = vmul.f32 %v3982_v15, %v3959_v60  ;;  %v3994_v46 = vpop.permute.xlu0 %3993 }
0x2457   :  { %v3997_v27 = vadd.f32 %v3994_v46, %v3985_v10 }
0x2459   :  { %v3989_v25 = vpop.permute.xlu1 %3988  ;;  %v3999_v53 = vmul.f32 0.01, %v3997_v27 }
0x245a   :  { %v3996_v1 = vadd.f32 %v3989_v25, %v3984_v20 }
0x245b   :  { %v9135_v17 = vmax.f32 %v3997_v27, %v3999_v53 }
0x245c   :  { %v3998_v40 = vmul.f32 0.01, %v3996_v1 }
0x245e   :  { %v9129_v47 = vmax.f32 %v3996_v1, %v3998_v40 }
0x2460   :  { %4008 = vrot.lane.b32.xlu0 %v9129_v47, %s7445_s19  ;;  %4002 = vrot.lane.b32.xlu1 %v9129_v47, %s7461_s30  ;;  %v6560_v12 = vpack.c.bf16 %v9135_v17, %v9129_v47 }
0x2464   :  { %4014 = vrot.lane.b32.xlu0 %v9129_v47, %s7462_s29  ;;  %4004 = vrot.lane.b32.xlu1 %v9135_v17, %s7461_s30 }
0x2468   :  { %4020 = vrot.lane.b32.xlu0 %v9129_v47, %s7449_s13  ;;  %4010 = vrot.lane.b32.xlu1 %v9135_v17, %s7445_s19 }
0x246c   :  { %4026 = vrot.lane.b32.xlu0 %v9129_v47, %s7453_s15  ;;  %4016 = vrot.lane.b32.xlu1 %v9135_v17, %s7462_s29 }
0x2470   :  { %4032 = vrot.lane.b32.xlu0 %v9129_v47, %s7463_s11  ;;  %4022 = vrot.lane.b32.xlu1 %v9135_v17, %s7449_s13 }
0x2474   :  { %4038 = vrot.lane.b32.xlu0 %v9129_v47, %s7464_s6  ;;  %4028 = vrot.lane.b32.xlu1 %v9135_v17, %s7453_s15 }
0x2478   :  { %4044 = vrot.lane.b32.xlu0 %v9129_v47, %s7465_s14  ;;  %4034 = vrot.lane.b32.xlu1 %v9135_v17, %s7463_s11 }
0x247c   :  { %4040 = vrot.lane.b32.xlu1 %v9135_v17, %s7464_s6 }
0x2480   :  { %4046 = vrot.lane.b32.xlu1 %v9135_v17, %s7465_s14 }
0x24d2   :  { %v4009_v35 = vpop.permute.xlu0 %4008  ;;  %v4003_v52 = vpop.permute.xlu1 %4002 }
0x24d3   :  { %v4006_v31 = vmul.f32 %v9019_v21, %v4003_v52  ;;  %v4012_v4 = vmul.f32 %v9070_v59, %v4009_v35  ;;  %v4050_v52 = vld [vmem:[#allocation2 + $0x300] sm:$0xff] }
0x24d6   :  { %v4015_v32 = vpop.permute.xlu0 %4014  ;;  %v4005_v54 = vpop.permute.xlu1 %4004 }
0x24d7   :  { %v4007_v56 = vmul.f32 %v9019_v21, %v4005_v54  ;;  %v4018_v8 = vmul.f32 %v8916_v29, %v4015_v32  ;;  %v4053_v32 = vld [vmem:[#allocation2 + $0x328] sm:$0xff]  ;;  %v10618_v54 = vmov 0.0  }
0x24d9   :  { %v6548_v45 = vpack.c.bf16 %v4007_v56, %v4006_v31 }
0x24da   :  { %v4011_v41 = vpop.permute.xlu1 %4010  ;;  %v4021_v42 = vpop.permute.xlu0 %4020 }
0x24db   :  { %v4013_v60 = vmul.f32 %v9070_v59, %v4011_v41  ;;  %6549 = vmatpush1.bf16.msra.mxu1 %v6548_v45  ;;  %v4024_v57 = vmul.f32 %v9023_v14, %v4021_v42 }
0x24dc   :  { %6550 = vmatprep.subr.bf16.mxu1 %v10615_v7 }
0x24dd   :  { %v6551_v50 = vpack.c.bf16 %v4013_v60, %v4012_v4 }
0x24de   :  { %v4017_v11 = vpop.permute.xlu1 %4016  ;;  %v4027_v44 = vpop.permute.xlu0 %4026 }
0x24df   :  { %v4019_v26 = vmul.f32 %v8916_v29, %v4017_v11  ;;  %6552 = vmatpush1.bf16.msra.mxu1 %v6551_v50  ;;  %v4030_v0 = vmul.f32 %v9031_v5, %v4027_v44 }
0x24e0   :  { %6553 = vmatprep.subr.bf16.mxu1 %v10615_v7 }
0x24e1   :  { %v6554_v21 = vpack.c.bf16 %v4019_v26, %v4018_v8 }
0x24e2   :  { %v4023_v6 = vpop.permute.xlu1 %4022  ;;  %v4033_v34 = vpop.permute.xlu0 %4032 }
0x24e3   :  { %v4025_v59 = vmul.f32 %v9023_v14, %v4023_v6  ;;  %6555 = vmatpush1.bf16.msra.mxu1 %v6554_v21  ;;  %v4036_v20 = vmul.f32 %v9042_v63, %v4033_v34 }
0x24e4   :  { %6556 = vmatprep.subr.bf16.mxu1 %v10615_v7 }
0x24e5   :  { %v6557_v22 = vpack.c.bf16 %v4025_v59, %v4024_v57 }
0x24e6   :  { %v4029_v49 = vpop.permute.xlu1 %4028  ;;  %v4039_v10 = vpop.permute.xlu0 %4038 }
0x24e7   :  { %6558 = vmatpush1.bf16.msra.mxu1 %v6557_v22  ;;  %v4031_v29 = vmul.f32 %v9031_v5, %v4029_v49  ;;  %v4042_v40 = vmul.f32 %v9066_v23, %v4039_v10  ;;  %v4135_v22 = vld [vmem:[%s10475_s2 + $0xc0] sm:$0xff] }
0x24e8   :  { %6559 = vmatprep.subr.bf16.mxu1 %v10615_v7 }
0x24e9   :  { %v6563_v14 = vpack.c.bf16 %v4031_v29, %v4030_v0  ;;  %v4136_v29 = vld [vmem:[%s10475_s2 + $0xc8] sm:$0xff]  ;;  %v4189_v0 = vld [vmem:[#allocation2 + $0x340] sm:$0xff] }
0x24ea   :  { %v4035_v55 = vpop.permute.xlu1 %4034  ;;  %v4045_v5 = vpop.permute.xlu0 %4044  ;;  %6181 = vmatprep.mubr.msk.f32.mxu0 %vm1483_vm12, %v4189_v0 }
0x24eb   :  { %6561 = vmatpush1.bf16.msra.mxu1 %v6560_v12  ;;  %v4037_v15 = vmul.f32 %v9042_v63, %v4035_v55  ;;  %v4048_v35 = vmul.f32 %v9092_v13, %v4045_v5 }
0x24ec   :  { %6562 = vmatprep.subr.bf16.mxu1 %v10615_v7 }
0x24ed   :  { %v6566_v25 = vpack.c.bf16 %v4037_v15, %v4036_v20 }
0x24ee   :  { %v4041_v46 = vpop.permute.xlu1 %4040 }
0x24ef   :  { %6564 = vmatpush1.bf16.msra.mxu1 %v6563_v14  ;;  %v4043_v27 = vmul.f32 %v9066_v23, %v4041_v46  ;;  %v4052_v23 = vld [vmem:[#allocation2 + $0x320] sm:$0xff] }
0x24f0   :  { %6565 = vmatprep.subr.bf16.mxu1 %v10615_v7 }
0x24f1   :  { %v6569_v53 = vpack.c.bf16 %v4043_v27, %v4042_v40 }
0x24f2   :  { %v4047_v1 = vpop.permute.xlu1 %4046 }
0x24f3   :  { %6567 = vmatpush1.bf16.msra.mxu1 %v6566_v25  ;;  %v4049_v16 = vmul.f32 %v9092_v13, %v4047_v1 }
0x24f4   :  { %6568 = vmatprep.subr.bf16.mxu1 %v10615_v7 }
0x24f5   :  { %v6572_v63 = vpack.c.bf16 %v4049_v16, %v4048_v35 }
0x24f7   :  { %6570 = vmatpush1.bf16.msra.mxu1 %v6569_v53 }
0x24f8   :  { %6571 = vmatprep.subr.bf16.mxu1 %v10615_v7 }
0x24fb   :  { %6573 = vmatpush1.bf16.msra.mxu1 %v6572_v63 }
0x24fe   :  { %4125 = vmatmul.mubr.f32.vlgmr.msra.gmra.mrb[24].mxu1 %v4050_v52 }
0x24ff   :  { %5803 = vmatprep.mubr.msk.f32.mxu1 %vm1483_vm12, %v4053_v32  ;;  %v4190_v32 = vld [vmem:[#allocation2 + $0x360] sm:$0xff] }
0x2502   :  { %4130 = vmatmul.mubr.f32.gmra.mrb[26].mxu1 %v4052_v23 }
0x2503   :  { %4529 = vmatprep.mubr.f32.mxu1 %v10618_v54 }
0x25d1   :  { %v4126_v31 = vpop.f32.mrb[24].mxu1 }
0x25d2   :  { %4137 = vadd.xlane.f32.xlu0 %v4126_v31  ;;  %v4128_v56 = vpop.f32.mrb[25].mxu1 }
0x25d3   :  { %v9211_v56 = vld [vmem:[%s10475_s2 + $0xd0] sm:$0xff] }
0x25d5   :  { %v4131_v45 = vpop.f32.mrb[26].mxu1 }
0x25d6   :  { %4139 = vadd.xlane.f32.xlu1 %v4131_v45  ;;  %v4133_v13 = vpop.f32.mrb[27].mxu1 }
0x265f   :  { %v4138_v41 = vpop.xlane.xlu0 %4137 }
0x2660   :  { %v4141_v4 = vmul.f32 0.0078125, %v4138_v41 }
0x2662   :  { %v4143_v7 = vsub.f32 %v4126_v31, %v4141_v4 }
0x2663   :  { %v4140_v60 = vpop.xlane.xlu1 %4139 }
0x2664   :  { %v4142_v42 = vmul.f32 0.0078125, %v4140_v60  ;;  %v4145_v50 = vmul.f32 %v4143_v7, %v4143_v7  ;;  %v4325_v60 = vld [vmem:[#allocation10 + $0x8] sm:$0xff] }
0x2666   :  { %v4144_v11 = vsub.f32 %v4131_v45, %v4142_v42  ;;  %4147 = vadd.xlane.f32.xlu0 %v4145_v50  ;;  %v4329_v42 = vld [vmem:[#allocation10 + $0x28] sm:$0xff]  ;;  %v4327_v50 = vld [vmem:[#allocation10 + $0x18] sm:$0xff] }
0x2668   :  { %v4146_v8 = vmul.f32 %v4144_v11, %v4144_v11 }
0x266a   :  { %4149 = vadd.xlane.f32.xlu0 %v4146_v8  ;;  %v4331_v8 = vld [vmem:[#allocation10 + $0x38] sm:$0xff] }
0x26f3   :  { %v4148_v26 = vpop.xlane.xlu0 %4147 }
0x26f4   :  { %v4151_v21 = vmul.f32 0.0078125, %v4148_v26  ;;  %v4324_v26 = vld [vmem:[#allocation10] sm:$0xff] }
0x26f6   :  { %v4153_v44 = vadd.f32 1e-05, %v4151_v21  ;;  %v4328_v21 = vld [vmem:[#allocation10 + $0x20] sm:$0xff] }
0x26f7   :  { %v4150_v6 = vpop.xlane.xlu0 %4149 }
0x26f8   :  { %7279 = vrsqrt.f32 %v4153_v44  ;;  %v4152_v57 = vmul.f32 0.0078125, %v4150_v6  ;;  %v6610_v44 = vpack.c.bf16 %v4331_v8, %v4327_v50  ;;  %v6580_v6 = vpack.c.bf16 %v4328_v21, %v4324_v26  ;;  %v4350_v50 = vld [vmem:[#allocation10 + $0xd0] sm:$0xff]  ;;  %v4357_v8 = vld [vmem:[#allocation10 + $0x108] sm:$0xff]  ;;  %v4359_v21 = vld [vmem:[#allocation10 + $0x118] sm:$0xff] }
0x26f9   :  { %v4361_v26 = vld [vmem:[#allocation10 + $0x128] sm:$0xff] }
0x26fa   :  { %v4154_v59 = vadd.f32 1e-05, %v4152_v57  ;;  %v4326_v57 = vld [vmem:[#allocation10 + $0x10] sm:$0xff]  ;;  %6611 = vmatprep.subr.bf16.mxu1 %v6610_v44  ;;  %v4363_v44 = vld [vmem:[#allocation10 + $0x138] sm:$0xff] }
0x26fc   :  { %7281 = vrsqrt.f32 %v4154_v59  ;;  %v4330_v59 = vld [vmem:[#allocation10 + $0x30] sm:$0xff] }
0x2702   :  { %v7280_v49 = vpop.eup %7279 }
0x2703   :  { %v4157_v34 = vmul.f32 %v7280_v49, %v4135_v22  ;;  %v6612_v49 = vpack.c.bf16 %v4330_v59, %v4326_v57  ;;  %v6594_v59 = vpack.c.bf16 %v4361_v26, %v4357_v8  ;;  %v4372_v8 = vld [vmem:[#allocation10 + $0x180] sm:$0xff] }
0x2704   :  { %v4376_v26 = vld [vmem:[#allocation10 + $0x1a0] sm:$0xff] }
0x2705   :  { %4161 = vperm.xlu1 %7218, %v4157_v34   ;;  %v4337_v34 = vld [vmem:[#allocation10 + $0x68] sm:$0xff]  ;;  %6613 = vmatpush1.bf16.msra.mxu1 %v6612_v49  ;;  %v4360_v49 = vld [vmem:[#allocation10 + $0x120] sm:$0xff] }
0x2706   :  { %v7282_v12 = vpop.eup %7281 }
0x2707   :  { %v4158_v55 = vmul.f32 %v7282_v12, %v4136_v29  ;;  %v4339_v12 = vld [vmem:[#allocation10 + $0x78] sm:$0xff] }
0x2709   :  { %7220 = vset.pattern.permute.xlu1 %v10614_v33  ;;  %4166 = vperm.xlu0 %7219, %v4158_v55  }
0x270a   :  { %4173 = vperm.xlu1 %7220, %v4135_v22   ;;  %v4333_v22 = vld [vmem:[#allocation10 + $0x48] sm:$0xff] }
0x270b   :  { %v6582_v55 = vpack.c.bf16 %v4337_v34, %v4333_v22  ;;  %v4356_v22 = vld [vmem:[#allocation10 + $0x100] sm:$0xff]  ;;  %v4358_v34 = vld [vmem:[#allocation10 + $0x110] sm:$0xff] }
0x270d   :  { %7221 = vset.pattern.permute.xlu0 %v10614_v33 }
0x270e   :  { %4178 = vperm.xlu1 %7220, %v4136_v29   ;;  %v4335_v29 = vld [vmem:[#allocation10 + $0x58] sm:$0xff] }
0x270f   :  { %v6614_v0 = vpack.c.bf16 %v4339_v12, %v4335_v29  ;;  %v6626_v29 = vpack.c.bf16 %v4363_v44, %v4359_v21  ;;  %v4362_v12 = vld [vmem:[#allocation10 + $0x130] sm:$0xff]  ;;  %v6604_v44 = vpack.c.bf16 %v4376_v26, %v4372_v8 }
0x2711   :  { %6615 = vmatprep.subr.bf16.mxu1 %v6614_v0  ;;  %v4369_v0 = vld [vmem:[#allocation10 + $0x168] sm:$0xff] }
0x2712   :  { %7222 = vset.pattern.permute.xlu1 %v10613_v3 }
0x2784   :  { %v4162_v14 = vpop.permute.xlu1 %4161 }
0x2785   :  { %v4169_v15 = vmul.f32 %v4162_v14, %v4143_v7  ;;  %v4332_v14 = vld [vmem:[#allocation10 + $0x40] sm:$0xff] }
0x2788   :  { %v4167_v10 = vpop.permute.xlu0 %4166 }
0x2789   :  { %v4174_v46 = vpop.permute.xlu1 %4173  ;;  %v4170_v25 = vmul.f32 %v4167_v10, %v4144_v11  ;;  %v6578_v11 = vpack.c.bf16 %v4329_v42, %v4325_v60  ;;  %v4334_v10 = vld [vmem:[#allocation10 + $0x50] sm:$0xff]  ;;  %v4352_v60 = vld [vmem:[#allocation10 + $0xe0] sm:$0xff] }
0x278a   :  { %v4181_v20 = vadd.f32 %v4174_v46, %v4169_v15  ;;  %v4336_v15 = vld [vmem:[#allocation10 + $0x60] sm:$0xff] }
0x278b   :  { %v6584_v46 = vpack.c.bf16 %v4336_v15, %v4332_v14  ;;  %v4367_v14 = vld [vmem:[#allocation10 + $0x158] sm:$0xff] }
0x278c   :  { %v4183_v27 = vmul.f32 0.01, %v4181_v20  ;;  %v4371_v15 = vld [vmem:[#allocation10 + $0x178] sm:$0xff] }
0x278d   :  { %v4179_v1 = vpop.permute.xlu1 %4178 }
0x278e   :  { %v4182_v40 = vadd.f32 %v4179_v1, %v4170_v25  ;;  %v4185_v5 = vmax.f32 %v4181_v20, %v4183_v27  ;;  %v4338_v20 = vld [vmem:[#allocation10 + $0x70] sm:$0xff]  ;;  %v4341_v25 = vld [vmem:[#allocation10 + $0x88] sm:$0xff] }
0x278f   :  { %v4345_v27 = vld [vmem:[#allocation10 + $0xa8] sm:$0xff]  ;;  %v6616_v1 = vpack.c.bf16 %v4338_v20, %v4334_v10  ;;  %v6596_v10 = vpack.c.bf16 %v4360_v49, %v4356_v22  ;;  %v4383_v49 = vld [vmem:[#allocation10 + $0x1d8] sm:$0xff] }
0x2790   :  { %v4184_v53 = vmul.f32 0.01, %v4182_v40  ;;  %v4187_v35 = vadd.f32 %v4185_v5, %v9129_v47  ;;  %v4343_v5 = vld [vmem:[#allocation10 + $0x98] sm:$0xff]  ;;  %v4385_v22 = vld [vmem:[#allocation10 + $0x1e8] sm:$0xff] }
0x2791   :  { %6617 = vmatpush1.bf16.msra.mxu1 %v6616_v1  ;;  %v6630_v1 = vpack.c.bf16 %v4371_v15, %v4367_v14  ;;  %v4382_v15 = vld [vmem:[#allocation10 + $0x1d0] sm:$0xff] }
0x2792   :  { %v4186_v16 = vmax.f32 %v4182_v40, %v4184_v53  ;;  %v6586_v40 = vpack.c.bf16 %v4345_v27, %v4341_v25  ;;  %v4347_v53 = vld [vmem:[#allocation10 + $0xb8] sm:$0xff]  ;;  %v4364_v25 = vld [vmem:[#allocation10 + $0x140] sm:$0xff] }
0x2793   :  { %v4368_v27 = vld [vmem:[#allocation10 + $0x160] sm:$0xff] }
0x2794   :  { %v4188_v63 = vadd.f32 %v4186_v16, %v9135_v17  ;;  %v4340_v16 = vld [vmem:[#allocation10 + $0x80] sm:$0xff] }
0x2796   :  { %v6574_v52 = vpack.c.bf16 %v4188_v63, %v4187_v35  ;;  %v6618_v35 = vpack.c.bf16 %v4347_v53, %v4343_v5  ;;  %v4344_v63 = vld [vmem:[#allocation10 + $0xa0] sm:$0xff]  ;;  %v4370_v5 = vld [vmem:[#allocation10 + $0x170] sm:$0xff]  ;;  %v6600_v53 = vpack.c.bf16 %v4368_v27, %v4364_v25 }
0x2798   :  { %6575 = vmatprep.subr.bf16.mxu0 %v6574_v52  ;;  %6619 = vmatprep.subr.bf16.mxu1 %v6618_v35 }
0x2799   :  { %6577 = vmatpush3.bf16.msra.mxu0 %v6574_v52  ;;  %v4342_v52 = vld [vmem:[#allocation10 + $0x90] sm:$0xff] }
0x279a   :  { %6579 = vmatprep.subr.bf16.mxu0 %v6578_v11  ;;  %v4354_v11 = vld [vmem:[#allocation10 + $0xf0] sm:$0xff] }
0x279b   :  { %v6624_v57 = vpack.c.bf16 %v4354_v11, %v4350_v50  ;;  %v4379_v11 = vld [vmem:[#allocation10 + $0x1b8] sm:$0xff] }
0x279c   :  { %6182 = vmatmul.mubr.msk.f32.vlgmr.msra.gmra.mrb[44].mxu0 %vm1483_vm12, %v4190_v32  ;;  %v4346_v32 = vld [vmem:[#allocation10 + $0xb0] sm:$0xff] }
0x279d   :  { %4452 = vmatprep.mubr.f32.mxu0 %v10618_v54  ;;  %6581 = vmatpush1.bf16.msra.mxu0 %v6580_v6 }
0x279e   :  { %6583 = vmatprep.subr.bf16.mxu0 %v6582_v55  ;;  %v4365_v55 = vld [vmem:[#allocation10 + $0x148] sm:$0xff] }
0x279f   :  { %v6598_v20 = vpack.c.bf16 %v4369_v0, %v4365_v55  ;;  %v4384_v55 = vld [vmem:[#allocation10 + $0x1e0] sm:$0xff] }
0x27a1   :  { %6585 = vmatpush1.bf16.msra.mxu0 %v6584_v46  ;;  %v6628_v46 = vpack.c.bf16 %v4362_v12, %v4358_v34  ;;  %v4380_v12 = vld [vmem:[#allocation10 + $0x1c0] sm:$0xff] }
0x27a2   :  { %6587 = vmatprep.subr.bf16.mxu0 %v6586_v40  ;;  %v4366_v40 = vld [vmem:[#allocation10 + $0x150] sm:$0xff]  ;;  %v6608_v14 = vpack.c.bf16 %v4384_v55, %v4380_v12 }
0x286f   :  { %v6183_v23 = vpop.f32.mrb[44].mxu0 }
0x2870   :  { %4276 = vadd.xlane.f32.xlu0 %v6183_v23  ;;  %v4263_v31 = vpop.f32.mrb[45].mxu0 }
0x2871   :  { %4274 = vadd.xlane.f32.xlu1 %v4263_v31 }
0x2886   :  { %4310 = vperm.xlu0 %7221, %v9211_v56  }
0x288a   :  { %4552 = vrot.lane.b32.xlu0 %v8193_v28, %s7451_s28 }
0x288b   :  { %7224 = vset.pattern.permute.xlu0 %v10613_v3 }
0x288e   :  { %4594 = vrot.lane.b32.xlu0 %v8190_v48, %s7450_s5 }
0x2892   :  { %4600 = vrot.lane.b32.xlu0 %v8193_v28, %s7450_s5 }
0x2896   :  { %4612 = vrot.lane.b32.xlu0 %v8199_v2, %s7450_s5 }
0x289a   :  { %4606 = vrot.lane.b32.xlu0 %v8196_v58, %s7450_s5 }
0x289e   :  { %4648 = vrot.lane.b32.xlu0 %v8193_v28, %s7452_s0 }
0x28a2   :  { %4690 = vrot.lane.b32.xlu0 %v8190_v48, %s7449_s13 }
0x28a6   :  { %4696 = vrot.lane.b32.xlu0 %v8193_v28, %s7449_s13 }
0x28aa   :  { %4708 = vrot.lane.b32.xlu0 %v8199_v2, %s7449_s13 }
0x28ae   :  { %4702 = vrot.lane.b32.xlu0 %v8196_v58, %s7449_s13 }
0x28b2   :  { %4744 = vrot.lane.b32.xlu0 %v8193_v28, %s7453_s15 }
0x28b6   :  { %4750 = vrot.lane.b32.xlu0 %v8196_v58, %s7453_s15 }
0x28ba   :  { %4738 = vrot.lane.b32.xlu0 %v8190_v48, %s7453_s15 }
0x28be   :  { %4756 = vrot.lane.b32.xlu0 %v8199_v2, %s7453_s15 }
0x28c2   :  { %4798 = vrot.lane.b32.xlu0 %v8196_v58, %s7455_s3 }
0x28c6   :  { %4840 = vrot.lane.b32.xlu0 %v8193_v28, %s7454_s17 }
0x28fd   :  { %v4277_v3 = vpop.xlane.xlu0 %4276 }
0x28fe   :  { %v4275_v47 = vpop.xlane.xlu1 %4274  ;;  %v4279_v17 = vmul.f32 0.0078125, %v4277_v3  ;;  %v4353_v3 = vld [vmem:[#allocation10 + $0xe8] sm:$0xff] }
0x28ff   :  { %v4278_v45 = vmul.f32 0.0078125, %v4275_v47  ;;  %v4351_v47 = vld [vmem:[#allocation10 + $0xd8] sm:$0xff] }
0x2900   :  { %v9249_v41 = vsub.f32 %v6183_v23, %v4279_v17  ;;  %v6588_v23 = vpack.c.bf16 %v4344_v63, %v4340_v16  ;;  %v6620_v17 = vpack.c.bf16 %v4346_v32, %v4342_v52  ;;  %v6632_v16 = vpack.c.bf16 %v4370_v5, %v4366_v40 }
0x2901   :  { %v9247_v13 = vsub.f32 %v4263_v31, %v4278_v45  ;;  %v4349_v31 = vld [vmem:[#allocation10 + $0xc8] sm:$0xff] }
0x2902   :  { %v4283_v7 = vmul.f32 %v9249_v41, %v9249_v41  ;;  %v6590_v45 = vpack.c.bf16 %v4353_v3, %v4349_v31  ;;  %6589 = vmatpush1.bf16.msra.mxu0 %v6588_v23  ;;  %6621 = vmatpush1.bf16.msra.mxu1 %v6620_v17  ;;  %v4273_v17 = vld [vmem:[%s10475_s2 + $0xd8] sm:$0xff] }
0x2903   :  { %v4282_v4 = vmul.f32 %v9247_v13, %v9247_v13 }
0x2904   :  { %6591 = vmatprep.subr.bf16.mxu0 %v6590_v45 }
0x2905   :  { %4284 = vadd.xlane.f32.xlu1 %v4282_v4  ;;  %v4355_v4 = vld [vmem:[#allocation10 + $0xf8] sm:$0xff]  ;;  %v4311_v25 = vpop.permute.xlu0 %4310 }
0x2906   :  { %v6622_v42 = vpack.c.bf16 %v4355_v4, %v4351_v47 }
0x2908   :  { %6623 = vmatprep.subr.bf16.mxu1 %v6622_v42  ;;  %v4375_v42 = vld [vmem:[#allocation10 + $0x198] sm:$0xff] }
0x2909   :  { %4286 = vadd.xlane.f32.xlu1 %v4283_v7  ;;  %v4348_v7 = vld [vmem:[#allocation10 + $0xc0] sm:$0xff]  ;;  %6625 = vmatpush1.bf16.msra.mxu1 %v6624_v57  ;;  %v6634_v21 = vpack.c.bf16 %v4379_v11, %v4375_v42  ;;  %v4378_v57 = vld [vmem:[#allocation10 + $0x1b0] sm:$0xff]  ;;  %v9326_v42 = vpop.permute.xlu0 %4552 }
0x290a   :  { %v6592_v6 = vpack.c.bf16 %v4352_v60, %v4348_v7  ;;  %6627 = vmatprep.subr.bf16.mxu1 %v6626_v29  ;;  %v4373_v7 = vld [vmem:[#allocation10 + $0x188] sm:$0xff]  ;;  %v4387_v29 = vld [vmem:[#allocation10 + $0x1f8] sm:$0xff] }
0x290b   :  { %v4377_v60 = vld [vmem:[#allocation10 + $0x1a8] sm:$0xff]  ;;  %v6638_v0 = vpack.c.bf16 %v4387_v29, %v4383_v49 }
0x290c   :  { %6593 = vmatpush1.bf16.msra.mxu0 %v6592_v6  ;;  %v6602_v50 = vpack.c.bf16 %v4377_v60, %v4373_v7  ;;  %v4374_v6 = vld [vmem:[#allocation10 + $0x190] sm:$0xff] }
0x290d   :  { %6595 = vmatprep.subr.bf16.mxu0 %v6594_v59  ;;  %6629 = vmatpush1.bf16.msra.mxu1 %v6628_v46  ;;  %v4381_v59 = vld [vmem:[#allocation10 + $0x1c8] sm:$0xff] }
0x290e   :  { %6631 = vmatprep.subr.bf16.mxu1 %v6630_v1  ;;  %v6606_v34 = vpack.c.bf16 %v4385_v22, %v4381_v59 }
0x2910   :  { %6597 = vmatpush1.bf16.msra.mxu0 %v6596_v10  ;;  %v4386_v10 = vld [vmem:[#allocation10 + $0x1f0] sm:$0xff] }
0x2911   :  { %6599 = vmatprep.subr.bf16.mxu0 %v6598_v20  ;;  %6633 = vmatpush1.bf16.msra.mxu1 %v6632_v16  ;;  %v6640_v46 = vpack.c.bf16 %v4386_v10, %v4382_v15 }
0x2912   :  { %6635 = vmatprep.subr.bf16.mxu1 %v6634_v21 }
0x2914   :  { %6601 = vmatpush1.bf16.msra.mxu0 %v6600_v53 }
0x2915   :  { %6603 = vmatprep.subr.bf16.mxu0 %v6602_v50  ;;  %v9336_v50 = vpop.permute.xlu0 %4594 }
0x2918   :  { %6605 = vmatpush1.bf16.msra.mxu0 %v6604_v44 }
0x2919   :  { %6607 = vmatprep.subr.bf16.mxu0 %v6606_v34  ;;  %v9342_v11 = vpop.permute.xlu0 %4600 }
0x291c   :  { %6609 = vmatpush1.bf16.msra.mxu0 %v6608_v14 }
0x291d   :  { %v9352_v8 = vpop.permute.xlu0 %4612 }
0x2921   :  { %v9358_v26 = vpop.permute.xlu0 %4606 }
0x2925   :  { %v9368_v21 = vpop.permute.xlu0 %4648 }
0x2929   :  { %v9374_v44 = vpop.permute.xlu0 %4690 }
0x2992   :  { %v4285_v35 = vpop.xlane.xlu1 %4284 }
0x2993   :  { %v4288_v63 = vmul.f32 0.0078125, %v4285_v35 }
0x2995   :  { %v4290_v52 = vadd.f32 1e-05, %v4288_v63 }
0x2996   :  { %v4287_v32 = vpop.xlane.xlu1 %4286 }
0x2997   :  { %7283 = vrsqrt.f32 %v4290_v52  ;;  %v4289_v23 = vmul.f32 0.0078125, %v4287_v32 }
0x2999   :  { %v4291_v31 = vadd.f32 1e-05, %v4289_v23 }
0x299b   :  { %7285 = vrsqrt.f32 %v4291_v31 }
0x29a1   :  { %v7284_v3 = vpop.eup %7283 }
0x29a2   :  { %v4294_v47 = vmul.f32 %v7284_v3, %v9211_v56  ;;  %v6636_v56 = vpack.c.bf16 %v4378_v57, %v4374_v6  ;;  %v9384_v6 = vpop.permute.xlu0 %4696 }
0x29a4   :  { %4298 = vperm.xlu1 %7222, %v4294_v47   ;;  %6637 = vmatpush1.bf16.msra.mxu1 %v6636_v56 }
0x29a5   :  { %v7286_v45 = vpop.eup %7285  ;;  %6639 = vmatprep.subr.bf16.mxu1 %v6638_v0 }
0x29a6   :  { %v4295_v4 = vmul.f32 %v7286_v45, %v4273_v17  ;;  %v9392_v56 = vpop.permute.xlu0 %4708 }
0x29a7   :  { %10627 = vst [vmem:[#allocation50_spill] sm:$0xff] %v9392_v56 }
0x29a8   :  { %4303 = vperm.xlu1 %7222, %v4295_v4   ;;  %6641 = vmatpush1.bf16.msra.mxu1 %v6640_v46 }
0x29aa   :  { %v9404_v22 = vpop.permute.xlu0 %4702 }
0x29ab   :  { %10628 = vst [vmem:[#allocation51_spill] sm:$0xff] %v9404_v22 }
0x29ac   :  { %7223 = vset.pattern.permute.xlu1 %v10614_v33 }
0x29ad   :  { %4315 = vperm.xlu1 %7223, %v4273_v17  }
0x29ae   :  { %v9412_v34 = vpop.permute.xlu0 %4744 }
0x29af   :  { %10629 = vst [vmem:[#allocation52_spill] sm:$0xff] %v9412_v34 }
0x29b1   :  { %4546 = vrot.lane.b32.xlu1 %v8190_v48, %s7451_s28 }
0x29b2   :  { %v9424_v12 = vpop.permute.xlu0 %4750 }
0x29b3   :  { %10630 = vst [vmem:[#allocation53_spill] sm:$0xff] %v9424_v12 }
0x29b5   :  { %4564 = vrot.lane.b32.xlu1 %v8199_v2, %s7451_s28 }
0x29b6   :  { %v9432_v0 = vpop.permute.xlu0 %4738 }
0x29b7   :  { %10631 = vst [vmem:[#allocation54_spill] sm:$0xff] %v9432_v0 }
0x29b9   :  { %4558 = vrot.lane.b32.xlu1 %v8196_v58, %s7451_s28 }
0x29ba   :  { %v9444_v15 = vpop.permute.xlu0 %4756 }
0x29bb   :  { %10632 = vst [vmem:[#allocation55_spill] sm:$0xff] %v9444_v15 }
0x29bd   :  { %4642 = vrot.lane.b32.xlu1 %v8190_v48, %s7452_s0 }
0x29be   :  { %v9452_v46 = vpop.permute.xlu0 %4798 }
0x29bf   :  { %10634 = vst [vmem:[#allocation57_spill] sm:$0xff] %v9452_v46 }
0x29c1   :  { %4660 = vrot.lane.b32.xlu1 %v8199_v2, %s7452_s0 }
0x29c5   :  { %4654 = vrot.lane.b32.xlu1 %v8196_v58, %s7452_s0 }
0x29c9   :  { %4792 = vrot.lane.b32.xlu1 %v8193_v28, %s7455_s3 }
0x29cd   :  { %4786 = vrot.lane.b32.xlu1 %v8190_v48, %s7455_s3 }
0x29d1   :  { %4804 = vrot.lane.b32.xlu1 %v8199_v2, %s7455_s3 }
0x2a23   :  { %v4299_v33 = vpop.permute.xlu1 %4298 }
0x2a24   :  { %v4306_v20 = vmul.f32 %v4299_v33, %v9247_v13 }
0x2a26   :  { %v4318_v27 = vadd.f32 %v4311_v25, %v4306_v20  ;;  %v9464_v20 = vpop.permute.xlu0 %4840 }
0x2a27   :  { %v4304_v1 = vpop.permute.xlu1 %4303  ;;  %10636 = vst [vmem:[#allocation59_spill] sm:$0xff] %v9464_v20 }
0x2a28   :  { %v4320_v40 = vmul.f32 0.01, %v4318_v27  ;;  %v4307_v53 = vmul.f32 %v4304_v1, %v9249_v41 }
0x2a2a   :  { %v4322_v5 = vmax.f32 %v4318_v27, %v4320_v40 }
0x2a2c   :  { %4453 = vmatmul.mubr.f32.vlgmr.msra.gmra.mrb[46].mxu0 %v4322_v5  ;;  %4530 = vmatmul.mubr.f32.vlgmr.msra.gmra.mrb[28].mxu1 %v4322_v5  ;;  %v4316_v16 = vpop.permute.xlu1 %4315 }
0x2a2d   :  { %v4319_v35 = vadd.f32 %v4316_v16, %v4307_v53  ;;  %4458 = vmatprep.mubr.f32.mxu0 %v10618_v54  ;;  %4535 = vmatprep.mubr.f32.mxu1 %v10618_v54 }
0x2a2f   :  { %v4321_v63 = vmul.f32 0.01, %v4319_v35 }
0x2a30   :  { %v9386_v57 = vpop.permute.xlu1 %4546 }
0x2a31   :  { %v4323_v52 = vmax.f32 %v4319_v35, %v4321_v63 }
0x2a33   :  { %4459 = vmatmul.mubr.f32.gmra.mrb[48].mxu0 %v4323_v52  ;;  %4536 = vmatmul.mubr.f32.gmra.mrb[30].mxu1 %v4323_v52 }
0x2a34   :  { %v9394_v59 = vpop.permute.xlu1 %4564 }
0x2a38   :  { %v9406_v49 = vpop.permute.xlu1 %4558 }
0x2a3c   :  { %v9414_v29 = vpop.permute.xlu1 %4642 }
0x2a40   :  { %v9426_v55 = vpop.permute.xlu1 %4660 }
0x2a44   :  { %v9434_v14 = vpop.permute.xlu1 %4654 }
0x2a48   :  { %v9446_v10 = vpop.permute.xlu1 %4792 }
0x2a49   :  { %10633 = vst [vmem:[#allocation56_spill] sm:$0xff] %v9446_v10 }
0x2a4c   :  { %v9454_v33 = vpop.permute.xlu1 %4786 }
0x2a4d   :  { %10635 = vst [vmem:[#allocation58_spill] sm:$0xff] %v9454_v33 }
0x2a50   :  { %v9466_v25 = vpop.permute.xlu1 %4804 }
0x2a51   :  { %10637 = vst [vmem:[#allocation60_spill] sm:$0xff] %v9466_v25 }
0x2aff   :  { %v9282_v13 = vpop.f32.mrb[46].mxu0  ;;  %v9284_v32 = vpop.f32.mrb[28].mxu1 }
0x2b00   :  { %10619 = vst [vmem:[#allocation42_spill] sm:$0xff] %v9282_v13  ;;  %10620 = vst [vmem:[#allocation43_spill] sm:$0xff] %v9284_v32  ;;  %4542 = vrot.lane.b32.xlu1 %v9282_v13, %s7451_s28  ;;  %v9288_v41 = vpop.f32.mrb[47].mxu0  ;;  %4602 = vrot.lane.b32.xlu0 %v9284_v32, %s7450_s5  ;;  %v9292_v23 = vpop.f32.mrb[29].mxu1 }
0x2b01   :  { %10621 = vst [vmem:[#allocation44_spill] sm:$0xff] %v9288_v41  ;;  %10622 = vst [vmem:[#allocation45_spill] sm:$0xff] %v9292_v23 }
0x2b04   :  { %4698 = vrot.lane.b32.xlu0 %v9284_v32, %s7449_s13  ;;  %4554 = vrot.lane.b32.xlu1 %v9284_v32, %s7451_s28 }
0x2b06   :  { %v9298_v31 = vpop.f32.mrb[48].mxu0  ;;  %v9300_v3 = vpop.f32.mrb[30].mxu1 }
0x2b07   :  { %10623 = vst [vmem:[#allocation46_spill] sm:$0xff] %v9298_v31  ;;  %10624 = vst [vmem:[#allocation47_spill] sm:$0xff] %v9300_v3  ;;  %v9302_v47 = vpop.f32.mrb[49].mxu0  ;;  %v9304_v17 = vpop.f32.mrb[31].mxu1 }
0x2b08   :  { %10625 = vst [vmem:[#allocation48_spill] sm:$0xff] %v9302_v47  ;;  %10626 = vst [vmem:[#allocation49_spill] sm:$0xff] %v9304_v17  ;;  %4746 = vrot.lane.b32.xlu0 %v9284_v32, %s7453_s15  ;;  %4590 = vrot.lane.b32.xlu1 %v9282_v13, %s7450_s5 }
0x2b0c   :  { %4842 = vrot.lane.b32.xlu0 %v9284_v32, %s7454_s17  ;;  %4638 = vrot.lane.b32.xlu1 %v9282_v13, %s7452_s0 }
0x2b10   :  { %4830 = vrot.lane.b32.xlu0 %v9282_v13, %s7454_s17  ;;  %4650 = vrot.lane.b32.xlu1 %v9284_v32, %s7452_s0 }
0x2b14   :  { %4596 = vrot.lane.b32.xlu0 %v9288_v41, %s7450_s5  ;;  %4686 = vrot.lane.b32.xlu1 %v9282_v13, %s7449_s13 }
0x2b18   :  { %4734 = vrot.lane.b32.xlu1 %v9282_v13, %s7453_s15  ;;  %4608 = vrot.lane.b32.xlu0 %v9292_v23, %s7450_s5 }
0x2b1c   :  { %4794 = vrot.lane.b32.xlu1 %v9284_v32, %s7455_s3  ;;  %4692 = vrot.lane.b32.xlu0 %v9288_v41, %s7449_s13 }
0x2b20   :  { %4782 = vrot.lane.b32.xlu1 %v9282_v13, %s7455_s3  ;;  %4704 = vrot.lane.b32.xlu0 %v9292_v23, %s7449_s13 }
0x2b24   :  { %4548 = vrot.lane.b32.xlu1 %v9288_v41, %s7451_s28  ;;  %4752 = vrot.lane.b32.xlu0 %v9292_v23, %s7453_s15 }
0x2b28   :  { %4848 = vrot.lane.b32.xlu0 %v9292_v23, %s7454_s17  ;;  %4560 = vrot.lane.b32.xlu1 %v9292_v23, %s7451_s28 }
0x2b2c   :  { %4644 = vrot.lane.b32.xlu1 %v9288_v41, %s7452_s0  ;;  %4556 = vrot.lane.b32.xlu0 %v9300_v3, %s7451_s28 }
0x2b30   :  { %4656 = vrot.lane.b32.xlu1 %v9292_v23, %s7452_s0  ;;  %4640 = vrot.lane.b32.xlu0 %v9298_v31, %s7452_s0 }
0x2b34   :  { %4740 = vrot.lane.b32.xlu1 %v9288_v41, %s7453_s15  ;;  %4652 = vrot.lane.b32.xlu0 %v9300_v3, %s7452_s0 }
0x2b38   :  { %4788 = vrot.lane.b32.xlu1 %v9288_v41, %s7455_s3  ;;  %4796 = vrot.lane.b32.xlu0 %v9300_v3, %s7455_s3 }
0x2b3c   :  { %4800 = vrot.lane.b32.xlu1 %v9292_v23, %s7455_s3  ;;  %4784 = vrot.lane.b32.xlu0 %v9298_v31, %s7455_s3 }
0x2b40   :  { %4836 = vrot.lane.b32.xlu1 %v9288_v41, %s7454_s17  ;;  %4646 = vrot.lane.b32.xlu0 %v9302_v47, %s7452_s0 }
0x2b44   :  { %4544 = vrot.lane.b32.xlu1 %v9298_v31, %s7451_s28  ;;  %4658 = vrot.lane.b32.xlu0 %v9304_v17, %s7452_s0 }
0x2b48   :  { %4592 = vrot.lane.b32.xlu1 %v9298_v31, %s7450_s5  ;;  %4846 = vrot.lane.b32.xlu0 %v8196_v58, %s7454_s17 }
0x2b4c   :  { %4604 = vrot.lane.b32.xlu1 %v9300_v3, %s7450_s5  ;;  %4834 = vrot.lane.b32.xlu0 %v8190_v48, %s7454_s17 }
0x2b50   :  { %4688 = vrot.lane.b32.xlu1 %v9298_v31, %s7449_s13  ;;  %4852 = vrot.lane.b32.xlu0 %v8199_v2, %s7454_s17 }
0x2b54   :  { %4700 = vrot.lane.b32.xlu1 %v9300_v3, %s7449_s13  ;;  %4892 = vrot.lane.b32.xlu0 %v9300_v3, %s7457_s4 }
0x2b58   :  { %4748 = vrot.lane.b32.xlu1 %v9300_v3, %s7453_s15  ;;  %4790 = vrot.lane.b32.xlu0 %v9302_v47, %s7455_s3 }
0x2b5c   :  { %4736 = vrot.lane.b32.xlu1 %v9298_v31, %s7453_s15  ;;  %4802 = vrot.lane.b32.xlu0 %v9304_v17, %s7455_s3 }
0x2b60   :  { %4844 = vrot.lane.b32.xlu1 %v9300_v3, %s7454_s17  ;;  %4880 = vrot.lane.b32.xlu0 %v9298_v31, %s7457_s4 }
0x2b64   :  { %4550 = vrot.lane.b32.xlu1 %v9302_v47, %s7451_s28  ;;  %4886 = vrot.lane.b32.xlu0 %v9302_v47, %s7457_s4 }
0x2b68   :  { %4898 = vrot.lane.b32.xlu0 %v9304_v17, %s7457_s4  ;;  %4562 = vrot.lane.b32.xlu1 %v9304_v17, %s7451_s28 }
0x2b6c   :  { %4894 = vrot.lane.b32.xlu0 %v8196_v58, %s7457_s4  ;;  %4598 = vrot.lane.b32.xlu1 %v9302_v47, %s7450_s5 }
0x2b70   :  { %4900 = vrot.lane.b32.xlu0 %v8199_v2, %s7457_s4  ;;  %4610 = vrot.lane.b32.xlu1 %v9304_v17, %s7450_s5  ;;  %v4927_v2 = vld [vmem:[#allocation2 + $0x3c8] sm:$0xff] }
0x2b71   :  { %5806 = vmatprep.mubr.msk.f32.mxu0 %vm4928_vm4, %v4927_v2  ;;  %5807 = vmatprep.mubr.msk.f32.mxu1 %vm4928_vm4, %v4927_v2 }
0x2b72   :  { %v9472_v27 = vpop.permute.xlu1 %4542  ;;  %v9474_v1 = vpop.permute.xlu0 %4602 }
0x2b74   :  { %4832 = vrot.lane.b32.xlu1 %v9298_v31, %s7454_s17 }
0x2b76   :  { %v9478_v40 = vpop.permute.xlu0 %4698  ;;  %v9480_v5 = vpop.permute.xlu1 %4554 }
0x2b78   :  { %4884 = vrot.lane.b32.xlu1 %v9288_v41, %s7457_s4 }
0x2b7a   :  { %v9484_v53 = vpop.permute.xlu0 %4746  ;;  %v9486_v16 = vpop.permute.xlu1 %4590 }
0x2b7b   :  { %10638 = vst [vmem:[#allocation61_spill] sm:$0xff] %v9484_v53 }
0x2b7c   :  { %4694 = vrot.lane.b32.xlu1 %v9302_v47, %s7449_s13 }
0x2b7e   :  { %v9490_v35 = vpop.permute.xlu1 %4638  ;;  %v9492_v63 = vpop.permute.xlu0 %4842 }
0x2b7f   :  { %10639 = vst [vmem:[#allocation62_spill] sm:$0xff] %v9492_v63 }
0x2b80   :  { %4706 = vrot.lane.b32.xlu1 %v9304_v17, %s7449_s13 }
0x2b82   :  { %v9496_v52 = vpop.permute.xlu1 %4650  ;;  %v9500_v4 = vpop.permute.xlu0 %4830 }
0x2b83   :  { %10640 = vst [vmem:[#allocation63_spill] sm:$0xff] %v9500_v4 }
0x2b84   :  { %4890 = vrot.lane.b32.xlu1 %v9284_v32, %s7457_s4 }
0x2b86   :  { %v9502_v45 = vpop.permute.xlu1 %4686  ;;  %v4597_v7 = vpop.permute.xlu0 %4596 }
0x2b88   :  { %4878 = vrot.lane.b32.xlu1 %v9282_v13, %s7457_s4 }
0x2b8a   :  { %v9506_v60 = vpop.permute.xlu1 %4734  ;;  %v4609_v20 = vpop.permute.xlu0 %4608 }
0x2b8b   :  { %10641 = vst [vmem:[#allocation64_spill] sm:$0xff] %v9506_v60  ;;  %v4574_v60 = vsel %vm135_vm2, %v9386_v57, %v9326_v42  ;;  %v4614_v12 = vsel %vm174_vm0, %v9474_v1, %v4609_v20 }
0x2b8c   :  { %4742 = vrot.lane.b32.xlu1 %v9302_v47, %s7453_s15 }
0x2b8e   :  { %v9510_v54 = vpop.permute.xlu1 %4794  ;;  %v9520_v3 = vpop.permute.xlu0 %4692 }
0x2b8f   :  { %10642 = vst [vmem:[#allocation65_spill] sm:$0xff] %v9510_v54 }
0x2b90   :  { %4754 = vrot.lane.b32.xlu1 %v9304_v17, %s7453_s15 }
0x2b92   :  { %v9514_v58 = vpop.permute.xlu1 %4782  ;;  %v9526_v54 = vpop.permute.xlu0 %4704 }
0x2b93   :  { %10643 = vst [vmem:[#allocation66_spill] sm:$0xff] %v9514_v58 }
0x2b94   :  { %4896 = vrot.lane.b32.xlu1 %v9292_v23, %s7457_s4 }
0x2b96   :  { %v9518_v32 = vpop.permute.xlu1 %4548  ;;  %v9534_v31 = vpop.permute.xlu0 %4752 }
0x2b97   :  { %10644 = vst [vmem:[#allocation67_spill] sm:$0xff] %v9534_v31  ;;  %v4622_v31 = vsel %vm174_vm0, %v9336_v50, %v9342_v11 }
0x2b98   :  { %4838 = vrot.lane.b32.xlu1 %v9302_v47, %s7454_s17 }
0x2b9a   :  { %v4561_v4 = vpop.permute.xlu1 %4560  ;;  %v9540_v23 = vpop.permute.xlu0 %4848 }
0x2b9b   :  { %10646 = vst [vmem:[#allocation69_spill] sm:$0xff] %v9540_v23 }
0x2b9c   :  { %4850 = vrot.lane.b32.xlu1 %v9304_v17, %s7454_s17 }
0x2b9e   :  { %v9528_v58 = vpop.permute.xlu1 %4644  ;;  %v4557_v2 = vpop.permute.xlu0 %4556 }
0x2ba0   :  { %4888 = vrot.lane.b32.xlu1 %v8193_v28, %s7457_s4 }
0x2ba2   :  { %v9532_v13 = vpop.permute.xlu1 %4656  ;;  %v9548_v47 = vpop.permute.xlu0 %4640 }
0x2ba4   :  { %4882 = vrot.lane.b32.xlu1 %v8190_v48, %s7457_s4 }
0x2ba6   :  { %v9538_v63 = vpop.permute.xlu1 %4740  ;;  %v9552_v10 = vpop.permute.xlu0 %4652 }
0x2ba7   :  { %10645 = vst [vmem:[#allocation68_spill] sm:$0xff] %v9538_v63 }
0x2baa   :  { %v9542_v17 = vpop.permute.xlu1 %4788  ;;  %v9556_v48 = vpop.permute.xlu0 %4796 }
0x2bab   :  { %10647 = vst [vmem:[#allocation70_spill] sm:$0xff] %v9542_v17  ;;  %10650 = vst [vmem:[#allocation73_spill] sm:$0xff] %v9556_v48  ;;  %v4625_v48 = vsel %vm174_vm0, %v9352_v8, %v9336_v50  ;;  %v4577_v50 = vsel %vm135_vm2, %v9394_v59, %v9386_v57 }
0x2bac   :  { %v9624_v34 = vmul.f32 %v4577_v50, %v7770_v43 }
0x2bae   :  { %v9544_v25 = vpop.permute.xlu1 %4800  ;;  %v9562_v17 = vpop.permute.xlu0 %4784 }
0x2baf   :  { %10648 = vst [vmem:[#allocation71_spill] sm:$0xff] %v9544_v25  ;;  %10653 = vst [vmem:[#allocation76_spill] sm:$0xff] %v9562_v17  ;;  %v4616_v17 = vsel %vm174_vm0, %v9358_v26, %v9352_v8  ;;  %v9599_v8 = vmul.f32 %v4622_v31, %v7724_v19  ;;  %v4572_v31 = vsel %vm135_vm2, %v9472_v27, %v9518_v32 }
0x2bb0   :  { %v9616_v53 = vmul.f32 %v4616_v17, %v7794_v62  ;;  %v4579_v22 = vmul.f32 %v4572_v31, %v7737_v24 }
0x2bb2   :  { %v9546_v41 = vpop.permute.xlu1 %4836 }
0x2bb3   :  { %10649 = vst [vmem:[#allocation72_spill] sm:$0xff] %v9546_v41  ;;  %v9566_v41 = vpop.permute.xlu0 %4646 }
0x2bb6   :  { %v4545_v28 = vpop.permute.xlu1 %4544 }
0x2bb7   :  { %v9596_v63 = vpop.permute.xlu0 %4658 }
0x2bba   :  { %v9550_v33 = vpop.permute.xlu1 %4592 }
0x2bbe   :  { %v9554_v46 = vpop.permute.xlu1 %4604 }
0x2bc2   :  { %v9558_v15 = vpop.permute.xlu1 %4688 }
0x2bc3   :  { %10651 = vst [vmem:[#allocation74_spill] sm:$0xff] %v9558_v15  ;;  %v4575_v15 = vsel %vm135_vm2, %v4561_v4, %v9472_v27 }
0x2bc6   :  { %v9560_v23 = vpop.permute.xlu1 %4700 }
0x2bc7   :  { %10652 = vst [vmem:[#allocation75_spill] sm:$0xff] %v9560_v23 }
0x2bca   :  { %v9564_v25 = vpop.permute.xlu1 %4748 }
0x2bcb   :  { %10654 = vst [vmem:[#allocation77_spill] sm:$0xff] %v9564_v25 }
0x2bce   :  { %v9568_v0 = vpop.permute.xlu1 %4736 }
0x2bcf   :  { %10655 = vst [vmem:[#allocation78_spill] sm:$0xff] %v9568_v0  ;;  %v4619_v0 = vsel %vm174_vm0, %v9342_v11, %v9358_v26  ;;  %v4568_v11 = vsel %vm135_vm2, %v9406_v49, %v9394_v59  ;;  %v4571_v26 = vsel %vm135_vm2, %v9326_v42, %v9406_v49  ;;  %v4587_v59 = vmul.f32 %v4574_v60, %v7737_v24 }
0x2bd0   :  { %v9613_v57 = vmul.f32 %v4619_v0, %v7791_v61  ;;  %v4620_v42 = vsel %vm174_vm0, %v9486_v16, %v4597_v7  ;;  %v9633_v49 = vmul.f32 %v4571_v26, %v7834_v37  ;;  %v4589_v0 = vmul.f32 %v4568_v11, %v7838_v39 }
0x2bd1   :  { %v4623_v60 = vsel %vm174_vm0, %v4609_v20, %v9486_v16  ;;  %v4627_v11 = vmul.f32 %v4620_v42, %v7724_v19  ;;  %v4566_v16 = vsel %vm135_vm2, %v9480_v5, %v4561_v4  ;;  %v9656_v20 = vpop.permute.xlu0 %4846 }
0x2bd2   :  { %v9586_v25 = vpop.permute.xlu1 %4844  ;;  %10657 = vst [vmem:[#allocation80_spill] sm:$0xff] %v9656_v20  ;;  %v4626_v31 = vmul.f32 %v4623_v60, %v7761_v38  ;;  %v4578_v20 = vmul.f32 %v4575_v15, %v7770_v43  ;;  %v4581_v60 = vmul.f32 %v4566_v16, %v7838_v39  ;;  %v4669_v16 = vsel %vm214_vm3, %v9548_v47, %v9566_v41 }
0x2bd3   :  { %10656 = vst [vmem:[#allocation79_spill] sm:$0xff] %v9586_v25  ;;  %v9610_v25 = vmul.f32 %v4625_v48, %v7761_v38  ;;  %v4617_v48 = vsel %vm174_vm0, %v4597_v7, %v9474_v1  ;;  %v9662_v1 = vsel %vm214_vm3, %v9414_v29, %v9368_v21 }
0x2bd4   :  { %v4628_v23 = vmul.f32 %v4617_v48, %v7791_v61  ;;  %v4569_v48 = vsel %vm135_vm2, %v9518_v32, %v9480_v5  ;;  %v6648_v15 = vpack.c.bf16 %v4626_v31, %v9624_v34  ;;  %v4668_v31 = vsel %vm214_vm3, %v9490_v35, %v9528_v58 }
0x2bd5   :  { %v4580_v5 = vmul.f32 %v4569_v48, %v7834_v37  ;;  %v4662_v48 = vsel %vm214_vm3, %v9496_v52, %v9532_v13 }
0x2bd6   :  { %v4551_v17 = vpop.permute.xlu1 %4550 }
0x2bd7   :  { %v4573_v50 = vsel %vm135_vm2, %v4545_v28, %v4551_v17  ;;  %v4570_v7 = vsel %vm135_vm2, %v4551_v17, %v4557_v2 }
0x2bd8   :  { %v4583_v26 = vmul.f32 %v4573_v50, %v7737_v24  ;;  %v4629_v50 = vmul.f32 %v4614_v12, %v7794_v62  ;;  %v4584_v4 = vmul.f32 %v4570_v7, %v7834_v37  ;;  %v6700_v12 = vpack.c.bf16 %v4628_v23, %v9633_v49 }
0x2bda   :  { %v4563_v42 = vpop.permute.xlu1 %4562  ;;  %v6642_v17 = vpack.c.bf16 %v4583_v26, %v4579_v22  ;;  %v9683_v22 = vsel %vm214_vm3, %v9434_v14, %v9426_v55  ;;  %v6696_v23 = vpack.c.bf16 %v4584_v4, %v4580_v5  ;;  %v4672_v4 = vsel %vm214_vm3, %v9596_v63, %v9548_v47 }
0x2bdb   :  { %v4567_v27 = vsel %vm135_vm2, %v4557_v2, %v4563_v42  ;;  %v4576_v24 = vsel %vm135_vm2, %v4563_v42, %v4545_v28  ;;  %v6646_v28 = vpack.c.bf16 %v4627_v11, %v4587_v59  ;;  %v9696_v42 = vpop.permute.xlu0 %4834  ;;  %v6698_v59 = vpack.c.bf16 %v4629_v50, %v4589_v0 }
0x2bdc   :  { %v4582_v56 = vmul.f32 %v4576_v24, %v7770_v43  ;;  %v4585_v32 = vmul.f32 %v4567_v27, %v7838_v39  ;;  %6643 = vmatprep.subr.bf16.mxu0 %v6642_v17  ;;  %v4716_v24 = vsel %vm254_vm1, %v9502_v45, %v9520_v3  ;;  %v4710_v0 = vsel %vm254_vm1, %v9478_v40, %v9526_v54 }
0x2bdd   :  { %v4679_v17 = vmul.f32 %v4669_v16, %v7749_v30 }
0x2bde   :  { %v6644_v2 = vpack.c.bf16 %v4582_v56, %v4578_v20  ;;  %v4599_v7 = vpop.permute.xlu1 %4598  ;;  %v6694_v26 = vpack.c.bf16 %v4585_v32, %v4581_v60  ;;  %v4713_v56 = vsel %vm254_vm1, %v9520_v3, %v9478_v40  ;;  %v4723_v20 = vmul.f32 %v4716_v24, %v7721_v18 }
0x2bdf   :  { %v4621_v34 = vsel %vm174_vm0, %v9550_v33, %v4599_v7  ;;  %v4618_v49 = vsel %vm174_vm0, %v4599_v7, %v9554_v46  ;;  %v4663_v3 = vsel %vm214_vm3, %v9552_v10, %v9596_v63  ;;  %v4675_v63 = vmul.f32 %v4668_v31, %v7749_v30 }
0x2be0   :  { %v4631_v11 = vmul.f32 %v4621_v34, %v7724_v19  ;;  %6645 = vmatpush1.bf16.msra.mxu0 %v6644_v2  ;;  %6695 = vmatprep.subr.bf16.mxu1 %v6694_v26  ;;  %v4632_v27 = vmul.f32 %v4618_v49, %v7791_v61  ;;  %v4681_v5 = vmul.f32 %v4663_v3, %v7830_v36  ;;  %v10659_v26 = vld [vmem:[#allocation19_spill] sm:$0xff] }
0x2be1   :  { %6647 = vmatprep.subr.bf16.mxu0 %v6646_v28  ;;  %6697 = vmatpush1.bf16.msra.mxu1 %v6696_v23  ;;  %v4725_v16 = vmul.f32 %v4710_v0, %v10659_v26  ;;  %v4685_v34 = vmul.f32 %v9683_v22, %v7830_v36  ;;  %v10661_v0 = vld [vmem:[#allocation18_spill] sm:$0xff] }
0x2be2   :  { %6699 = vmatprep.subr.bf16.mxu1 %v6698_v59  ;;  %v4611_v40 = vpop.permute.xlu1 %4610  ;;  %v6650_v50 = vpack.c.bf16 %v9599_v8, %v4631_v11  ;;  %v4666_v8 = vsel %vm214_vm3, %v9566_v41, %v9552_v10  ;;  %v9755_v41 = vpop.permute.xlu0 %4852  ;;  %v4677_v10 = vmul.f32 %v4662_v48, %v7830_v36  ;;  %v6704_v7 = vpack.c.bf16 %v9613_v57, %v4632_v27  ;;  %v10660_v59 = vld [vmem:[#allocation17_spill] sm:$0xff] }
0x2be3   :  { %v4615_v60 = vsel %vm174_vm0, %v9554_v46, %v4611_v40  ;;  %v4624_v32 = vsel %vm174_vm0, %v4611_v40, %v9550_v33  ;;  %v4665_v46 = vsel %vm214_vm3, %v9528_v58, %v9496_v52  ;;  %v4671_v33 = vsel %vm214_vm3, %v9532_v13, %v9490_v35  ;;  %v10658_v13 = vld [vmem:[#allocation20_spill] sm:$0xff]  ;;  %v10662_v40 = vld [vmem:[#allocation50_spill] sm:$0xff] }
0x2be4   :  { %v4630_v28 = vmul.f32 %v4624_v32, %v7761_v38  ;;  %v4633_v47 = vmul.f32 %v4615_v60, %v7794_v62  ;;  %6649 = vmatpush1.bf16.msra.mxu0 %v6648_v15  ;;  %v4678_v15 = vmul.f32 %v4672_v4, %v7780_v51  ;;  %v4719_v52 = vsel %vm254_vm1, %v9526_v54, %v9502_v45  ;;  %v10663_v4 = vld [vmem:[#allocation74_spill] sm:$0xff]  ;;  %v10664_v32 = vld [vmem:[#allocation75_spill] sm:$0xff] }
0x2be5   :  { %6651 = vmatprep.subr.bf16.mxu0 %v6650_v50  ;;  %6701 = vmatpush1.bf16.msra.mxu1 %v6700_v12  ;;  %v4680_v35 = vmul.f32 %v4666_v8, %v10658_v13  ;;  %v6654_v12 = vpack.c.bf16 %v4679_v17, %v4675_v63  ;;  %v4674_v23 = vmul.f32 %v4671_v33, %v7780_v51 }
0x2be6   :  { %v6652_v24 = vpack.c.bf16 %v9610_v25, %v4630_v28  ;;  %v9760_v2 = vpop.permute.xlu1 %4832  ;;  %v6702_v58 = vpack.c.bf16 %v9616_v53, %v4633_v47  ;;  %v6706_v25 = vpack.c.bf16 %v4681_v5, %v4677_v10  ;;  %v4683_v53 = vmul.f32 %v9662_v1, %v7749_v30  ;;  %v9788_v3 = vpop.permute.xlu0 %4892  ;;  %v10665_v28 = vld [vmem:[#allocation51_spill] sm:$0xff] }
0x2be7   :  { %v4673_v54 = vsel %vm214_vm3, %v9426_v55, %v9414_v29  ;;  %v4676_v45 = vmul.f32 %v4665_v46, %v10658_v13  ;;  %v4667_v57 = vsel %vm214_vm3, %v9368_v21, %v9434_v14  ;;  %v4722_v49 = vmul.f32 %v4719_v52, %v10660_v59 }
0x2be8   :  { %6653 = vmatpush1.bf16.msra.mxu0 %v6652_v24  ;;  %6703 = vmatprep.subr.bf16.mxu1 %v6702_v58  ;;  %v6656_v1 = vpack.c.bf16 %v4678_v15, %v4674_v23  ;;  %v4724_v29 = vmul.f32 %v4713_v56, %v10661_v0  ;;  %v6658_v31 = vpack.c.bf16 %v4723_v20, %v4683_v53  ;;  %v10666_v15 = vld [vmem:[#allocation53_spill] sm:$0xff]  ;;  %v10667_v24 = vld [vmem:[#allocation52_spill] sm:$0xff] }
0x2be9   :  { %6655 = vmatprep.subr.bf16.mxu0 %v6654_v12  ;;  %6705 = vmatpush1.bf16.msra.mxu1 %v6704_v7  ;;  %v6708_v55 = vpack.c.bf16 %v4680_v35, %v4676_v45  ;;  %v4682_v48 = vmul.f32 %v4673_v54, %v7780_v51  ;;  %v6710_v17 = vpack.c.bf16 %v4725_v16, %v4685_v34  ;;  %v10669_v16 = vld [vmem:[#allocation68_spill] sm:$0xff] }
0x2bea   :  { %6707 = vmatprep.subr.bf16.mxu1 %v6706_v25  ;;  %v9785_v11 = vpop.permute.xlu1 %4884  ;;  %v4718_v21 = vsel %vm254_vm1, %v9374_v44, %v9384_v6  ;;  %v4684_v14 = vmul.f32 %v4667_v57, %v10658_v13  ;;  %v4721_v20 = vsel %vm254_vm1, %v10662_v40, %v9374_v44  ;;  %v4712_v47 = vsel %vm254_vm1, %v10665_v28, %v10662_v40  ;;  %v9812_v44 = vpop.permute.xlu0 %4790  ;;  %v10670_v45 = vld [vmem:[#allocation64_spill] sm:$0xff]  ;;  %v10671_v57 = vld [vmem:[#allocation67_spill] sm:$0xff]  ;;  %v10714_v13 = vld [vmem:[#allocation66_spill] sm:$0xff] }
0x2beb   :  { %v6660_v22 = vpack.c.bf16 %v4722_v49, %v4682_v48  ;;  %v4731_v60 = vmul.f32 %v4718_v21, %v7721_v18  ;;  %v4730_v46 = vmul.f32 %v4721_v20, %v10660_v59  ;;  %v4715_v63 = vsel %vm254_vm1, %v9384_v6, %v10665_v28  ;;  %v10668_v6 = vld [vmem:[#allocation61_spill] sm:$0xff]  ;;  %v10672_v49 = vld [vmem:[#allocation22_spill] sm:$0xff]  ;;  %v10674_v20 = vld [vmem:[#allocation55_spill] sm:$0xff] }
0x2bec   :  { %6657 = vmatpush1.bf16.msra.mxu0 %v6656_v1  ;;  %v6712_v50 = vpack.c.bf16 %v4724_v29, %v4684_v14  ;;  %v4763_v58 = vsel %vm294_vm5, %v10667_v24, %v10666_v15  ;;  %v4733_v12 = vmul.f32 %v4712_v47, %v10659_v26  ;;  %v4761_v23 = vsel %vm294_vm5, %v10669_v16, %v10668_v6  ;;  %v10673_v29 = vld [vmem:[#allocation54_spill] sm:$0xff]  ;;  %v10678_v28 = vld [vmem:[#allocation56_spill] sm:$0xff] }
0x2bed   :  { %6659 = vmatprep.subr.bf16.mxu0 %v6658_v31  ;;  %6709 = vmatpush1.bf16.msra.mxu1 %v6708_v55  ;;  %v4732_v54 = vmul.f32 %v4715_v63, %v10661_v0  ;;  %v4767_v34 = vsel %vm294_vm5, %v10671_v57, %v10670_v45  ;;  %v9843_v1 = vmul.f32 %v4763_v58, %v10672_v49 }
0x2bee   :  { %6711 = vmatprep.subr.bf16.mxu1 %v6710_v17  ;;  %v4695_v56 = vpop.permute.xlu1 %4694  ;;  %v4766_v55 = vsel %vm294_vm5, %v10673_v29, %v10667_v24  ;;  %v4758_v21 = vsel %vm294_vm5, %v10668_v6, %v10671_v57  ;;  %v4764_v14 = vsel %vm294_vm5, %v10670_v45, %v10669_v16  ;;  %v10683_v24 = vld [vmem:[#allocation60_spill] sm:$0xff]  ;;  %v10685_v16 = vld [vmem:[#allocation49_spill] sm:$0xff]  ;;  %v10689_v57 = vld [vmem:[#allocation62_spill] sm:$0xff] }
0x2bef   :  { %v4717_v27 = vsel %vm254_vm1, %v10663_v4, %v4695_v56  ;;  %v4714_v8 = vsel %vm254_vm1, %v4695_v56, %v10664_v32  ;;  %v9860_v56 = vpop.permute.xlu0 %4802  ;;  %v10688_v45 = vld [vmem:[#allocation69_spill] sm:$0xff] }
0x2bf0   :  { %v4727_v5 = vmul.f32 %v4717_v27, %v7721_v18  ;;  %6661 = vmatpush1.bf16.msra.mxu0 %v6660_v22  ;;  %v4728_v52 = vmul.f32 %v4714_v8, %v10661_v0  ;;  %v4771_v22 = vmul.f32 %v4761_v23, %v10672_v49  ;;  %v10675_v27 = vld [vmem:[#allocation29_spill] sm:$0xff] }
0x2bf1   :  { %6713 = vmatpush1.bf16.msra.mxu1 %v6712_v50  ;;  %v4760_v50 = vsel %vm294_vm5, %v10666_v15, %v10674_v20  ;;  %v10686_v23 = vld [vmem:[#allocation45_spill] sm:$0xff] }
0x2bf2   :  { %v4707_v33 = vpop.permute.xlu1 %4706  ;;  %v6662_v10 = vpack.c.bf16 %v4731_v60, %v4727_v5  ;;  %v6716_v40 = vpack.c.bf16 %v4732_v54, %v4728_v52  ;;  %v4773_v60 = vmul.f32 %v4767_v34, %v10675_v27  ;;  %v10677_v5 = vld [vmem:[#allocation57_spill] sm:$0xff]  ;;  %v4854_v34 = vsel %vm374_vm6, %v10689_v57, %v10688_v45 }
0x2bf3   :  { %v4711_v35 = vsel %vm254_vm1, %v10664_v32, %v4707_v33  ;;  %v4720_v7 = vsel %vm254_vm1, %v4707_v33, %v10663_v4  ;;  %v4769_v4 = vsel %vm294_vm5, %v10674_v20, %v10673_v29  ;;  %v10676_v32 = vld [vmem:[#allocation25_spill] sm:$0xff]  ;;  %v4811_v47 = vsel %vm334_vm7, %v10678_v28, %v10677_v5  ;;  %v10680_v33 = vld [vmem:[#allocation48_spill] sm:$0xff]  ;;  %v10690_v29 = vld [vmem:[#allocation39_spill] sm:$0xff] }
0x2bf4   :  { %v4726_v25 = vmul.f32 %v4720_v7, %v10660_v59  ;;  %v4729_v53 = vmul.f32 %v4711_v35, %v10659_v26  ;;  %6663 = vmatprep.subr.bf16.mxu0 %v6662_v10  ;;  %v9872_v8 = vmul.f32 %v4766_v55, %v10676_v32  ;;  %v10681_v10 = vld [vmem:[#allocation44_spill] sm:$0xff]  ;;  %v4808_v58 = vsel %vm334_vm7, %v10677_v5, %v10683_v24 }
0x2bf5   :  { %v10682_v15 = vpack.c.bf16 %v10680_v33, %v10681_v10  ;;  %v10684_v35 = vld [vmem:[#allocation28_spill] sm:$0xff]  ;;  %v9904_v54 = vmul.f32 %v4769_v4, %v10675_v27  ;;  %v6670_v55 = vpack.c.bf16 %v4771_v22, %v10690_v29  ;;  %v10695_v4 = vld [vmem:[#allocation42_spill] sm:$0xff]  ;;  %v10699_v22 = vld [vmem:[#allocation33_spill] sm:$0xff] }
0x2bf6   :  { %v6664_v31 = vpack.c.bf16 %v4730_v46, %v4726_v25  ;;  %v9849_v48 = vpop.permute.xlu1 %4890  ;;  %v6714_v17 = vpack.c.bf16 %v4733_v12, %v4729_v53  ;;  %v10679_v46 = vld [vmem:[#allocation58_spill] sm:$0xff]  ;;  %v4772_v7 = vmul.f32 %v4758_v21, %v10684_v35  ;;  %v4770_v12 = vmul.f32 %v4764_v14, %v10676_v32  ;;  %v10692_v21 = vld [vmem:[#allocation27_spill] sm:$0xff]  ;;  %v10698_v33 = vld [vmem:[#allocation32_spill] sm:$0xff] }
0x2bf7   :  { %v4814_v63 = vsel %vm334_vm7, %v10679_v46, %v10678_v28  ;;  %v4817_v52 = vsel %vm334_vm7, %v10683_v24, %v10679_v46  ;;  %v10687_v25 = vpack.c.bf16 %v10685_v16, %v10686_v23  ;;  %v9901_v53 = vmul.f32 %v4760_v50, %v10684_v35  ;;  %v10694_v50 = vld [vmem:[#allocation46_spill] sm:$0xff]  ;;  %v10697_v28 = vld [vmem:[#allocation41_spill] sm:$0xff]  ;;  %v9935_v24 = vpop.permute.xlu0 %4880  ;;  %v10701_v16 = vld [vmem:[#allocation47_spill] sm:$0xff] }
0x2bf8   :  { %6665 = vmatpush1.bf16.msra.mxu0 %v6664_v31  ;;  %6715 = vmatprep.subr.bf16.mxu1 %v6714_v17  ;;  %v10691_v31 = vld [vmem:[#allocation26_spill] sm:$0xff]  ;;  %v9915_v14 = vmul.f32 %v4814_v63, %v10692_v21  ;;  %v10696_v5 = vpack.c.bf16 %v10694_v50, %v10695_v4  ;;  %v6722_v46 = vpack.c.bf16 %v4773_v60, %v10697_v28  ;;  %v10702_v23 = vld [vmem:[#allocation43_spill] sm:$0xff]  ;;  %v10704_v29 = vld [vmem:[#allocation40_spill] sm:$0xff] }
0x2bf9   :  { %6667 = vmatprep.subr.bf16.mxu0 %v10682_v15  ;;  %6717 = vmatpush1.bf16.msra.mxu1 %v6716_v40  ;;  %v9912_v17 = vmul.f32 %v4811_v47, %v10691_v31  ;;  %v10693_v40 = vld [vmem:[#allocation73_spill] sm:$0xff]  ;;  %v9926_v10 = vmul.f32 %v4808_v58, %v10698_v33  ;;  %v9929_v47 = vmul.f32 %v4817_v52, %v10699_v22  ;;  %v10700_v15 = vld [vmem:[#allocation63_spill] sm:$0xff]  ;;  %v10705_v50 = vld [vmem:[#allocation30_spill] sm:$0xff] }
0x2bfa   :  { %v9895_v6 = vpop.permute.xlu1 %4878  ;;  %6719 = vmatprep.subr.bf16.mxu1 %v10687_v25  ;;  %v4810_v20 = vsel %vm334_vm7, %v9812_v44, %v10693_v40  ;;  %v4863_v63 = vsel %vm374_vm6, %v10688_v45, %v10700_v15  ;;  %v10703_v25 = vpack.c.bf16 %v10701_v16, %v10702_v23  ;;  %v6724_v60 = vpack.c.bf16 %v4772_v7, %v10704_v29  ;;  %v10706_v4 = vld [vmem:[#allocation38_spill] sm:$0xff]  ;;  %v10710_v7 = vld [vmem:[#allocation77_spill] sm:$0xff]  ;;  %v10712_v29 = vld [vmem:[#allocation31_spill] sm:$0xff] }
0x2bfb   :  { %v9942_v58 = vmul.f32 %v4854_v34, %v10705_v50  ;;  %v6672_v52 = vpack.c.bf16 %v4770_v12, %v10706_v4  ;;  %v10708_v28 = vld [vmem:[#allocation70_spill] sm:$0xff]  ;;  %v4823_v23 = vmul.f32 %v4810_v20, %v10691_v31  ;;  %v9961_v4 = vmul.f32 %v4863_v63, %v10712_v29  ;;  %v10715_v63 = vld [vmem:[#allocation71_spill] sm:$0xff] }
0x2bfc   :  { %6669 = vmatpush1.bf16.msra.mxu0 %v10696_v5  ;;  %v10707_v5 = vld [vmem:[#allocation65_spill] sm:$0xff]  ;;  %v4812_v36 = vsel %vm334_vm7, %v10714_v13, %v10708_v28  ;;  %v4815_v59 = vsel %vm334_vm7, %v10715_v63, %v10714_v13 }
0x2bfd   :  { %6671 = vmatprep.subr.bf16.mxu0 %v6670_v55  ;;  %6721 = vmatpush1.bf16.msra.mxu1 %v10703_v25  ;;  %v4809_v26 = vsel %vm334_vm7, %v10708_v28, %v10707_v5  ;;  %v10709_v55 = vld [vmem:[#allocation72_spill] sm:$0xff]  ;;  %v10711_v25 = vld [vmem:[#allocation78_spill] sm:$0xff] }
0x2bfe   :  { %v4743_v45 = vpop.permute.xlu1 %4742  ;;  %6723 = vmatprep.subr.bf16.mxu1 %v6722_v46  ;;  %v4857_v16 = vsel %vm374_vm6, %v10709_v55, %v10689_v57  ;;  %v10713_v46 = vld [vmem:[#allocation76_spill] sm:$0xff] }
0x2bff   :  { %v4762_v34 = vsel %vm294_vm5, %v4743_v45, %v10710_v7  ;;  %v4765_v12 = vsel %vm294_vm5, %v10711_v25, %v4743_v45  ;;  %v4813_v0 = vsel %vm334_vm7, %v10713_v46, %v9812_v44  ;;  %v4819_v45 = vmul.f32 %v4809_v26, %v10691_v31 }
0x2c00   :  { %v4774_v57 = vmul.f32 %v4765_v12, %v10676_v32  ;;  %v4775_v20 = vmul.f32 %v4762_v34, %v10672_v49  ;;  %6673 = vmatpush1.bf16.msra.mxu0 %v6672_v52  ;;  %v4816_v44 = vsel %vm334_vm7, %v9860_v56, %v10713_v46  ;;  %v4860_v52 = vsel %vm374_vm6, %v10700_v15, %v10709_v55  ;;  %v10716_v34 = vld [vmem:[#allocation23_spill] sm:$0xff]  ;;  %v4887_v49 = vpop.permute.xlu0 %4886 }
0x2c01   :  { %6725 = vmatpush1.bf16.msra.mxu1 %v6724_v60  ;;  %v4867_v28 = vmul.f32 %v4857_v16, %v10716_v34  ;;  %v4822_v13 = vmul.f32 %v4813_v0, %v10692_v21  ;;  %v6678_v32 = vpack.c.bf16 %v4823_v23, %v4819_v45  ;;  %v4825_v15 = vmul.f32 %v4816_v44, %v10699_v22 }
0x2c02   :  { %v6676_v26 = vpack.c.bf16 %v9872_v8, %v4774_v57  ;;  %v4755_v12 = vpop.permute.xlu1 %4754  ;;  %v6674_v31 = vpack.c.bf16 %v9843_v1, %v4775_v20  ;;  %v4807_v8 = vsel %vm334_vm7, %v10693_v40, %v9860_v56  ;;  %v6736_v55 = vpack.c.bf16 %v9942_v58, %v9926_v10  ;;  %v10718_v40 = vld [vmem:[#allocation80_spill] sm:$0xff]  ;;  %v10719_v57 = vld [vmem:[#allocation59_spill] sm:$0xff] }
0x2c03   :  { %v4759_v46 = vsel %vm294_vm5, %v10710_v7, %v4755_v12  ;;  %v4768_v60 = vsel %vm294_vm5, %v4755_v12, %v10711_v25  ;;  %v4818_v16 = vmul.f32 %v4812_v36, %v10692_v21  ;;  %v4806_v23 = vsel %vm334_vm7, %v10707_v5, %v10715_v63  ;;  %v10717_v7 = vld [vmem:[#allocation24_spill] sm:$0xff] }
0x2c04   :  { %v4776_v1 = vmul.f32 %v4759_v46, %v10684_v35  ;;  %v4777_v0 = vmul.f32 %v4768_v60, %v10675_v27  ;;  %6675 = vmatprep.subr.bf16.mxu0 %v6674_v31  ;;  %v4866_v25 = vmul.f32 %v4860_v52, %v10717_v7  ;;  %v4821_v56 = vmul.f32 %v4815_v59, %v10699_v22  ;;  %v10721_v60 = vld [vmem:[#allocation79_spill] sm:$0xff] }
0x2c05   :  { %6677 = vmatpush1.bf16.msra.mxu0 %v6676_v26  ;;  %v4859_v31 = vsel %vm374_vm6, %v10719_v57, %v10718_v40  ;;  %v4862_v58 = vsel %vm374_vm6, %v9696_v42, %v10719_v57  ;;  %v6680_v5 = vpack.c.bf16 %v4822_v13, %v4818_v16  ;;  %v4824_v45 = vmul.f32 %v4807_v8, %v10698_v33  ;;  %v10720_v13 = vld [vmem:[#allocation34_spill] sm:$0xff] }
0x2c06   :  { %v6728_v20 = vpack.c.bf16 %v9901_v53, %v4776_v1  ;;  %6679 = vmatprep.subr.bf16.mxu0 %v6678_v32  ;;  %v4897_v10 = vpop.permute.xlu1 %4896  ;;  %v6726_v36 = vpack.c.bf16 %v9904_v54, %v4777_v0  ;;  %v6734_v59 = vpack.c.bf16 %v9961_v4, %v9929_v47  ;;  %v4820_v63 = vmul.f32 %v4806_v23, %v10698_v33  ;;  %v4899_v4 = vpop.permute.xlu0 %4898 }
0x2c07   :  { %v4905_v32 = vsel %vm414_vm8, %v9785_v11, %v9849_v48  ;;  %v6682_v53 = vpack.c.bf16 %v4867_v28, %v9912_v17  ;;  %v6730_v54 = vpack.c.bf16 %v4825_v15, %v4821_v56  ;;  %v6684_v44 = vpack.c.bf16 %v4866_v25, %v9915_v14 }
0x2c08   :  { %6727 = vmatprep.subr.bf16.mxu1 %v6726_v36  ;;  %v4875_v52 = vmul.f32 %v4859_v31, %v10716_v34  ;;  %v4856_v47 = vsel %vm374_vm6, %v10718_v40, %v9755_v41  ;;  %v4874_v26 = vmul.f32 %v4862_v58, %v10717_v7  ;;  %v4865_v17 = vsel %vm374_vm6, %v9755_v41, %v9696_v42  ;;  %v10722_v36 = vld [vmem:[#allocation35_spill] sm:$0xff] }
0x2c09   :  { %6681 = vmatpush1.bf16.msra.mxu0 %v6680_v5  ;;  %6729 = vmatpush1.bf16.msra.mxu1 %v6728_v20  ;;  %v4906_v14 = vsel %vm414_vm8, %v4887_v49, %v9788_v3  ;;  %v6732_v12 = vpack.c.bf16 %v4824_v45, %v4820_v63  ;;  %v4915_v46 = vmul.f32 %v4905_v32, %v10720_v13  ;;  %v10723_v45 = vld [vmem:[#allocation36_spill] sm:$0xff] }
0x2c0a   :  { %6683 = vmatprep.subr.bf16.mxu0 %v6682_v53  ;;  %v4839_v28 = vpop.permute.xlu1 %4838  ;;  %6731 = vmatprep.subr.bf16.mxu1 %v6730_v54  ;;  %v4876_v42 = vmul.f32 %v4856_v47, %v10705_v50  ;;  %v4908_v41 = vsel %vm414_vm8, %v9895_v6, %v9785_v11  ;;  %v4877_v16 = vmul.f32 %v4865_v17, %v10712_v29  ;;  %v4895_v20 = vpop.permute.xlu0 %4894  ;;  %v10724_v47 = vld [vmem:[#allocation37_spill] sm:$0xff] }
0x2c0b   :  { %v4858_v8 = vsel %vm374_vm6, %v4839_v28, %v10721_v60  ;;  %v4861_v15 = vsel %vm374_vm6, %v9760_v2, %v4839_v28  ;;  %v4919_v23 = vmul.f32 %v4906_v14, %v10720_v13  ;;  %v4911_v25 = vsel %vm414_vm8, %v4897_v10, %v9895_v6 }
0x2c0c   :  { %v4870_v1 = vmul.f32 %v4861_v15, %v10717_v7  ;;  %v4871_v0 = vmul.f32 %v4858_v8, %v10716_v34  ;;  %v4909_v56 = vsel %vm414_vm8, %v9935_v24, %v4887_v49  ;;  %v4912_v11 = vsel %vm414_vm8, %v4899_v4, %v9935_v24 }
0x2c0d   :  { %6685 = vmatpush1.bf16.msra.mxu0 %v6684_v44  ;;  %6733 = vmatpush1.bf16.msra.mxu1 %v6732_v12  ;;  %v4914_v58 = vmul.f32 %v4908_v41, %v10722_v36  ;;  %v6690_v49 = vpack.c.bf16 %v4919_v23, %v4915_v46  ;;  %v4902_v24 = vsel %vm414_vm8, %v9849_v48, %v4897_v10  ;;  %v4926_v41 = vld [vmem:[#allocation2 + $0x3c0] sm:$0xff] }
0x2c0e   :  { %v6688_v40 = vpack.c.bf16 %v4874_v26, %v4870_v1  ;;  %v4851_v57 = vpop.permute.xlu1 %4850  ;;  %6735 = vmatprep.subr.bf16.mxu1 %v6734_v59  ;;  %v6686_v31 = vpack.c.bf16 %v4875_v52, %v4871_v0  ;;  %v4917_v63 = vmul.f32 %v4911_v25, %v10723_v45  ;;  %v4918_v53 = vmul.f32 %v4909_v56, %v10722_v36  ;;  %v4901_v12 = vpop.permute.xlu0 %4900 }
0x2c0f   :  { %v4855_v6 = vsel %vm374_vm6, %v10721_v60, %v4851_v57  ;;  %v4864_v5 = vsel %vm374_vm6, %v4851_v57, %v9760_v2  ;;  %v4903_v2 = vsel %vm414_vm8, %v9788_v3, %v4899_v4  ;;  %v4921_v54 = vmul.f32 %v4912_v11, %v10723_v45 }
0x2c10   :  { %v4872_v59 = vmul.f32 %v4855_v6, %v10705_v50  ;;  %v4873_v32 = vmul.f32 %v4864_v5, %v10712_v29  ;;  %6687 = vmatprep.subr.bf16.mxu0 %v6686_v31  ;;  %v6692_v52 = vpack.c.bf16 %v4918_v53, %v4914_v58  ;;  %v4916_v26 = vmul.f32 %v4902_v24, %v10724_v47  ;;  %v5074_v31 = vld [vmem:[%s10475_s2 + $0xf0] sm:$0xff] }
0x2c11   :  { %6689 = vmatpush1.bf16.msra.mxu0 %v6688_v40  ;;  %6737 = vmatpush1.bf16.msra.mxu1 %v6736_v55  ;;  %v6742_v55 = vpack.c.bf16 %v4921_v54, %v4917_v63  ;;  %v4920_v28 = vmul.f32 %v4903_v2, %v10724_v47  ;;  %v4904_v8 = vsel %vm414_vm8, %v4895_v20, %v4901_v12  ;;  %v10725_v0 = vmov 0.0  }
0x2c12   :  { %v6740_v44 = vpack.c.bf16 %v4876_v42, %v4872_v59  ;;  %6691 = vmatprep.subr.bf16.mxu0 %v6690_v49  ;;  %v4889_v48 = vpop.permute.xlu1 %4888  ;;  %v6738_v10 = vpack.c.bf16 %v4877_v16, %v4873_v32  ;;  %v4924_v1 = vmul.f32 %v4904_v8, %v10724_v47 }
0x2c13   :  { %v4907_v17 = vsel %vm414_vm8, %v4889_v48, %v4895_v20  ;;  %v6744_v4 = vpack.c.bf16 %v4920_v28, %v4916_v26 }
0x2c14   :  { %v4923_v14 = vmul.f32 %v4907_v17, %v10720_v13  ;;  %6739 = vmatprep.subr.bf16.mxu1 %v6738_v10 }
0x2c15   :  { %6693 = vmatpush1.bf16.msra.mxu0 %v6692_v52  ;;  %6741 = vmatpush1.bf16.msra.mxu1 %v6740_v44 }
0x2c16   :  { %4984 = vmatprep.subr.mxu0 %v4923_v14  ;;  %v4883_v3 = vpop.permute.xlu1 %4882  ;;  %6743 = vmatprep.subr.bf16.mxu1 %v6742_v55 }
0x2c17   :  { %v4910_v46 = vsel %vm414_vm8, %v4883_v3, %v4889_v48  ;;  %v4913_v60 = vsel %vm414_vm8, %v4901_v12, %v4883_v3 }
0x2c18   :  { %v4922_v15 = vmul.f32 %v4910_v46, %v10722_v36  ;;  %v4925_v42 = vmul.f32 %v4913_v60, %v10723_v45 }
0x2c19   :  { %6745 = vmatpush1.bf16.msra.mxu1 %v6744_v4 }
0x2c1a   :  { %4985 = vmatpush1.msra.mxu0 %v4922_v15  ;;  %5055 = vmatprep.subr.mxu1 %v4925_v42 }
0x2c1b   :  { %4997 = vmatmul.mubr.f32.vlgmr.msra.gmra.mrb[50].mxu0 %v4926_v41 }
0x2c1c   :  { %5320 = vmatprep.mubr.f32.mxu0 %v10725_v0 }
0x2c1d   :  { %5056 = vmatpush1.msra.mxu1 %v4924_v1 }
0x2c1e   :  { %5068 = vmatmul.mubr.f32.vlgmr.msra.gmra.mrb[32].mxu1 %v4926_v41 }
0x2c1f   :  { %5391 = vmatprep.mubr.f32.mxu1 %v10725_v0 }
0x2cee   :  { %v4998_v16 = vpop.f32.mrb[50].mxu0 }
0x2cef   :  { %v5000_v23 = vpop.f32.mrb[51].mxu0 }
0x2cf0   :  { %v5075_v25 = vadd.f32 %v5000_v23, %v4998_v16 }
0x2cf1   :  { %v5069_v56 = vpop.f32.mrb[32].mxu1 }
0x2cf2   :  { %v5076_v11 = vadd.f32 %v5075_v25, %v5069_v56  ;;  %v5071_v40 = vpop.f32.mrb[33].mxu1 }
0x2cf4   :  { %v5077_v57 = vadd.f32 %v5076_v11, %v5071_v40 }
0x2cf6   :  { %5078 = vadd.xlane.f32.xlu1 %v5077_v57 }
0x2d07   :  { %5109 = vperm.xlu1 %7223, %v5074_v31  }
0x2d83   :  { %v5079_v20 = vpop.xlane.xlu1 %5078 }
0x2d84   :  { %v5080_v58 = vmul.f32 0.001953125, %v5079_v20 }
0x2d86   :  { %v5081_v6 = vsub.f32 %v4998_v16, %v5080_v58  ;;  %v5082_v5 = vsub.f32 %v5000_v23, %v5080_v58  ;;  %v5083_v49 = vsub.f32 %v5069_v56, %v5080_v58  ;;  %v5084_v24 = vsub.f32 %v5071_v40, %v5080_v58 }
0x2d87   :  { %v5110_v3 = vpop.permute.xlu1 %5109 }
0x2d88   :  { %v5085_v63 = vmul.f32 %v5081_v6, %v5081_v6  ;;  %v5086_v59 = vmul.f32 %v5082_v5, %v5082_v5  ;;  %v5087_v32 = vmul.f32 %v5083_v49, %v5083_v49  ;;  %v5088_v2 = vmul.f32 %v5084_v24, %v5084_v24 }
0x2d8a   :  { %v5089_v53 = vadd.f32 %v5086_v59, %v5085_v63  ;;  %v10726_v59 = vld [vmem:[#allocation16_spill] sm:$0xff] }
0x2d8c   :  { %v5090_v54 = vadd.f32 %v5089_v53, %v5087_v32 }
0x2d8e   :  { %v5091_v44 = vadd.f32 %v5090_v54, %v5088_v2 }
0x2d90   :  { %5092 = vadd.xlane.f32.xlu0 %v5091_v44 }
0x2e1d   :  { %v5093_v48 = vpop.xlane.xlu0 %5092 }
0x2e1e   :  { %v5094_v10 = vmul.f32 0.001953125, %v5093_v48 }
0x2e20   :  { %v5095_v52 = vadd.f32 1e-05, %v5094_v10 }
0x2e22   :  { %7287 = vrsqrt.f32 %v5095_v52 }
0x2e2c   :  { %v7288_v26 = vpop.eup %7287 }
0x2e2d   :  { %v5097_v17 = vmul.f32 %v7288_v26, %v5074_v31 }
0x2e2f   :  { %5100 = vperm.xlu0 %7224, %v5097_v17  }
0x2eae   :  { %v5101_v14 = vpop.permute.xlu0 %5100 }
0x2eaf   :  { %v5103_v55 = vmul.f32 %v5101_v14, %v5081_v6  ;;  %v5104_v28 = vmul.f32 %v5101_v14, %v5082_v5  ;;  %v5105_v12 = vmul.f32 %v5101_v14, %v5083_v49  ;;  %v5106_v42 = vmul.f32 %v5101_v14, %v5084_v24 }
0x2eb1   :  { %v5112_v4 = vadd.f32 %v5110_v3, %v5103_v55  ;;  %v5113_v46 = vadd.f32 %v5110_v3, %v5104_v28  ;;  %v5114_v60 = vadd.f32 %v5110_v3, %v5105_v12  ;;  %v5115_v23 = vadd.f32 %v5110_v3, %v5106_v42 }
0x2eb3   :  { %v5116_v8 = vmul.f32 0.01, %v5112_v4  ;;  %v5118_v15 = vmul.f32 0.01, %v5114_v60  ;;  %v5117_v41 = vmul.f32 0.01, %v5113_v46 }
0x2eb4   :  { %v5119_v56 = vmul.f32 0.01, %v5115_v23 }
0x2eb5   :  { %v10107_v1 = vmax.f32 %v5112_v4, %v5116_v8  ;;  %v10109_v16 = vmax.f32 %v5114_v60, %v5118_v15  ;;  %v10115_v25 = vmax.f32 %v5113_v46, %v5117_v41 }
0x2eb6   :  { %v10125_v11 = vmax.f32 %v5115_v23, %v5119_v56 }
0x2eb7   :  { %5128 = vrot.lane.b32.xlu0 %v10109_v16, %s7451_s28  ;;  %5124 = vrot.lane.b32.xlu1 %v10107_v1, %s7451_s28 }
0x2ebb   :  { %5156 = vrot.lane.b32.xlu0 %v10107_v1, %s7452_s0  ;;  %5126 = vrot.lane.b32.xlu1 %v10115_v25, %s7451_s28 }
0x2ebf   :  { %5172 = vrot.lane.b32.xlu0 %v10107_v1, %s7449_s13  ;;  %5140 = vrot.lane.b32.xlu1 %v10107_v1, %s7450_s5 }
0x2ec3   :  { %5162 = vrot.lane.b32.xlu0 %v10125_v11, %s7452_s0  ;;  %5142 = vrot.lane.b32.xlu1 %v10115_v25, %s7450_s5 }
0x2ec7   :  { %5160 = vrot.lane.b32.xlu0 %v10109_v16, %s7452_s0  ;;  %5130 = vrot.lane.b32.xlu1 %v10125_v11, %s7451_s28 }
0x2ecb   :  { %5190 = vrot.lane.b32.xlu0 %v10115_v25, %s7453_s15  ;;  %5146 = vrot.lane.b32.xlu1 %v10125_v11, %s7450_s5 }
0x2ecf   :  { %5188 = vrot.lane.b32.xlu0 %v10107_v1, %s7453_s15  ;;  %5144 = vrot.lane.b32.xlu1 %v10109_v16, %s7450_s5 }
0x2ed3   :  { %5206 = vrot.lane.b32.xlu0 %v10115_v25, %s7455_s3  ;;  %5158 = vrot.lane.b32.xlu1 %v10115_v25, %s7452_s0 }
0x2ed7   :  { %5222 = vrot.lane.b32.xlu0 %v10115_v25, %s7454_s17  ;;  %5174 = vrot.lane.b32.xlu1 %v10115_v25, %s7449_s13 }
0x2edb   :  { %5204 = vrot.lane.b32.xlu0 %v10107_v1, %s7455_s3  ;;  %5178 = vrot.lane.b32.xlu1 %v10125_v11, %s7449_s13 }
0x2edf   :  { %5210 = vrot.lane.b32.xlu0 %v10125_v11, %s7455_s3  ;;  %5176 = vrot.lane.b32.xlu1 %v10109_v16, %s7449_s13 }
0x2ee3   :  { %5238 = vrot.lane.b32.xlu0 %v10115_v25, %s7457_s4  ;;  %5192 = vrot.lane.b32.xlu1 %v10109_v16, %s7453_s15 }
0x2ee7   :  { %5236 = vrot.lane.b32.xlu0 %v10107_v1, %s7457_s4  ;;  %5194 = vrot.lane.b32.xlu1 %v10125_v11, %s7453_s15 }
0x2eeb   :  { %5208 = vrot.lane.b32.xlu1 %v10109_v16, %s7455_s3 }
0x2eef   :  { %5224 = vrot.lane.b32.xlu1 %v10109_v16, %s7454_s17 }
0x2ef3   :  { %5220 = vrot.lane.b32.xlu1 %v10107_v1, %s7454_s17 }
0x2ef7   :  { %5226 = vrot.lane.b32.xlu1 %v10125_v11, %s7454_s17 }
0x2efb   :  { %5240 = vrot.lane.b32.xlu1 %v10109_v16, %s7457_s4 }
0x2eff   :  { %5242 = vrot.lane.b32.xlu1 %v10125_v11, %s7457_s4 }
0x2f29   :  { %v5129_v40 = vpop.permute.xlu0 %5128  ;;  %v5125_v57 = vpop.permute.xlu1 %5124 }
0x2f2d   :  { %v5157_v31 = vpop.permute.xlu0 %5156  ;;  %v5127_v20 = vpop.permute.xlu1 %5126 }
0x2f2e   :  { %v5134_v5 = vsel %vm135_vm2, %v5125_v57, %v5127_v20  ;;  %v5133_v14 = vsel %vm135_vm2, %v5127_v20, %v5129_v40 }
0x2f2f   :  { %v5137_v32 = vmul.f32 %v5134_v5, %v10726_v59  ;;  %v5138_v60 = vmul.f32 %v5133_v14, %v7834_v37 }
0x2f31   :  { %v5173_v58 = vpop.permute.xlu0 %5172  ;;  %v5141_v6 = vpop.permute.xlu1 %5140 }
0x2f35   :  { %v5163_v49 = vpop.permute.xlu0 %5162  ;;  %v5143_v24 = vpop.permute.xlu1 %5142 }
0x2f36   :  { %v5150_v63 = vsel %vm174_vm0, %v5141_v6, %v5143_v24 }
0x2f37   :  { %v5153_v53 = vmul.f32 %v5150_v63, %v7724_v19  ;;  %v5167_v63 = vsel %vm214_vm3, %v5163_v49, %v5157_v31 }
0x2f39   :  { %v5131_v2 = vpop.permute.xlu1 %5130  ;;  %v6746_v54 = vpack.c.bf16 %v5153_v53, %v5137_v32  ;;  %v5161_v44 = vpop.permute.xlu0 %5160 }
0x2f3a   :  { %v5135_v48 = vsel %vm135_vm2, %v5131_v2, %v5125_v57  ;;  %v5132_v55 = vsel %vm135_vm2, %v5129_v40, %v5131_v2 }
0x2f3b   :  { %6747 = vmatprep.subr.bf16.mxu0 %v6746_v54  ;;  %v5136_v26 = vmul.f32 %v5135_v48, %v7770_v43  ;;  %v5139_v8 = vmul.f32 %v5132_v55, %v7838_v39  ;;  %v5168_v48 = vmul.f32 %v5167_v63, %v7780_v51 }
0x2f3d   :  { %v5147_v10 = vpop.permute.xlu1 %5146  ;;  %v5191_v28 = vpop.permute.xlu0 %5190 }
0x2f3e   :  { %v5151_v52 = vsel %vm174_vm0, %v5147_v10, %v5141_v6 }
0x2f3f   :  { %v5152_v17 = vmul.f32 %v5151_v52, %v7761_v38  ;;  %v10727_v52 = vld [vmem:[#allocation17_spill] sm:$0xff] }
0x2f41   :  { %v6748_v12 = vpack.c.bf16 %v5152_v17, %v5136_v26  ;;  %v5145_v3 = vpop.permute.xlu1 %5144  ;;  %v5189_v40 = vpop.permute.xlu0 %5188 }
0x2f42   :  { %v5148_v4 = vsel %vm174_vm0, %v5145_v3, %v5147_v10  ;;  %v5149_v46 = vsel %vm174_vm0, %v5143_v24, %v5145_v3  ;;  %v5164_v10 = vsel %vm214_vm3, %v5161_v44, %v5163_v49  ;;  %v5198_v49 = vsel %vm294_vm5, %v5189_v40, %v5191_v28 }
0x2f43   :  { %v5154_v15 = vmul.f32 %v5149_v46, %v7791_v61  ;;  %v5155_v42 = vmul.f32 %v5148_v4, %v7794_v62  ;;  %6749 = vmatpush1.bf16.msra.mxu0 %v6748_v12  ;;  %v10729_v46 = vld [vmem:[#allocation20_spill] sm:$0xff] }
0x2f45   :  { %v6764_v41 = vpack.c.bf16 %v5154_v15, %v5138_v60  ;;  %v5159_v23 = vpop.permute.xlu1 %5158  ;;  %v6762_v56 = vpack.c.bf16 %v5155_v42, %v5139_v8  ;;  %v5207_v32 = vpop.permute.xlu0 %5206  ;;  %v10730_v8 = vld [vmem:[#allocation18_spill] sm:$0xff]  ;;  %v10731_v42 = vld [vmem:[#allocation19_spill] sm:$0xff] }
0x2f46   :  { %v5166_v57 = vsel %vm214_vm3, %v5157_v31, %v5159_v23  ;;  %v5165_v17 = vsel %vm214_vm3, %v5159_v23, %v5161_v44  ;;  %v10728_v31 = vld [vmem:[#allocation21_spill] sm:$0xff] }
0x2f47   :  { %6763 = vmatprep.subr.bf16.mxu1 %v6762_v56  ;;  %v5169_v5 = vmul.f32 %v5166_v57, %v7749_v30  ;;  %v5171_v12 = vmul.f32 %v5164_v10, %v10728_v31  ;;  %v5170_v60 = vmul.f32 %v5165_v17, %v10729_v46  ;;  %v10732_v57 = vld [vmem:[#allocation25_spill] sm:$0xff] }
0x2f48   :  { %6765 = vmatpush1.bf16.msra.mxu1 %v6764_v41 }
0x2f49   :  { %v5175_v20 = vpop.permute.xlu1 %5174  ;;  %v5223_v3 = vpop.permute.xlu0 %5222 }
0x2f4a   :  { %v5182_v6 = vsel %vm254_vm1, %v5173_v58, %v5175_v20 }
0x2f4b   :  { %v5185_v24 = vmul.f32 %v5182_v6, %v7721_v18  ;;  %v5200_v6 = vmul.f32 %v5198_v49, %v10732_v57  ;;  %v10734_v49 = vld [vmem:[#allocation26_spill] sm:$0xff] }
0x2f4d   :  { %v5179_v53 = vpop.permute.xlu1 %5178  ;;  %v6750_v2 = vpack.c.bf16 %v5185_v24, %v5169_v5  ;;  %v10733_v24 = vld [vmem:[#allocation22_spill] sm:$0xff]  ;;  %v5205_v63 = vpop.permute.xlu0 %5204 }
0x2f4e   :  { %v5183_v54 = vsel %vm254_vm1, %v5179_v53, %v5173_v58 }
0x2f4f   :  { %v5184_v26 = vmul.f32 %v5183_v54, %v10727_v52  ;;  %6751 = vmatprep.subr.bf16.mxu0 %v6750_v2  ;;  %v6756_v54 = vpack.c.bf16 %v5200_v6, %v10107_v1 }
0x2f51   :  { %v6752_v14 = vpack.c.bf16 %v5184_v26, %v5168_v48  ;;  %v5177_v55 = vpop.permute.xlu1 %5176 }
0x2f52   :  { %v5180_v4 = vsel %vm254_vm1, %v5177_v55, %v5179_v53  ;;  %v5181_v58 = vsel %vm254_vm1, %v5175_v20, %v5177_v55 }
0x2f53   :  { %v5186_v15 = vmul.f32 %v5181_v58, %v10730_v8  ;;  %v5187_v44 = vmul.f32 %v5180_v4, %v10731_v42  ;;  %6753 = vmatpush1.bf16.msra.mxu0 %v6752_v14 }
0x2f55   :  { %v6768_v41 = vpack.c.bf16 %v5186_v15, %v5170_v60  ;;  %v5193_v23 = vpop.permute.xlu1 %5192  ;;  %v6766_v56 = vpack.c.bf16 %v5187_v44, %v5171_v12  ;;  %v5211_v12 = vpop.permute.xlu0 %5210  ;;  %v5214_v44 = vsel %vm334_vm7, %v5205_v63, %v5207_v32 }
0x2f56   :  { %v5197_v5 = vsel %vm294_vm5, %v5191_v28, %v5193_v23 }
0x2f57   :  { %v5201_v20 = vmul.f32 %v5197_v5, %v10733_v24  ;;  %6767 = vmatprep.subr.bf16.mxu1 %v6766_v56  ;;  %v5216_v5 = vmul.f32 %v5214_v44, %v10692_v21 }
0x2f58   :  { %6769 = vmatpush1.bf16.msra.mxu1 %v6768_v41 }
0x2f59   :  { %v5195_v53 = vpop.permute.xlu1 %5194  ;;  %v6754_v2 = vpack.c.bf16 %v5201_v20, %v10115_v25  ;;  %v5239_v41 = vpop.permute.xlu0 %5238 }
0x2f5a   :  { %v5196_v48 = vsel %vm294_vm5, %v5193_v23, %v5195_v53  ;;  %v5199_v10 = vsel %vm294_vm5, %v5195_v53, %v5189_v40  ;;  %v5215_v53 = vsel %vm334_vm7, %v5211_v12, %v5205_v63 }
0x2f5b   :  { %v5202_v26 = vmul.f32 %v5196_v48, %v10684_v35  ;;  %v5203_v28 = vmul.f32 %v5199_v10, %v10675_v27  ;;  %6755 = vmatprep.subr.bf16.mxu0 %v6754_v2 }
0x2f5c   :  { %6757 = vmatpush1.bf16.msra.mxu0 %v6756_v54 }
0x2f5d   :  { %v6772_v17 = vpack.c.bf16 %v5202_v26, %v10109_v16  ;;  %v5209_v14 = vpop.permute.xlu1 %5208  ;;  %v6770_v55 = vpack.c.bf16 %v5203_v28, %v10125_v11  ;;  %v5219_v26 = vmul.f32 %v5215_v53, %v10699_v22 }
0x2f5e   :  { %v5213_v4 = vsel %vm334_vm7, %v5207_v32, %v5209_v14  ;;  %v5212_v2 = vsel %vm334_vm7, %v5209_v14, %v5211_v12  ;;  %v5237_v32 = vpop.permute.xlu0 %5236 }
0x2f5f   :  { %6771 = vmatprep.subr.bf16.mxu1 %v6770_v55  ;;  %v5217_v60 = vmul.f32 %v5213_v4, %v10734_v49  ;;  %v5218_v28 = vmul.f32 %v5212_v2, %v10698_v33  ;;  %v5246_v14 = vsel %vm414_vm8, %v5237_v32, %v5239_v41 }
0x2f60   :  { %6773 = vmatpush1.bf16.msra.mxu1 %v6772_v17 }
0x2f61   :  { %v5225_v58 = vpop.permute.xlu1 %5224 }
0x2f62   :  { %v5229_v40 = vsel %vm374_vm6, %v5223_v3, %v5225_v58 }
0x2f63   :  { %v5233_v15 = vmul.f32 %v5229_v40, %v10716_v34 }
0x2f65   :  { %v5221_v23 = vpop.permute.xlu1 %5220  ;;  %v6758_v56 = vpack.c.bf16 %v5233_v15, %v5217_v60  ;;  %v5248_v60 = vmul.f32 %v5246_v14, %v10722_v36  ;;  %v5252_v15 = vld [vmem:[#allocation2 + $0x3e0] sm:$0xff] }
0x2f66   :  { %v5230_v6 = vsel %vm374_vm6, %v5221_v23, %v5223_v3 }
0x2f67   :  { %v5232_v20 = vmul.f32 %v5230_v6, %v10717_v7  ;;  %6759 = vmatprep.subr.bf16.mxu0 %v6758_v56 }
0x2f69   :  { %v6760_v54 = vpack.c.bf16 %v5232_v20, %v5216_v5  ;;  %v5227_v48 = vpop.permute.xlu1 %5226 }
0x2f6a   :  { %v5228_v10 = vsel %vm374_vm6, %v5225_v58, %v5227_v48  ;;  %v5231_v3 = vsel %vm374_vm6, %v5227_v48, %v5221_v23 }
0x2f6b   :  { %v5234_v17 = vmul.f32 %v5228_v10, %v10705_v50  ;;  %v5235_v63 = vmul.f32 %v5231_v3, %v10712_v29  ;;  %6761 = vmatpush1.bf16.msra.mxu0 %v6760_v54 }
0x2f6d   :  { %v6776_v55 = vpack.c.bf16 %v5234_v17, %v5218_v28  ;;  %v5241_v12 = vpop.permute.xlu1 %5240  ;;  %v6774_v4 = vpack.c.bf16 %v5235_v63, %v5219_v26 }
0x2f6e   :  { %v5245_v58 = vsel %vm414_vm8, %v5239_v41, %v5241_v12 }
0x2f6f   :  { %v5249_v40 = vmul.f32 %v5245_v58, %v10720_v13  ;;  %6775 = vmatprep.subr.bf16.mxu1 %v6774_v4 }
0x2f70   :  { %6777 = vmatpush1.bf16.msra.mxu1 %v6776_v55 }
0x2f71   :  { %5272 = vmatprep.subr.mxu0 %v5249_v40  ;;  %v5243_v44 = vpop.permute.xlu1 %5242 }
0x2f72   :  { %v5244_v23 = vsel %vm414_vm8, %v5241_v12, %v5243_v44  ;;  %v5247_v56 = vsel %vm414_vm8, %v5243_v44, %v5237_v32  ;;  %5273 = vmatpush1.msra.mxu0 %v5248_v60  ;;  %v5398_v60 = vld [vmem:[%s10475_s2 + $0xf8] sm:$0xff] }
0x2f73   :  { %v5250_v6 = vmul.f32 %v5244_v23, %v10724_v47  ;;  %v5251_v41 = vmul.f32 %v5247_v56, %v10723_v45  ;;  %5808 = vmatmul.mubr.msk.f32.vlgmr.msra.gmra.mrb[52].mxu0 %vm850_vm10, %v5252_v15 }
0x2f74   :  { %5654 = vmatprep.mubr.f32.mxu0 %v10725_v0 }
0x2f75   :  { %5343 = vmatprep.subr.mxu1 %v5251_v41 }
0x2f76   :  { %5344 = vmatpush1.msra.mxu1 %v5250_v6 }
0x2f77   :  { %5809 = vmatmul.mubr.msk.f32.vlgmr.msra.gmra.mrb[34].mxu1 %vm850_vm10, %v5252_v15 }
0x2f78   :  { %5725 = vmatprep.mubr.f32.mxu1 %v10725_v0 }
0x3046   :  { %v5322_v5 = vpop.f32.mrb[52].mxu0 }
0x3047   :  { %v5324_v20 = vpop.f32.mrb[53].mxu0 }
0x3048   :  { %v5399_v53 = vadd.f32 %v5324_v20, %v5322_v5 }
0x304a   :  { %v5393_v2 = vpop.f32.mrb[34].mxu1 }
0x304b   :  { %v5400_v54 = vadd.f32 %v5399_v53, %v5393_v2  ;;  %v5395_v48 = vpop.f32.mrb[35].mxu1 }
0x304d   :  { %v5401_v32 = vadd.f32 %v5400_v54, %v5395_v48 }
0x304f   :  { %5402 = vadd.xlane.f32.xlu0 %v5401_v32 }
0x30dc   :  { %v5403_v10 = vpop.xlane.xlu0 %5402 }
0x30dd   :  { %v5404_v3 = vmul.f32 0.001953125, %v5403_v10 }
0x30df   :  { %v5405_v26 = vsub.f32 %v5322_v5, %v5404_v3  ;;  %v5406_v28 = vsub.f32 %v5324_v20, %v5404_v3  ;;  %v5407_v17 = vsub.f32 %v5393_v2, %v5404_v3  ;;  %v5408_v63 = vsub.f32 %v5395_v48, %v5404_v3 }
0x30e1   :  { %v5409_v14 = vmul.f32 %v5405_v26, %v5405_v26  ;;  %v5410_v55 = vmul.f32 %v5406_v28, %v5406_v28  ;;  %v5411_v12 = vmul.f32 %v5407_v17, %v5407_v17  ;;  %v5412_v58 = vmul.f32 %v5408_v63, %v5408_v63 }
0x30e3   :  { %v5413_v4 = vadd.f32 %v5410_v55, %v5409_v14 }
0x30e5   :  { %v5414_v0 = vadd.f32 %v5413_v4, %v5411_v12 }
0x30e7   :  { %v5415_v40 = vadd.f32 %v5414_v0, %v5412_v58 }
0x30e9   :  { %5416 = vadd.xlane.f32.xlu1 %v5415_v40 }
0x30fa   :  { %5433 = vperm.xlu1 %7223, %v5398_v60  }
0x3176   :  { %v5417_v15 = vpop.xlane.xlu1 %5416 }
0x3177   :  { %v5418_v44 = vmul.f32 0.001953125, %v5417_v15 }
0x3179   :  { %v5419_v23 = vadd.f32 1e-05, %v5418_v44 }
0x317a   :  { %v5434_v54 = vpop.permute.xlu1 %5433 }
0x317b   :  { %7289 = vrsqrt.f32 %v5419_v23 }
0x3185   :  { %v7290_v56 = vpop.eup %7289 }
0x3186   :  { %v5421_v6 = vmul.f32 %v7290_v56, %v5398_v60 }
0x3188   :  { %5424 = vperm.xlu0 %7224, %v5421_v6  }
0x3207   :  { %v5425_v41 = vpop.permute.xlu0 %5424 }
0x3208   :  { %v5427_v5 = vmul.f32 %v5425_v41, %v5405_v26  ;;  %v5428_v20 = vmul.f32 %v5425_v41, %v5406_v28  ;;  %v5429_v53 = vmul.f32 %v5425_v41, %v5407_v17  ;;  %v5430_v2 = vmul.f32 %v5425_v41, %v5408_v63 }
0x320a   :  { %v5436_v48 = vadd.f32 %v5434_v54, %v5427_v5  ;;  %v5437_v32 = vadd.f32 %v5434_v54, %v5428_v20  ;;  %v5438_v10 = vadd.f32 %v5434_v54, %v5429_v53  ;;  %v5439_v3 = vadd.f32 %v5434_v54, %v5430_v2 }
0x320c   :  { %v5440_v14 = vmul.f32 0.01, %v5436_v48  ;;  %v5441_v55 = vmul.f32 0.01, %v5437_v32  ;;  %v5442_v12 = vmul.f32 0.01, %v5438_v10 }
0x320d   :  { %v5443_v4 = vmul.f32 0.01, %v5439_v3 }
0x320e   :  { %v5444_v58 = vmax.f32 %v5436_v48, %v5440_v14  ;;  %v5445_v0 = vmax.f32 %v5437_v32, %v5441_v55  ;;  %v5446_v40 = vmax.f32 %v5438_v10, %v5442_v12 }
0x320f   :  { %v5447_v15 = vmax.f32 %v5439_v3, %v5443_v4 }
0x3210   :  { %v10287_v60 = vadd.f32 %v5444_v58, %v10107_v1  ;;  %v10290_v26 = vadd.f32 %v5445_v0, %v10115_v25  ;;  %v10297_v28 = vadd.f32 %v5446_v40, %v10109_v16  ;;  %v5581_v1 = vld [vmem:[%s10475_s2 + $0x100] sm:$0xf] }
0x3211   :  { %v10300_v17 = vadd.f32 %v5447_v15, %v10125_v11 }
0x3212   :  { %5454 = vrot.lane.b32.xlu1 %v10290_v26, %s7451_s28  ;;  %5452 = vrot.lane.b32.xlu0 %v10287_v60, %s7451_s28 }
0x3216   :  { %5458 = vrot.lane.b32.xlu1 %v10300_v17, %s7451_s28  ;;  %5456 = vrot.lane.b32.xlu0 %v10297_v28, %s7451_s28 }
0x321a   :  { %5470 = vrot.lane.b32.xlu1 %v10290_v26, %s7450_s5  ;;  %5468 = vrot.lane.b32.xlu0 %v10287_v60, %s7450_s5 }
0x321e   :  { %5474 = vrot.lane.b32.xlu1 %v10300_v17, %s7450_s5  ;;  %5472 = vrot.lane.b32.xlu0 %v10297_v28, %s7450_s5 }
0x3222   :  { %5486 = vrot.lane.b32.xlu1 %v10290_v26, %s7452_s0  ;;  %5484 = vrot.lane.b32.xlu0 %v10287_v60, %s7452_s0 }
0x3226   :  { %5490 = vrot.lane.b32.xlu1 %v10300_v17, %s7452_s0  ;;  %5488 = vrot.lane.b32.xlu0 %v10297_v28, %s7452_s0 }
0x322a   :  { %5502 = vrot.lane.b32.xlu1 %v10290_v26, %s7449_s13  ;;  %5500 = vrot.lane.b32.xlu0 %v10287_v60, %s7449_s13 }
0x322e   :  { %5506 = vrot.lane.b32.xlu1 %v10300_v17, %s7449_s13  ;;  %5504 = vrot.lane.b32.xlu0 %v10297_v28, %s7449_s13 }
0x3232   :  { %5518 = vrot.lane.b32.xlu1 %v10290_v26, %s7453_s15  ;;  %5516 = vrot.lane.b32.xlu0 %v10287_v60, %s7453_s15 }
0x3236   :  { %5522 = vrot.lane.b32.xlu1 %v10300_v17, %s7453_s15  ;;  %5520 = vrot.lane.b32.xlu0 %v10297_v28, %s7453_s15 }
0x323a   :  { %5534 = vrot.lane.b32.xlu1 %v10290_v26, %s7455_s3  ;;  %5532 = vrot.lane.b32.xlu0 %v10287_v60, %s7455_s3 }
0x323e   :  { %5538 = vrot.lane.b32.xlu1 %v10300_v17, %s7455_s3  ;;  %5536 = vrot.lane.b32.xlu0 %v10297_v28, %s7455_s3 }
0x3242   :  { %5550 = vrot.lane.b32.xlu1 %v10290_v26, %s7454_s17  ;;  %5548 = vrot.lane.b32.xlu0 %v10287_v60, %s7454_s17 }
0x3246   :  { %5554 = vrot.lane.b32.xlu1 %v10300_v17, %s7454_s17  ;;  %5552 = vrot.lane.b32.xlu0 %v10297_v28, %s7454_s17 }
0x324a   :  { %5566 = vrot.lane.b32.xlu1 %v10290_v26, %s7457_s4  ;;  %5564 = vrot.lane.b32.xlu0 %v10287_v60, %s7457_s4 }
0x324e   :  { %5570 = vrot.lane.b32.xlu1 %v10300_v17, %s7457_s4  ;;  %5568 = vrot.lane.b32.xlu0 %v10297_v28, %s7457_s4 }
0x3252   :  { %5584 = vperm.xlu0 %7224, %v5581_v1  }
0x3284   :  { %v5455_v16 = vpop.permute.xlu1 %5454  ;;  %v5453_v25 = vpop.permute.xlu0 %5452 }
0x3285   :  { %v5462_v44 = vsel %vm135_vm2, %v5453_v25, %v5455_v16 }
0x3286   :  { %v5465_v5 = vmul.f32 %v5462_v44, %v10726_v59 }
0x3288   :  { %v5459_v11 = vpop.permute.xlu1 %5458  ;;  %v5457_v63 = vpop.permute.xlu0 %5456 }
0x3289   :  { %v5463_v6 = vsel %vm135_vm2, %v5459_v11, %v5453_v25  ;;  %v5461_v20 = vsel %vm135_vm2, %v5455_v16, %v5457_v63  ;;  %v5460_v2 = vsel %vm135_vm2, %v5457_v63, %v5459_v11 }
0x328a   :  { %v5464_v54 = vmul.f32 %v5463_v6, %v7770_v43  ;;  %v5466_v3 = vmul.f32 %v5461_v20, %v7834_v37 }
0x328c   :  { %v5471_v23 = vpop.permute.xlu1 %5470  ;;  %v5469_v56 = vpop.permute.xlu0 %5468 }
0x328d   :  { %v5478_v41 = vsel %vm174_vm0, %v5469_v56, %v5471_v23 }
0x328e   :  { %v5481_v53 = vmul.f32 %v5478_v41, %v7724_v19  ;;  %v5467_v19 = vmul.f32 %v5460_v2, %v7838_v39 }
0x3290   :  { %v5475_v48 = vpop.permute.xlu1 %5474  ;;  %v5473_v32 = vpop.permute.xlu0 %5472  ;;  %v6778_v10 = vpack.c.bf16 %v5481_v53, %v5465_v5 }
0x3291   :  { %v5479_v14 = vsel %vm174_vm0, %v5475_v48, %v5469_v56  ;;  %v5476_v59 = vsel %vm174_vm0, %v5473_v32, %v5475_v48  ;;  %v5477_v55 = vsel %vm174_vm0, %v5471_v23, %v5473_v32 }
0x3292   :  { %v5480_v12 = vmul.f32 %v5479_v14, %v7761_v38  ;;  %v5482_v43 = vmul.f32 %v5477_v55, %v7791_v61  ;;  %v5483_v4 = vmul.f32 %v5476_v59, %v7794_v62  ;;  %6779 = vmatprep.subr.bf16.mxu0 %v6778_v10 }
0x3294   :  { %v6780_v58 = vpack.c.bf16 %v5480_v12, %v5464_v54  ;;  %v6796_v37 = vpack.c.bf16 %v5482_v43, %v5466_v3  ;;  %v5487_v0 = vpop.permute.xlu1 %5486  ;;  %v5485_v40 = vpop.permute.xlu0 %5484  ;;  %v6794_v15 = vpack.c.bf16 %v5483_v4, %v5467_v19 }
0x3295   :  { %v5494_v39 = vsel %vm214_vm3, %v5485_v40, %v5487_v0 }
0x3296   :  { %6781 = vmatpush1.bf16.msra.mxu0 %v6780_v58  ;;  %6795 = vmatprep.subr.bf16.mxu1 %v6794_v15  ;;  %v5497_v11 = vmul.f32 %v5494_v39, %v7749_v30 }
0x3297   :  { %6797 = vmatpush1.bf16.msra.mxu1 %v6796_v37 }
0x3298   :  { %v5491_v1 = vpop.permute.xlu1 %5490  ;;  %v5489_v16 = vpop.permute.xlu0 %5488 }
0x3299   :  { %v5495_v61 = vsel %vm214_vm3, %v5491_v1, %v5485_v40  ;;  %v5493_v63 = vsel %vm214_vm3, %v5487_v0, %v5489_v16  ;;  %v5492_v23 = vsel %vm214_vm3, %v5489_v16, %v5491_v1 }
0x329a   :  { %v5496_v56 = vmul.f32 %v5495_v61, %v7780_v51  ;;  %v5498_v20 = vmul.f32 %v5493_v63, %v10729_v46 }
0x329c   :  { %v5503_v25 = vpop.permute.xlu1 %5502  ;;  %v5501_v38 = vpop.permute.xlu0 %5500 }
0x329d   :  { %v5510_v62 = vsel %vm254_vm1, %v5501_v38, %v5503_v25 }
0x329e   :  { %v5513_v44 = vmul.f32 %v5510_v62, %v7721_v18  ;;  %v5499_v18 = vmul.f32 %v5492_v23, %v10728_v31 }
0x32a0   :  { %v5507_v6 = vpop.permute.xlu1 %5506  ;;  %v5505_v41 = vpop.permute.xlu0 %5504  ;;  %v6782_v5 = vpack.c.bf16 %v5513_v44, %v5497_v11 }
0x32a1   :  { %v5511_v53 = vsel %vm254_vm1, %v5507_v6, %v5501_v38  ;;  %v5508_v30 = vsel %vm254_vm1, %v5505_v41, %v5507_v6  ;;  %v5509_v2 = vsel %vm254_vm1, %v5503_v25, %v5505_v41 }
0x32a2   :  { %v5512_v54 = vmul.f32 %v5511_v53, %v10727_v52  ;;  %v5514_v51 = vmul.f32 %v5509_v2, %v10730_v8  ;;  %v5515_v48 = vmul.f32 %v5508_v30, %v10731_v42  ;;  %6783 = vmatprep.subr.bf16.mxu0 %v6782_v5 }
0x32a4   :  { %v6784_v32 = vpack.c.bf16 %v5512_v54, %v5496_v56  ;;  %v6800_v46 = vpack.c.bf16 %v5514_v51, %v5498_v20  ;;  %v5519_v10 = vpop.permute.xlu1 %5518  ;;  %v5517_v3 = vpop.permute.xlu0 %5516  ;;  %v6798_v14 = vpack.c.bf16 %v5515_v48, %v5499_v18 }
0x32a5   :  { %v5526_v59 = vsel %vm294_vm5, %v5517_v3, %v5519_v10 }
0x32a6   :  { %6785 = vmatpush1.bf16.msra.mxu0 %v6784_v32  ;;  %6799 = vmatprep.subr.bf16.mxu1 %v6798_v14  ;;  %v5528_v52 = vmul.f32 %v5526_v59, %v10732_v57  ;;  %v5580_v32 = vld [vmem:[#allocation2 + $0x400] sm:$0xf] }
0x32a7   :  { %6801 = vmatpush1.bf16.msra.mxu1 %v6800_v46 }
0x32a8   :  { %v5523_v55 = vpop.permute.xlu1 %5522  ;;  %v5521_v31 = vpop.permute.xlu0 %5520  ;;  %v6788_v15 = vpack.c.bf16 %v5528_v52, %v10287_v60 }
0x32a9   :  { %v5527_v8 = vsel %vm294_vm5, %v5523_v55, %v5517_v3  ;;  %v5524_v42 = vsel %vm294_vm5, %v5521_v31, %v5523_v55  ;;  %v5525_v19 = vsel %vm294_vm5, %v5519_v10, %v5521_v31 }
0x32aa   :  { %v5531_v12 = vmul.f32 %v5527_v8, %v10675_v27  ;;  %v5529_v43 = vmul.f32 %v5525_v19, %v10733_v24  ;;  %v5530_v4 = vmul.f32 %v5524_v42, %v10684_v35 }
0x32ac   :  { %v6804_v58 = vpack.c.bf16 %v5530_v4, %v10297_v28  ;;  %v5535_v37 = vpop.permute.xlu1 %5534  ;;  %v5533_v0 = vpop.permute.xlu0 %5532  ;;  %v6786_v57 = vpack.c.bf16 %v5529_v43, %v10290_v26  ;;  %v6802_v40 = vpack.c.bf16 %v5531_v12, %v10300_v17 }
0x32ad   :  { %v5542_v17 = vsel %vm334_vm7, %v5533_v0, %v5535_v37 }
0x32ae   :  { %6787 = vmatprep.subr.bf16.mxu0 %v6786_v57  ;;  %6803 = vmatprep.subr.bf16.mxu1 %v6802_v40  ;;  %v5544_v6 = vmul.f32 %v5542_v17, %v10692_v21 }
0x32af   :  { %6789 = vmatpush1.bf16.msra.mxu0 %v6788_v15  ;;  %6805 = vmatpush1.bf16.msra.mxu1 %v6804_v58 }
0x32b0   :  { %v5539_v1 = vpop.permute.xlu1 %5538  ;;  %v5537_v27 = vpop.permute.xlu0 %5536 }
0x32b1   :  { %v5543_v35 = vsel %vm334_vm7, %v5539_v1, %v5533_v0  ;;  %v5541_v28 = vsel %vm334_vm7, %v5535_v37, %v5537_v27  ;;  %v5540_v60 = vsel %vm334_vm7, %v5537_v27, %v5539_v1 }
0x32b2   :  { %v5547_v39 = vmul.f32 %v5543_v35, %v10699_v22  ;;  %v5545_v25 = vmul.f32 %v5541_v28, %v10734_v49  ;;  %v5546_v23 = vmul.f32 %v5540_v60, %v10698_v33 }
0x32b4   :  { %v5551_v16 = vpop.permute.xlu1 %5550  ;;  %v5549_v24 = vpop.permute.xlu0 %5548 }
0x32b5   :  { %v5558_v26 = vsel %vm374_vm6, %v5549_v24, %v5551_v16 }
0x32b6   :  { %v5560_v62 = vmul.f32 %v5558_v26, %v10717_v7 }
0x32b8   :  { %v5555_v38 = vpop.permute.xlu1 %5554  ;;  %v5553_v61 = vpop.permute.xlu0 %5552  ;;  %v6792_v30 = vpack.c.bf16 %v5560_v62, %v5544_v6 }
0x32b9   :  { %v5559_v11 = vsel %vm374_vm6, %v5555_v38, %v5549_v24  ;;  %v5556_v63 = vsel %vm374_vm6, %v5553_v61, %v5555_v38  ;;  %v5557_v44 = vsel %vm374_vm6, %v5551_v16, %v5553_v61 }
0x32ba   :  { %v5563_v56 = vmul.f32 %v5559_v11, %v10712_v29  ;;  %v5561_v22 = vmul.f32 %v5557_v44, %v10716_v34  ;;  %v5562_v49 = vmul.f32 %v5556_v63, %v10705_v50 }
0x32bc   :  { %v6808_v7 = vpack.c.bf16 %v5562_v49, %v5546_v23  ;;  %v5567_v41 = vpop.permute.xlu1 %5566  ;;  %v5565_v5 = vpop.permute.xlu0 %5564  ;;  %v6790_v20 = vpack.c.bf16 %v5561_v22, %v5545_v25  ;;  %v6806_v53 = vpack.c.bf16 %v5563_v56, %v5547_v39 }
0x32bd   :  { %v5574_v33 = vsel %vm414_vm8, %v5565_v5, %v5567_v41 }
0x32be   :  { %6791 = vmatprep.subr.bf16.mxu0 %v6790_v20  ;;  %6807 = vmatprep.subr.bf16.mxu1 %v6806_v53  ;;  %v5576_v48 = vmul.f32 %v5574_v33, %v10722_v36 }
0x32bf   :  { %6793 = vmatpush1.bf16.msra.mxu0 %v6792_v30  ;;  %6809 = vmatpush1.bf16.msra.mxu1 %v6808_v7 }
0x32c0   :  { %v5571_v29 = vpop.permute.xlu1 %5570  ;;  %v5569_v2 = vpop.permute.xlu0 %5568 }
0x32c1   :  { %v5575_v50 = vsel %vm414_vm8, %v5571_v29, %v5565_v5  ;;  %v5572_v21 = vsel %vm414_vm8, %v5569_v2, %v5571_v29  ;;  %v5573_v34 = vsel %vm414_vm8, %v5567_v41, %v5569_v2 }
0x32c2   :  { %v5579_v18 = vmul.f32 %v5575_v50, %v10723_v45  ;;  %v5577_v54 = vmul.f32 %v5573_v34, %v10720_v13  ;;  %v5578_v51 = vmul.f32 %v5572_v21, %v10724_v47 }
0x32c4   :  { %5606 = vmatprep.subr.mxu0 %v5577_v54  ;;  %5677 = vmatprep.subr.mxu1 %v5579_v18 }
0x32c5   :  { %5607 = vmatpush1.msra.mxu0 %v5576_v48  ;;  %5678 = vmatpush1.msra.mxu1 %v5578_v51 }
0x32c6   :  { %5810 = vmatmul.mubr.msk.f32.vlgmr.msra.gmra.mrb[54].mxu0 %vm850_vm10, %v5580_v32  ;;  %5811 = vmatmul.mubr.msk.f32.vlgmr.msra.gmra.mrb[36].mxu1 %vm850_vm10, %v5580_v32 }
0x32d1   :  { %v5585_v46 = vpop.permute.xlu0 %5584 }
0x3399   :  { %v5656_v9 = vpop.f32.mrb[54].mxu0  ;;  %v5727_v10 = vpop.f32.mrb[36].mxu1 }
0x339a   :  { %v5657_v3 = vadd.f32 %v5656_v9, %v5585_v46  ;;  %v5728_v45 = vadd.f32 %v5727_v10, %v5585_v46  ;;  %v5658_v14 = vpop.f32.mrb[55].mxu0  ;;  %v5729_v13 = vpop.f32.mrb[37].mxu1 }
0x339b   :  { %v5659_v59 = vadd.f32 %v5658_v14, %v5585_v46  ;;  %v5730_v47 = vadd.f32 %v5729_v13, %v5585_v46 }
0x339d   :  { %v5736_v55 = vcombine.low %v5657_v3, %v5659_v59  ;;  %v5737_v36 = vcombine.low %v5728_v45, %v5730_v47 }
0x339f   :  { %5740 = vst [vmem:[%s10483_s10] sm:$0xff] %v5736_v55  ;;  %5741 = vst [vmem:[%s10483_s10 + $0x8] sm:$0xff] %v5737_v36 }
0x33a0   :  { %5746 = vsyncpa [#allocation3], 1 }
0x33a1   :  { %5747 = vsyncpa [#allocation5], 1 }
0x33a2   :  { %5748 = vsyncpa [#allocation8], 1 }
0x33a3   :  { %5749 = vsyncpa [#allocation11], 1 }

</bundles_post_ra>
